<compile_context>
chip_gen: v6e
topology: v6e:2x2x1
jax: 0.10.0
libtpu: 0.0.40
codegen_flags: <defaults>
</compile_context>

<pallas_src>
import functools

import jax
import jax.numpy as jnp
from jax import lax
from jax.experimental import pallas as pl
from jax.experimental.pallas import tpu as pltpu

# ---------------- model hyper-parameters (synthetic cfg) ----------------
N_DIMS = 6                       # RayParam output dims (pluecker)
NUM_FREQS = 2                    # PE frequencies for embedding_pe and color_pe
NUM_BANDS = 2 * NUM_FREQS + 1    # identity + sin/cos per freq = 5
H_EMB = 64                       # embedding_net hidden width
E_OUT = 64                       # embedding_net out_channels
H_COL = 64                       # color_model hidden width
NUM_OUTPUTS = 3                  # cfg.num_outputs (RGB)

RAY_ROWS = 8                     # 6 pluecker dims padded to 8 sublanes
EMB_PE_ROWS = NUM_BANDS * RAY_ROWS   # 40 (each 6-row band on an 8-row stride)
EMB_PE_CH = N_DIMS * NUM_BANDS   # 30 (original channel count)
COL_PE_CH = E_OUT * NUM_BANDS    # 320

DEFAULT_TILE_M = 4096            # rays per grid step (sweep 2048-8192)


def _round_up(x, m):
    return (x + m - 1) // m * m


# ---------------- Pallas kernel (feature-major [C, TM]) ----------------
def _lf_kernel(rays_ref,
               w1e_ref, b1e_ref, w2e_ref, b2e_ref, w3e_ref, b3e_ref,
               w1c_ref, b1c_ref, w2c_ref, b2c_ref, w3c_ref, b3c_ref,
               out_ref):
    f32, bf16 = jnp.float32, jnp.bfloat16

    x = rays_ref[...]                               # [8, TM] f32: rows 0-2 o, 3-5 d
    tm = x.shape[1]

    # ---- RayParam (pluecker): d / ||d||, moment m = o x d, 128-lane dense ----
    o0, o1, o2 = x[0:1, :], x[1:2, :], x[2:3, :]
    u0, u1, u2 = x[3:4, :], x[4:5, :], x[5:6, :]
    inv = lax.rsqrt(u0 * u0 + u1 * u1 + u2 * u2)
    d0, d1, d2 = u0 * inv, u1 * inv, u2 * inv
    m0 = o1 * d2 - o2 * d1
    m1 = o2 * d0 - o0 * d2
    m2 = o0 * d1 - o1 * d0
    p = jnp.concatenate(
        [d0, d1, d2, m0, m1, m2, jnp.zeros((RAY_ROWS - N_DIMS, tm), f32)], axis=0)

    # ---- embedding PE: sin(2p)/cos(2p) via double angle (VPU, not extra EUP) ----
    s1 = jnp.sin(p)
    c1 = jnp.cos(p)
    s2 = 2.0 * s1 * c1
    c2 = 1.0 - 2.0 * s1 * s1
    # [40, TM]; every piece is [8, TM] -> sublane-aligned concat (no lane rotates).
    # Junk rows (6,7 of each band) hit zero weight rows.
    pe = jnp.concatenate([p, s1, c1, s2, c2], axis=0)

    # ---- embedding_net MLP, transposed: [64,K] @ [K,TM], bf16 MXU / f32 acc ----
    h = jnp.dot(w1e_ref[...], pe.astype(bf16), preferred_element_type=f32)
    h = jnp.maximum(h + b1e_ref[...], 0.0)
    h = jnp.dot(w2e_ref[...], h.astype(bf16), preferred_element_type=f32)
    h = jnp.maximum(h + b2e_ref[...], 0.0)
    e = jnp.dot(w3e_ref[...], h.astype(bf16), preferred_element_type=f32)
    e = e + b3e_ref[...]                            # [64, TM]

    # ---- color PE + color layer 1: 5 accumulated K=64 GEMMs (no 320-wide
    #      activation is ever materialized / copied) ----
    es1 = jnp.sin(e)
    ec1 = jnp.cos(e)
    es2 = 2.0 * es1 * ec1
    ec2 = 1.0 - 2.0 * es1 * es1
    acc = jnp.dot(w1c_ref[0], e.astype(bf16), preferred_element_type=f32)
    for j, f in ((1, es1), (2, ec1), (3, es2), (4, ec2)):
        acc = acc + jnp.dot(w1c_ref[j], f.astype(bf16), preferred_element_type=f32)
    c = jnp.maximum(acc + b1c_ref[...], 0.0)

    # ---- color_model hidden + output head; [3,TM] store is lane-dense ----
    c = jnp.dot(w2c_ref[...], c.astype(bf16), preferred_element_type=f32)
    c = jnp.maximum(c + b2c_ref[...], 0.0)          # [64, TM]
    out = jnp.dot(w3c_ref[...], c.astype(bf16), preferred_element_type=f32)
    out_ref[...] = (out + b3c_ref[...]).astype(out_ref.dtype)


def _const_spec(shape):
    zeros = (0,) * len(shape)
    return pl.BlockSpec(shape, lambda i, _z=zeros: _z)


def _prep_weights(params):
    """Pre-transpose weights for the feature-major kernel (bf16 MXU operands)."""
    (w1e, b1e, w2e, b2e, w3e, b3e,
     w1c, b1c, w2c, b2c, w3c, b3c) = params
    bf16 = jnp.bfloat16

    # Spread each 6-row PE band of w1e onto an 8-row (sublane-aligned) stride so it
    # matches the kernel's [8,TM]-piece concat; the 2 pad rows per band stay zero.
    w1e_exp = jnp.zeros((EMB_PE_ROWS, H_EMB), jnp.float32)
    for band in range(NUM_BANDS):
        w1e_exp = w1e_exp.at[band * RAY_ROWS:band * RAY_ROWS + N_DIMS].set(
            w1e[band * N_DIMS:(band + 1) * N_DIMS])

    # Split color layer-1 weight into per-band [H_COL, E_OUT] chunks; the kernel
    # indexes the leading dim so no lane-misaligned slicing is needed.
    w1c_bands = jnp.transpose(w1c.reshape(NUM_BANDS, E_OUT, H_COL), (0, 2, 1))

    return (
        w1e_exp.T.astype(bf16), b1e.reshape(H_EMB, 1),        # [64,40] bf16, [64,1] f32
        w2e.T.astype(bf16), b2e.reshape(H_EMB, 1),
        w3e.T.astype(bf16), b3e.reshape(E_OUT, 1),
        w1c_bands.astype(bf16), b1c.reshape(H_COL, 1),        # [5,64,64] bf16
        w2c.T.astype(bf16), b2c.reshape(H_COL, 1),
        w3c.T.astype(bf16), b3c.reshape(NUM_OUTPUTS, 1),      # [3,64] bf16, [3,1] f32
    )


@functools.partial(jax.jit, static_argnames=("tile_m",))
def lightfield_forward(rays, params, *, tile_m=DEFAULT_TILE_M):
    """LightfieldModel.forward(rays) -> [N, NUM_OUTPUTS] (default cfg branch)."""
    n = rays.shape[0]
    # Lane-aligned tile; cap so the grid has >=2 steps when N allows (keeps both
    # v7x TensorCores busy under dimension_semantics=('parallel',)).
    tm_cap = _round_up(max((n + 1) // 2, 1), 256)
    tm = min(_round_up(tile_m, 256), tm_cap)
    n_pad = _round_up(n, tm)

    # Feature-major [8, n_pad] rays: 6 channels padded to 8 rows, ragged tail padded
    # with benign dummy rays (direction (1,1,1), no NaNs); one fused pad+transpose.
    x_t = jnp.pad(rays.astype(jnp.float32),
                  ((0, n_pad - n), (0, RAY_ROWS - N_DIMS)),
                  constant_values=1.0).T

    weight_args = _prep_weights(params)

    in_specs = [pl.BlockSpec((RAY_ROWS, tm), lambda i: (0, i))]
    in_specs += [_const_spec(w.shape) for w in weight_args]

    out_t = pl.pallas_call(
        _lf_kernel,
        out_shape=jax.ShapeDtypeStruct((NUM_OUTPUTS, n_pad), jnp.float32),
        grid_spec=pltpu.PrefetchScalarGridSpec(
            num_scalar_prefetch=0,
            grid=(n_pad // tm,),
            in_specs=in_specs,
            out_specs=pl.BlockSpec((NUM_OUTPUTS, tm), lambda i: (0, i)),
        ),
        compiler_params=pltpu.CompilerParams(
            dimension_semantics=("parallel",),
            vmem_limit_bytes=48 * 1024 * 1024,
        ),
    )(x_t, *weight_args)

    return out_t[:, :n].T                                      # [N, NUM_OUTPUTS]


# ---------------- deterministic parameter construction ----------------
def init_params(key):
    def dense(k, fan_in, fan_out):
        return (jax.random.normal(k, (fan_in, fan_out), jnp.float32)
                / jnp.sqrt(jnp.float32(fan_in)))

    ks = jax.random.split(key, 12)
    w1e = dense(ks[0], EMB_PE_CH, H_EMB)
    b1e = 0.1 * jax.random.normal(ks[1], (1, H_EMB), jnp.float32)
    w2e = dense(ks[2], H_EMB, H_EMB)
    b2e = 0.1 * jax.random.normal(ks[3], (1, H_EMB), jnp.float32)
    w3e = dense(ks[4], H_EMB, E_OUT)
    b3e = 0.1 * jax.random.normal(ks[5], (1, E_OUT), jnp.float32)
    w1c = dense(ks[6], COL_PE_CH, H_COL)
    b1c = 0.1 * jax.random.normal(ks[7], (1, H_COL), jnp.float32)
    w2c = dense(ks[8], H_COL, H_COL)
    b2c = 0.1 * jax.random.normal(ks[9], (1, H_COL), jnp.float32)
    w3c = dense(ks[10], H_COL, NUM_OUTPUTS)
    b3c = 0.1 * jax.random.normal(ks[11], (1, NUM_OUTPUTS), jnp.float32)
    return (w1e, b1e, w2e, b2e, w3e, b3e, w1c, b1c, w2c, b2c, w3c, b3c)


# ---------- pure-JAX reference (bf16-at-the-dot, f32 accumulation) ----------
def reference_forward(rays, params):
    (w1e, b1e, w2e, b2e, w3e, b3e,
     w1c, b1c, w2c, b2c, w3c, b3c) = params
    f32, bf16 = jnp.float32, jnp.bfloat16

    x = rays.astype(f32)
    o, d = x[..., :3], x[..., 3:6]
    d = d * lax.rsqrt(jnp.sum(d * d, axis=-1, keepdims=True))
    p = jnp.concatenate([d, jnp.cross(o, d)], axis=-1)

    def pe(v):
        feats = [v]
        for k in range(NUM_FREQS):
            f = 2.0 ** k
            feats += [jnp.sin(f * v), jnp.cos(f * v)]
        return jnp.concatenate(feats, axis=-1)

    def dot(a, w):
        return jnp.dot(a.astype(bf16), w.astype(bf16), preferred_element_type=f32)

    h = jnp.maximum(dot(pe(p), w1e) + b1e, 0.0)
    h = jnp.maximum(dot(h, w2e) + b2e, 0.0)
    e = dot(h, w3e) + b3e
    c = jnp.maximum(dot(pe(e), w1c) + b1c, 0.0)
    c = jnp.maximum(dot(c, w2c) + b2c, 0.0)
    return dot(c, w3c) + b3c


if __name__ == "__main__":
    key = jax.random.PRNGKey(0)
    k_rays, k_params = jax.random.split(key)

    N = 600   # small, deliberately NOT a tile multiple (exercises padding)
    rays = jax.random.normal(k_rays, (N, 6), jnp.float32)
    # keep directions away from zero norm
    rays = rays.at[:, 3:6].add(jnp.sign(rays[:, 3:6]) * 0.1 + 1e-3)

    params = init_params(k_params)
    ref = reference_forward(rays, params)

    # default tile: capped to 2 grid steps for this N (ragged tail padded)
    out_a = jax.block_until_ready(lightfield_forward(rays, params))
    # small tile: multi-step grid path
    out_b = jax.block_until_ready(lightfield_forward(rays, params, tile_m=256))

    for out in (out_a, out_b):
        assert out.shape == (N, NUM_OUTPUTS)
        err = float(jnp.max(jnp.abs(out - ref)))
        assert err < 1e-2, f"max abs err {err}"

    print("KERNEL_OK")
</pallas_src>

<mosaic_0001>
module attributes {stable_mosaic.version = 11 : i64} {
  func.func @_lf_kernel(%arg0: i32, %arg1: memref<8x512xf32, #tpu.memory_space<vmem>>, %arg2: memref<64x40xbf16, #tpu.memory_space<vmem>>, %arg3: memref<64x1xf32, #tpu.memory_space<vmem>>, %arg4: memref<64x64xbf16, #tpu.memory_space<vmem>>, %arg5: memref<64x1xf32, #tpu.memory_space<vmem>>, %arg6: memref<64x64xbf16, #tpu.memory_space<vmem>>, %arg7: memref<64x1xf32, #tpu.memory_space<vmem>>, %arg8: memref<5x64x64xbf16, #tpu.memory_space<vmem>>, %arg9: memref<64x1xf32, #tpu.memory_space<vmem>>, %arg10: memref<64x64xbf16, #tpu.memory_space<vmem>>, %arg11: memref<64x1xf32, #tpu.memory_space<vmem>>, %arg12: memref<3x64xbf16, #tpu.memory_space<vmem>>, %arg13: memref<3x1xf32, #tpu.memory_space<vmem>>, %arg14: memref<3x512xf32, #tpu.memory_space<vmem>>) attributes {dimension_semantics = [#tpu.dimension_semantics<parallel>], iteration_bounds = array<i64: 2>, scalar_prefetch = 0 : i64, scratch_operands = 0 : i64, tpu.core_type = #tpu.core_type<tc>, window_params = [{transform_indices = @transform_0, window_bounds = array<i64: 8, 512>}, {pipeline_mode = #tpu.pipeline_mode<synchronous>, transform_indices = @transform_1, window_bounds = array<i64: 64, 40>}, {pipeline_mode = #tpu.pipeline_mode<synchronous>, transform_indices = @transform_2, window_bounds = array<i64: 64, 1>}, {pipeline_mode = #tpu.pipeline_mode<synchronous>, transform_indices = @transform_3, window_bounds = array<i64: 64, 64>}, {pipeline_mode = #tpu.pipeline_mode<synchronous>, transform_indices = @transform_4, window_bounds = array<i64: 64, 1>}, {pipeline_mode = #tpu.pipeline_mode<synchronous>, transform_indices = @transform_5, window_bounds = array<i64: 64, 64>}, {pipeline_mode = #tpu.pipeline_mode<synchronous>, transform_indices = @transform_6, window_bounds = array<i64: 64, 1>}, {pipeline_mode = #tpu.pipeline_mode<synchronous>, transform_indices = @transform_7, window_bounds = array<i64: 5, 64, 64>}, {pipeline_mode = #tpu.pipeline_mode<synchronous>, transform_indices = @transform_8, window_bounds = array<i64: 64, 1>}, {pipeline_mode = #tpu.pipeline_mode<synchronous>, transform_indices = @transform_9, window_bounds = array<i64: 64, 64>}, {pipeline_mode = #tpu.pipeline_mode<synchronous>, transform_indices = @transform_10, window_bounds = array<i64: 64, 1>}, {pipeline_mode = #tpu.pipeline_mode<synchronous>, transform_indices = @transform_11, window_bounds = array<i64: 3, 64>}, {pipeline_mode = #tpu.pipeline_mode<synchronous>, transform_indices = @transform_12, window_bounds = array<i64: 3, 1>}, {transform_indices = @transform_13, window_bounds = array<i64: 3, 512>}]} {
    %c0 = arith.constant 0 : index
    %c0_0 = arith.constant 0 : index
    %0 = vector.load %arg1[%c0, %c0_0] : memref<8x512xf32, #tpu.memory_space<vmem>>, vector<8x512xf32>
    %1 = vector.extract_strided_slice %0 {offsets = [0, 0], sizes = [1, 512], strides = [1, 1]} : vector<8x512xf32> to vector<1x512xf32>
    %2 = vector.extract_strided_slice %0 {offsets = [1, 0], sizes = [1, 512], strides = [1, 1]} : vector<8x512xf32> to vector<1x512xf32>
    %3 = vector.extract_strided_slice %0 {offsets = [2, 0], sizes = [1, 512], strides = [1, 1]} : vector<8x512xf32> to vector<1x512xf32>
    %4 = vector.extract_strided_slice %0 {offsets = [3, 0], sizes = [1, 512], strides = [1, 1]} : vector<8x512xf32> to vector<1x512xf32>
    %5 = vector.extract_strided_slice %0 {offsets = [4, 0], sizes = [1, 512], strides = [1, 1]} : vector<8x512xf32> to vector<1x512xf32>
    %6 = vector.extract_strided_slice %0 {offsets = [5, 0], sizes = [1, 512], strides = [1, 1]} : vector<8x512xf32> to vector<1x512xf32>
    %7 = arith.mulf %4, %4 : vector<1x512xf32>
    %8 = arith.mulf %5, %5 : vector<1x512xf32>
    %9 = arith.addf %7, %8 : vector<1x512xf32>
    %10 = arith.mulf %6, %6 : vector<1x512xf32>
    %11 = arith.addf %9, %10 : vector<1x512xf32>
    %12 = math.rsqrt %11 : vector<1x512xf32>
    %13 = arith.mulf %4, %12 : vector<1x512xf32>
    %14 = arith.mulf %5, %12 : vector<1x512xf32>
    %15 = arith.mulf %6, %12 : vector<1x512xf32>
    %16 = arith.mulf %2, %15 : vector<1x512xf32>
    %17 = arith.mulf %3, %14 : vector<1x512xf32>
    %18 = arith.subf %16, %17 : vector<1x512xf32>
    %19 = arith.mulf %3, %13 : vector<1x512xf32>
    %20 = arith.mulf %1, %15 : vector<1x512xf32>
    %21 = arith.subf %19, %20 : vector<1x512xf32>
    %22 = arith.mulf %1, %14 : vector<1x512xf32>
    %23 = arith.mulf %2, %13 : vector<1x512xf32>
    %24 = arith.subf %22, %23 : vector<1x512xf32>
    %cst = arith.constant 0.000000e+00 : f32
    %25 = vector.broadcast %cst : f32 to vector<2x512xf32>
    %26 = tpu.concatenate %13, %14, %15, %18, %21, %24, %25 in 0 : vector<1x512xf32>, vector<1x512xf32>, vector<1x512xf32>, vector<1x512xf32>, vector<1x512xf32>, vector<1x512xf32>, vector<2x512xf32> -> vector<8x512xf32>
    %27 = math.sin %26 : vector<8x512xf32>
    %28 = math.cos %26 : vector<8x512xf32>
    %cst_1 = arith.constant 2.000000e+00 : f32
    %29 = vector.broadcast %cst_1 : f32 to vector<8x512xf32>
    %30 = arith.mulf %29, %27 : vector<8x512xf32>
    %31 = arith.mulf %30, %28 : vector<8x512xf32>
    %cst_2 = arith.constant 2.000000e+00 : f32
    %32 = vector.broadcast %cst_2 : f32 to vector<8x512xf32>
    %33 = arith.mulf %32, %27 : vector<8x512xf32>
    %34 = arith.mulf %33, %27 : vector<8x512xf32>
    %cst_3 = arith.constant 1.000000e+00 : f32
    %35 = vector.broadcast %cst_3 : f32 to vector<8x512xf32>
    %36 = arith.subf %35, %34 : vector<8x512xf32>
    %37 = tpu.concatenate %26, %27, %28, %31, %36 in 0 : vector<8x512xf32>, vector<8x512xf32>, vector<8x512xf32>, vector<8x512xf32>, vector<8x512xf32> -> vector<40x512xf32>
    %c0_4 = arith.constant 0 : index
    %c0_5 = arith.constant 0 : index
    %38 = vector.load %arg2[%c0_4, %c0_5] : memref<64x40xbf16, #tpu.memory_space<vmem>>, vector<64x40xbf16>
    %39 = arith.truncf %37 : vector<40x512xf32> to vector<40x512xbf16>
    %cst_6 = arith.constant dense<0.000000e+00> : vector<64x512xf32>
    %40 = tpu.matmul %38, %39, %cst_6 {dimension_numbers = #tpu.dot_dimension_numbers<[1], [0], [0], [1], [0, 0, 1, 1], [], []>} : vector<64x40xbf16>, vector<40x512xbf16>, vector<64x512xf32> -> vector<64x512xf32>
    %c0_7 = arith.constant 0 : index
    %c0_8 = arith.constant 0 : index
    %41 = vector.load %arg3[%c0_7, %c0_8] : memref<64x1xf32, #tpu.memory_space<vmem>>, vector<64x1xf32>
    %42 = vector.broadcast %41 : vector<64x1xf32> to vector<64x512xf32>
    %43 = arith.addf %40, %42 : vector<64x512xf32>
    %cst_9 = arith.constant 0.000000e+00 : f32
    %44 = vector.broadcast %cst_9 : f32 to vector<64x512xf32>
    %45 = arith.maximumf %43, %44 : vector<64x512xf32>
    %c0_10 = arith.constant 0 : index
    %c0_11 = arith.constant 0 : index
    %46 = vector.load %arg4[%c0_10, %c0_11] : memref<64x64xbf16, #tpu.memory_space<vmem>>, vector<64x64xbf16>
    %47 = arith.truncf %45 : vector<64x512xf32> to vector<64x512xbf16>
    %cst_12 = arith.constant dense<0.000000e+00> : vector<64x512xf32>
    %48 = tpu.matmul %46, %47, %cst_12 {dimension_numbers = #tpu.dot_dimension_numbers<[1], [0], [0], [1], [0, 0, 1, 1], [], []>} : vector<64x64xbf16>, vector<64x512xbf16>, vector<64x512xf32> -> vector<64x512xf32>
    %c0_13 = arith.constant 0 : index
    %c0_14 = arith.constant 0 : index
    %49 = vector.load %arg5[%c0_13, %c0_14] : memref<64x1xf32, #tpu.memory_space<vmem>>, vector<64x1xf32>
    %50 = vector.broadcast %49 : vector<64x1xf32> to vector<64x512xf32>
    %51 = arith.addf %48, %50 : vector<64x512xf32>
    %cst_15 = arith.constant 0.000000e+00 : f32
    %52 = vector.broadcast %cst_15 : f32 to vector<64x512xf32>
    %53 = arith.maximumf %51, %52 : vector<64x512xf32>
    %c0_16 = arith.constant 0 : index
    %c0_17 = arith.constant 0 : index
    %54 = vector.load %arg6[%c0_16, %c0_17] : memref<64x64xbf16, #tpu.memory_space<vmem>>, vector<64x64xbf16>
    %55 = arith.truncf %53 : vector<64x512xf32> to vector<64x512xbf16>
    %cst_18 = arith.constant dense<0.000000e+00> : vector<64x512xf32>
    %56 = tpu.matmul %54, %55, %cst_18 {dimension_numbers = #tpu.dot_dimension_numbers<[1], [0], [0], [1], [0, 0, 1, 1], [], []>} : vector<64x64xbf16>, vector<64x512xbf16>, vector<64x512xf32> -> vector<64x512xf32>
    %c0_19 = arith.constant 0 : index
    %c0_20 = arith.constant 0 : index
    %57 = vector.load %arg7[%c0_19, %c0_20] : memref<64x1xf32, #tpu.memory_space<vmem>>, vector<64x1xf32>
    %58 = vector.broadcast %57 : vector<64x1xf32> to vector<64x512xf32>
    %59 = arith.addf %56, %58 : vector<64x512xf32>
    %60 = math.sin %59 : vector<64x512xf32>
    %61 = math.cos %59 : vector<64x512xf32>
    %cst_21 = arith.constant 2.000000e+00 : f32
    %62 = vector.broadcast %cst_21 : f32 to vector<64x512xf32>
    %63 = arith.mulf %62, %60 : vector<64x512xf32>
    %64 = arith.mulf %63, %61 : vector<64x512xf32>
    %cst_22 = arith.constant 2.000000e+00 : f32
    %65 = vector.broadcast %cst_22 : f32 to vector<64x512xf32>
    %66 = arith.mulf %65, %60 : vector<64x512xf32>
    %67 = arith.mulf %66, %60 : vector<64x512xf32>
    %cst_23 = arith.constant 1.000000e+00 : f32
    %68 = vector.broadcast %cst_23 : f32 to vector<64x512xf32>
    %69 = arith.subf %68, %67 : vector<64x512xf32>
    %c0_24 = arith.constant 0 : index
    %c0_25 = arith.constant 0 : index
    %c0_26 = arith.constant 0 : index
    %70 = vector.load %arg8[%c0_24, %c0_25, %c0_26] : memref<5x64x64xbf16, #tpu.memory_space<vmem>>, vector<1x64x64xbf16>
    %71 = vector.shape_cast %70 : vector<1x64x64xbf16> to vector<64x64xbf16>
    %72 = arith.truncf %59 : vector<64x512xf32> to vector<64x512xbf16>
    %cst_27 = arith.constant dense<0.000000e+00> : vector<64x512xf32>
    %73 = tpu.matmul %71, %72, %cst_27 {dimension_numbers = #tpu.dot_dimension_numbers<[1], [0], [0], [1], [0, 0, 1, 1], [], []>} : vector<64x64xbf16>, vector<64x512xbf16>, vector<64x512xf32> -> vector<64x512xf32>
    %c1 = arith.constant 1 : index
    %c0_28 = arith.constant 0 : index
    %c0_29 = arith.constant 0 : index
    %74 = vector.load %arg8[%c1, %c0_28, %c0_29] : memref<5x64x64xbf16, #tpu.memory_space<vmem>>, vector<1x64x64xbf16>
    %75 = vector.shape_cast %74 : vector<1x64x64xbf16> to vector<64x64xbf16>
    %76 = arith.truncf %60 : vector<64x512xf32> to vector<64x512xbf16>
    %cst_30 = arith.constant dense<0.000000e+00> : vector<64x512xf32>
    %77 = tpu.matmul %75, %76, %cst_30 {dimension_numbers = #tpu.dot_dimension_numbers<[1], [0], [0], [1], [0, 0, 1, 1], [], []>} : vector<64x64xbf16>, vector<64x512xbf16>, vector<64x512xf32> -> vector<64x512xf32>
    %78 = arith.addf %73, %77 : vector<64x512xf32>
    %c2 = arith.constant 2 : index
    %c0_31 = arith.constant 0 : index
    %c0_32 = arith.constant 0 : index
    %79 = vector.load %arg8[%c2, %c0_31, %c0_32] : memref<5x64x64xbf16, #tpu.memory_space<vmem>>, vector<1x64x64xbf16>
    %80 = vector.shape_cast %79 : vector<1x64x64xbf16> to vector<64x64xbf16>
    %81 = arith.truncf %61 : vector<64x512xf32> to vector<64x512xbf16>
    %cst_33 = arith.constant dense<0.000000e+00> : vector<64x512xf32>
    %82 = tpu.matmul %80, %81, %cst_33 {dimension_numbers = #tpu.dot_dimension_numbers<[1], [0], [0], [1], [0, 0, 1, 1], [], []>} : vector<64x64xbf16>, vector<64x512xbf16>, vector<64x512xf32> -> vector<64x512xf32>
    %83 = arith.addf %78, %82 : vector<64x512xf32>
    %c3 = arith.constant 3 : index
    %c0_34 = arith.constant 0 : index
    %c0_35 = arith.constant 0 : index
    %84 = vector.load %arg8[%c3, %c0_34, %c0_35] : memref<5x64x64xbf16, #tpu.memory_space<vmem>>, vector<1x64x64xbf16>
    %85 = vector.shape_cast %84 : vector<1x64x64xbf16> to vector<64x64xbf16>
    %86 = arith.truncf %64 : vector<64x512xf32> to vector<64x512xbf16>
    %cst_36 = arith.constant dense<0.000000e+00> : vector<64x512xf32>
    %87 = tpu.matmul %85, %86, %cst_36 {dimension_numbers = #tpu.dot_dimension_numbers<[1], [0], [0], [1], [0, 0, 1, 1], [], []>} : vector<64x64xbf16>, vector<64x512xbf16>, vector<64x512xf32> -> vector<64x512xf32>
    %88 = arith.addf %83, %87 : vector<64x512xf32>
    %c4 = arith.constant 4 : index
    %c0_37 = arith.constant 0 : index
    %c0_38 = arith.constant 0 : index
    %89 = vector.load %arg8[%c4, %c0_37, %c0_38] : memref<5x64x64xbf16, #tpu.memory_space<vmem>>, vector<1x64x64xbf16>
    %90 = vector.shape_cast %89 : vector<1x64x64xbf16> to vector<64x64xbf16>
    %91 = arith.truncf %69 : vector<64x512xf32> to vector<64x512xbf16>
    %cst_39 = arith.constant dense<0.000000e+00> : vector<64x512xf32>
    %92 = tpu.matmul %90, %91, %cst_39 {dimension_numbers = #tpu.dot_dimension_numbers<[1], [0], [0], [1], [0, 0, 1, 1], [], []>} : vector<64x64xbf16>, vector<64x512xbf16>, vector<64x512xf32> -> vector<64x512xf32>
    %93 = arith.addf %88, %92 : vector<64x512xf32>
    %c0_40 = arith.constant 0 : index
    %c0_41 = arith.constant 0 : index
    %94 = vector.load %arg9[%c0_40, %c0_41] : memref<64x1xf32, #tpu.memory_space<vmem>>, vector<64x1xf32>
    %95 = vector.broadcast %94 : vector<64x1xf32> to vector<64x512xf32>
    %96 = arith.addf %93, %95 : vector<64x512xf32>
    %cst_42 = arith.constant 0.000000e+00 : f32
    %97 = vector.broadcast %cst_42 : f32 to vector<64x512xf32>
    %98 = arith.maximumf %96, %97 : vector<64x512xf32>
    %c0_43 = arith.constant 0 : index
    %c0_44 = arith.constant 0 : index
    %99 = vector.load %arg10[%c0_43, %c0_44] : memref<64x64xbf16, #tpu.memory_space<vmem>>, vector<64x64xbf16>
    %100 = arith.truncf %98 : vector<64x512xf32> to vector<64x512xbf16>
    %cst_45 = arith.constant dense<0.000000e+00> : vector<64x512xf32>
    %101 = tpu.matmul %99, %100, %cst_45 {dimension_numbers = #tpu.dot_dimension_numbers<[1], [0], [0], [1], [0, 0, 1, 1], [], []>} : vector<64x64xbf16>, vector<64x512xbf16>, vector<64x512xf32> -> vector<64x512xf32>
    %c0_46 = arith.constant 0 : index
    %c0_47 = arith.constant 0 : index
    %102 = vector.load %arg11[%c0_46, %c0_47] : memref<64x1xf32, #tpu.memory_space<vmem>>, vector<64x1xf32>
    %103 = vector.broadcast %102 : vector<64x1xf32> to vector<64x512xf32>
    %104 = arith.addf %101, %103 : vector<64x512xf32>
    %cst_48 = arith.constant 0.000000e+00 : f32
    %105 = vector.broadcast %cst_48 : f32 to vector<64x512xf32>
    %106 = arith.maximumf %104, %105 : vector<64x512xf32>
    %c0_49 = arith.constant 0 : index
    %c0_50 = arith.constant 0 : index
    %107 = vector.load %arg12[%c0_49, %c0_50] : memref<3x64xbf16, #tpu.memory_space<vmem>>, vector<3x64xbf16>
    %108 = arith.truncf %106 : vector<64x512xf32> to vector<64x512xbf16>
    %cst_51 = arith.constant dense<0.000000e+00> : vector<3x512xf32>
    %109 = tpu.matmul %107, %108, %cst_51 {dimension_numbers = #tpu.dot_dimension_numbers<[1], [0], [0], [1], [0, 0, 1, 1], [], []>} : vector<3x64xbf16>, vector<64x512xbf16>, vector<3x512xf32> -> vector<3x512xf32>
    %c0_52 = arith.constant 0 : index
    %c0_53 = arith.constant 0 : index
    %110 = vector.load %arg13[%c0_52, %c0_53] : memref<3x1xf32, #tpu.memory_space<vmem>>, vector<3x1xf32>
    %111 = vector.broadcast %110 : vector<3x1xf32> to vector<3x512xf32>
    %112 = arith.addf %109, %111 : vector<3x512xf32>
    %c0_54 = arith.constant 0 : index
    %c0_55 = arith.constant 0 : index
    %113 = vector.load %arg14[%c0_54, %c0_55] : memref<3x512xf32, #tpu.memory_space<vmem>>, vector<3x512xf32>
    tpu.vector_store %arg14[%c0_54, %c0_55], %112 {strides = array<i32>} : memref<3x512xf32, #tpu.memory_space<vmem>>, vector<3x512xf32>,
    return
  }
  func.func @transform_0(%arg0: i32) -> (i32, i32) {
    %c0_i32 = arith.constant 0 : i32
    %c0_i32_0 = arith.constant 0 : i32
    return %c0_i32, %arg0 : i32, i32
  }
  func.func @transform_1(%arg0: i32) -> (i32, i32) {
    %c0_i32 = arith.constant 0 : i32
    %c0_i32_0 = arith.constant 0 : i32
    %c0_i32_1 = arith.constant 0 : i32
    return %c0_i32, %c0_i32_0 : i32, i32
  }
  func.func @transform_2(%arg0: i32) -> (i32, i32) {
    %c0_i32 = arith.constant 0 : i32
    %c0_i32_0 = arith.constant 0 : i32
    %c0_i32_1 = arith.constant 0 : i32
    return %c0_i32, %c0_i32_0 : i32, i32
  }
  func.func @transform_3(%arg0: i32) -> (i32, i32) {
    %c0_i32 = arith.constant 0 : i32
    %c0_i32_0 = arith.constant 0 : i32
    %c0_i32_1 = arith.constant 0 : i32
    return %c0_i32, %c0_i32_0 : i32, i32
  }
  func.func @transform_4(%arg0: i32) -> (i32, i32) {
    %c0_i32 = arith.constant 0 : i32
    %c0_i32_0 = arith.constant 0 : i32
    %c0_i32_1 = arith.constant 0 : i32
    return %c0_i32, %c0_i32_0 : i32, i32
  }
  func.func @transform_5(%arg0: i32) -> (i32, i32) {
    %c0_i32 = arith.constant 0 : i32
    %c0_i32_0 = arith.constant 0 : i32
    %c0_i32_1 = arith.constant 0 : i32
    return %c0_i32, %c0_i32_0 : i32, i32
  }
  func.func @transform_6(%arg0: i32) -> (i32, i32) {
    %c0_i32 = arith.constant 0 : i32
    %c0_i32_0 = arith.constant 0 : i32
    %c0_i32_1 = arith.constant 0 : i32
    return %c0_i32, %c0_i32_0 : i32, i32
  }
  func.func @transform_7(%arg0: i32) -> (i32, i32, i32) {
    %c0_i32 = arith.constant 0 : i32
    %c0_i32_0 = arith.constant 0 : i32
    %c0_i32_1 = arith.constant 0 : i32
    %c0_i32_2 = arith.constant 0 : i32
    return %c0_i32, %c0_i32_0, %c0_i32_1 : i32, i32, i32
  }
  func.func @transform_8(%arg0: i32) -> (i32, i32) {
    %c0_i32 = arith.constant 0 : i32
    %c0_i32_0 = arith.constant 0 : i32
    %c0_i32_1 = arith.constant 0 : i32
    return %c0_i32, %c0_i32_0 : i32, i32
  }
  func.func @transform_9(%arg0: i32) -> (i32, i32) {
    %c0_i32 = arith.constant 0 : i32
    %c0_i32_0 = arith.constant 0 : i32
    %c0_i32_1 = arith.constant 0 : i32
    return %c0_i32, %c0_i32_0 : i32, i32
  }
  func.func @transform_10(%arg0: i32) -> (i32, i32) {
    %c0_i32 = arith.constant 0 : i32
    %c0_i32_0 = arith.constant 0 : i32
    %c0_i32_1 = arith.constant 0 : i32
    return %c0_i32, %c0_i32_0 : i32, i32
  }
  func.func @transform_11(%arg0: i32) -> (i32, i32) {
    %c0_i32 = arith.constant 0 : i32
    %c0_i32_0 = arith.constant 0 : i32
    %c0_i32_1 = arith.constant 0 : i32
    return %c0_i32, %c0_i32_0 : i32, i32
  }
  func.func @transform_12(%arg0: i32) -> (i32, i32) {
    %c0_i32 = arith.constant 0 : i32
    %c0_i32_0 = arith.constant 0 : i32
    %c0_i32_1 = arith.constant 0 : i32
    return %c0_i32, %c0_i32_0 : i32, i32
  }
  func.func @transform_13(%arg0: i32) -> (i32, i32) {
    %c0_i32 = arith.constant 0 : i32
    %c0_i32_0 = arith.constant 0 : i32
    return %c0_i32, %arg0 : i32, i32
  }
}

</mosaic_0001>

<bundles_post_ra>
// kernel: lightfield_forward.1
= control target key start
LH: loop header
LB: loop body
LE: loop exit
PB: predicated region body
PF: predicated region fallthrough
CT: control target
= control target key end

     0   :  { %s11728_s25 = smov 0   ;;  %s18041_s0 = inlined_call_operand.vmem [shape: f32[8,1024], index: 0, kind: input, shape index: {}]   ;;  %s18042_s1 = inlined_call_operand.vmem [shape: bf16[64,40], index: 1, kind: input, shape index: {}]   ;;  %s18043_s2 = inlined_call_operand.vmem [shape: f32[64,1], index: 2, kind: input, shape index: {}]   ;;  %s18044_s3 = inlined_call_operand.vmem [shape: bf16[64,64], index: 3, kind: input, shape index: {}]   ;;  %s18045_s4 = inlined_call_operand.vmem [shape: f32[64,1], index: 4, kind: input, shape index: {}]   ;;  %s18046_s5 = inlined_call_operand.vmem [shape: bf16[64,64], index: 5, kind: input, shape index: {}]   ;;  %s18047_s6 = inlined_call_operand.vmem [shape: f32[64,1], index: 6, kind: input, shape index: {}]   ;;  %s18048_s7 = inlined_call_operand.vmem [shape: bf16[5,64,64], index: 7, kind: input, shape index: {}]   ;;  %s18049_s8 = inlined_call_operand.vmem [shape: f32[64,1], index: 8, kind: input, shape index: {}]   ;;  %s18050_s9 = inlined_call_operand.vmem [shape: bf16[64,64], index: 9, kind: input, shape index: {}]   ;;  %s18051_s10 = inlined_call_operand.vmem [shape: f32[64,1], index: 10, kind: input, shape index: {}]   ;;  %s18052_s11 = inlined_call_operand.vmem [shape: bf16[3,64], index: 11, kind: input, shape index: {}]   ;;  %s18053_s12 = inlined_call_operand.vmem [shape: f32[3,1], index: 12, kind: input, shape index: {}]   ;;  %s18054_s13 = inlined_call_operand.vmem [shape: f32[3,1024], index: 13, kind: output, shape index: {}]  }
   0x1 LB: > { %s10837_s26 = sadd.s32 4294967295, %s11648_s25   ;;  %p10841_p0 = scmp.ge.s32.totalorder %s11648_s25, 1  ;;  %s11648_s25 = sphi %s11728_s25, %s23_s25  }
   0x2   : > { %p388_p1 = scmp.lt.s32.totalorder %s11648_s25, 3 }
   0x4   : > { %p389_p2 = pnand %p10841_p0, %p388_p1 }
   0x6   : > { %392 = sbr.rel (%p389_p2) target bundleno = 2602 (0xa2a), region = 72 }
   0xb   : > { %s10842_s27 = sshll.u32 %s10837_s26, 2  ;;  %vm709_vm0 = vcmask 1040384   ;;  %vm714_vm1 = vcmask 1041408   ;;  %vm719_vm2 = vcmask 1042432   ;;  %vm724_vm3 = vcmask 1043456  }
   0xc   : > { %p433_p3 = scmp.lt.s32.totalorder %s10842_s27, 7  ;;  %vm729_vm4 = vcmask 1044480   ;;  %vm734_vm5 = vcmask 1045504  }
   0xe   : > { %s19516_s27 = smov (!%p433_p3, %s10842_s27), 7 }
   0xf   : > { %s10843_s28 = sshll.u32 %s19516_s27, 3  ;;  %s10845_s21 = sshll.u32 %s19516_s27, 2 }
  0x10   : > { %s436_s14 = scalar_lea.vmem %s18041_s0, %s10843_s28  ;;  %s442_s24 = scalar_lea.vmem %s18054_s13, %s10845_s21 }
  0x11   : > { %v446_v0 = vld [vmem:[%s436_s14 + $0x8] sm:$0xff]  ;;  %v11742_v1 = vld [vmem:[%s436_s14 + $0x18] sm:$0xff]  ;;  %v11744_v2 = vld [vmem:[%s436_s14] sm:$0xff] }
  0x12   : > { %v450_v3 = vmul.f32 %v446_v0, %v446_v0  ;;  %v452_v4 = vmul.f32 %v11742_v1, %v11742_v1  ;;  %v449_v5 = vmul.f32 %v11744_v2, %v11744_v2  ;;  %v11750_v6 = vld [vmem:[%s436_s14 + $0x10] sm:$0xff] }
  0x13   : > { %v11754_v7 = vmul.f32 %v11750_v6, %v11750_v6 }
  0x14   : > { %v458_v8 = vrot.slane %v450_v3, 1  ;;  %v470_v9 = vrot.slane %v450_v3, 2  ;;  %v460_v10 = vrot.slane %v452_v4, 1  ;;  %v472_v11 = vrot.slane %v452_v4, 2 }
  0x15   : > { %v457_v12 = vrot.slane %v449_v5, 1  ;;  %v469_v13 = vrot.slane %v449_v5, 2  ;;  %v459_v14 = vrot.slane %v11754_v7, 1  ;;  %v471_v29 = vrot.slane %v11754_v7, 2 }
  0x16   : > { %v466_v15 = vadd.f32 %v458_v8, %v450_v3  ;;  %v468_v16 = vadd.f32 %v460_v10, %v452_v4 }
  0x17   : > { %v465_v19 = vadd.f32 %v457_v12, %v449_v5 }
  0x18   : > { %v478_v17 = vadd.f32 %v470_v9, %v466_v15  ;;  %v480_v18 = vadd.f32 %v472_v11, %v468_v16 }
  0x19   : > { %v477_v20 = vadd.f32 %v469_v13, %v465_v19 }
  0x1a   : > { %11490 = vrsqrt.f32 %v478_v17 }
  0x1b   : > { %11492 = vrsqrt.f32 %v480_v18 }
  0x1c   : > { %11494 = vrsqrt.f32 %v477_v20 }
  0x27   : > { %v11491_v21 = vpop.eup %11490 }
  0x28   : > { %v11493_v22 = vpop.eup %11492  ;;  %v486_v23 = vmul.f32 %v11491_v21, %v446_v0  ;;  %v494_v24 = vrot.slane %v11491_v21, 7  ;;  %v506_v25 = vrot.slane %v11491_v21, 6 }
  0x29   : > { %v11758_v26 = vmul.f32 %v11493_v22, %v11742_v1  ;;  %v496_v27 = vrot.slane %v11493_v22, 7  ;;  %v508_v28 = vrot.slane %v11493_v22, 6  ;;  %v11495_v4 = vpop.eup %11494 }
  0x2a   : > { %v502_v30 = vmul.f32 %v494_v24, %v446_v0  ;;  %v514_v31 = vmul.f32 %v506_v25, %v446_v0  ;;  %v570_v32 = vrot.slane %v486_v23, 1  ;;  %v622_v33 = vrot.slane %v486_v23, 2 }
  0x2b   : > { %v650_v34 = vrot.slane %v486_v23, 3  ;;  %v504_v35 = vmul.f32 %v496_v27, %v11742_v1  ;;  %v516_v36 = vmul.f32 %v508_v28, %v11742_v1  ;;  %v572_v37 = vrot.slane %v11758_v26, 1 }
  0x2c   : > { %v522_v38 = vrot.slane %v514_v31, 4  ;;  %v538_v39 = vrot.slane %v502_v30, 2  ;;  %v578_v40 = vmul.f32 %v570_v32, %v446_v0  ;;  %v582_v41 = vrot.slane %v514_v31, 5 }
  0x2d   : > { %v610_v42 = vrot.slane %v502_v30, 4  ;;  %v630_v43 = vmul.f32 %v622_v33, %v446_v0  ;;  %v658_v44 = vrot.slane %v502_v30, 3  ;;  %v666_v45 = vrot.slane %v514_v31, 3 }
  0x2e   : > { %v530_v46 = vmul.f32 %v522_v38, %v446_v0  ;;  %v546_v47 = vmul.f32 %v538_v39, %v446_v0  ;;  %v590_v48 = vmul.f32 %v582_v41, %v446_v0  ;;  %v524_v49 = vrot.slane %v516_v36, 4 }
  0x2f   : > { %v618_v50 = vmul.f32 %v610_v42, %v446_v0  ;;  %v638_v51 = vrot.slane %v630_v43, 1  ;;  %v711_v52 = vsel %vm709_vm0, %v650_v34, %v658_v44  ;;  %v540_v53 = vrot.slane %v504_v35, 2 }
  0x30   : > { %v554_v54 = vrot.slane %v546_v47, 1  ;;  %v598_v55 = vrot.slane %v590_v48, 6  ;;  %v716_v56 = vsel %vm714_vm1, %v711_v52, %v666_v45  ;;  %v532_v57 = vmul.f32 %v524_v49, %v11742_v1 }
  0x31   : > { %v646_v58 = vsub.f32 %v618_v50, %v638_v51  ;;  %v548_v59 = vmul.f32 %v540_v53, %v11742_v1  ;;  %v580_v60 = vmul.f32 %v572_v37, %v11742_v1  ;;  %v584_v61 = vrot.slane %v516_v36, 5 }
  0x32   : > { %v562_v62 = vsub.f32 %v530_v46, %v554_v54  ;;  %v606_v63 = vsub.f32 %v578_v40, %v598_v55  ;;  %v612_v3 = vrot.slane %v504_v35, 4  ;;  %v624_v0 = vrot.slane %v11758_v26, 2 }
  0x33   : > { %v702_v5 = vrot.slane %v646_v58, 3  ;;  %v556_v8 = vrot.slane %v548_v59, 1  ;;  %v592_v9 = vmul.f32 %v584_v61, %v11742_v1  ;;  %v652_v10 = vrot.slane %v11758_v26, 3 }
  0x34   : > { %v678_v11 = vrot.slane %v562_v62, 6  ;;  %v690_v12 = vrot.slane %v606_v63, 6  ;;  %v620_v13 = vmul.f32 %v612_v3, %v11742_v1  ;;  %v632_v15 = vmul.f32 %v624_v0, %v11742_v1 }
  0x35   : > { %v564_v16 = vsub.f32 %v532_v57, %v556_v8  ;;  %v600_v17 = vrot.slane %v592_v9, 6  ;;  %v660_v18 = vrot.slane %v504_v35, 3  ;;  %v668_v19 = vrot.slane %v516_v36, 3 }
  0x36   : > { %v721_v20 = vsel %vm719_vm2, %v716_v56, %v678_v11  ;;  %v640_v21 = vrot.slane %v632_v15, 1  ;;  %v493_v22 = vrot.slane %v11495_v4, 7  ;;  %v467_v23 = vadd.f32 %v459_v14, %v11754_v7 }
  0x37   : > { %v726_v24 = vsel %vm724_vm3, %v721_v20, %v690_v12  ;;  %v608_v25 = vsub.f32 %v580_v60, %v600_v17  ;;  %v680_v26 = vrot.slane %v564_v16, 6  ;;  %v713_v27 = vsel %vm709_vm0, %v652_v10, %v660_v18 }
  0x38   : > { %v11781_v1 = vsel %vm729_vm4, %v726_v24, %v702_v5  ;;  %v648_v28 = vsub.f32 %v620_v13, %v640_v21  ;;  %v718_v30 = vsel %vm714_vm1, %v713_v27, %v668_v19  ;;  %v11785_v31 = vmul.f32 %v493_v22, %v11744_v2 }
  0x39   : > { %v11789_v32 = vsel %vm734_vm5, %v11781_v1, 0.0  ;;  %v692_v14 = vrot.slane %v608_v25, 6  ;;  %v723_v33 = vsel %vm719_vm2, %v718_v30, %v680_v26  ;;  %v505_v34 = vrot.slane %v11495_v4, 6 }
  0x3a   : > { %v843_v35 = vand.u32 2147483647, %v11789_v32  ;;  %v846_v36 = vand.u32 2139095040, %v11789_v32  ;;  %v11795_v37 = vmul.f32 %v11495_v4, %v11744_v2  ;;  %v704_v38 = vrot.slane %v648_v28, 3 }
  0x3b   : > { %v728_v39 = vsel %vm724_vm3, %v723_v33, %v692_v14  ;;  %v11799_v40 = vmul.f32 %v505_v34, %v11744_v2  ;;  %v537_v41 = vrot.slane %v11785_v31, 2  ;;  %v479_v44 = vadd.f32 %v471_v29, %v467_v23 }
  0x3c   : > { %v847_v42 = vshrl.u32 %v846_v36, 23  ;;  %v850_v43 = vand.u32 8388607, %v843_v35  ;;  %v11807_v45 = vsel %vm729_vm4, %v728_v39, %v704_v38  ;;  %v569_v51 = vrot.slane %v11795_v37, 1 }
  0x3d   : > { %v521_v46 = vrot.slane %v11799_v40, 4  ;;  %v545_v47 = vmul.f32 %v537_v41, %v11744_v2  ;;  %v581_v48 = vrot.slane %v11799_v40, 5  ;;  %v11814_v50 = vsel %vm734_vm5, %v11807_v45, 0.0 }
  0x3e   : > { %v10850_v49 = vadd.s32 4294967169, %v847_v42  ;;  %v1051_v52 = vand.u32 2147483647, %v11814_v50  ;;  %v1054_v7 = vand.u32 2139095040, %v11814_v50  ;;  %v851_v29 = vor.u32 8388608, %v850_v43 }
  0x3f   : > { %v529_v54 = vmul.f32 %v521_v46, %v11744_v2  ;;  %v553_v55 = vrot.slane %v545_v47, 1  ;;  %v589_v58 = vmul.f32 %v581_v48, %v11744_v2  ;;  %11496 = vrsqrt.f32 %v479_v44 }
  0x40   : > { %v853_v53 = vadd.s32 1, %v10850_v49  ;;  %v1055_v56 = vshrl.u32 %v1054_v7, 23  ;;  %v1058_v57 = vand.u32 8388607, %v1051_v52  ;;  %v577_v59 = vmul.f32 %v569_v51, %v11744_v2 }
  0x41   : > { %v609_v60 = vrot.slane %v11785_v31, 4  ;;  %v621_v61 = vrot.slane %v11795_v37, 2  ;;  %v597_v0 = vrot.slane %v589_v58, 6  ;;  %v11826_v8 = vshll.u32 %v851_v29, 8 }
  0x42   : > { %vm854_vm6 = vcmp.gt.s32.totalorder %v853_v53, 0  ;;  %v10858_v63 = vadd.s32 4294967169, %v1055_v56  ;;  %v1059_v3 = vor.u32 8388608, %v1058_v57  ;;  %v11828_v9 = vsub.f32 %v529_v54, %v553_v55 }
  0x43   : > { %v855_v62 = vsel %vm854_vm6, %v853_v53, 0  ;;  %v11833_v12 = vmul.f32 %v609_v60, %v11744_v2  ;;  %v11836_v13 = vmul.f32 %v621_v61, %v11744_v2  ;;  %v18068_v16 = vmov 683565275  }
  0x44   : > { %v856_v4 = vshrl.u32 %v855_v62, 5  ;;  %v857_v5 = vand.u32 31, %v855_v62  ;;  %v1061_v10 = vadd.s32 1, %v10858_v63  ;;  %v11830_v11 = vshll.u32 %v1059_v3, 8 }
  0x45   : > { %v18070_v18 = vmov 2475754826   ;;  %v18076_v20 = vmov 2131351028   ;;  %v18078_v22 = vmov 2102212464   ;;  %v11843_v26 = vsub.f32 %v577_v59, %v597_v0 }
  0x46   : > { %v858_v15 = vsub.s32 32, %v857_v5  ;;  %v860_v17 = vshll.u32 %v18068_v16, %v857_v5  ;;  %v863_v19 = vshll.u32 %v18070_v18, %v857_v5  ;;  %v866_v21 = vshll.u32 %v18076_v20, %v857_v5 }
  0x47   : > { %v869_v23 = vshll.u32 %v18078_v22, %v857_v5  ;;  %v18064_v24 = vmov 920167782   ;;  %vm875_vm7 = vcmp.lt.s32.totalorder %v856_v4, 1  ;;  %v18061_v33 = vmov 1326507024  }
  0x48   : > { %v872_v25 = vshll.u32 %v18064_v24, %v857_v5  ;;  %v859_v2 = vshrl.u32 %v18068_v16, %v858_v15  ;;  %v861_v27 = vshrl.u32 %v18070_v18, %v858_v15  ;;  %v864_v28 = vshrl.u32 %v18076_v20, %v858_v15 }
  0x49   : > { %v867_v30 = vshrl.u32 %v18078_v22, %v858_v15  ;;  %v870_v14 = vshrl.u32 %v18064_v24, %v858_v15  ;;  %v873_v34 = vshrl.u32 %v18061_v33, %v858_v15  ;;  %vm876_vm8 = vcmp.lt.s32.totalorder %v856_v4, 2 }
  0x4a   : > { %vm878_vm9 = vcmp.lt.s32.totalorder %v856_v4, 4  ;;  %v862_v36 = vor.u32 %v861_v27, %v860_v17  ;;  %v865_v38 = vor.u32 %v864_v28, %v863_v19  ;;  %vm1062_vm10 = vcmp.gt.s32.totalorder %v1061_v10, 0 }
  0x4b   : > { %v868_v39 = vor.u32 %v867_v30, %v866_v21  ;;  %v871_v41 = vor.u32 %v870_v14, %v869_v23  ;;  %v874_v42 = vor.u32 %v873_v34, %v872_v25  ;;  %vm877_vm11 = vcmp.lt.s32.totalorder %v856_v4, 3 }
  0x4c   : > { %v1063_v43 = vsel %vm1062_vm10, %v1061_v10, 0  ;;  %v879_v44 = vsel %vm875_vm7, %v859_v2, %v862_v36  ;;  %v883_v47 = vsel %vm875_vm7, %v862_v36, %v865_v38  ;;  %v649_v29 = vrot.slane %v11795_v37, 3  ;;  %v11855_v53 = vpop.eup %11496 }
  0x4d   : > { %v880_v46 = vsel %vm878_vm9, %v868_v39, 2102212464  ;;  %v887_v48 = vsel %vm875_vm7, %v865_v38, %v868_v39  ;;  %v884_v51 = vsel %vm878_vm9, %v871_v41, 920167782  ;;  %v888_v7 = vsel %vm878_vm9, %v874_v42, 1326507024 }
  0x4e   : > { %v881_v49 = vsel %vm877_vm11, %v865_v38, %v880_v46  ;;  %v885_v54 = vsel %vm877_vm11, %v868_v39, %v884_v51  ;;  %v889_v55 = vsel %vm877_vm11, %v871_v41, %v888_v7  ;;  %v1064_v56 = vshrl.u32 %v1063_v43, 5 }
  0x4f   : > { %v1065_v57 = vand.u32 31, %v1063_v43  ;;  %v882_v58 = vsel %vm876_vm8, %v879_v44, %v881_v49  ;;  %v886_v59 = vsel %vm876_vm8, %v883_v47, %v885_v54  ;;  %v890_v60 = vsel %vm876_vm8, %v887_v48, %v889_v55 }
  0x50   : > { %v637_v61 = vrot.slane %v11836_v13, 1  ;;  %v11862_v62 = vmul.u32.u64.low %v11826_v8, %v890_v60  ;;  %v11863_v63 = vmul.u32.u64.high %v11826_v8, %v890_v60, %v11862_v62  ;;  %v898_v4 = vmul.u32 %v11826_v8, %v882_v58 }
  0x51   : > { %v11866_v3 = vmul.u32.u64.low %v11826_v8, %v886_v59  ;;  %v11867_v0 = vmul.u32.u64.high %v11826_v8, %v886_v59, %v11866_v3  ;;  %v1066_v5 = vsub.s32 32, %v1065_v57  ;;  %v1068_v10 = vshll.u32 %v18068_v16, %v1065_v57 }
  0x52   : > { %v1071_v15 = vshll.u32 %v18070_v18, %v1065_v57  ;;  %v1074_v17 = vshll.u32 %v18076_v20, %v1065_v57  ;;  %v1077_v13 = vshll.u32 %v18078_v22, %v1065_v57  ;;  %v1080_v19 = vshll.u32 %v18064_v24, %v1065_v57 }
  0x53   : > { %vm1083_vm12 = vcmp.lt.s32.totalorder %v1064_v56, 1  ;;  %v1067_v21 = vshrl.u32 %v18068_v16, %v1066_v5  ;;  %v1069_v23 = vshrl.u32 %v18070_v18, %v1066_v5  ;;  %v1072_v25 = vshrl.u32 %v18076_v20, %v1066_v5 }
  0x54   : > { %v1075_v2 = vshrl.u32 %v18078_v22, %v1066_v5  ;;  %vm900_vm13 = vc.u32 %v11863_v63, %v11866_v3  ;;  %v901_v27 = vadd.s32 1, %v11867_v0  ;;  %v1078_v8 = vshrl.u32 %v18064_v24, %v1066_v5 }
  0x55   : > { %vm1084_vm14 = vcmp.lt.s32.totalorder %v1064_v56, 2  ;;  %v1070_v28 = vor.u32 %v1069_v23, %v1068_v10  ;;  %v1073_v30 = vor.u32 %v1072_v25, %v1071_v15  ;;  %v1081_v34 = vshrl.u32 %v18061_v33, %v1066_v5 }
  0x56   : > { %v1076_v14 = vor.u32 %v1075_v2, %v1074_v17  ;;  %v902_v36 = vsel %vm900_vm13, %v901_v27, %v11867_v0  ;;  %v1079_v38 = vor.u32 %v1078_v8, %v1077_v13  ;;  %vm1085_vm15 = vcmp.lt.s32.totalorder %v1064_v56, 3 }
  0x57   : > { %vm1086_vm6 = vcmp.lt.s32.totalorder %v1064_v56, 4  ;;  %v903_v39 = vadd.s32 %v902_v36, %v898_v4  ;;  %v1082_v41 = vor.u32 %v1081_v34, %v1080_v19  ;;  %v1087_v42 = vsel %vm1083_vm12, %v1067_v21, %v1070_v28 }
  0x58   : > { %v1088_v43 = vsel %vm1086_vm6, %v1076_v14, 2102212464  ;;  %v1091_v46 = vsel %vm1083_vm12, %v1070_v28, %v1073_v30  ;;  %v1092_v47 = vsel %vm1086_vm6, %v1079_v38, 920167782  ;;  %v1095_v48 = vsel %vm1083_vm12, %v1073_v30, %v1076_v14 }
  0x59   : > { %v1089_v44 = vsel %vm1085_vm15, %v1073_v30, %v1088_v43  ;;  %v904_v49 = vadd.s32 536870912, %v903_v39  ;;  %v1093_v51 = vsel %vm1085_vm15, %v1076_v14, %v1092_v47  ;;  %v1096_v7 = vsel %vm1086_vm6, %v1082_v41, 1326507024 }
  0x5a   : > { %v645_v54 = vsub.f32 %v11833_v12, %v637_v61  ;;  %v1090_v55 = vsel %vm1084_vm14, %v1087_v42, %v1089_v44  ;;  %v1094_v57 = vsel %vm1084_vm14, %v1091_v46, %v1093_v51  ;;  %v1097_v58 = vsel %vm1085_vm15, %v1079_v38, %v1096_v7 }
  0x5b   : > { %v657_v59 = vrot.slane %v11785_v31, 3  ;;  %v905_v60 = vshrl.u32 %v904_v49, 30  ;;  %v1098_v62 = vsel %vm1084_vm14, %v1095_v48, %v1097_v58  ;;  %v665_v12 = vrot.slane %v11799_v40, 3 }
  0x5c   : > { %v11898_v0 = vmul.u32.u64.low %v11830_v11, %v1094_v57  ;;  %v11899_v5 = vmul.u32.u64.high %v11830_v11, %v1094_v57, %v11898_v0  ;;  %v11902_v10 = vmul.u32.u64.low %v11830_v11, %v1098_v62  ;;  %v11903_v15 = vmul.u32.u64.high %v11830_v11, %v1098_v62, %v11902_v10 }
  0x5d   : > { %v677_v61 = vrot.slane %v11828_v9, 6  ;;  %v906_v17 = vshll.u32 %v905_v60, 30  ;;  %v689_v4 = vrot.slane %v11843_v26, 6  ;;  %v1106_v31 = vmul.u32 %v11830_v11, %v1090_v55 }
  0x5e   : > { %v701_v13 = vrot.slane %v645_v54, 3  ;;  %v710_v56 = vsel %vm709_vm0, %v649_v29, %v657_v59  ;;  %v929_v21 = vsub.s32 4, %v905_v60  ;;  %v1109_v23 = vadd.s32 1, %v11899_v5 }
  0x5f   : > { %v907_v19 = vsub.s32 %v903_v39, %v906_v17  ;;  %v715_v25 = vsel %vm714_vm1, %v710_v56, %v665_v12  ;;  %vm1108_vm7 = vc.u32 %v11903_v15, %v11898_v0  ;;  %v495_v9 = vrot.slane %v11855_v53, 7 }
  0x60   : > { %v720_v40 = vsel %vm719_vm2, %v715_v25, %v677_v61  ;;  %v1110_v11 = vsel %vm1108_vm7, %v1109_v23, %v11899_v5  ;;  %vm845_vm8 = vcmp.lt.s32.totalorder %v11789_v32, 0  ;;  %v507_v27 = vrot.slane %v11855_v53, 6 }
  0x61   : > { %v909_v26 = vsub.s32 0, %v907_v19  ;;  %v725_v2 = vsel %vm724_vm3, %v720_v40, %v689_v4  ;;  %v1111_v37 = vadd.s32 %v1110_v11, %v1106_v31  ;;  %v930_v28 = vsel %vm845_vm8, %v929_v21, %v905_v60 }
  0x62   : > { %v11921_v29 = vsel %vm729_vm4, %v725_v2, %v701_v13  ;;  %v11933_v38 = vmul.f32 %v495_v9, %v11750_v6  ;;  %vm11937_vm9 = vcmp.le.f32.partialorder %v843_v35, 0.7853982  ;;  %v11943_v42 = vmul.f32 %v11855_v53, %v11750_v6 }
  0x63   : > { %v10851_v8 = vmin.u32 %v909_v26, %v907_v19  ;;  %v11928_v30 = vsel %vm734_vm5, %v11921_v29, 0.0  ;;  %v1112_v14 = vadd.s32 536870912, %v1111_v37  ;;  %v11947_v43 = vsel %vm11937_vm9, 0, %v930_v28 }
  0x64   : > { %v739_v34 = vand.u32 2147483647, %v11928_v30  ;;  %v742_v36 = vand.u32 2139095040, %v11928_v30  ;;  %v11952_v47 = vmul.f32 %v507_v27, %v11750_v6  ;;  %v539_v53 = vrot.slane %v11933_v38, 2 }
  0x65   : > { %v911_v41 = vclz %v10851_v8  ;;  %v11949_v44 = vshrl.u32 %v1112_v14, 30  ;;  %v899_v7 = vadd.s32 %v11866_v3, %v11863_v63  ;;  %v936_v54 = vadd.s32 3, %v11947_v43 }
  0x66   : > { %v743_v46 = vshrl.u32 %v742_v36, 23  ;;  %v746_v35 = vand.u32 8388607, %v739_v34  ;;  %v571_v55 = vrot.slane %v11943_v42, 1  ;;  %v523_v60 = vrot.slane %v11952_v47, 4 }
  0x67   : > { %v10852_v48 = vadd.s32 4294967294, %v911_v41  ;;  %v1114_v49 = vshll.u32 %v11949_v44, 30  ;;  %v1107_v61 = vadd.s32 %v11898_v0, %v11903_v15  ;;  %v11968_v63 = vmul.f32 %v539_v53, %v11750_v6 }
  0x68   : > { %v10846_v51 = vadd.s32 4294967169, %v743_v46  ;;  %v747_v12 = vor.u32 8388608, %v746_v35  ;;  %v11970_v31 = vand.u32 3, %v936_v54  ;;  %v1137_v21 = vsub.s32 4, %v11949_v44 }
  0x69   : > { %vm10853_vm10 = vcmp.lt.s32.totalorder %v10852_v48, 0  ;;  %v11962_v58 = vsub.s32 %v1111_v37, %v1114_v49  ;;  %v531_v23 = vmul.f32 %v523_v60, %v11750_v6  ;;  %v11978_v40 = vmul.f32 %v571_v55, %v11750_v6 }
  0x6a   : > { %v914_v57 = vsel %vm10853_vm10, 0, %v10852_v48  ;;  %v749_v59 = vadd.s32 1, %v10846_v51  ;;  %v11975_v15 = vshll.u32 %v747_v12, 8  ;;  %v555_v11 = vrot.slane %v11968_v63, 1 }
  0x6b   : > { %v915_v62 = vsub.s32 32, %v914_v57  ;;  %v916_v5 = vshll.u32 %v907_v19, %v914_v57  ;;  %v919_v10 = vsub.s32 4294967266, %v914_v57  ;;  %v1117_v17 = vsub.s32 0, %v11962_v58 }
  0x6c   : > { %vm750_vm11 = vcmp.gt.s32.totalorder %v749_v59, 0  ;;  %v583_v2 = vrot.slane %v11952_v47, 5  ;;  %vm1053_vm6 = vcmp.lt.s32.totalorder %v11814_v50, 0  ;;  %vm12010_vm10 = vcmp.le.f32.partialorder %v1051_v52, 0.7853982 }
  0x6d   : > { %v917_v3 = vshrl.u32 %v899_v7, %v915_v62  ;;  %v920_v4 = vadd.s32 127, %v919_v10  ;;  %v751_v13 = vsel %vm750_vm11, %v749_v59, 0  ;;  %v10859_v56 = vmin.u32 %v1117_v17, %v11962_v58 }
  0x6e   : > { %v753_v19 = vand.u32 31, %v751_v13  ;;  %v11980_v26 = vshrl.u32 %v751_v13, 5 }
  0x6f   : > { %v918_v25 = vor.u32 %v917_v3, %v916_v5  ;;  %v921_v0 = vshll.u32 %v920_v4, 23  ;;  %v1119_v9 = vclz %v10859_v56 }
  0x70   : > { %v754_v8 = vsub.s32 32, %v753_v19  ;;  %v756_v28 = vshll.u32 %v18068_v16, %v753_v19  ;;  %v759_v36 = vshll.u32 %v18070_v18, %v753_v19  ;;  %v762_v41 = vshll.u32 %v18076_v20, %v753_v19 }
  0x71   : > { %v922_v37 = vor.u32 4788187, %v921_v0  ;;  %v925_v27 = vcvt.s32.f32 %v918_v25  ;;  %v10860_v14 = vadd.s32 4294967294, %v1119_v9  ;;  %v765_v46 = vshll.u32 %v18078_v22, %v753_v19  ;;  %v1609_v25 = vld [vmem:[%s18043_s2 + $0x30] sm:$0xff] }
  0x72   : > { %v755_v35 = vshrl.u32 %v18068_v16, %v754_v8  ;;  %v757_v49 = vshrl.u32 %v18070_v18, %v754_v8  ;;  %v760_v51 = vshrl.u32 %v18076_v20, %v754_v8  ;;  %v763_v53 = vshrl.u32 %v18078_v22, %v754_v8 }
  0x73   : > { %v923_v48 = vand.u32 2147483647, %v922_v37  ;;  %vm10861_vm12 = vcmp.lt.s32.totalorder %v10860_v14, 0  ;;  %v766_v7 = vshrl.u32 %v18064_v24, %v754_v8  ;;  %v768_v54 = vshll.u32 %v18064_v24, %v753_v19 }
  0x74   : > { %v1122_v57 = vsel %vm10861_vm12, 0, %v10860_v14  ;;  %v758_v59 = vor.u32 %v757_v49, %v756_v28  ;;  %v761_v60 = vor.u32 %v760_v51, %v759_v36  ;;  %v764_v12 = vor.u32 %v763_v53, %v762_v41 }
  0x75   : > { %v926_v55 = vmul.f32 %v925_v27, %v923_v48  ;;  %v1123_v62 = vsub.s32 32, %v1122_v57  ;;  %v1124_v5 = vshll.u32 %v11962_v58, %v1122_v57  ;;  %v1127_v10 = vsub.s32 4294967266, %v1122_v57 }
  0x76   : > { %v767_v63 = vor.u32 %v766_v7, %v765_v46  ;;  %v769_v3 = vshrl.u32 %v18061_v33, %v754_v8  ;;  %vm771_vm13 = vcmp.lt.s32.totalorder %v11980_v26, 1  ;;  %vm772_vm14 = vcmp.lt.s32.totalorder %v11980_v26, 2 }
  0x77   : > { %v927_v17 = vxor.u32 2147483648, %v926_v55  ;;  %v1125_v4 = vshrl.u32 %v1107_v61, %v1123_v62  ;;  %v1128_v13 = vadd.s32 127, %v1127_v10  ;;  %vm773_vm15 = vcmp.lt.s32.totalorder %v11980_v26, 3 }
  0x78   : > { %v770_v58 = vor.u32 %v769_v3, %v768_v54  ;;  %vm774_vm7 = vcmp.lt.s32.totalorder %v11980_v26, 4  ;;  %v775_v19 = vsel %vm771_vm13, %v755_v35, %v758_v59  ;;  %v779_v8 = vsel %vm771_vm13, %v758_v59, %v761_v60 }
  0x79   : > { %v928_v56 = vsel %vm845_vm8, %v927_v17, %v926_v55  ;;  %v1126_v0 = vor.u32 %v1125_v4, %v1124_v5  ;;  %v1129_v9 = vshll.u32 %v1128_v13, 23  ;;  %v776_v37 = vsel %vm774_vm7, %v764_v12, 2102212464 }
  0x7a   : > { %v931_v61 = vsel %vm11937_vm9, %v11789_v32, %v928_v56  ;;  %v777_v27 = vsel %vm773_vm15, %v761_v60, %v776_v37  ;;  %v780_v39 = vsel %vm774_vm7, %v767_v63, 920167782  ;;  %v563_v14 = vsub.f32 %v531_v23, %v555_v11 }
  0x7b   : > { %11498 = vcosq.f32 %v931_v61  ;;  %v1130_v52 = vor.u32 4788187, %v1129_v9  ;;  %v1133_v28 = vcvt.s32.f32 %v1126_v0  ;;  %v778_v36 = vsel %vm772_vm14, %v775_v19, %v777_v27 }
  0x7c   : > { %11500 = vsinq.f32 %v931_v61  ;;  %v781_v41 = vsel %vm773_vm15, %v764_v12, %v780_v39  ;;  %v783_v46 = vsel %vm771_vm13, %v761_v60, %v764_v12  ;;  %v784_v48 = vsel %vm774_vm7, %v770_v58, 1326507024 }
  0x7d   : > { %v1131_v35 = vand.u32 2147483647, %v1130_v52  ;;  %v782_v49 = vsel %vm772_vm14, %v779_v8, %v781_v41  ;;  %v785_v51 = vsel %vm773_vm15, %v767_v63, %v784_v48  ;;  %v591_v23 = vmul.f32 %v583_v2, %v11750_v6 }
  0x7e   : > { %v786_v11 = vsel %vm772_vm14, %v783_v46, %v785_v51  ;;  %v12038_v53 = vmul.u32.u64.low %v11975_v15, %v782_v49  ;;  %v12039_v7 = vmul.u32.u64.high %v11975_v15, %v782_v49, %v12038_v53  ;;  %v611_v54 = vrot.slane %v11933_v38, 4  ;;  %v1607_v46 = vld [vmem:[%s18043_s2 + $0x20] sm:$0xff] }
  0x7f   : > { %v1134_v55 = vmul.f32 %v1133_v28, %v1131_v35  ;;  %v12044_v57 = vmul.u32.u64.low %v11975_v15, %v786_v11  ;;  %v12045_v59 = vmul.u32.u64.high %v11975_v15, %v786_v11, %v12044_v57  ;;  %v599_v60 = vrot.slane %v591_v23, 6 }
  0x80   : > { %v794_v62 = vmul.u32 %v11975_v15, %v778_v36  ;;  %v623_v2 = vrot.slane %v11943_v42, 2  ;;  %v651_v26 = vrot.slane %v11943_v42, 3  ;;  %v659_v5 = vrot.slane %v11933_v38, 3 }
  0x81   : > { %v1135_v10 = vxor.u32 2147483648, %v1134_v55  ;;  %v607_v12 = vsub.f32 %v11978_v40, %v599_v60  ;;  %v667_v17 = vrot.slane %v11952_v47, 3  ;;  %v679_v63 = vrot.slane %v563_v14, 6 }
  0x82   : > { %v797_v3 = vadd.s32 1, %v12039_v7  ;;  %v619_v4 = vmul.f32 %v611_v54, %v11750_v6  ;;  %v631_v13 = vmul.f32 %v623_v2, %v11750_v6  ;;  %v712_v15 = vsel %vm709_vm0, %v651_v26, %v659_v5  ;;  %v1610_v54 = vld [vmem:[%s18043_s2 + $0x38] sm:$0xff] }
  0x83   : > { %v1136_v56 = vsel %vm1053_vm6, %v1135_v10, %v1134_v55  ;;  %v1138_v38 = vsel %vm1053_vm6, %v1137_v21, %v11949_v44  ;;  %vm796_vm8 = vc.u32 %v12045_v59, %v12038_v53  ;;  %v691_v42 = vrot.slane %v607_v12, 6 }
  0x84   : > { %v1139_v47 = vsel %vm12010_vm10, %v11814_v50, %v1136_v56  ;;  %v798_v6 = vsel %vm796_vm8, %v797_v3, %v12039_v7  ;;  %v639_v40 = vrot.slane %v631_v13, 1  ;;  %v717_v58 = vsel %vm714_vm1, %v712_v15, %v667_v17  ;;  %v1608_v13 = vld [vmem:[%s18043_s2 + $0x28] sm:$0xff] }
  0x85   : > { %11502 = vcosq.f32 %v1139_v47  ;;  %v799_v19 = vadd.s32 %v798_v6, %v794_v62  ;;  %v722_v61 = vsel %vm719_vm2, %v717_v58, %v679_v63  ;;  %v1140_v44 = vsel %vm12010_vm10, 0, %v1138_v38  ;;  %v1605_v63 = vld [vmem:[%s18043_s2 + $0x10] sm:$0xff] }
  0x86   : > { %11504 = vsinq.f32 %v1139_v47  ;;  %v647_v21 = vsub.f32 %v619_v4, %v639_v40  ;;  %vm939_vm0 = vcmp.eq.s32.totalorder %v11970_v31, 0  ;;  %vm942_vm9 = vcmp.eq.s32.totalorder %v11970_v31, 2  ;;  %v1606_v40 = vld [vmem:[%s18043_s2 + $0x18] sm:$0xff] }
  0x87   : > { %v800_v9 = vadd.s32 536870912, %v799_v19  ;;  %v727_v37 = vsel %vm724_vm3, %v722_v61, %v691_v42  ;;  %v1351_v52 = vand.u32 3, %v11947_v43  ;;  %vm938_vm1 = vcmp.lt.s32.totalorder %v11970_v31, 2 }
  0x88   : > { %v11499_v0 = vpop.eup %11498  ;;  %v703_v39 = vrot.slane %v647_v21, 3  ;;  %v1144_v14 = vadd.s32 3, %v1140_v44  ;;  %v18055_v41 = vmov 0   ;;  %vm935_vm2 = vweird.f32 %v11789_v32  ;;  %v1603_v21 = vld [vmem:[%s18043_s2] sm:$0xff] }
  0x89   : > { %v11501_v27 = vpop.eup %11500  ;;  %v943_v8 = vxor.u32 2147483648, %v11499_v0  ;;  %v12082_v36 = vshrl.u32 %v800_v9, 30  ;;  %1728 = vmatprep.mubr.bf16.mxu0 %v18055_v41  ;;  %1801 = vmatprep.mubr.bf16.mxu1 %v18055_v41  ;;  %vm1353_vm11 = vcmp.eq.s32.totalorder %v1351_v52, 0  ;;  %vm1352_vm12 = vcmp.lt.s32.totalorder %v1351_v52, 2 }
  0x8a   : > { %v940_v28 = vxor.u32 2147483648, %v11501_v27  ;;  %v12093_v48 = vsel %vm729_vm4, %v727_v37, %v703_v39  ;;  %11452 = vset.pattern.permute.xlu0 %v18055_v41  ;;  %11453 = vset.pattern.permute.xlu1 %v18055_v41  ;;  %vm1356_vm4 = vcmp.eq.s32.totalorder %v1351_v52, 2  ;;  %v1145_v57 = vand.u32 3, %v1144_v14 }
  0x8b   : > { %v944_v43 = vsel %vm942_vm9, %v943_v8, %v11501_v27  ;;  %v802_v49 = vshll.u32 %v12082_v36, 30  ;;  %v12102_v51 = vsel %vm734_vm5, %v12093_v48, 0.0  ;;  %1643 = vperm.xlu0 %11452, %v1609_v25   ;;  %1633 = vperm.xlu1 %11453, %v1607_v46   ;;  %v1358_v26 = vsel %vm1356_vm4, %v943_v8, %v11501_v27  ;;  %v1604_v25 = vld [vmem:[%s18043_s2 + $0x8] sm:$0xff] }
  0x8c   : > { %v941_v35 = vsel %vm939_vm0, %v11499_v0, %v940_v28  ;;  %v947_v11 = vand.u32 2147483647, %v12102_v51  ;;  %v950_v7 = vand.u32 2139095040, %v12102_v51  ;;  %v12119_v5 = vand.u32 3, %v1140_v44 }
  0x8d   : > { %v945_v23 = vsel %vm938_vm1, %v941_v35, %v944_v43  ;;  %v12115_v60 = vsub.s32 %v799_v19, %v802_v49  ;;  %v1355_v17 = vsel %vm1353_vm11, %v11499_v0, %v940_v28  ;;  %vm1143_vm13 = vweird.f32 %v11814_v50  ;;  %v1904_v35 = vld [vmem:[%s18045_s4 + $0x30] sm:$0xff] }
  0x8e   : > { %v12113_v55 = vsel %vm935_vm2, nan, %v945_v23  ;;  %v951_v2 = vshrl.u32 %v950_v7, 23  ;;  %v954_v12 = vand.u32 8388607, %v947_v11  ;;  %vm1146_vm14 = vcmp.lt.s32.totalorder %v1145_v57, 2 }
  0x8f   : > { %v1568_v31 = vmul.f32 2.0, %v12113_v55  ;;  %v805_v62 = vsub.s32 0, %v12115_v60  ;;  %1648 = vperm.xlu0 %11452, %v1610_v54   ;;  %vm1147_vm15 = vcmp.eq.s32.totalorder %v1145_v57, 0  ;;  %vm1150_vm6 = vcmp.eq.s32.totalorder %v1145_v57, 2  ;;  %1638 = vperm.xlu1 %11453, %v1608_v13  }
  0x90   : > { %v10854_v4 = vadd.s32 4294967169, %v951_v2  ;;  %v1359_v38 = vsel %vm1352_vm12, %v1355_v17, %v1358_v26  ;;  %vm1559_vm7 = vcmp.eq.s32.totalorder %v12119_v5, 0  ;;  %vm1562_vm10 = vcmp.eq.s32.totalorder %v12119_v5, 2 }
  0x91   : > { %v1576_v10 = vmul.f32 %v1568_v31, %v12113_v55  ;;  %v10847_v3 = vmin.u32 %v805_v62, %v12115_v60  ;;  %v955_v61 = vor.u32 8388608, %v954_v12  ;;  %v795_v9 = vadd.s32 %v12038_v53, %v12045_v59 }
  0x92   : > { %v11503_v15 = vpop.eup %11502  ;;  %v957_v44 = vadd.s32 1, %v10854_v4  ;;  %v12145_v27 = vsel %vm935_vm2, nan, %v1359_v38  ;;  %vm1558_vm9 = vcmp.lt.s32.totalorder %v12119_v5, 2  ;;  %vm741_vm1 = vcmp.lt.s32.totalorder %v11928_v30, 0 }
  0x93   : > { %v1580_v56 = vsub.f32 1.0, %v1576_v10  ;;  %v11505_v42 = vpop.eup %11504  ;;  %v1151_v47 = vxor.u32 2147483648, %v11503_v15  ;;  %v807_v6 = vclz %v10847_v3  ;;  %1623 = vperm.xlu0 %11452, %v1605_v63   ;;  %v12150_v39 = vmul.f32 %v1568_v31, %v12145_v27  ;;  %1628 = vperm.xlu1 %11453, %v1606_v40  }
  0x94   : > { %v1148_v19 = vxor.u32 2147483648, %v11505_v42  ;;  %vm958_vm8 = vcmp.gt.s32.totalorder %v957_v44, 0  ;;  %v12168_v43 = vshll.u32 %v955_v61, 8 }
  0x95   : > { %v1600_v58 = vpack.c.bf16 %v1580_v56, %v1580_v56  ;;  %v1152_v0 = vsel %vm1150_vm6, %v1151_v47, %v11505_v42  ;;  %v10848_v37 = vadd.s32 4294967294, %v807_v6  ;;  %v959_v59 = vsel %vm958_vm8, %v957_v44, 0 }
  0x96   : > { %v1149_v8 = vsel %vm1147_vm15, %v11503_v15, %v1148_v19  ;;  %v12154_v52 = vsel %vm1559_vm7, %v11503_v15, %v1148_v19  ;;  %v12159_v32 = vsel %vm1562_vm10, %v1151_v47, %v11505_v42  ;;  %v961_v46 = vand.u32 31, %v959_v59  ;;  %v1902_v15 = vld [vmem:[%s18045_s4 + $0x20] sm:$0xff] }
  0x97   : > { %10882 = vmatprep.subr.msk.bf16.mxu0 %vm724_vm3, %v1600_v58  ;;  %v1153_v53 = vsel %vm1146_vm14, %v1149_v8, %v1152_v0  ;;  %vm10849_vm0 = vcmp.lt.s32.totalorder %v10848_v37, 0  ;;  %1613 = vperm.xlu0 %11452, %v1603_v21   ;;  %v12177_v54 = vshrl.u32 %v959_v59, 5  ;;  %vm12226_vm14 = vcmp.le.f32.partialorder %v739_v34, 0.7853982 }
  0x98   : > { %v12166_v28 = vsel %vm1143_vm13, nan, %v1153_v53  ;;  %v810_v14 = vsel %vm10849_vm0, 0, %v10848_v37  ;;  %v962_v31 = vsub.s32 32, %v961_v46  ;;  %v964_v62 = vshll.u32 %v18068_v16, %v961_v46  ;;  %1618 = vperm.xlu1 %11453, %v1604_v25   ;;  %v1900_v53 = vld [vmem:[%s18045_s4 + $0x10] sm:$0xff] }
  0x99   : > { %v12174_v49 = vmul.f32 2.0, %v12166_v28  ;;  %v811_v23 = vsub.s32 32, %v810_v14  ;;  %v812_v7 = vshll.u32 %v12115_v60, %v810_v14  ;;  %v815_v57 = vsub.s32 4294967266, %v810_v14  ;;  %v1905_v60 = vld [vmem:[%s18045_s4 + $0x38] sm:$0xff] }
  0x9a   : > { %v967_v2 = vshll.u32 %v18070_v18, %v961_v46  ;;  %v970_v12 = vshll.u32 %v18076_v20, %v961_v46  ;;  %v973_v17 = vshll.u32 %v18078_v22, %v961_v46  ;;  %v963_v3 = vshrl.u32 %v18068_v16, %v962_v31 }
  0x9b   : > { %v1578_v26 = vmul.f32 %v12174_v49, %v12166_v28  ;;  %v813_v10 = vshrl.u32 %v795_v9, %v811_v23  ;;  %1938 = vperm.xlu0 %11452, %v1904_v35   ;;  %v816_v63 = vadd.s32 127, %v815_v57  ;;  %v965_v4 = vshrl.u32 %v18070_v18, %v962_v31  ;;  %v1903_v9 = vld [vmem:[%s18045_s4 + $0x28] sm:$0xff] }
  0x9c   : > { %v968_v13 = vshrl.u32 %v18076_v20, %v962_v31  ;;  %v971_v42 = vshrl.u32 %v18078_v22, %v962_v31  ;;  %v974_v47 = vshrl.u32 %v18064_v24, %v962_v31  ;;  %v976_v19 = vshll.u32 %v18064_v24, %v961_v46  ;;  %1943 = vperm.xlu1 %11453, %v1905_v60   ;;  %v1898_v60 = vld [vmem:[%s18045_s4] sm:$0xff] }
  0x9d   : > { %v1582_v56 = vsub.f32 1.0, %v1578_v26  ;;  %v814_v38 = vor.u32 %v813_v10, %v812_v7  ;;  %v817_v6 = vshll.u32 %v816_v63, 23  ;;  %v966_v40 = vor.u32 %v965_v4, %v964_v62 }
  0x9e   : > { %v969_v58 = vor.u32 %v968_v13, %v967_v2  ;;  %v972_v21 = vor.u32 %v971_v42, %v970_v12  ;;  %v975_v0 = vor.u32 %v974_v47, %v973_v17  ;;  %v977_v8 = vshrl.u32 %v18061_v33, %v962_v31  ;;  %v1901_v2 = vld [vmem:[%s18045_s4 + $0x18] sm:$0xff] }
  0x9f   : > { %v1602_v61 = vpack.c.bf16 %v1582_v56, %v1582_v56  ;;  %v821_v44 = vcvt.s32.f32 %v814_v38  ;;  %1928 = vperm.xlu0 %11452, %v1902_v15   ;;  %v818_v37 = vor.u32 4788187, %v817_v6  ;;  %vm979_vm2 = vcmp.lt.s32.totalorder %v12177_v54, 1 }
  0xa0   : > { %vm980_vm4 = vcmp.lt.s32.totalorder %v12177_v54, 2  ;;  %vm981_vm11 = vcmp.lt.s32.totalorder %v12177_v54, 3  ;;  %vm982_vm12 = vcmp.lt.s32.totalorder %v12177_v54, 4  ;;  %v983_v59 = vsel %vm979_vm2, %v963_v3, %v966_v40  ;;  %1933 = vperm.xlu1 %11453, %v1903_v9   ;;  %v1899_v54 = vld [vmem:[%s18045_s4 + $0x8] sm:$0xff] }
  0xa1   : > { %10893 = vmatprep.subr.msk.bf16.mxu1 %vm724_vm3, %v1602_v61  ;;  %v987_v25 = vsel %vm979_vm2, %v966_v40, %v969_v58  ;;  %v819_v14 = vand.u32 2147483647, %v818_v37  ;;  %v978_v46 = vor.u32 %v977_v8, %v976_v19  ;;  %v984_v35 = vsel %vm982_vm12, %v972_v21, 2102212464  ;;  %v2186_v37 = vld [vmem:[%s18047_s6 + $0x28] sm:$0xff]  ;;  %v2183_v8 = vld [vmem:[%s18047_s6 + $0x10] sm:$0xff] }
  0xa2   : > { %v988_v23 = vsel %vm982_vm12, %v975_v0, 920167782  ;;  %v985_v7 = vsel %vm981_vm11, %v969_v58, %v984_v35  ;;  %v991_v31 = vsel %vm979_vm2, %v969_v58, %v972_v21  ;;  %v1596_v62 = vpack.c.bf16 %v12150_v39, %v12145_v27  ;;  %v2181_v35 = vld [vmem:[%s18047_s6] sm:$0xff] }
  0xa3   : > { %v989_v57 = vsel %vm981_vm11, %v972_v21, %v988_v23  ;;  %1918 = vperm.xlu0 %11452, %v1900_v53   ;;  %v822_v10 = vmul.f32 %v821_v44, %v819_v14  ;;  %v992_v17 = vsel %vm982_vm12, %v978_v46, 1326507024  ;;  %v825_v63 = vsub.s32 4, %v12082_v36  ;;  %v2185_v44 = vld [vmem:[%s18047_s6 + $0x20] sm:$0xff]  ;;  %v2184_v46 = vld [vmem:[%s18047_s6 + $0x18] sm:$0xff] }
  0xa4   : > { %v990_v12 = vsel %vm980_vm4, %v987_v25, %v989_v57  ;;  %v993_v3 = vsel %vm981_vm11, %v975_v0, %v992_v17  ;;  %v986_v15 = vsel %vm980_vm4, %v983_v59, %v985_v7  ;;  %v1565_v38 = vsel %vm1558_vm9, %v12154_v52, %v12159_v32  ;;  %1923 = vperm.xlu1 %11453, %v1901_v2   ;;  %v2187_v52 = vld [vmem:[%s18047_s6 + $0x30] sm:$0xff]  ;;  %v10409_v39 = vld [vmem:[%s18051_s10 + $0x20] sm:$0xff] }
  0xa5   : > { %v12241_v34 = vmul.u32.u64.low %v12168_v43, %v990_v12  ;;  %v12242_v4 = vmul.u32.u64.high %v12168_v43, %v990_v12, %v12241_v34  ;;  %v823_v13 = vxor.u32 2147483648, %v822_v10  ;;  %v994_v56 = vsel %vm980_vm4, %v991_v31, %v993_v3  ;;  %v2182_v31 = vld [vmem:[%s18047_s6 + $0x8] sm:$0xff] }
  0xa6   : > { %v12254_v42 = vmul.u32.u64.low %v12168_v43, %v994_v56  ;;  %v12255_v47 = vmul.u32.u64.high %v12168_v43, %v994_v56, %v12254_v42  ;;  %v12259_v6 = vsel %vm1143_vm13, nan, %v1565_v38  ;;  %v826_v50 = vsel %vm741_vm1, %v825_v63, %v12082_v36  ;;  %v2188_v36 = vld [vmem:[%s18047_s6 + $0x38] sm:$0xff]  ;;  %v10273_v38 = vld [vmem:[%s18049_s8 + $0x20] sm:$0xff] }
  0xa7   : > { %1908 = vperm.xlu0 %11452, %v1898_v60   ;;  %v824_v40 = vsel %vm741_vm1, %v823_v13, %v822_v10  ;;  %v12268_v5 = vmul.f32 %v12174_v49, %v12259_v6  ;;  %v1002_v58 = vmul.u32 %v12168_v43, %v986_v15  ;;  %v1005_v19 = vadd.s32 1, %v12242_v4  ;;  %v10275_v10 = vld [vmem:[%s18049_s8 + $0x30] sm:$0xff]  ;;  %v10276_v13 = vld [vmem:[%s18049_s8 + $0x38] sm:$0xff] }
  0xa8   : > { %v827_v32 = vsel %vm12226_vm14, %v11928_v30, %v824_v40  ;;  %1913 = vperm.xlu1 %11453, %v1899_v54   ;;  %vm1004_vm13 = vc.u32 %v12255_v47, %v12241_v34  ;;  %v828_v61 = vsel %vm12226_vm14, 0, %v826_v50  ;;  %vm831_vm0 = vweird.f32 %v11928_v30  ;;  %v10269_v30 = vld [vmem:[%s18049_s8] sm:$0xff] }
  0xa9   : > { %11506 = vcosq.f32 %v827_v32  ;;  %v1598_v49 = vpack.c.bf16 %v12268_v5, %v12259_v6  ;;  %v1006_v43 = vsel %vm1004_vm13, %v1005_v19, %v12242_v4  ;;  %v832_v0 = vadd.s32 3, %v828_v61 }
  0xaa   : > { %11508 = vsinq.f32 %v827_v32  ;;  %v1007_v21 = vadd.s32 %v1006_v43, %v1002_v58  ;;  %v1248_v14 = vand.u32 3, %v828_v61  ;;  %v1003_v50 = vadd.s32 %v12241_v34, %v12255_v47  ;;  %v10274_v32 = vld [vmem:[%s18049_s8 + $0x28] sm:$0xff]  ;;  %v10271_v61 = vld [vmem:[%s18049_s8 + $0x10] sm:$0xff] }
  0xab   : > { %2221 = vperm.xlu0 %11452, %v2187_v52   ;;  %v833_v59 = vand.u32 3, %v832_v0  ;;  %vm11657_vm2 = vmmov 1   ;;  %vm949_vm11 = vcmp.lt.s32.totalorder %v12102_v51, 0  ;;  %vm1671_vm12 = vcmask 326656  }
  0xac   : > { %2226 = vperm.xlu1 %11453, %v2188_v36   ;;  %v1008_v9 = vadd.s32 536870912, %v1007_v21  ;;  %vm1253_vm6 = vcmp.eq.s32.totalorder %v1248_v14, 2  ;;  %vm1250_vm8 = vcmp.eq.s32.totalorder %v1248_v14, 0  ;;  %vm1249_vm9 = vcmp.lt.s32.totalorder %v1248_v14, 2  ;;  %vm12353_vm4 = vmpackc.low %vm11657_vm2, %vm734_vm5 }
  0xad   : > { %vm838_vm15 = vcmp.eq.s32.totalorder %v833_v59, 2  ;;  %vm835_vm7 = vcmp.eq.s32.totalorder %v833_v59, 0  ;;  %vm834_vm10 = vcmp.lt.s32.totalorder %v833_v59, 2  ;;  %vm12370_vm5 = vcmp.le.f32.partialorder %v947_v11, 0.7853982  ;;  %v10410_v11 = vld [vmem:[%s18051_s10 + $0x28] sm:$0xff] }
  0xae   : > { %v12300_v53 = vshrl.u32 %v1008_v9, 30 }
  0xaf   : > { %2211 = vperm.xlu0 %11452, %v2185_v44  }
  0xb0   : > { %2216 = vperm.xlu1 %11453, %v2186_v37   ;;  %v1010_v25 = vshll.u32 %v12300_v53, 30  ;;  %v10272_v37 = vld [vmem:[%s18049_s8 + $0x18] sm:$0xff]  ;;  %v1033_v27 = vsub.s32 4, %v12300_v53 }
  0xb2   : > { %v1011_v23 = vsub.s32 %v1007_v21, %v1010_v25 }
  0xb3   : > { %2201 = vperm.xlu0 %11452, %v2183_v8  }
  0xb4   : > { %2206 = vperm.xlu1 %11453, %v2184_v46   ;;  %v1013_v57 = vsub.s32 0, %v1011_v23 }
  0xb6   : > { %v11507_v7 = vpop.eup %11506  ;;  %v10855_v17 = vmin.u32 %v1013_v57, %v1011_v23  ;;  %v10884_v57 = vpack.c.bf16 %v12113_v55, %v11781_v1  ;;  %v10412_v55 = vld [vmem:[%s18051_s10 + $0x38] sm:$0xff] }
  0xb7   : > { %2191 = vperm.xlu0 %11452, %v2181_v35   ;;  %v11509_v2 = vpop.eup %11508  ;;  %v839_v26 = vxor.u32 2147483648, %v11507_v7 }
  0xb8   : > { %v836_v12 = vxor.u32 2147483648, %v11509_v2  ;;  %2196 = vperm.xlu1 %11453, %v2182_v31   ;;  %v1015_v4 = vclz %v10855_v17  ;;  %v10411_v31 = vld [vmem:[%s18051_s10 + $0x30] sm:$0xff] }
  0xb9   : > { %v840_v60 = vsel %vm838_vm15, %v839_v26, %v11509_v2  ;;  %v1255_v63 = vsel %vm1253_vm6, %v839_v26, %v11509_v2 }
  0xba   : > { %v837_v3 = vsel %vm835_vm7, %v11507_v7, %v836_v12  ;;  %v1252_v56 = vsel %vm1250_vm8, %v11507_v7, %v836_v12  ;;  %v10856_v54 = vadd.s32 4294967294, %v1015_v4  ;;  %v10270_v7 = vld [vmem:[%s18049_s8 + $0x8] sm:$0xff]  ;;  %v12377_v12 = vld [vmem:[%s18042_s1] sm:$0xff]  }
  0xbb   : > { %10309 = vperm.xlu0 %11452, %v10275_v10   ;;  %v841_v15 = vsel %vm834_vm10, %v837_v3, %v840_v60  ;;  %v1256_v40 = vsel %vm1249_vm9, %v1252_v56, %v1255_v63  ;;  %v1034_v60 = vsel %vm949_vm11, %v1033_v27, %v12300_v53  ;;  %v10407_v3 = vld [vmem:[%s18051_s10 + $0x10] sm:$0xff]  ;;  %v10408_v53 = vld [vmem:[%s18051_s10 + $0x18] sm:$0xff]  ;;  %v11455_v56 = vld [vmem:[%s18042_s1 + $0x8] sm:$0xff]   ;;  %vm1039_vm10 = vweird.f32 %v12102_v51 }
  0xbc   : > { %v842_v42 = vsel %vm831_vm0, nan, %v841_v15  ;;  %10314 = vperm.xlu1 %11453, %v10276_v13   ;;  %vm10857_vm1 = vcmp.lt.s32.totalorder %v10856_v54, 0  ;;  %v1257_v36 = vsel %vm831_vm0, nan, %v1256_v40  ;;  %v1036_v4 = vsel %vm12370_vm5, 0, %v1034_v60  ;;  %v10405_v13 = vld [vmem:[%s18051_s10] sm:$0xff] }
  0xbd   : > { %v1567_v52 = vmul.f32 2.0, %v842_v42  ;;  %v1018_v19 = vsel %vm10857_vm1, 0, %v10856_v54  ;;  %v10887_v1 = vpack.c.bf16 %v842_v42, %v11921_v29  ;;  %v1040_v15 = vadd.s32 3, %v1036_v4 }
  0xbe   : > { %v1019_v43 = vsub.s32 32, %v1018_v19  ;;  %v1020_v44 = vshll.u32 %v1011_v23, %v1018_v19  ;;  %v1023_v21 = vsub.s32 4294967266, %v1018_v19  ;;  %v1454_v40 = vand.u32 3, %v1036_v4 }
  0xbf   : > { %10299 = vperm.xlu0 %11452, %v10273_v38   ;;  %v1575_v58 = vmul.f32 %v1567_v52, %v842_v42  ;;  %v1571_v9 = vmul.f32 %v1567_v52, %v1257_v36  ;;  %v10406_v38 = vld [vmem:[%s18051_s10 + $0x8] sm:$0xff]  ;;  %v10680_v42 = vld [vmem:[%s18053_s12] sm:$0x7]  ;;  %v1041_v54 = vand.u32 3, %v1040_v15 }
  0xc0   : > { %10304 = vperm.xlu1 %11453, %v10274_v32   ;;  %v1021_v34 = vshrl.u32 %v1003_v50, %v1019_v43  ;;  %v1024_v47 = vadd.s32 127, %v1023_v21  ;;  %vm1459_vm13 = vcmp.eq.s32.totalorder %v1454_v40, 2  ;;  %v11456_v50 = vld [vmem:[%s18042_s1 + $0x10] sm:$0xff]   ;;  %vm1456_vm6 = vcmp.eq.s32.totalorder %v1454_v40, 0 }
  0xc1   : > { %v1579_v0 = vsub.f32 1.0, %v1575_v58  ;;  %v1595_v23 = vpack.c.bf16 %v1571_v9, %v1257_v36  ;;  %vm1046_vm14 = vcmp.eq.s32.totalorder %v1041_v54, 2  ;;  %vm1043_vm15 = vcmp.eq.s32.totalorder %v1041_v54, 0  ;;  %v11457_v9 = vld [vmem:[%s18042_s1 + $0x18] sm:$0xff]  }
  0xc2   : > { %v1022_v59 = vor.u32 %v1021_v34, %v1020_v44  ;;  %v1025_v25 = vshll.u32 %v1024_v47, 23  ;;  %vm1042_vm7 = vcmp.lt.s32.totalorder %v1041_v54, 2  ;;  %vm1455_vm8 = vcmp.lt.s32.totalorder %v1454_v40, 2 }
  0xc3   : > { %10289 = vperm.xlu0 %11452, %v10271_v61   ;;  %v1599_v8 = vpack.c.bf16 %v1579_v0, %v1579_v0 }
  0xc4   : > { %10294 = vperm.xlu1 %11453, %v10272_v37   ;;  %v1026_v46 = vor.u32 4788187, %v1025_v25  ;;  %v1029_v35 = vcvt.s32.f32 %v1022_v59 }
  0xc5   : > { %v1685_v14 = vsel %vm724_vm3, %v1599_v8, 0 }
  0xc6   : > { %1707 = vmatpush1.bf16.msra.mxu0 %v1685_v14  ;;  %v1027_v2 = vand.u32 2147483647, %v1026_v46  ;;  %v10895_v46 = vpack.c.bf16 %v12166_v28, %v11807_v45 }
  0xc7   : > { %10279 = vperm.xlu0 %11452, %v10269_v30   ;;  %1708 = vmatprep.subr.bf16.mxu0 %v1596_v62 }
  0xc8   : > { %10284 = vperm.xlu1 %11453, %v10270_v7   ;;  %v1030_v10 = vmul.f32 %v1029_v35, %v1027_v2 }
  0xca   : > { %1709 = vmatpush1.bf16.msra.mxu0 %v1595_v23  ;;  %v1031_v62 = vxor.u32 2147483648, %v1030_v10 }
  0xcb   : > { %10445 = vperm.xlu0 %11452, %v10411_v31   ;;  %10885 = vmatprep.subr.msk.bf16.mxu0 %vm12353_vm4, %v10884_v57 }
  0xcc   : > { %10450 = vperm.xlu1 %11453, %v10412_v55   ;;  %v1032_v17 = vsel %vm949_vm11, %v1031_v62, %v1030_v10 }
  0xcd   : > { %v1035_v63 = vsel %vm12370_vm5, %v12102_v51, %v1032_v17 }
  0xce   : > { %10888 = vmatpush1.bf16.msk.msra.mxu0 %vm12353_vm4, %v10887_v1  ;;  %11510 = vcosq.f32 %v1035_v63 }
  0xcf   : > { %10435 = vperm.xlu0 %11452, %v10409_v39   ;;  %11512 = vsinq.f32 %v1035_v63 }
  0xd0   : > { %10440 = vperm.xlu1 %11453, %v10410_v11  }
  0xd1   : > { %10889 = vmatmul.mubr.msk.bf16.vlgmr.msra.gmra.mxu0 %vm1671_vm12, %v12377_v12 }
  0xd2   : > { %1738 = vmatprep.mubr.bf16.mxu0 %v18055_v41 }
  0xd3   : > { %10425 = vperm.xlu0 %11452, %v10407_v3  }
  0xd4   : > { %10430 = vperm.xlu1 %11453, %v10408_v53  }
  0xd7   : > { %10415 = vperm.xlu0 %11452, %v10405_v13  }
  0xd8   : > { %10420 = vperm.xlu1 %11453, %v10406_v38  }
  0xd9   : > { %10890 = vmatmul.mubr.msk.bf16.gmra.mxu0 %vm1671_vm12, %v11455_v56 }
  0xda   : > { %1748 = vmatprep.mubr.bf16.mxu0 %v18055_v41 }
  0xdb   : > { %10683 = vperm.xlu0 %11452, %v10680_v42   ;;  %v11511_v52 = vpop.eup %11510 }
  0xdc   : > { %v11513_v32 = vpop.eup %11512  ;;  %v1047_v58 = vxor.u32 2147483648, %v11511_v52 }
  0xdd   : > { %v1044_v19 = vxor.u32 2147483648, %v11513_v32 }
  0xde   : > { %v1048_v36 = vsel %vm1046_vm14, %v1047_v58, %v11513_v32  ;;  %v1461_v61 = vsel %vm1459_vm13, %v1047_v58, %v11513_v32 }
  0xdf   : > { %v1045_v43 = vsel %vm1043_vm15, %v11511_v52, %v1044_v19  ;;  %v1458_v44 = vsel %vm1456_vm6, %v11511_v52, %v1044_v19 }
  0xe0   : > { %v1049_v21 = vsel %vm1042_vm7, %v1045_v43, %v1048_v36  ;;  %v1462_v34 = vsel %vm1455_vm8, %v1458_v44, %v1461_v61 }
  0xe1   : > { %10891 = vmatmul.mubr.msk.bf16.gmra.mxu0 %vm1671_vm12, %v11456_v50  ;;  %v1050_v0 = vsel %vm1039_vm10, nan, %v1049_v21  ;;  %v1463_v8 = vsel %vm1039_vm10, nan, %v1462_v34 }
  0xe2   : > { %1758 = vmatprep.mubr.bf16.mxu0 %v18055_v41  ;;  %v1569_v47 = vmul.f32 2.0, %v1050_v0  ;;  %v10898_v35 = vpack.c.bf16 %v1050_v0, %v12093_v48 }
  0xe4   : > { %v1577_v37 = vmul.f32 %v1569_v47, %v1050_v0  ;;  %v1573_v30 = vmul.f32 %v1569_v47, %v1463_v8 }
  0xe6   : > { %v1581_v51 = vsub.f32 1.0, %v1577_v37  ;;  %v1597_v14 = vpack.c.bf16 %v1573_v30, %v1463_v8 }
  0xe8   : > { %v1601_v59 = vpack.c.bf16 %v1581_v51, %v1581_v51 }
  0xe9   : > { %10892 = vmatmul.mubr.msk.bf16.gmra.mxu0 %vm1671_vm12, %v11457_v9 }
  0xea   : > { %2011 = vmatprep.mubr.bf16.mxu0 %v18055_v41  ;;  %v1691_v25 = vsel %vm724_vm3, %v1601_v59, 0  ;;  %vm18150_vm3 = vcmask 523264  }
  0xeb   : > { %1780 = vmatpush1.bf16.msra.mxu1 %v1691_v25 }
  0xec   : > { %1781 = vmatprep.subr.bf16.mxu1 %v1598_v49 }
  0xef   : > { %1782 = vmatpush1.bf16.msra.mxu1 %v1597_v14 }
  0xf0   : > { %10896 = vmatprep.subr.msk.bf16.mxu1 %vm12353_vm4, %v10895_v46 }
  0xf3   : > { %10899 = vmatpush1.bf16.msk.msra.mxu1 %vm12353_vm4, %v10898_v35 }
  0xf6   : > { %10900 = vmatmul.mubr.msk.bf16.vlgmr.msra.gmra.mxu1 %vm1671_vm12, %v12377_v12 }
  0xf7   : > { %1811 = vmatprep.mubr.bf16.mxu1 %v18055_v41 }
  0xfe   : > { %10901 = vmatmul.mubr.msk.bf16.gmra.mxu1 %vm1671_vm12, %v11455_v56 }
  0xff   : > { %1821 = vmatprep.mubr.bf16.mxu1 %v18055_v41 }
 0x106   : > { %10902 = vmatmul.mubr.msk.bf16.gmra.mxu1 %vm1671_vm12, %v11456_v50  ;;  %v12444_v31 = vpop.permute.xlu1 %1633  ;;  %v12446_v26 = vpop.permute.xlu0 %1643 }
 0x107   : > { %1831 = vmatprep.mubr.bf16.mxu1 %v18055_v41 }
 0x10a   : > { %v12448_v55 = vpop.permute.xlu1 %1638  ;;  %v12450_v39 = vpop.permute.xlu0 %1648 }
 0x10e   : > { %10903 = vmatmul.mubr.msk.bf16.gmra.mxu1 %vm1671_vm12, %v11457_v9  ;;  %v12455_v60 = vpop.permute.xlu1 %1628  ;;  %v12460_v13 = vpop.permute.xlu0 %1623 }
 0x10f   : > { %2084 = vmatprep.mubr.bf16.mxu1 %v18055_v41 }
 0x112   : > { %v12470_v47 = vpop.permute.xlu0 %1613 }
 0x113   : > { %v12466_v36 = vpop.permute.xlu1 %1618 }
 0x191   : > { %v1730_v45 = vpop.f32.mrf.mxu0 }
 0x193   : > { %v1732_v48 = vpop.f32.mrf.mxu0 }
 0x194   : > { %v1733_v51 = vadd.f32 %v1732_v48, %v12470_v47 }
 0x195   : > { %v1734_v28 = vpop.f32.mrf.mxu0 }
 0x196   : > { %v1735_v59 = vadd.f32 %v1734_v28, %v12466_v36 }
 0x197   : > { %v1736_v6 = vpop.f32.mrf.mxu0 }
 0x198   : > { %v1737_v21 = vadd.f32 %v1736_v6, %v12466_v36 }
 0x199   : > { %v1740_v5 = vpop.f32.mrf.mxu0 }
 0x19a   : > { %v1741_v9 = vadd.f32 %v1740_v5, %v12460_v13  ;;  %v1847_v35 = vmax.f32 %v1737_v21, 0.0  ;;  %v1843_v5 = vmax.f32 %v1733_v51, 0.0 }
 0x19b   : > { %v1742_v49 = vpop.f32.mrf.mxu0 }
 0x19c   : > { %v1743_v32 = vadd.f32 %v1742_v49, %v12460_v13  ;;  %v1731_v49 = vadd.f32 %v1730_v45, %v12470_v47  ;;  %v12485_v45 = vld [vmem:[%s18044_s3] sm:$0xff]  }
 0x19d   : > { %v1744_v23 = vpop.f32.mrf.mxu0 }
 0x19e   : > { %v1745_v61 = vadd.f32 %v1744_v23, %v12455_v60  ;;  %v1851_v30 = vmax.f32 %v1743_v32, 0.0  ;;  %v1850_v23 = vmax.f32 %v1741_v9, 0.0  ;;  %v11461_v9 = vld [vmem:[%s18044_s3 + $0x18] sm:$0xff]  }
 0x19f   : > { %v1746_v7 = vpop.f32.mrf.mxu0 }
 0x1a0   : > { %v1747_v38 = vadd.f32 %v1746_v7, %v12455_v60  ;;  %v1854_v25 = vmax.f32 %v1745_v61, 0.0 }
 0x1a1   : > { %v1750_v57 = vpop.f32.mrf.mxu0 }
 0x1a2   : > { %v1751_v52 = vadd.f32 %v1750_v57, %v12444_v31  ;;  %v1855_v0 = vmax.f32 %v1747_v38, 0.0  ;;  %v1846_v57 = vmax.f32 %v1735_v59, 0.0  ;;  %v1886_v48 = vpack.c.bf16 %v1854_v25, %v1850_v23 }
 0x1a3   : > { %v1752_v2 = vpop.f32.mrf.mxu0 }
 0x1a4   : > { %v1753_v4 = vadd.f32 %v1752_v2, %v12444_v31  ;;  %v1858_v37 = vmax.f32 %v1751_v52, 0.0  ;;  %v1887_v6 = vpack.c.bf16 %v1855_v0, %v1851_v30 }
 0x1a5   : > { %v1754_v10 = vpop.f32.mrf.mxu0 }
 0x1a6   : > { %v1755_v15 = vadd.f32 %v1754_v10, %v12448_v55  ;;  %v1859_v58 = vmax.f32 %v1753_v4, 0.0  ;;  %v1883_v10 = vpack.c.bf16 %v1847_v35, %v1843_v5 }
 0x1a7   : > { %v1756_v1 = vpop.f32.mrf.mxu0 }
 0x1a8   : > { %v1757_v12 = vadd.f32 %v1756_v1, %v12448_v55  ;;  %v1862_v43 = vmax.f32 %v1755_v15, 0.0  ;;  %v1842_v1 = vmax.f32 %v1731_v49, 0.0 }
 0x1a9   : > { %v1760_v27 = vpop.f32.mrf.mxu0 }
 0x1aa   : > { %v1761_v63 = vadd.f32 %v1760_v27, %v12446_v26  ;;  %v1863_v42 = vmax.f32 %v1757_v12, 0.0  ;;  %v1890_v14 = vpack.c.bf16 %v1862_v43, %v1858_v37  ;;  %v1882_v27 = vpack.c.bf16 %v1846_v57, %v1842_v1 }
 0x1ab   : > { %v1762_v29 = vpop.f32.mrf.mxu0 }
 0x1ac   : > { %v1763_v17 = vadd.f32 %v1762_v29, %v12446_v26  ;;  %v1866_v50 = vmax.f32 %v1761_v63, 0.0  ;;  %v1891_v34 = vpack.c.bf16 %v1863_v42, %v1859_v58  ;;  %v12493_v63 = vld [vmem:[%s18044_s3 + $0x8] sm:$0xff]  }
 0x1ad   : > { %v1764_v62 = vpop.f32.mrf.mxu0 }
 0x1ae   : > { %v1765_v11 = vadd.f32 %v1764_v62, %v12450_v39  ;;  %v1867_v54 = vmax.f32 %v1763_v17, 0.0 }
 0x1af   : > { %v1766_v3 = vpop.f32.mrf.mxu0 }
 0x1b0   : > { %v1767_v53 = vadd.f32 %v1766_v3, %v12450_v39  ;;  %v1870_v56 = vmax.f32 %v1765_v11, 0.0 }
 0x1b2   : > { %v1871_v40 = vmax.f32 %v1767_v53, 0.0  ;;  %v1894_v44 = vpack.c.bf16 %v1870_v56, %v1866_v50  ;;  %v11460_v56 = vld [vmem:[%s18044_s3 + $0x10] sm:$0xff]  }
 0x1b4   : > { %v1895_v19 = vpack.c.bf16 %v1871_v40, %v1867_v54 }
 0x1b6   : > { %1987 = vmatprep.subr.bf16.mxu0 %v1895_v19  ;;  %v12473_v8 = vpop.f32.mrf.mxu1 }
 0x1b7   : > { %1988 = vmatpush1.bf16.msra.mxu0 %v1894_v44 }
 0x1b8   : > { %1989 = vmatprep.subr.bf16.mxu0 %v1891_v34  ;;  %v12477_v46 = vpop.f32.mrf.mxu1 }
 0x1b9   : > { %v1806_v49 = vadd.f32 %v12477_v46, %v12470_v47 }
 0x1ba   : > { %v12480_v7 = vpop.f32.mrf.mxu1 }
 0x1bb   : > { %1990 = vmatpush1.bf16.msra.mxu0 %v1890_v14  ;;  %v1845_v1 = vmax.f32 %v1806_v49, 0.0 }
 0x1bc   : > { %1991 = vmatprep.subr.bf16.mxu0 %v1887_v6  ;;  %v1809_v2 = vpop.f32.mrf.mxu1 }
 0x1bd   : > { %v1810_v25 = vadd.f32 %v1809_v2, %v12466_v36 }
 0x1be   : > { %v1813_v28 = vpop.f32.mrf.mxu1 }
 0x1bf   : > { %1992 = vmatpush1.bf16.msra.mxu0 %v1886_v48  ;;  %v1849_v48 = vmax.f32 %v1810_v25, 0.0 }
 0x1c0   : > { %1993 = vmatprep.subr.bf16.mxu0 %v1883_v10  ;;  %v1815_v29 = vpop.f32.mrf.mxu1 }
 0x1c1   : > { %v1816_v37 = vadd.f32 %v1815_v29, %v12460_v13 }
 0x1c2   : > { %v1817_v62 = vpop.f32.mrf.mxu1 }
 0x1c3   : > { %1994 = vmatpush1.bf16.msra.mxu0 %v1882_v27  ;;  %v1818_v30 = vadd.f32 %v1817_v62, %v12455_v60  ;;  %v1853_v23 = vmax.f32 %v1816_v37, 0.0  ;;  %v1885_v27 = vpack.c.bf16 %v1849_v48, %v1845_v1 }
 0x1c4   : > { %v1819_v12 = vpop.f32.mrf.mxu1 }
 0x1c5   : > { %v1820_v43 = vadd.f32 %v1819_v12, %v12455_v60  ;;  %v1808_v60 = vadd.f32 %v12480_v7, %v12466_v36  ;;  %v1856_v5 = vmax.f32 %v1818_v30, 0.0 }
 0x1c6   : > { %10908 = vmatmul.mubr.msk.bf16.vlgmr.msra.gmra.mxu0 %vm18150_vm3, %v12485_v45  ;;  %v1823_v17 = vpop.f32.mrf.mxu1 }
 0x1c7   : > { %2021 = vmatprep.mubr.bf16.mxu0 %v18055_v41  ;;  %v1824_v34 = vadd.f32 %v1823_v17, %v12444_v31  ;;  %v1857_v14 = vmax.f32 %v1820_v43, 0.0 }
 0x1c8   : > { %v1825_v11 = vpop.f32.mrf.mxu1 }
 0x1c9   : > { %v1826_v32 = vadd.f32 %v1825_v11, %v12444_v31  ;;  %v1814_v31 = vadd.f32 %v1813_v28, %v12460_v13  ;;  %v1860_v6 = vmax.f32 %v1824_v34, 0.0  ;;  %v1889_v2 = vpack.c.bf16 %v1857_v14, %v1853_v23 }
 0x1ca   : > { %v1827_v3 = vpop.f32.mrf.mxu1  ;;  %v1804_v13 = vadd.f32 %v12473_v8, %v12470_v47  ;;  %v1848_v28 = vmax.f32 %v1808_v60, 0.0 }
 0x1cb   : > { %v1828_v19 = vadd.f32 %v1827_v3, %v12448_v55  ;;  %v1852_v10 = vmax.f32 %v1814_v31, 0.0 }
 0x1cc   : > { %v1829_v4 = vpop.f32.mrf.mxu1  ;;  %v1844_v29 = vmax.f32 %v1804_v13, 0.0 }
 0x1cd   : > { %v1830_v42 = vadd.f32 %v1829_v4, %v12448_v55  ;;  %v1864_v55 = vmax.f32 %v1828_v19, 0.0  ;;  %v1888_v46 = vpack.c.bf16 %v1856_v5, %v1852_v10 }
 0x1ce   : > { %10909 = vmatmul.mubr.msk.bf16.gmra.mxu0 %vm18150_vm3, %v12493_v63  ;;  %v1833_v53 = vpop.f32.mrf.mxu1  ;;  %v1884_v62 = vpack.c.bf16 %v1848_v28, %v1844_v29 }
 0x1cf   : > { %2031 = vmatprep.mubr.bf16.mxu0 %v18055_v41  ;;  %v1834_v52 = vadd.f32 %v1833_v53, %v12446_v26  ;;  %v1865_v44 = vmax.f32 %v1830_v42, 0.0  ;;  %v1892_v57 = vpack.c.bf16 %v1864_v55, %v1860_v6  ;;  %v12539_v53 = vpop.permute.xlu0 %1938 }
 0x1d0   : > { %v1835_v15 = vpop.f32.mrf.mxu1 }
 0x1d1   : > { %v1836_v54 = vadd.f32 %v1835_v15, %v12446_v26  ;;  %v1868_v26 = vmax.f32 %v1834_v52, 0.0 }
 0x1d2   : > { %v1837_v38 = vpop.f32.mrf.mxu1 }
 0x1d3   : > { %v1838_v40 = vadd.f32 %v1837_v38, %v12450_v39  ;;  %v1869_v21 = vmax.f32 %v1836_v54, 0.0  ;;  %v12543_v54 = vpop.permute.xlu0 %1928 }
 0x1d4   : > { %v1839_v50 = vpop.f32.mrf.mxu1 }
 0x1d5   : > { %v1840_v58 = vadd.f32 %v1839_v50, %v12450_v39  ;;  %v1872_v61 = vmax.f32 %v1838_v40, 0.0  ;;  %v1861_v39 = vmax.f32 %v1826_v32, 0.0 }
 0x1d6   : > { %10910 = vmatmul.mubr.msk.bf16.gmra.mxu0 %vm18150_vm3, %v11460_v56 }
 0x1d7   : > { %2041 = vmatprep.mubr.bf16.mxu0 %v18055_v41  ;;  %v1873_v0 = vmax.f32 %v1840_v58, 0.0  ;;  %v1896_v59 = vpack.c.bf16 %v1872_v61, %v1868_v26  ;;  %v1893_v35 = vpack.c.bf16 %v1865_v44, %v1861_v39 }
 0x1d9   : > { %v1897_v51 = vpack.c.bf16 %v1873_v0, %v1869_v21  ;;  %v12553_v0 = vpop.permute.xlu0 %1918 }
 0x1db   : > { %2060 = vmatprep.subr.bf16.mxu1 %v1897_v51 }
 0x1dc   : > { %2061 = vmatpush1.bf16.msra.mxu1 %v1896_v59 }
 0x1dd   : > { %2062 = vmatprep.subr.bf16.mxu1 %v1893_v35 }
 0x1de   : > { %10911 = vmatmul.mubr.msk.bf16.gmra.mxu0 %vm18150_vm3, %v11461_v9 }
 0x1df   : > { %2293 = vmatprep.mubr.bf16.mxu0 %v18055_v41 }
 0x1e0   : > { %2063 = vmatpush1.bf16.msra.mxu1 %v1892_v57  ;;  %v12563_v57 = vpop.permute.xlu0 %1908 }
 0x1e1   : > { %2064 = vmatprep.subr.bf16.mxu1 %v1889_v2 }
 0x1e4   : > { %2065 = vmatpush1.bf16.msra.mxu1 %v1888_v46 }
 0x1e5   : > { %2066 = vmatprep.subr.bf16.mxu1 %v1885_v27 }
 0x1e8   : > { %2067 = vmatpush1.bf16.msra.mxu1 %v1884_v62 }
 0x1eb   : > { %10912 = vmatmul.mubr.msk.bf16.vlgmr.msra.gmra.mxu1 %vm18150_vm3, %v12485_v45 }
 0x1ec   : > { %2094 = vmatprep.mubr.bf16.mxu1 %v18055_v41 }
 0x1f3   : > { %10913 = vmatmul.mubr.msk.bf16.gmra.mxu1 %vm18150_vm3, %v12493_v63  ;;  %v12537_v63 = vpop.permute.xlu1 %1943 }
 0x1f4   : > { %2104 = vmatprep.mubr.bf16.mxu1 %v18055_v41 }
 0x1f7   : > { %v12541_v38 = vpop.permute.xlu1 %1933 }
 0x1fb   : > { %10914 = vmatmul.mubr.msk.bf16.gmra.mxu1 %vm18150_vm3, %v11460_v56  ;;  %v12548_v19 = vpop.permute.xlu1 %1923 }
 0x1fc   : > { %2114 = vmatprep.mubr.bf16.mxu1 %v18055_v41 }
 0x1ff   : > { %v12559_v35 = vpop.permute.xlu1 %1913 }
 0x203   : > { %10915 = vmatmul.mubr.msk.bf16.gmra.mxu1 %vm18150_vm3, %v11461_v9 }
 0x204   : > { %2366 = vmatprep.mubr.bf16.mxu1 %v18055_v41 }
 0x286   : > { %v2013_v36 = vpop.f32.mrf.mxu0 }
 0x288   : > { %v2015_v47 = vpop.f32.mrf.mxu0 }
 0x289   : > { %v2016_v10 = vadd.f32 %v2015_v47, %v12563_v57 }
 0x28a   : > { %v2017_v8 = vpop.f32.mrf.mxu0 }
 0x28b   : > { %v2018_v28 = vadd.f32 %v2017_v8, %v12559_v35 }
 0x28c   : > { %v2019_v7 = vpop.f32.mrf.mxu0 }
 0x28d   : > { %v2020_v23 = vadd.f32 %v2019_v7, %v12559_v35 }
 0x28e   : > { %v2023_v45 = vpop.f32.mrf.mxu0 }
 0x28f   : > { %v2024_v48 = vadd.f32 %v2023_v45, %v12553_v0  ;;  %v2130_v62 = vmax.f32 %v2020_v23, 0.0  ;;  %v2126_v45 = vmax.f32 %v2016_v10, 0.0 }
 0x290   : > { %v2025_v12 = vpop.f32.mrf.mxu0 }
 0x291   : > { %v2026_v59 = vadd.f32 %v2025_v12, %v12553_v0  ;;  %v2014_v12 = vadd.f32 %v2013_v36, %v12563_v57  ;;  %v12578_v36 = vld [vmem:[%s18046_s5] sm:$0xff]  }
 0x292   : > { %v2027_v17 = vpop.f32.mrf.mxu0 }
 0x293   : > { %v2028_v31 = vadd.f32 %v2027_v17, %v12548_v19  ;;  %v2134_v1 = vmax.f32 %v2026_v59, 0.0  ;;  %v2133_v17 = vmax.f32 %v2024_v48, 0.0  ;;  %v11465_v48 = vld [vmem:[%s18046_s5 + $0x18] sm:$0xff]  }
 0x294   : > { %v2029_v11 = vpop.f32.mrf.mxu0 }
 0x295   : > { %v2030_v9 = vadd.f32 %v2029_v11, %v12548_v19  ;;  %v2137_v46 = vmax.f32 %v2028_v31, 0.0 }
 0x296   : > { %v2033_v3 = vpop.f32.mrf.mxu0 }
 0x297   : > { %v2034_v30 = vadd.f32 %v2033_v3, %v12543_v54  ;;  %v2138_v60 = vmax.f32 %v2030_v9, 0.0  ;;  %v2129_v3 = vmax.f32 %v2018_v28, 0.0  ;;  %v2169_v47 = vpack.c.bf16 %v2137_v46, %v2133_v17 }
 0x298   : > { %v2035_v4 = vpop.f32.mrf.mxu0 }
 0x299   : > { %v2036_v44 = vadd.f32 %v2035_v4, %v12543_v54  ;;  %v2141_v2 = vmax.f32 %v2034_v30, 0.0  ;;  %v2170_v7 = vpack.c.bf16 %v2138_v60, %v2134_v1 }
 0x29a   : > { %v2037_v15 = vpop.f32.mrf.mxu0 }
 0x29b   : > { %v2038_v34 = vadd.f32 %v2037_v15, %v12541_v38  ;;  %v2142_v25 = vmax.f32 %v2036_v44, 0.0  ;;  %v2166_v15 = vpack.c.bf16 %v2130_v62, %v2126_v45 }
 0x29c   : > { %v2039_v56 = vpop.f32.mrf.mxu0 }
 0x29d   : > { %v2040_v50 = vadd.f32 %v2039_v56, %v12541_v38  ;;  %v2145_v6 = vmax.f32 %v2038_v34, 0.0  ;;  %v2125_v56 = vmax.f32 %v2014_v12, 0.0 }
 0x29e   : > { %v2043_v42 = vpop.f32.mrf.mxu0 }
 0x29f   : > { %v2044_v61 = vadd.f32 %v2043_v42, %v12539_v53  ;;  %v2146_v37 = vmax.f32 %v2040_v50, 0.0  ;;  %v2173_v27 = vpack.c.bf16 %v2145_v6, %v2141_v2  ;;  %v2165_v42 = vpack.c.bf16 %v2129_v3, %v2125_v56 }
 0x2a0   : > { %v2045_v40 = vpop.f32.mrf.mxu0 }
 0x2a1   : > { %v2046_v32 = vadd.f32 %v2045_v40, %v12539_v53  ;;  %v2149_v55 = vmax.f32 %v2044_v61, 0.0  ;;  %v2174_v5 = vpack.c.bf16 %v2146_v37, %v2142_v25  ;;  %v12586_v61 = vld [vmem:[%s18046_s5 + $0x8] sm:$0xff]  }
 0x2a2   : > { %v2047_v52 = vpop.f32.mrf.mxu0 }
 0x2a3   : > { %v2048_v58 = vadd.f32 %v2047_v52, %v12537_v63  ;;  %v2150_v39 = vmax.f32 %v2046_v32, 0.0 }
 0x2a4   : > { %v2049_v43 = vpop.f32.mrf.mxu0 }
 0x2a5   : > { %v2050_v21 = vadd.f32 %v2049_v43, %v12537_v63  ;;  %v2153_v26 = vmax.f32 %v2048_v58, 0.0 }
 0x2a7   : > { %v2154_v51 = vmax.f32 %v2050_v21, 0.0  ;;  %v2177_v49 = vpack.c.bf16 %v2153_v26, %v2149_v55  ;;  %v11464_v26 = vld [vmem:[%s18046_s5 + $0x10] sm:$0xff]  }
 0x2a9   : > { %v2178_v14 = vpack.c.bf16 %v2154_v51, %v2150_v39 }
 0x2ab   : > { %2269 = vmatprep.subr.bf16.mxu0 %v2178_v14  ;;  %v12566_v13 = vpop.f32.mrf.mxu1 }
 0x2ac   : > { %2270 = vmatpush1.bf16.msra.mxu0 %v2177_v49 }
 0x2ad   : > { %2271 = vmatprep.subr.bf16.mxu0 %v2174_v5  ;;  %v12570_v29 = vpop.f32.mrf.mxu1 }
 0x2ae   : > { %v2089_v12 = vadd.f32 %v12570_v29, %v12563_v57 }
 0x2af   : > { %v12573_v11 = vpop.f32.mrf.mxu1 }
 0x2b0   : > { %2272 = vmatpush1.bf16.msra.mxu0 %v2173_v27  ;;  %v2128_v56 = vmax.f32 %v2089_v12, 0.0 }
 0x2b1   : > { %2273 = vmatprep.subr.bf16.mxu0 %v2170_v7  ;;  %v2092_v4 = vpop.f32.mrf.mxu1 }
 0x2b2   : > { %v2093_v46 = vadd.f32 %v2092_v4, %v12559_v35 }
 0x2b3   : > { %v2096_v8 = vpop.f32.mrf.mxu1 }
 0x2b4   : > { %2274 = vmatpush1.bf16.msra.mxu0 %v2169_v47  ;;  %v2132_v47 = vmax.f32 %v2093_v46, 0.0 }
 0x2b5   : > { %2275 = vmatprep.subr.bf16.mxu0 %v2166_v15  ;;  %v2098_v40 = vpop.f32.mrf.mxu1 }
 0x2b6   : > { %v2099_v2 = vadd.f32 %v2098_v40, %v12553_v0 }
 0x2b7   : > { %v2100_v52 = vpop.f32.mrf.mxu1 }
 0x2b8   : > { %2276 = vmatpush1.bf16.msra.mxu0 %v2165_v42  ;;  %v2101_v1 = vadd.f32 %v2100_v52, %v12548_v19  ;;  %v2136_v17 = vmax.f32 %v2099_v2, 0.0  ;;  %v2168_v42 = vpack.c.bf16 %v2132_v47, %v2128_v56 }
 0x2b9   : > { %v2102_v50 = vpop.f32.mrf.mxu1 }
 0x2ba   : > { %v2103_v6 = vadd.f32 %v2102_v50, %v12548_v19  ;;  %v2091_v19 = vadd.f32 %v12573_v11, %v12559_v35  ;;  %v2139_v45 = vmax.f32 %v2101_v1, 0.0  ;;  %v12630_v35 = vpop.permute.xlu0 %2221 }
 0x2bb   : > { %10920 = vmatmul.mubr.msk.bf16.vlgmr.msra.gmra.mxu0 %vm18150_vm3, %v12578_v36  ;;  %v2106_v32 = vpop.f32.mrf.mxu1 }
 0x2bc   : > { %2303 = vmatprep.mubr.bf16.mxu0 %v18055_v41  ;;  %v2107_v5 = vadd.f32 %v2106_v32, %v12543_v54  ;;  %v2140_v27 = vmax.f32 %v2103_v6, 0.0 }
 0x2bd   : > { %v2108_v58 = vpop.f32.mrf.mxu1 }
 0x2be   : > { %v2109_v59 = vadd.f32 %v2108_v58, %v12543_v54  ;;  %v2097_v54 = vadd.f32 %v2096_v8, %v12553_v0  ;;  %v2143_v7 = vmax.f32 %v2107_v5, 0.0  ;;  %v2172_v4 = vpack.c.bf16 %v2140_v27, %v2136_v17 }
 0x2bf   : > { %v2110_v43 = vpop.f32.mrf.mxu1  ;;  %v2087_v0 = vadd.f32 %v12566_v13, %v12563_v57  ;;  %v2131_v8 = vmax.f32 %v2091_v19, 0.0  ;;  %v12632_v57 = vpop.permute.xlu1 %2226 }
 0x2c0   : > { %v2111_v14 = vadd.f32 %v2110_v43, %v12541_v38  ;;  %v2135_v15 = vmax.f32 %v2097_v54, 0.0  ;;  %18604 = vst [vmem:[#allocation2_spill] sm:$0xff] %v12632_v57  ;;  %v12634_v13 = vpop.permute.xlu0 %2211 }
 0x2c1   : > { %v2112_v44 = vpop.f32.mrf.mxu1  ;;  %v2127_v40 = vmax.f32 %v2087_v0, 0.0 }
 0x2c2   : > { %v2113_v37 = vadd.f32 %v2112_v44, %v12541_v38  ;;  %v2147_v38 = vmax.f32 %v2111_v14, 0.0  ;;  %v2171_v29 = vpack.c.bf16 %v2139_v45, %v2135_v15 }
 0x2c3   : > { %10921 = vmatmul.mubr.msk.bf16.gmra.mxu0 %vm18150_vm3, %v12586_v61  ;;  %v2116_v21 = vpop.f32.mrf.mxu1  ;;  %v2167_v52 = vpack.c.bf16 %v2131_v8, %v2127_v40  ;;  %v12636_v11 = vpop.permute.xlu1 %2216 }
 0x2c4   : > { %2313 = vmatprep.mubr.bf16.mxu0 %v18055_v41  ;;  %v2117_v30 = vadd.f32 %v2116_v21, %v12539_v53  ;;  %v2148_v49 = vmax.f32 %v2113_v37, 0.0  ;;  %v2175_v3 = vpack.c.bf16 %v2147_v38, %v2143_v7 }
 0x2c5   : > { %v2118_v34 = vpop.f32.mrf.mxu1 }
 0x2c6   : > { %v2119_v39 = vadd.f32 %v2118_v34, %v12539_v53  ;;  %v2151_v53 = vmax.f32 %v2117_v30, 0.0 }
 0x2c7   : > { %v2120_v9 = vpop.f32.mrf.mxu1  ;;  %v12640_v50 = vpop.permute.xlu1 %2206 }
 0x2c8   : > { %v2121_v51 = vadd.f32 %v2120_v9, %v12537_v63  ;;  %v2152_v23 = vmax.f32 %v2119_v39, 0.0 }
 0x2c9   : > { %v2122_v55 = vpop.f32.mrf.mxu1 }
 0x2ca   : > { %v2123_v25 = vadd.f32 %v2122_v55, %v12537_v63  ;;  %v2155_v31 = vmax.f32 %v2121_v51, 0.0  ;;  %v2144_v63 = vmax.f32 %v2109_v59, 0.0 }
 0x2cb   : > { %10922 = vmatmul.mubr.msk.bf16.gmra.mxu0 %vm18150_vm3, %v11464_v26 }
 0x2cc   : > { %2323 = vmatprep.mubr.bf16.mxu0 %v18055_v41  ;;  %v2156_v60 = vmax.f32 %v2123_v25, 0.0  ;;  %v2179_v28 = vpack.c.bf16 %v2155_v31, %v2151_v53  ;;  %v2176_v62 = vpack.c.bf16 %v2148_v49, %v2144_v63 }
 0x2ce   : > { %v2180_v10 = vpack.c.bf16 %v2156_v60, %v2152_v23 }
 0x2d0   : > { %2342 = vmatprep.subr.bf16.mxu1 %v2180_v10 }
 0x2d1   : > { %2343 = vmatpush1.bf16.msra.mxu1 %v2179_v28 }
 0x2d2   : > { %2344 = vmatprep.subr.bf16.mxu1 %v2176_v62 }
 0x2d3   : > { %10923 = vmatmul.mubr.msk.bf16.gmra.mxu0 %vm18150_vm3, %v11465_v48 }
 0x2d4   : > { %9272 = vmatprep.mubr.bf16.mxu0 %v18055_v41 }
 0x2d5   : > { %2345 = vmatpush1.bf16.msra.mxu1 %v2175_v3 }
 0x2d6   : > { %2346 = vmatprep.subr.bf16.mxu1 %v2172_v4 }
 0x2d9   : > { %2347 = vmatpush1.bf16.msra.mxu1 %v2171_v29 }
 0x2da   : > { %2348 = vmatprep.subr.bf16.mxu1 %v2168_v42 }
 0x2dd   : > { %2349 = vmatpush1.bf16.msra.mxu1 %v2167_v52 }
 0x2e0   : > { %10924 = vmatmul.mubr.msk.bf16.vlgmr.msra.gmra.mxu1 %vm18150_vm3, %v12578_v36  ;;  %v12638_v36 = vpop.permute.xlu0 %2201 }
 0x2e1   : > { %2376 = vmatprep.mubr.bf16.mxu1 %v18055_v41 }
 0x2e4   : > { %v12642_v32 = vpop.permute.xlu0 %2191 }
 0x2e8   : > { %10925 = vmatmul.mubr.msk.bf16.gmra.mxu1 %vm18150_vm3, %v12586_v61 }
 0x2e9   : > { %2386 = vmatprep.mubr.bf16.mxu1 %v18055_v41 }
 0x2f0   : > { %10926 = vmatmul.mubr.msk.bf16.gmra.mxu1 %vm18150_vm3, %v11464_v26  ;;  %v12650_v26 = vpop.permute.xlu1 %2196 }
 0x2f1   : > { %2396 = vmatprep.mubr.bf16.mxu1 %v18055_v41 }
 0x2f8   : > { %10927 = vmatmul.mubr.msk.bf16.gmra.mxu1 %vm18150_vm3, %v11465_v48 }
 0x2f9   : > { %9345 = vmatprep.mubr.bf16.mxu1 %v18055_v41 }
 0x37b   : > { %v2295_v58 = vpop.f32.mrf.mxu0 }
 0x37c   : > { %v12645_v61 = vadd.f32 %v2295_v58, %v12642_v32 }
 0x37d   : > { %v12647_v43 = vpop.f32.mrf.mxu0 }
 0x37e   : > { %18605 = vst [vmem:[#allocation3_spill] sm:$0xff] %v12645_v61  ;;  %v2410_v44 = vand.u32 2139095040, %v12645_v61  ;;  %v18059_v30 = vand.u32 2147483647, %v12645_v61 }
 0x37f   : > { %v2299_v21 = vpop.f32.mrf.mxu0 }
 0x380   : > { %v2411_v34 = vshrl.u32 %v2410_v44, 23  ;;  %v12653_v37 = vadd.f32 %v2299_v21, %v12650_v26  ;;  %v2414_v31 = vand.u32 8388607, %v18059_v30 }
 0x382   : > { %v10928_v9 = vadd.s32 4294967169, %v2411_v34  ;;  %18606 = vst [vmem:[#allocation4_spill] sm:$0xff] %v12653_v37  ;;  %v2826_v51 = vand.u32 2139095040, %v12653_v37  ;;  %v2415_v7 = vor.u32 8388608, %v2414_v31  ;;  %v18058_v31 = vand.u32 2147483647, %v12653_v37 }
 0x384   : > { %v2417_v39 = vadd.s32 1, %v10928_v9  ;;  %v2827_v14 = vshrl.u32 %v2826_v51, 23  ;;  %v2455_v56 = vshll.u32 %v2415_v7, 8 }
 0x386   : > { %vm2418_vm0 = vcmp.gt.s32.totalorder %v2417_v39, 0  ;;  %v10944_v27 = vadd.s32 4294967169, %v2827_v14 }
 0x387   : > { %v2419_v55 = vsel %vm2418_vm0, %v2417_v39, 0 }
 0x388   : > { %v2421_v59 = vand.u32 31, %v2419_v55  ;;  %v2420_v6 = vshrl.u32 %v2419_v55, 5  ;;  %v2833_v4 = vadd.s32 1, %v10944_v27  ;;  %v2830_v27 = vand.u32 8388607, %v18058_v31 }
 0x38a   : > { %v2422_v25 = vsub.s32 32, %v2421_v59  ;;  %v2424_v49 = vshll.u32 %v18068_v16, %v2421_v59  ;;  %v2427_v23 = vshll.u32 %v18070_v18, %v2421_v59  ;;  %v2430_v53 = vshll.u32 %v18076_v20, %v2421_v59 }
 0x38b   : > { %v2433_v2 = vshll.u32 %v18078_v22, %v2421_v59  ;;  %v2436_v10 = vshll.u32 %v18064_v24, %v2421_v59  ;;  %vm2439_vm9 = vcmp.lt.s32.totalorder %v2420_v6, 1  ;;  %vm2442_vm1 = vcmp.lt.s32.totalorder %v2420_v6, 4 }
 0x38c   : > { %v2425_v60 = vshrl.u32 %v18070_v18, %v2422_v25  ;;  %v2428_v5 = vshrl.u32 %v18076_v20, %v2422_v25  ;;  %v2431_v48 = vshrl.u32 %v18078_v22, %v2422_v25  ;;  %v2434_v63 = vshrl.u32 %v18064_v24, %v2422_v25 }
 0x38d   : > { %v2437_v1 = vshrl.u32 %v18061_v33, %v2422_v25  ;;  %vm2441_vm2 = vcmp.lt.s32.totalorder %v2420_v6, 3  ;;  %vm2440_vm4 = vcmp.lt.s32.totalorder %v2420_v6, 2  ;;  %vm2834_vm11 = vcmp.gt.s32.totalorder %v2833_v4, 0 }
 0x38e   : > { %v2426_v38 = vor.u32 %v2425_v60, %v2424_v49  ;;  %v2429_v28 = vor.u32 %v2428_v5, %v2427_v23  ;;  %v2432_v46 = vor.u32 %v2431_v48, %v2430_v53  ;;  %v2435_v62 = vor.u32 %v2434_v63, %v2433_v2 }
 0x38f   : > { %v2438_v54 = vor.u32 %v2437_v1, %v2436_v10  ;;  %v2835_v52 = vsel %vm2834_vm11, %v2833_v4, 0  ;;  %v2423_v21 = vshrl.u32 %v18068_v16, %v2422_v25  ;;  %v2831_v4 = vor.u32 8388608, %v2830_v27 }
 0x390   : > { %v2447_v12 = vsel %vm2439_vm9, %v2426_v38, %v2429_v28  ;;  %v2448_v17 = vsel %vm2442_vm1, %v2435_v62, 920167782  ;;  %v2451_v19 = vsel %vm2439_vm9, %v2429_v28, %v2432_v46  ;;  %v2837_v58 = vand.u32 31, %v2835_v52 }
 0x391   : > { %v2452_v45 = vsel %vm2442_vm1, %v2438_v54, 1326507024  ;;  %v2449_v3 = vsel %vm2441_vm2, %v2432_v46, %v2448_v17  ;;  %v2444_v44 = vsel %vm2442_vm1, %v2432_v46, 2102212464  ;;  %v2443_v9 = vsel %vm2439_vm9, %v2423_v21, %v2426_v38 }
 0x392   : > { %v2453_v47 = vsel %vm2441_vm2, %v2435_v62, %v2452_v45  ;;  %v2450_v0 = vsel %vm2440_vm4, %v2447_v12, %v2449_v3  ;;  %v2838_v34 = vsub.s32 32, %v2837_v58  ;;  %v2445_v39 = vsel %vm2441_vm2, %v2429_v28, %v2444_v44 }
 0x393   : > { %v2454_v15 = vsel %vm2440_vm4, %v2451_v19, %v2453_v47  ;;  %v12677_v8 = vmul.u32.u64.low %v2455_v56, %v2450_v0  ;;  %v12678_v29 = vmul.u32.u64.high %v2455_v56, %v2450_v0, %v12677_v8  ;;  %v2446_v14 = vsel %vm2440_vm4, %v2443_v9, %v2445_v39 }
 0x394   : > { %v12681_v42 = vmul.u32.u64.low %v2455_v56, %v2454_v15  ;;  %v12682_v40 = vmul.u32.u64.high %v2455_v56, %v2454_v15, %v12681_v42  ;;  %v2850_v55 = vshrl.u32 %v18064_v24, %v2838_v34  ;;  %v2853_v59 = vshrl.u32 %v18061_v33, %v2838_v34 }
 0x395   : > { %v2465_v51 = vadd.s32 1, %v12678_v29  ;;  %v12695_v49 = vshrl.u32 %v2835_v52, 5  ;;  %v2849_v25 = vshll.u32 %v18078_v22, %v2837_v58  ;;  %v2841_v23 = vshrl.u32 %v18070_v18, %v2838_v34 }
 0x396   : > { %vm2464_vm5 = vc.u32 %v12682_v40, %v12677_v8  ;;  %v2844_v60 = vshrl.u32 %v18076_v20, %v2838_v34  ;;  %v2847_v5 = vshrl.u32 %v18078_v22, %v2838_v34  ;;  %v2852_v53 = vshll.u32 %v18064_v24, %v2837_v58 }
 0x397   : > { %v2466_v48 = vsel %vm2464_vm5, %v2465_v51, %v12678_v29  ;;  %v2840_v6 = vshll.u32 %v18068_v16, %v2837_v58  ;;  %v2851_v63 = vor.u32 %v2850_v55, %v2849_v25  ;;  %v2843_v1 = vshll.u32 %v18070_v18, %v2837_v58 }
 0x398   : > { %v2846_v38 = vshll.u32 %v18076_v20, %v2837_v58  ;;  %v2854_v28 = vor.u32 %v2853_v59, %v2852_v53  ;;  %v2462_v46 = vmul.u32 %v2455_v56, %v2446_v14  ;;  %vm2858_vm12 = vcmp.lt.s32.totalorder %v12695_v49, 4 }
 0x399   : > { %v2842_v54 = vor.u32 %v2841_v23, %v2840_v6  ;;  %v2845_v7 = vor.u32 %v2844_v60, %v2843_v1  ;;  %v2864_v19 = vsel %vm2858_vm12, %v2851_v63, 920167782  ;;  %vm2855_vm14 = vcmp.lt.s32.totalorder %v12695_v49, 1 }
 0x39a   : > { %v2848_v12 = vor.u32 %v2847_v5, %v2846_v38  ;;  %v2467_v17 = vadd.s32 %v2466_v48, %v2462_v46  ;;  %v2868_v3 = vsel %vm2858_vm12, %v2854_v28, 1326507024  ;;  %vm2857_vm13 = vcmp.lt.s32.totalorder %v12695_v49, 3 }
 0x39b   : > { %v2863_v0 = vsel %vm2855_vm14, %v2842_v54, %v2845_v7  ;;  %v2869_v42 = vsel %vm2857_vm13, %v2851_v63, %v2868_v3  ;;  %vm2856_vm15 = vcmp.lt.s32.totalorder %v12695_v49, 2  ;;  %v12732_v44 = vadd.f32 %v12647_v43, %v12642_v32 }
 0x39c   : > { %v2865_v15 = vsel %vm2857_vm13, %v2848_v12, %v2864_v19  ;;  %v2468_v56 = vadd.s32 536870912, %v2467_v17  ;;  %v2867_v29 = vsel %vm2855_vm14, %v2845_v7, %v2848_v12  ;;  %v12736_v9 = vshll.u32 %v2831_v4, 8 }
 0x39d   : > { %v2866_v58 = vsel %vm2856_vm15, %v2863_v0, %v2865_v15  ;;  %18608 = vst [vmem:[#allocation6_spill] sm:$0xff] %v12732_v44  ;;  %v2870_v21 = vsel %vm2856_vm15, %v2867_v29, %v2869_v42  ;;  %v2839_v55 = vshrl.u32 %v18068_v16, %v2838_v34  ;;  %v2860_v43 = vsel %vm2858_vm12, %v2848_v12, 2102212464 }
 0x39e   : > { %v12738_v39 = vshrl.u32 %v2468_v56, 30  ;;  %v12742_v59 = vmul.u32.u64.low %v12736_v9, %v2866_v58  ;;  %v12743_v14 = vmul.u32.u64.high %v12736_v9, %v2866_v58, %v12742_v59  ;;  %v2514_v5 = vand.u32 2139095040, %v12732_v44 }
 0x39f   : > { %v12749_v23 = vmul.u32.u64.low %v12736_v9, %v2870_v21  ;;  %v12750_v60 = vmul.u32.u64.high %v12736_v9, %v2870_v21, %v12749_v23  ;;  %v2861_v28 = vsel %vm2857_vm13, %v2845_v7, %v2860_v43 }
 0x3a0   : > { %v2368_v2 = vpop.f32.mrf.mxu1  ;;  %18609 = vst [vmem:[#allocation7_spill] sm:$0xff] %v12738_v39  ;;  %v2470_v53 = vshll.u32 %v12738_v39, 30  ;;  %v2515_v42 = vshrl.u32 %v2514_v5, 23  ;;  %v2881_v21 = vadd.s32 1, %v12743_v14  ;;  %v2301_v23 = vpop.f32.mrf.mxu0 }
 0x3a1   : > { %v12705_v10 = vadd.f32 %v2368_v2, %v12642_v32  ;;  %v2859_v2 = vsel %vm2855_vm14, %v2839_v55, %v2842_v54  ;;  %vm2880_vm10 = vc.u32 %v12750_v60, %v12742_v59 }
 0x3a2   : > { %v12763_v38 = vpop.f32.mrf.mxu1  ;;  %v12782_v15 = vsub.s32 %v2467_v17, %v2470_v53  ;;  %v2862_v58 = vsel %vm2856_vm15, %v2859_v2, %v2861_v28 }
 0x3a3   : > { %18607 = vst [vmem:[#allocation5_spill] sm:$0xff] %v12705_v10  ;;  %v2618_v62 = vand.u32 2139095040, %v12705_v10  ;;  %v18057_v48 = vand.u32 2147483647, %v12705_v10 }
 0x3a4   : > { %v2473_v2 = vsub.s32 0, %v12782_v15 }
 0x3a5   : > { %v2619_v45 = vshrl.u32 %v2618_v62, 23  ;;  %v2622_v3 = vand.u32 8388607, %v18057_v48 }
 0x3a7   : > { %v10936_v47 = vadd.s32 4294967169, %v2619_v45  ;;  %v2623_v55 = vor.u32 8388608, %v2622_v3 }
 0x3a9   : > { %v2625_v52 = vadd.s32 1, %v10936_v47 }
 0x3ab   : > { %vm2626_vm6 = vcmp.gt.s32.totalorder %v2625_v52, 0 }
 0x3ac   : > { %v2627_v51 = vsel %vm2626_vm6, %v2625_v52, 0  ;;  %v2372_v52 = vpop.f32.mrf.mxu1 }
 0x3ad   : > { %v2629_v25 = vand.u32 31, %v2627_v51  ;;  %v12759_v6 = vshrl.u32 %v2627_v51, 5  ;;  %v12801_v43 = vadd.f32 %v2372_v52, %v12650_v26  ;;  %v12831_v52 = vadd.f32 %v2301_v23, %v12650_v26 }
 0x3af   : > { %v12755_v34 = vsub.s32 32, %v2629_v25  ;;  %v2632_v63 = vshll.u32 %v18068_v16, %v2629_v25  ;;  %v2635_v1 = vshll.u32 %v18070_v18, %v2629_v25  ;;  %v2638_v62 = vshll.u32 %v18076_v20, %v2629_v25  ;;  %18610 = vst [vmem:[#allocation8_spill] sm:$0xff] %v12801_v43  ;;  %18612 = vst [vmem:[#allocation10_spill] sm:$0xff] %v12831_v52 }
 0x3b0   : > { %v2641_v12 = vshll.u32 %v18078_v22, %v2629_v25  ;;  %v2644_v45 = vshll.u32 %v18064_v24, %v2629_v25  ;;  %vm2650_vm7 = vcmp.lt.s32.totalorder %v12759_v6, 4  ;;  %vm2647_vm8 = vcmp.lt.s32.totalorder %v12759_v6, 1 }
 0x3b1   : > { %v2633_v46 = vshrl.u32 %v18070_v18, %v12755_v34  ;;  %v2636_v27 = vshrl.u32 %v18076_v20, %v12755_v34  ;;  %v2639_v54 = vshrl.u32 %v18078_v22, %v12755_v34  ;;  %v2642_v19 = vshrl.u32 %v18064_v24, %v12755_v34 }
 0x3b2   : > { %v2645_v7 = vshrl.u32 %v18061_v33, %v12755_v34  ;;  %vm2649_vm0 = vcmp.lt.s32.totalorder %v12759_v6, 3  ;;  %vm2648_vm9 = vcmp.lt.s32.totalorder %v12759_v6, 2 }
 0x3b3   : > { %v2634_v47 = vor.u32 %v2633_v46, %v2632_v63  ;;  %v2637_v4 = vor.u32 %v2636_v27, %v2635_v1  ;;  %v2640_v0 = vor.u32 %v2639_v54, %v2638_v62  ;;  %v2643_v56 = vor.u32 %v2642_v19, %v2641_v12  ;;  %v2305_v12 = vpop.f32.mrf.mxu0 }
 0x3b4   : > { %v2646_v29 = vor.u32 %v2645_v7, %v2644_v45  ;;  %v10932_v63 = vadd.s32 4294967169, %v2515_v42  ;;  %v2882_v1 = vsel %vm2880_vm10, %v2881_v21, %v12743_v14  ;;  %v2878_v46 = vmul.u32 %v12736_v9, %v2862_v58 }
 0x3b5   : > { %v2656_v17 = vsel %vm2650_vm7, %v2643_v56, 920167782  ;;  %v2655_v49 = vsel %vm2647_vm8, %v2634_v47, %v2637_v4  ;;  %v2659_v5 = vsel %vm2647_vm8, %v2637_v4, %v2640_v0  ;;  %v2663_v62 = vshll.u32 %v2623_v55, 8 }
 0x3b6   : > { %v2660_v51 = vsel %vm2650_vm7, %v2646_v29, 1326507024  ;;  %v2657_v25 = vsel %vm2649_vm0, %v2640_v0, %v2656_v17  ;;  %v3034_v54 = vand.u32 2139095040, %v12801_v43  ;;  %v2883_v19 = vadd.s32 %v2882_v1, %v2878_v46 }
 0x3b7   : > { %v2661_v53 = vsel %vm2649_vm0, %v2643_v56, %v2660_v51  ;;  %v2658_v28 = vsel %vm2648_vm9, %v2655_v49, %v2657_v25  ;;  %v10929_v45 = vmin.u32 %v2473_v2, %v12782_v15  ;;  %v2521_v14 = vadd.s32 1, %v10932_v63 }
 0x3b8   : > { %v2662_v27 = vsel %vm2648_vm9, %v2659_v5, %v2661_v53  ;;  %v12820_v7 = vmul.u32.u64.low %v2663_v62, %v2658_v28  ;;  %v12821_v3 = vmul.u32.u64.high %v2663_v62, %v2658_v28, %v12820_v7  ;;  %v12828_v9 = vadd.f32 %v2305_v12, %v12638_v36 }
 0x3b9   : > { %v12824_v56 = vmul.u32.u64.low %v2663_v62, %v2662_v27  ;;  %v12825_v29 = vmul.u32.u64.high %v2663_v62, %v2662_v27, %v12824_v56  ;;  %v3035_v42 = vshrl.u32 %v3034_v54, 23  ;;  %v2884_v58 = vadd.s32 536870912, %v2883_v19 }
 0x3ba   : > { %18611 = vst [vmem:[#allocation9_spill] sm:$0xff] %v12828_v9  ;;  %v2475_v21 = vclz %v10929_v45  ;;  %v2652_v17 = vsel %vm2650_vm7, %v2640_v0, 2102212464  ;;  %vm2522_vm1 = vcmp.gt.s32.totalorder %v2521_v14, 0  ;;  %v2631_v55 = vshrl.u32 %v18068_v16, %v12755_v34 }
 0x3bb   : > { %v10952_v51 = vadd.s32 4294967169, %v3035_v42  ;;  %v3242_v49 = vand.u32 2139095040, %v12828_v9  ;;  %v2930_v5 = vand.u32 2139095040, %v12831_v52  ;;  %v2653_v23 = vsel %vm2649_vm0, %v2637_v4, %v2652_v17 }
 0x3bc   : > { %v2651_v53 = vsel %vm2647_vm8, %v2631_v55, %v2634_v47  ;;  %v2523_v2 = vsel %vm2522_vm1, %v2521_v14, 0  ;;  %v12843_v63 = vshrl.u32 %v2884_v58, 30  ;;  %v10930_v0 = vadd.s32 4294967294, %v2475_v21 }
 0x3bd   : > { %v3041_v25 = vadd.s32 1, %v10952_v51  ;;  %v2673_v1 = vadd.s32 1, %v12821_v3  ;;  %vm2672_vm4 = vc.u32 %v12825_v29, %v12820_v7  ;;  %v3243_v28 = vshrl.u32 %v3242_v49, 23 }
 0x3be   : > { %18613 = vst [vmem:[#allocation11_spill] sm:$0xff] %v12843_v63  ;;  %v2654_v46 = vsel %vm2648_vm9, %v2651_v53, %v2653_v23  ;;  %v12850_v27 = vand.u32 31, %v2523_v2  ;;  %v2931_v54 = vshrl.u32 %v2930_v5, 23  ;;  %v2886_v4 = vshll.u32 %v12843_v63, 30 }
 0x3bf   : > { %vm3042_vm2 = vcmp.gt.s32.totalorder %v3041_v25, 0  ;;  %vm10931_vm11 = vcmp.lt.s32.totalorder %v10930_v0, 0  ;;  %v2674_v12 = vsel %vm2672_vm4, %v2673_v1, %v12821_v3  ;;  %v2670_v14 = vmul.u32 %v2663_v62, %v2654_v46 }
 0x3c0   : > { %v3043_v34 = vsel %vm3042_vm2, %v3041_v25, 0  ;;  %18614 = vst [vmem:[#allocation12_spill] sm:$0xff] %v12850_v27  ;;  %v18063_v56 = vand.u32 2147483647, %v12828_v9  ;;  %v10960_v42 = vadd.s32 4294967169, %v3243_v28  ;;  %v12857_v58 = vshrl.u32 %v2523_v2, 5 }
 0x3c1   : > { %v3045_v47 = vand.u32 31, %v3043_v34  ;;  %v12860_v6 = vsub.s32 32, %v12850_v27  ;;  %v18060_v21 = vand.u32 2147483647, %v12801_v43  ;;  %v10948_v17 = vadd.s32 4294967169, %v2931_v54 }
 0x3c2   : > { %18615 = vst [vmem:[#allocation13_spill] sm:$0xff] %v12857_v58  ;;  %v2478_v51 = vsel %vm10931_vm11, 0, %v10930_v0  ;;  %v12863_v55 = vadd.s32 %v2674_v12, %v2670_v14  ;;  %v12865_v49 = vsub.s32 %v2883_v19, %v2886_v4  ;;  %v12876_v23 = vshrl.u32 %v3043_v34, 5 }
 0x3c3   : > { %v12854_v45 = vsub.s32 32, %v3045_v47  ;;  %18616 = vst [vmem:[#allocation14_spill] sm:$0xff] %v12860_v6  ;;  %v3057_v3 = vshll.u32 %v18078_v22, %v3045_v47  ;;  %v3048_v2 = vshll.u32 %v18068_v16, %v3045_v47  ;;  %v3249_v0 = vadd.s32 1, %v10960_v42 }
 0x3c4   : > { %v3051_v1 = vshll.u32 %v18070_v18, %v3045_v47  ;;  %v3054_v28 = vshll.u32 %v18076_v20, %v3045_v47  ;;  %v3060_v54 = vshll.u32 %v18064_v24, %v3045_v47  ;;  %v2483_v4 = vsub.s32 4294967266, %v2478_v51 }
 0x3c5   : > { %v3049_v62 = vshrl.u32 %v18070_v18, %v12854_v45  ;;  %v3052_v25 = vshrl.u32 %v18076_v20, %v12854_v45  ;;  %v3055_v5 = vshrl.u32 %v18078_v22, %v12854_v45  ;;  %v3058_v53 = vshrl.u32 %v18064_v24, %v12854_v45 }
 0x3c6   : > { %v3061_v19 = vshrl.u32 %v18061_v33, %v12854_v45  ;;  %v2537_v12 = vshll.u32 %v18078_v22, %v12850_v27  ;;  %v2538_v34 = vshrl.u32 %v18064_v24, %v12860_v6  ;;  %v3038_v14 = vand.u32 8388607, %v18060_v21 }
 0x3c7   : > { %v3059_v46 = vor.u32 %v3058_v53, %v3057_v3  ;;  %v12890_v41 = vor.u32 %v3049_v62, %v3048_v2  ;;  %v12892_v42 = vor.u32 %v3052_v25, %v3051_v1  ;;  %v3056_v48 = vor.u32 %v3055_v5, %v3054_v28 }
 0x3c8   : > { %v3062_v31 = vor.u32 %v3061_v19, %v3060_v54  ;;  %v2676_v3 = vadd.s32 536870912, %v12863_v55  ;;  %v2889_v47 = vsub.s32 0, %v12865_v49  ;;  %vm3066_vm5 = vcmp.lt.s32.totalorder %v12876_v23, 4 }
 0x3c9   : > { %vm3250_vm12 = vcmp.gt.s32.totalorder %v3249_v0, 0  ;;  %v2463_v53 = vadd.s32 %v12677_v8, %v12682_v40  ;;  %v2479_v30 = vsub.s32 32, %v2478_v51  ;;  %v12901_v21 = vadd.f32 %v12763_v38, %v12642_v32 }
 0x3ca   : > { %v3072_v62 = vsel %vm3066_vm5, %v3059_v46, 920167782  ;;  %v2484_v25 = vadd.s32 127, %v2483_v4  ;;  %v3039_v5 = vor.u32 8388608, %v3038_v14  ;;  %vm3063_vm14 = vcmp.lt.s32.totalorder %v12876_v23, 1 }
 0x3cb   : > { %18617 = vst [vmem:[#allocation15_spill] sm:$0xff] %v12901_v21  ;;  %vm3065_vm13 = vcmp.lt.s32.totalorder %v12876_v23, 3  ;;  %v3071_v2 = vsel %vm3063_vm14, %v12890_v41, %v12892_v42  ;;  %v3076_v32 = vsel %vm3066_vm5, %v3062_v31, 1326507024  ;;  %v3251_v40 = vsel %vm3250_vm12, %v3249_v0, 0 }
 0x3cc   : > { %v3073_v8 = vsel %vm3065_vm13, %v3056_v48, %v3072_v62  ;;  %v12915_v38 = vshrl.u32 %v2676_v3, 30  ;;  %v10945_v19 = vmin.u32 %v2889_v47, %v12865_v49  ;;  %v3075_v1 = vsel %vm3063_vm14, %v12892_v42, %v3056_v48 }
 0x3cd   : > { %v2937_v28 = vadd.s32 1, %v10948_v17  ;;  %v2481_v54 = vshrl.u32 %v2463_v53, %v2479_v30  ;;  %v2722_v4 = vand.u32 2139095040, %v12901_v21  ;;  %vm3064_vm15 = vcmp.lt.s32.totalorder %v12876_v23, 2 }
 0x3ce   : > { %18618 = vst [vmem:[#allocation16_spill] sm:$0xff] %v12915_v38  ;;  %v3077_v14 = vsel %vm3065_vm13, %v3059_v46, %v3076_v32  ;;  %v2485_v62 = vshll.u32 %v2484_v25, 23  ;;  %v12925_v31 = vor.u32 %v2538_v34, %v2537_v12  ;;  %v3074_v0 = vsel %vm3064_vm15, %v3071_v2, %v3073_v8 }
 0x3cf   : > { %v3253_v3 = vand.u32 31, %v3251_v40  ;;  %v2480_v47 = vshll.u32 %v12782_v15, %v2478_v51  ;;  %v12932_v17 = vshrl.u32 %v18061_v33, %v12860_v6  ;;  %v3078_v30 = vsel %vm3064_vm15, %v3075_v1, %v3077_v14  ;;  %v2307_v14 = vpop.f32.mrf.mxu0 }
 0x3d0   : > { %18619 = vst [vmem:[#allocation17_spill] sm:$0xff] %v12925_v31  ;;  %v12936_v53 = vshll.u32 %v3039_v5, 8  ;;  %v2678_v46 = vshll.u32 %v12915_v38, 30  ;;  %v12941_v12 = vshll.u32 %v18064_v24, %v12850_v27  ;;  %v2891_v34 = vclz %v10945_v19 }
 0x3d1   : > { %vm2938_vm6 = vcmp.gt.s32.totalorder %v2937_v28, 0  ;;  %v2482_v25 = vor.u32 %v2481_v54, %v2480_v47  ;;  %v2723_v2 = vshrl.u32 %v2722_v4, 23  ;;  %v2486_v8 = vor.u32 4788187, %v2485_v62 }
 0x3d2   : > { %v12944_v15 = vmul.u32.u64.low %v12936_v53, %v3074_v0  ;;  %v12945_v51 = vmul.u32.u64.high %v12936_v53, %v3074_v0, %v12944_v15  ;;  %v12949_v32 = vmul.u32.u64.low %v12936_v53, %v3078_v30  ;;  %v12950_v5 = vmul.u32.u64.high %v12936_v53, %v3078_v30, %v12949_v32 }
 0x3d3   : > { %v12952_v1 = vsub.s32 32, %v3253_v3  ;;  %v2542_v33 = vor.u32 %v12932_v17, %v12941_v12  ;;  %vm18196_vm7 = vcmp.lt.s32.totalorder %v12857_v58, 4  ;;  %v12959_v19 = vand.u32 8388607, %v18063_v56 }
 0x3d4   : > { %v12962_v54 = vsub.s32 %v12863_v55, %v2678_v46  ;;  %v12967_v4 = vsel %vm18196_vm7, %v12925_v31, 920167782  ;;  %v10946_v62 = vadd.s32 4294967294, %v2891_v34  ;;  %v3068_v0 = vsel %vm3066_vm5, %v3056_v48, 2102212464 }
 0x3d5   : > { %18620 = vst [vmem:[#allocation18_spill] sm:$0xff] %v12967_v4  ;;  %v10940_v47 = vadd.s32 4294967169, %v2723_v2  ;;  %v3047_v17 = vshrl.u32 %v18068_v16, %v12854_v45  ;;  %v2939_v30 = vsel %vm2938_vm6, %v2937_v28, 0  ;;  %v12975_v12 = vadd.f32 %v2307_v14, %v12638_v36 }
 0x3d6   : > { %v2487_v55 = vand.u32 2147483647, %v2486_v8  ;;  %v2489_v46 = vcvt.s32.f32 %v2482_v25  ;;  %v3257_v32 = vshrl.u32 %v18070_v18, %v12952_v1  ;;  %v3260_v34 = vshrl.u32 %v18076_v20, %v12952_v1  ;;  %v2374_v8 = vpop.f32.mrf.mxu1 }
 0x3d7   : > { %18621 = vst [vmem:[#allocation19_spill] sm:$0xff] %v12975_v12  ;;  %v3067_v48 = vsel %vm3063_vm14, %v3047_v17, %v12890_v41  ;;  %v3069_v45 = vsel %vm3065_vm13, %v12892_v42, %v3068_v0  ;;  %v12987_v28 = vshrl.u32 %v3251_v40, 5  ;;  %v3263_v2 = vshrl.u32 %v18078_v22, %v12952_v1 }
 0x3d8   : > { %v2681_v25 = vsub.s32 0, %v12962_v54  ;;  %vm10947_vm10 = vcmp.lt.s32.totalorder %v10946_v62, 0  ;;  %v3256_v14 = vshll.u32 %v18068_v16, %v3253_v3  ;;  %v3259_v56 = vshll.u32 %v18070_v18, %v3253_v3 }
 0x3d9   : > { %v3089_v24 = vadd.s32 1, %v12945_v51  ;;  %v3262_v41 = vshll.u32 %v18076_v20, %v3253_v3  ;;  %v3265_v17 = vshll.u32 %v18078_v22, %v3253_v3  ;;  %v18622_v42 = vmov 920167782  }
 0x3da   : > { %v3266_v40 = vshrl.u32 %v18622_v42, %v12952_v1  ;;  %v3070_v0 = vsel %vm3064_vm15, %v3067_v48, %v3069_v45  ;;  %vm3088_vm8 = vc.u32 %v12950_v5, %v12944_v15  ;;  %v13003_v38 = vor.u32 %v3257_v32, %v3256_v14  ;;  %v2378_v48 = vpop.f32.mrf.mxu1 }
 0x3db   : > { %v13005_v16 = vor.u32 %v3260_v34, %v3259_v56  ;;  %v3264_v18 = vor.u32 %v3263_v2, %v3262_v41  ;;  %v3268_v39 = vshll.u32 %v18622_v42, %v3253_v3  ;;  %v18623_v20 = vmov 1326507024  }
 0x3dc   : > { %v3267_v63 = vor.u32 %v3266_v40, %v3265_v17  ;;  %v3269_v22 = vshrl.u32 %v18623_v20, %v12952_v1  ;;  %v2490_v21 = vmul.f32 %v2489_v46, %v2487_v55  ;;  %v2729_v52 = vadd.s32 1, %v10940_v47 }
 0x3dd   : > { %v13011_v31 = vsel %vm10947_vm10, 0, %v10946_v62  ;;  %v13013_v23 = vand.u32 31, %v2939_v30  ;;  %v10937_v32 = vmin.u32 %v2681_v25, %v12962_v54  ;;  %v3090_v56 = vsel %vm3088_vm8, %v3089_v24, %v12945_v51 }
 0x3de   : > { %v3270_v34 = vor.u32 %v3269_v22, %v3268_v39  ;;  %vm3274_vm0 = vcmp.lt.s32.totalorder %v12987_v28, 4  ;;  %v3086_v3 = vmul.u32 %v12936_v53, %v3070_v0  ;;  %vm3271_vm9 = vcmp.lt.s32.totalorder %v12987_v28, 1 }
 0x3df   : > { %18624 = vst [vmem:[#allocation20_spill] sm:$0xff] %v13013_v23  ;;  %vm3273_vm1 = vcmp.lt.s32.totalorder %v12987_v28, 3  ;;  %v3280_v62 = vsel %vm3274_vm0, %v3267_v63, 920167782  ;;  %vm18168_vm2 = vcmp.lt.s32.totalorder %v12645_v61, 0  ;;  %v3247_v47 = vor.u32 8388608, %v12959_v19 }
 0x3e0   : > { %v3279_v22 = vsel %vm3271_vm9, %v13003_v38, %v13005_v16  ;;  %v3281_v24 = vsel %vm3273_vm1, %v3264_v18, %v3280_v62  ;;  %v13032_v39 = vadd.f32 %v2378_v48, %v12638_v36  ;;  %v2899_v53 = vsub.s32 4294967266, %v13011_v31 }
 0x3e1   : > { %v13035_v51 = vadd.s32 %v3090_v56, %v3086_v3  ;;  %v3283_v55 = vsel %vm3271_vm9, %v13005_v16, %v3264_v18  ;;  %v3284_v19 = vsel %vm3274_vm0, %v3270_v34, 1326507024  ;;  %v2683_v46 = vclz %v10937_v32 }
 0x3e2   : > { %18625 = vst [vmem:[#allocation21_spill] sm:$0xff] %v13032_v39  ;;  %v13044_v45 = vsel %vm18196_vm7, %v2542_v33, 1326507024  ;;  %vm3272_vm4 = vcmp.lt.s32.totalorder %v12987_v28, 2  ;;  %v3285_v2 = vsel %vm3273_vm1, %v3267_v63, %v3284_v19  ;;  %v18627_v25 = vand.u32 2147483647, %v12645_v61 }
 0x3e3   : > { %18626 = vst [vmem:[#allocation22_spill] sm:$0xff] %v13044_v45  ;;  %v18628_v14 = vmov 0  ;;  %vm2730_vm5 = vcmp.gt.s32.totalorder %v2729_v52, 0  ;;  %v13055_v41 = vshrl.u32 %v2939_v30, 5  ;;  %v13058_v17 = vsub.s32 32, %v13013_v23 }
 0x3e4   : > { %vm13051_vm11 = vcmp.le.f32.partialorder %v18627_v25, 0.7853982  ;;  %v3282_v33 = vsel %vm3272_vm4, %v3279_v22, %v3281_v24  ;;  %v2895_v40 = vsub.s32 32, %v13011_v31  ;;  %v3286_v63 = vsel %vm3272_vm4, %v3283_v55, %v3285_v2 }
 0x3e5   : > { %v18629_v14 = vsel %vm13051_vm11, 4294967295, %v18628_v14  ;;  %18631 = vst [vmem:[#allocation24_spill] sm:$0xff] %v13055_v41  ;;  %18632 = vst [vmem:[#allocation25_spill] sm:$0xff] %v13058_v17  ;;  %v13065_v0 = vshll.u32 %v3247_v47, 8  ;;  %v3450_v48 = vand.u32 2139095040, %v13032_v39  ;;  %v2491_v32 = vxor.u32 2147483648, %v2490_v21 }
 0x3e6   : > { %18630 = vst [vmem:[#allocation23_spill] sm:$0xff] %v18629_v14  ;;  %v2879_v30 = vadd.s32 %v12742_v59, %v12750_v60  ;;  %v2900_v56 = vadd.s32 127, %v2899_v53  ;;  %v3092_v34 = vadd.s32 536870912, %v13035_v51  ;;  %v10938_v3 = vadd.s32 4294967294, %v2683_v46 }
 0x3e7   : > { %v13072_v62 = vmul.u32.u64.low %v13065_v0, %v3282_v33  ;;  %v13073_v22 = vmul.u32.u64.high %v13065_v0, %v3282_v33, %v13072_v62  ;;  %v3451_v24 = vshrl.u32 %v3450_v48, 23  ;;  %v2731_v19 = vsel %vm2730_vm5, %v2729_v52, 0 }
 0x3e8   : > { %v18633_v47 = vmov 2102212464   ;;  %v13079_v2 = vmul.u32.u64.low %v13065_v0, %v3286_v63  ;;  %v13080_v25 = vmul.u32.u64.high %v13065_v0, %v3286_v63, %v13079_v2  ;;  %v2897_v45 = vshrl.u32 %v2879_v30, %v2895_v40 }
 0x3e9   : > { %v2953_v55 = vshll.u32 %v18633_v47, %v13013_v23  ;;  %v13083_v59 = vadd.f32 %v2374_v8, %v12650_v26  ;;  %v3276_v60 = vsel %vm3274_vm0, %v3264_v18, 2102212464  ;;  %v10968_v53 = vadd.s32 4294967169, %v3451_v24 }
 0x3ea   : > { %v2492_v46 = vsel %vm18168_vm2, %v2491_v32, %v2490_v21  ;;  %v2901_v33 = vshll.u32 %v2900_v56, 23  ;;  %v13089_v52 = vshrl.u32 %v3092_v34, 30  ;;  %v18636_v48 = vmov 683565275  }
 0x3eb   : > { %18634 = vst [vmem:[#allocation26_spill] sm:$0xff] %v13083_v59  ;;  %v3255_v4 = vshrl.u32 %v18636_v48, %v12952_v1  ;;  %vm10939_vm12 = vcmp.lt.s32.totalorder %v10938_v3, 0  ;;  %v2896_v40 = vshll.u32 %v12865_v49, %v13011_v31  ;;  %v2954_v26 = vshrl.u32 %v18622_v42, %v13058_v17 }
 0x3ec   : > { %18635 = vst [vmem:[#allocation27_spill] sm:$0xff] %v13089_v52  ;;  %v18085_v8 = vand.u32 2147483647, %v13032_v39  ;;  %v13098_v18 = vshrl.u32 %v2731_v19, 5  ;;  %v3277_v63 = vsel %vm3273_vm1, %v13005_v16, %v3276_v60  ;;  %v3457_v1 = vadd.s32 1, %v10968_v53 }
 0x3ed   : > { %v3275_v21 = vsel %vm3271_vm9, %v3255_v4, %v13003_v38  ;;  %v13109_v49 = vsel %vm13051_vm11, %v12645_v61, %v2492_v46  ;;  %v13111_v31 = vand.u32 31, %v2731_v19  ;;  %v2898_v32 = vor.u32 %v2897_v45, %v2896_v40 }
 0x3ee   : > { %18637 = vst [vmem:[#allocation28_spill] sm:$0xff] %v13098_v18  ;;  %v3138_v30 = vand.u32 2139095040, %v13083_v59  ;;  %v13114_v56 = vsel %vm10939_vm12, 0, %v10938_v3  ;;  %v2902_v34 = vor.u32 4788187, %v2901_v33  ;;  %v3094_v38 = vshll.u32 %v13089_v52, 30 }
 0x3ef   : > { %18638 = vst [vmem:[#allocation29_spill] sm:$0xff] %v13111_v31  ;;  %vm3458_vm14 = vcmp.gt.s32.totalorder %v3457_v1, 0  ;;  %v3278_v16 = vsel %vm3272_vm4, %v3275_v21, %v3277_v63  ;;  %v3297_v4 = vadd.s32 1, %v13073_v22  ;;  %v3454_v24 = vand.u32 8388607, %v18085_v8 }
 0x3f0   : > { %v3459_v2 = vsel %vm3458_vm14, %v3457_v1, 0  ;;  %11514 = vcosq.f32 %v13109_v49  ;;  %v13123_v45 = vor.u32 %v2954_v26, %v2953_v55  ;;  %vm3296_vm13 = vc.u32 %v13080_v25, %v13072_v62 }
 0x3f1   : > { %v3461_v3 = vand.u32 31, %v3459_v2  ;;  %v2691_v19 = vsub.s32 4294967266, %v13114_v56  ;;  %v13129_v60 = vsub.s32 32, %v13111_v31  ;;  %v2905_v28 = vcvt.s32.f32 %v2898_v32 }
 0x3f2   : > { %18639 = vst [vmem:[#allocation30_spill] sm:$0xff] %v13123_v45  ;;  %v3139_v53 = vshrl.u32 %v3138_v30, 23  ;;  %v2903_v46 = vand.u32 2147483647, %v2902_v34  ;;  %v13132_v33 = vsub.s32 %v13035_v51, %v3094_v38  ;;  %v3294_v40 = vmul.u32 %v13065_v0, %v3278_v16 }
 0x3f3   : > { %18640 = vst [vmem:[#allocation31_spill] sm:$0xff] %v13129_v60  ;;  %v3462_v21 = vsub.s32 32, %v3461_v3  ;;  %v3298_v55 = vsel %vm3296_vm13, %v3297_v4, %v13073_v22  ;;  %v3455_v26 = vor.u32 8388608, %v3454_v24  ;;  %v3460_v63 = vshrl.u32 %v3459_v2, 5 }
 0x3f4   : > { %v3464_v1 = vshll.u32 %v18636_v48, %v3461_v3  ;;  %v18641_v8 = vmov 2475754826   ;;  %v18642_v61 = vmov 2131351028   ;;  %v3473_v34 = vshll.u32 %v18633_v47, %v3461_v3 }
 0x3f5   : > { %v3465_v52 = vshrl.u32 %v18641_v8, %v3462_v21  ;;  %v3467_v14 = vshll.u32 %v18641_v8, %v3461_v3  ;;  %v3468_v32 = vshrl.u32 %v18642_v61, %v3462_v21  ;;  %v3471_v30 = vshrl.u32 %v18633_v47, %v3462_v21 }
 0x3f6   : > { %v3470_v51 = vshll.u32 %v18642_v61, %v3461_v3  ;;  %v3474_v0 = vshrl.u32 %v18622_v42, %v3462_v21  ;;  %v3477_v22 = vshrl.u32 %v18623_v20, %v3462_v21  ;;  %v13145_v38 = vadd.s32 %v3298_v55, %v3294_v40 }
 0x3f7   : > { %v3466_v16 = vor.u32 %v3465_v52, %v3464_v1  ;;  %v3469_v4 = vor.u32 %v3468_v32, %v3467_v14  ;;  %v3476_v24 = vshll.u32 %v18622_v42, %v3461_v3  ;;  %v2671_v2 = vadd.s32 %v12820_v7, %v12825_v29 }
 0x3f8   : > { %v2687_v59 = vsub.s32 32, %v13114_v56  ;;  %v3472_v58 = vor.u32 %v3471_v30, %v3470_v51  ;;  %v3475_v27 = vor.u32 %v3474_v0, %v3473_v34  ;;  %v2906_v6 = vmul.f32 %v2905_v28, %v2903_v46 }
 0x3f9   : > { %v10956_v44 = vadd.s32 4294967169, %v3139_v53  ;;  %v3478_v43 = vor.u32 %v3477_v22, %v3476_v24  ;;  %vm3479_vm15 = vcmp.lt.s32.totalorder %v3460_v63, 1  ;;  %v2692_v57 = vadd.s32 127, %v2691_v19  ;;  %v2309_v22 = vpop.f32.mrf.mxu0 }
 0x3fa   : > { %vm18152_vm6 = vcmp.lt.s32.totalorder %v12653_v37, 0  ;;  %v3097_v40 = vsub.s32 0, %v13132_v33  ;;  %vm3482_vm10 = vcmp.lt.s32.totalorder %v3460_v63, 4  ;;  %v3487_v14 = vsel %vm3479_vm15, %v3466_v16, %v3469_v4 }
 0x3fb   : > { %v3300_v52 = vadd.s32 536870912, %v13145_v38  ;;  %vm3481_vm8 = vcmp.lt.s32.totalorder %v3460_v63, 3  ;;  %v3488_v7 = vsel %vm3482_vm10, %v3475_v27, 920167782  ;;  %v3495_v29 = vshll.u32 %v3455_v26, 8 }
 0x3fc   : > { %vm3480_vm0 = vcmp.lt.s32.totalorder %v3460_v63, 2  ;;  %v3484_v3 = vsel %vm3482_vm10, %v3472_v58, 2102212464  ;;  %v3489_v28 = vsel %vm3481_vm8, %v3472_v58, %v3488_v7  ;;  %v3491_v53 = vsel %vm3479_vm15, %v3469_v4, %v3472_v58 }
 0x3fd   : > { %v18643_v19 = vand.u32 2147483647, %v12653_v37  ;;  %v18644_v46 = vmov 0  ;;  %v2907_v55 = vxor.u32 2147483648, %v2906_v6  ;;  %v3463_v1 = vshrl.u32 %v18636_v48, %v3462_v21  ;;  %v13165_v51 = vpop.eup %11514 }
 0x3fe   : > { %v3490_v32 = vsel %vm3480_vm0, %v3487_v14, %v3489_v28  ;;  %v3492_v30 = vsel %vm3482_vm10, %v3478_v43, 1326507024  ;;  %18647 = vst [vmem:[#allocation33_spill] sm:$0xff] %v13165_v51  ;;  %v10953_v26 = vmin.u32 %v3097_v40, %v13132_v33  ;;  %vm18173_vm1 = vcmp.lt.s32.totalorder %v13055_v41, 4 }
 0x3ff   : > { %vm13159_vm9 = vcmp.le.f32.partialorder %v18643_v19, 0.7853982  ;;  %v3493_v34 = vsel %vm3481_vm8, %v3475_v27, %v3492_v30  ;;  %v13169_v0 = vmul.u32.u64.low %v3495_v29, %v3490_v32  ;;  %v13170_v58 = vmul.u32.u64.high %v3495_v29, %v3490_v32, %v13169_v0  ;;  %v2380_v30 = vpop.f32.mrf.mxu1 }
 0x400   : > { %v18645_v46 = vsel %vm13159_vm9, 4294967295, %v18644_v46  ;;  %v13174_v24 = vshrl.u32 %v3300_v52, 30  ;;  %v3483_v21 = vsel %vm3479_vm15, %v3463_v1, %v3466_v16  ;;  %v3485_v14 = vsel %vm3481_vm8, %v3469_v4, %v3484_v3 }
 0x401   : > { %18646 = vst [vmem:[#allocation32_spill] sm:$0xff] %v18645_v46  ;;  %v3494_v43 = vsel %vm3480_vm0, %v3491_v53, %v3493_v34  ;;  %v2693_v7 = vshll.u32 %v2692_v57, 23  ;;  %v2745_v40 = vshll.u32 %v18633_v47, %v13111_v31  ;;  %v2746_v27 = vshrl.u32 %v18622_v42, %v13129_v60 }
 0x402   : > { %18648 = vst [vmem:[#allocation34_spill] sm:$0xff] %v13174_v24  ;;  %v2748_v28 = vshll.u32 %v18622_v42, %v13111_v31  ;;  %v2689_v19 = vshrl.u32 %v2671_v2, %v2687_v59  ;;  %v13185_v32 = vmul.u32.u64.low %v3495_v29, %v3494_v43  ;;  %v13186_v52 = vmul.u32.u64.high %v3495_v29, %v3494_v43, %v13185_v32  ;;  %v2382_v43 = vpop.f32.mrf.mxu1 }
 0x403   : > { %v13189_v16 = vadd.f32 %v2309_v22, %v12640_v50  ;;  %11516 = vsinq.f32 %v13109_v49  ;;  %v2688_v57 = vshll.u32 %v12962_v54, %v13114_v56  ;;  %v3486_v4 = vsel %vm3480_vm0, %v3483_v21, %v3485_v14 }
 0x404   : > { %v3505_v3 = vadd.s32 1, %v13170_v58  ;;  %v2908_v53 = vsel %vm18152_vm6, %v2907_v55, %v2906_v6  ;;  %v3099_v1 = vclz %v10953_v26  ;;  %v3145_v59 = vadd.s32 1, %v10956_v44 }
 0x405   : > { %18649 = vst [vmem:[#allocation35_spill] sm:$0xff] %v13189_v16  ;;  %v3302_v2 = vshll.u32 %v13174_v24, 30  ;;  %v2694_v34 = vor.u32 4788187, %v2693_v7  ;;  %v13199_v22 = vor.u32 %v2746_v27, %v2745_v40  ;;  %v2749_v49 = vshrl.u32 %v18623_v20, %v13129_v60 }
 0x406   : > { %v2957_v54 = vshrl.u32 %v18623_v20, %v13058_v17  ;;  %v2690_v56 = vor.u32 %v2689_v19, %v2688_v57  ;;  %v3502_v63 = vmul.u32 %v3495_v29, %v3486_v4  ;;  %vm3504_vm4 = vc.u32 %v13186_v52, %v13169_v0 }
 0x407   : > { %18650 = vst [vmem:[#allocation36_spill] sm:$0xff] %v13199_v22  ;;  %v3658_v6 = vand.u32 2139095040, %v13189_v16  ;;  %vm18172_vm5 = vcmp.lt.s32.totalorder %v13098_v18, 4  ;;  %v2911_v44 = vsel %vm13159_vm9, %v12653_v37, %v2908_v53  ;;  %v2956_v55 = vshll.u32 %v18622_v42, %v13013_v23 }
 0x408   : > { %v3506_v26 = vsel %vm3504_vm4, %v3505_v3, %v13170_v58  ;;  %v10954_v21 = vadd.s32 4294967294, %v3099_v1  ;;  %vm3146_vm12 = vcmp.gt.s32.totalorder %v3145_v59, 0  ;;  %v13216_v29 = vsub.s32 %v13145_v38, %v3302_v2 }
 0x409   : > { %v3507_v14 = vadd.s32 %v3506_v26, %v3502_v63  ;;  %v2695_v7 = vand.u32 2147483647, %v2694_v34  ;;  %v2750_v40 = vor.u32 %v2749_v49, %v2748_v28  ;;  %v2958_v27 = vor.u32 %v2957_v54, %v2956_v55 }
 0x40a   : > { %v13221_v19 = vsel %vm18173_vm1, %v13123_v45, 920167782  ;;  %v2697_v32 = vcvt.s32.f32 %v2690_v56  ;;  %v13226_v58 = vsel %vm18172_vm5, %v13199_v22, 920167782  ;;  %v3659_v4 = vshrl.u32 %v3658_v6, 23 }
 0x40b   : > { %18651 = vst [vmem:[#allocation37_spill] sm:$0xff] %v13221_v19  ;;  %18652 = vst [vmem:[#allocation38_spill] sm:$0xff] %v13226_v58  ;;  %v3508_v57 = vadd.s32 536870912, %v3507_v14  ;;  %11518 = vcosq.f32 %v2911_v44  ;;  %v3147_v38 = vsel %vm3146_vm12, %v3145_v59, 0  ;;  %v3346_v3 = vand.u32 2139095040, %v12975_v12 }
 0x40c   : > { %v13230_v28 = vadd.f32 %v2382_v43, %v12640_v50  ;;  %vm10955_vm14 = vcmp.lt.s32.totalorder %v10954_v21, 0  ;;  %v3305_v53 = vsub.s32 0, %v13216_v29  ;;  %v10976_v2 = vadd.s32 4294967169, %v3659_v4 }
 0x40d   : > { %v13233_v1 = vshrl.u32 %v3508_v57, 30  ;;  %v13235_v34 = vmul.f32 %v2697_v32, %v2695_v7  ;;  %v13239_v49 = vsel %vm18172_vm5, %v2750_v40, 1326507024  ;;  %11520 = vsinq.f32 %v2911_v44 }
 0x40e   : > { %18653 = vst [vmem:[#allocation39_spill] sm:$0xff] %v13230_v28  ;;  %18655 = vst [vmem:[#allocation41_spill] sm:$0xff] %v13239_v49  ;;  %v13243_v59 = vsel %vm18173_vm1, %v2958_v27, 1326507024  ;;  %v13247_v54 = vadd.s32 %v12944_v15, %v12950_v5  ;;  %v13249_v56 = vand.u32 31, %v3147_v38  ;;  %v3665_v6 = vadd.s32 1, %v10976_v2 }
 0x40f   : > { %18654 = vst [vmem:[#allocation40_spill] sm:$0xff] %v13233_v1  ;;  %18656 = vst [vmem:[#allocation42_spill] sm:$0xff] %v13243_v59  ;;  %v3510_v63 = vshll.u32 %v13233_v1, 30  ;;  %v13252_v55 = vsel %vm10955_vm14, 0, %v10954_v21  ;;  %v3347_v26 = vshrl.u32 %v3346_v3, 23  ;;  %v13255_v43 = vadd.f32 %v2380_v30, %v12638_v36 }
 0x410   : > { %18657 = vst [vmem:[#allocation43_spill] sm:$0xff] %v13249_v56  ;;  %v3866_v44 = vand.u32 2139095040, %v13230_v28  ;;  %v13258_v7 = vpop.eup %11516  ;;  %v10961_v40 = vmin.u32 %v3305_v53, %v13216_v29  ;;  %v18111_v15 = vand.u32 2147483647, %v13189_v16  ;;  %vm3666_vm13 = vcmp.gt.s32.totalorder %v3665_v6, 0 }
 0x411   : > { %18658 = vst [vmem:[#allocation44_spill] sm:$0xff] %v13255_v43  ;;  %18659 = vst [vmem:[#allocation45_spill] sm:$0xff] %v13258_v7  ;;  %v13261_v27 = vsub.s32 %v3507_v14, %v3510_v63  ;;  %v13265_v32 = vshrl.u32 %v3147_v38, 5  ;;  %v3667_v21 = vsel %vm3666_vm13, %v3665_v6, 0  ;;  %v13268_v36 = vsub.s32 32, %v13249_v56 }
 0x412   : > { %v3867_v57 = vshrl.u32 %v3866_v44, 23  ;;  %v13272_v30 = vshll.u32 %v18633_v47, %v13249_v56  ;;  %v13276_v14 = vshll.u32 %v18622_v42, %v13249_v56  ;;  %v3669_v4 = vand.u32 31, %v3667_v21 }
 0x413   : > { %18660 = vst [vmem:[#allocation46_spill] sm:$0xff] %v13265_v32  ;;  %18661 = vst [vmem:[#allocation47_spill] sm:$0xff] %v13268_v36  ;;  %v10964_v38 = vadd.s32 4294967169, %v3347_v26  ;;  %v3554_v2 = vand.u32 2139095040, %v13255_v43  ;;  %v3307_v63 = vclz %v10961_v40  ;;  %v3513_v6 = vsub.s32 0, %v13261_v27 }
 0x414   : > { %18662 = vst [vmem:[#allocation48_spill] sm:$0xff] %v13272_v30  ;;  %18663 = vst [vmem:[#allocation49_spill] sm:$0xff] %v13276_v14  ;;  %v3662_v44 = vand.u32 8388607, %v18111_v15  ;;  %v3670_v5 = vsub.s32 32, %v3669_v4  ;;  %v3668_v46 = vshrl.u32 %v3667_v21, 5  ;;  %v3672_v37 = vshll.u32 %v18636_v48, %v3669_v4 }
 0x415   : > { %v3675_v51 = vshll.u32 %v18641_v8, %v3669_v4  ;;  %v10984_v7 = vadd.s32 4294967169, %v3867_v57  ;;  %v3678_v26 = vshll.u32 %v18642_v61, %v3669_v4  ;;  %v3681_v40 = vshll.u32 %v18633_v47, %v3669_v4 }
 0x416   : > { %v3673_v3 = vshrl.u32 %v18641_v8, %v3670_v5  ;;  %v3676_v53 = vshrl.u32 %v18642_v61, %v3670_v5  ;;  %vm18151_vm15 = vcmp.lt.s32.totalorder %v12705_v10, 0  ;;  %v3679_v56 = vshrl.u32 %v18633_v47, %v3670_v5 }
 0x417   : > { %v3682_v15 = vshrl.u32 %v18622_v42, %v3670_v5  ;;  %v3684_v21 = vshll.u32 %v18622_v42, %v3669_v4  ;;  %v3685_v22 = vshrl.u32 %v18623_v20, %v3670_v5  ;;  %v10969_v57 = vmin.u32 %v3513_v6, %v13261_v27 }
 0x418   : > { %v13295_v49 = vpop.eup %11518  ;;  %v3663_v58 = vor.u32 8388608, %v3662_v44  ;;  %v3674_v18 = vor.u32 %v3673_v3, %v3672_v37  ;;  %v3677_v32 = vor.u32 %v3676_v53, %v3675_v51  ;;  %v3353_v14 = vadd.s32 1, %v10964_v38 }
 0x419   : > { %18664 = vst [vmem:[#allocation50_spill] sm:$0xff] %v13295_v49  ;;  %v3680_v31 = vor.u32 %v3679_v56, %v3678_v26  ;;  %v3683_v60 = vor.u32 %v3682_v15, %v3681_v40  ;;  %v3686_v19 = vor.u32 %v3685_v22, %v3684_v21  ;;  %v10962_v59 = vadd.s32 4294967294, %v3307_v63 }
 0x41a   : > { %v13298_v45 = vpop.eup %11520  ;;  %vm3687_vm10 = vcmp.lt.s32.totalorder %v3668_v46, 1  ;;  %vm3690_vm8 = vcmp.lt.s32.totalorder %v3668_v46, 4  ;;  %v3873_v41 = vadd.s32 1, %v10984_v7  ;;  %v3671_v4 = vshrl.u32 %v18636_v48, %v3670_v5 }
 0x41b   : > { %18665 = vst [vmem:[#allocation51_spill] sm:$0xff] %v13298_v45  ;;  %v3692_v17 = vsel %vm3690_vm8, %v3680_v31, 2102212464  ;;  %v3695_v23 = vsel %vm3687_vm10, %v3674_v18, %v3677_v32  ;;  %v3696_v49 = vsel %vm3690_vm8, %v3683_v60, 920167782  ;;  %v3515_v30 = vclz %v10969_v57 }
 0x41c   : > { %vm3689_vm0 = vcmp.lt.s32.totalorder %v3668_v46, 3  ;;  %v3699_v6 = vsel %vm3687_vm10, %v3677_v32, %v3680_v31  ;;  %v3703_v37 = vshll.u32 %v3663_v58, 8  ;;  %vm3688_vm4 = vcmp.lt.s32.totalorder %v3668_v46, 2 }
 0x41d   : > { %v3691_v51 = vsel %vm3687_vm10, %v3671_v4, %v3674_v18  ;;  %v3697_v56 = vsel %vm3689_vm0, %v3680_v31, %v3696_v49  ;;  %v3700_v15 = vsel %vm3690_vm8, %v3686_v19, 1326507024  ;;  %v3693_v22 = vsel %vm3689_vm0, %v3677_v32, %v3692_v17 }
 0x41e   : > { %v3698_v3 = vsel %vm3688_vm4, %v3695_v23, %v3697_v56  ;;  %v3701_v53 = vsel %vm3689_vm0, %v3683_v60, %v3700_v15  ;;  %vm3874_vm12 = vcmp.gt.s32.totalorder %v3873_v41, 0  ;;  %v3555_v38 = vshrl.u32 %v3554_v2, 23 }
 0x41f   : > { %v3702_v63 = vsel %vm3688_vm4, %v3699_v6, %v3701_v53  ;;  %v13301_v7 = vmul.u32.u64.low %v3703_v37, %v3698_v3  ;;  %v13302_v44 = vmul.u32.u64.high %v3703_v37, %v3698_v3, %v13301_v7  ;;  %v18666_v5 = vxor.u32 2147483648, %v13235_v34 }
 0x420   : > { %vm3354_vm14 = vcmp.gt.s32.totalorder %v3353_v14, 0  ;;  %v13312_v18 = vmul.u32.u64.low %v3703_v37, %v3702_v63  ;;  %v13313_v31 = vmul.u32.u64.high %v3703_v37, %v3702_v63, %v13312_v18  ;;  %v10970_v23 = vadd.s32 4294967294, %v3515_v30 }
 0x421   : > { %v13310_v58 = vsel %vm18151_vm15, %v18666_v5, %v13235_v34  ;;  %v3694_v17 = vsel %vm3688_vm4, %v3691_v51, %v3693_v22  ;;  %v18128_v60 = vand.u32 2147483647, %v13230_v28  ;;  %v3875_v46 = vsel %vm3874_vm12, %v3873_v41, 0  ;;  %v2311_v18 = vpop.f32.mrf.mxu0 }
 0x422   : > { %18667 = vst [vmem:[#allocation52_spill] sm:$0xff] %v13310_v58  ;;  %v3104_v19 = vshll.u32 %v13132_v33, %v13252_v55  ;;  %v13320_v49 = vadd.s32 %v13072_v62, %v13080_v25  ;;  %vm10963_vm13 = vcmp.lt.s32.totalorder %v10962_v59, 0  ;;  %v3877_v32 = vand.u32 31, %v3875_v46 }
 0x423   : > { %v18668_v34 = vsub.s32 32, %v13252_v55  ;;  %v18669_v26 = vsub.s32 4294967266, %v13252_v55  ;;  %v10972_v40 = vadd.s32 4294967169, %v3555_v38  ;;  %v3713_v21 = vadd.s32 1, %v13302_v44 }
 0x424   : > { %v3355_v41 = vsel %vm3354_vm14, %v3353_v14, 0  ;;  %v3710_v57 = vmul.u32 %v3703_v37, %v3694_v17  ;;  %vm3712_vm10 = vc.u32 %v13313_v31, %v13301_v7  ;;  %v13331_v62 = vsub.s32 32, %v3877_v32 }
 0x425   : > { %v3105_v2 = vshrl.u32 %v13247_v54, %v18668_v34  ;;  %v3108_v30 = vadd.s32 127, %v18669_v26  ;;  %v13333_v25 = vsel %vm10963_vm13, 0, %v10962_v59  ;;  %vm10971_vm8 = vcmp.lt.s32.totalorder %v10970_v23, 0 }
 0x426   : > { %v3714_v33 = vsel %vm3712_vm10, %v3713_v21, %v13302_v44  ;;  %v3870_v54 = vand.u32 8388607, %v18128_v60  ;;  %v3880_v4 = vshll.u32 %v18636_v48, %v3877_v32  ;;  %v3881_v14 = vshrl.u32 %v18641_v8, %v13331_v62 }
 0x427   : > { %v3715_v55 = vadd.s32 %v3714_v33, %v3710_v57  ;;  %v3883_v6 = vshll.u32 %v18641_v8, %v3877_v32  ;;  %v3884_v37 = vshrl.u32 %v18642_v61, %v13331_v62  ;;  %v3887_v59 = vshrl.u32 %v18633_v47, %v13331_v62 }
 0x428   : > { %v3889_v51 = vshll.u32 %v18633_v47, %v3877_v32  ;;  %v3890_v56 = vshrl.u32 %v18622_v42, %v13331_v62  ;;  %v13349_v22 = vshrl.u32 %v3875_v46, 5  ;;  %v13351_v3 = vor.u32 %v3881_v14, %v3880_v4 }
 0x429   : > { %v3716_v15 = vadd.s32 536870912, %v3715_v55  ;;  %v3886_v53 = vshll.u32 %v18642_v61, %v3877_v32  ;;  %v13354_v38 = vor.u32 %v3884_v37, %v3883_v6  ;;  %v3892_v44 = vshll.u32 %v18622_v42, %v3877_v32 }
 0x42a   : > { %v3891_v63 = vor.u32 %v3890_v56, %v3889_v51  ;;  %v3893_v5 = vshrl.u32 %v18623_v20, %v13331_v62  ;;  %v13359_v17 = vor.u32 %v3105_v2, %v3104_v19  ;;  %v3315_v34 = vsub.s32 4294967266, %v13333_v25 }
 0x42b   : > { %v13362_v26 = vshrl.u32 %v3716_v15, 30  ;;  %v3888_v46 = vor.u32 %v3887_v59, %v3886_v53  ;;  %v3109_v21 = vshll.u32 %v3108_v30, 23  ;;  %v13364_v57 = vand.u32 31, %v3355_v41 }
 0x42c   : > { %18670 = vst [vmem:[#allocation53_spill] sm:$0xff] %v13359_v17  ;;  %v3561_v33 = vadd.s32 1, %v10972_v40  ;;  %v3894_v4 = vor.u32 %v3893_v5, %v3892_v44  ;;  %v13367_v14 = vsel %vm10971_vm8, 0, %v10970_v23  ;;  %vm3895_vm0 = vcmp.lt.s32.totalorder %v13349_v22, 1  ;;  %v2315_v40 = vpop.f32.mrf.mxu0 }
 0x42d   : > { %18671 = vst [vmem:[#allocation54_spill] sm:$0xff] %v13362_v26  ;;  %18672 = vst [vmem:[#allocation55_spill] sm:$0xff] %v13364_v57  ;;  %v3718_v32 = vshll.u32 %v13362_v26, 30  ;;  %vm3898_vm4 = vcmp.lt.s32.totalorder %v13349_v22, 4  ;;  %v3871_v19 = vor.u32 8388608, %v3870_v54  ;;  %vm3897_vm12 = vcmp.lt.s32.totalorder %v13349_v22, 3 }
 0x42e   : > { %v3903_v2 = vsel %vm3895_vm0, %v13351_v3, %v13354_v38  ;;  %v3904_v30 = vsel %vm3898_vm4, %v3891_v63, 920167782  ;;  %v3316_v23 = vadd.s32 127, %v3315_v34  ;;  %v3907_v54 = vsel %vm3895_vm0, %v13354_v38, %v3888_v46 }
 0x42f   : > { %v13379_v6 = vsub.s32 %v3715_v55, %v3718_v32  ;;  %v3905_v37 = vsel %vm3897_vm12, %v3888_v46, %v3904_v30  ;;  %v13386_v59 = vor.u32 4788187, %v3109_v21  ;;  %v3523_v51 = vsub.s32 4294967266, %v13367_v14 }
 0x430   : > { %vm3896_vm14 = vcmp.lt.s32.totalorder %v13349_v22, 2  ;;  %v3908_v56 = vsel %vm3898_vm4, %v3894_v4, 1326507024  ;;  %v13398_v44 = vadd.f32 %v2315_v40, %v12634_v13  ;;  %v3311_v34 = vsub.s32 32, %v13333_v25 }
 0x431   : > { %18673 = vst [vmem:[#allocation56_spill] sm:$0xff] %v13386_v59  ;;  %v3721_v15 = vsub.s32 0, %v13379_v6  ;;  %v3906_v55 = vsel %vm3896_vm14, %v3903_v2, %v3905_v37  ;;  %v3909_v53 = vsel %vm3897_vm12, %v3891_v63, %v3908_v56  ;;  %v13404_v32 = vshll.u32 %v3871_v19, 8 }
 0x432   : > { %18674 = vst [vmem:[#allocation57_spill] sm:$0xff] %v13398_v44  ;;  %v3910_v21 = vsel %vm3896_vm14, %v3907_v54, %v3909_v53  ;;  %v3317_v4 = vshll.u32 %v3316_v23, 23  ;;  %v13406_v30 = vshrl.u32 %v3355_v41, 5  ;;  %v13409_v2 = vsub.s32 32, %v13364_v57 }
 0x433   : > { %vm3562_vm13 = vcmp.gt.s32.totalorder %v3561_v33, 0  ;;  %v3524_v63 = vadd.s32 127, %v3523_v51  ;;  %v13412_v40 = vmul.u32.u64.low %v13404_v32, %v3906_v55  ;;  %v13413_v37 = vmul.u32.u64.high %v13404_v32, %v3906_v55, %v13412_v40 }
 0x434   : > { %18675 = vst [vmem:[#allocation58_spill] sm:$0xff] %v13406_v30  ;;  %18676 = vst [vmem:[#allocation59_spill] sm:$0xff] %v13409_v2  ;;  %v13417_v56 = vadd.f32 %v2311_v18, %v12640_v50  ;;  %v10977_v54 = vmin.u32 %v3721_v15, %v13379_v6  ;;  %v13421_v19 = vmul.u32.u64.low %v13404_v32, %v3910_v21  ;;  %v13422_v23 = vmul.u32.u64.high %v13404_v32, %v3910_v21, %v13421_v19 }
 0x435   : > { %v4074_v41 = vand.u32 2139095040, %v13398_v44  ;;  %v3312_v51 = vshll.u32 %v13216_v29, %v13333_v25  ;;  %v3313_v55 = vshrl.u32 %v13320_v49, %v3311_v34  ;;  %v3369_v5 = vshll.u32 %v18633_v47, %v13364_v57 }
 0x436   : > { %18677 = vst [vmem:[#allocation60_spill] sm:$0xff] %v13417_v56  ;;  %v3519_v18 = vsub.s32 32, %v13367_v14  ;;  %v3370_v15 = vshrl.u32 %v18622_v42, %v13409_v2  ;;  %v3563_v60 = vsel %vm3562_vm13, %v3561_v33, 0  ;;  %v3318_v19 = vor.u32 4788187, %v3317_v4 }
 0x437   : > { %v4075_v21 = vshrl.u32 %v4074_v41, 23  ;;  %v3373_v45 = vshrl.u32 %v18623_v20, %v13409_v2  ;;  %v3900_v53 = vsel %vm3898_vm4, %v3888_v46, 2102212464  ;;  %v3762_v29 = vand.u32 2139095040, %v13417_v56 }
 0x438   : > { %v3503_v49 = vadd.s32 %v13169_v0, %v13186_v52  ;;  %v3525_v25 = vshll.u32 %v3524_v63, 23  ;;  %v3723_v34 = vclz %v10977_v54  ;;  %v3879_v36 = vshrl.u32 %v18636_v48, %v13331_v62  ;;  %v2384_v52 = vpop.f32.mrf.mxu1 }
 0x439   : > { %v3314_v58 = vor.u32 %v3313_v55, %v3312_v51  ;;  %v3372_v33 = vshll.u32 %v18622_v42, %v13364_v57  ;;  %v13445_v4 = vand.u32 31, %v3563_v60  ;;  %v10992_v41 = vadd.s32 4294967169, %v4075_v21 }
 0x43a   : > { %v3521_v1 = vshrl.u32 %v3503_v49, %v3519_v18  ;;  %v13447_v10 = vor.u32 %v3370_v15, %v3369_v5  ;;  %v3899_v46 = vsel %vm3895_vm0, %v3879_v36, %v13351_v3  ;;  %v3901_v0 = vsel %vm3897_vm12, %v13354_v38, %v3900_v53 }
 0x43b   : > { %18678 = vst [vmem:[#allocation61_spill] sm:$0xff] %v13445_v4  ;;  %v3319_v62 = vand.u32 2147483647, %v3318_v19  ;;  %v3374_v63 = vor.u32 %v3373_v45, %v3372_v33  ;;  %v3921_v54 = vadd.s32 1, %v13413_v37  ;;  %v3763_v51 = vshrl.u32 %v3762_v29, 23 }
 0x43c   : > { %18679 = vst [vmem:[#allocation62_spill] sm:$0xff] %v13447_v10  ;;  %v3520_v55 = vshll.u32 %v13261_v27, %v13367_v14  ;;  %v3526_v18 = vor.u32 4788187, %v3525_v25  ;;  %v10978_v5 = vadd.s32 4294967294, %v3723_v34  ;;  %vm3920_vm10 = vc.u32 %v13422_v23, %v13412_v40 }
 0x43d   : > { %v3321_v15 = vcvt.s32.f32 %v3314_v58  ;;  %v3902_v36 = vsel %vm3896_vm14, %v3899_v46, %v3901_v0  ;;  %v13463_v3 = vadd.f32 %v2384_v52, %v12640_v50  ;;  %v4081_v38 = vadd.s32 1, %v10992_v41 }
 0x43e   : > { %v3522_v45 = vor.u32 %v3521_v1, %v3520_v55  ;;  %vm18219_vm8 = vcmp.lt.s32.totalorder %v13406_v30, 4  ;;  %v13466_v53 = vshrl.u32 %v3563_v60, 5  ;;  %v13469_v27 = vsub.s32 32, %v13445_v4 }
 0x43f   : > { %18680 = vst [vmem:[#allocation63_spill] sm:$0xff] %v13463_v3  ;;  %v13471_v14 = vmul.f32 %v3321_v15, %v3319_v62  ;;  %v3922_v21 = vsel %vm3920_vm10, %v3921_v54, %v13413_v37  ;;  %v10980_v58 = vadd.s32 4294967169, %v3763_v51  ;;  %vm4082_vm0 = vcmp.gt.s32.totalorder %v4081_v38, 0 }
 0x440   : > { %18681 = vst [vmem:[#allocation64_spill] sm:$0xff] %v13466_v53  ;;  %18682 = vst [vmem:[#allocation65_spill] sm:$0xff] %v13469_v27  ;;  %v3527_v22 = vand.u32 2147483647, %v3526_v18  ;;  %vm10979_vm4 = vcmp.lt.s32.totalorder %v10978_v5, 0  ;;  %v3918_v50 = vmul.u32 %v13404_v32, %v3902_v36  ;;  %v4083_v19 = vsel %vm4082_vm0, %v4081_v38, 0 }
 0x441   : > { %v13478_v1 = vsel %vm18219_vm8, %v13447_v10, 920167782  ;;  %v13482_v60 = vsel %vm18219_vm8, %v3374_v63, 1326507024  ;;  %v3970_v29 = vand.u32 2139095040, %v13463_v3  ;;  %v4085_v49 = vand.u32 31, %v4083_v19  ;;  %v2388_v3 = vpop.f32.mrf.mxu1 }
 0x442   : > { %18683 = vst [vmem:[#allocation66_spill] sm:$0xff] %v13478_v1  ;;  %18684 = vst [vmem:[#allocation67_spill] sm:$0xff] %v13482_v60  ;;  %v3529_v37 = vcvt.s32.f32 %v3522_v45  ;;  %v13487_v25 = vshll.u32 %v18633_v47, %v13445_v4  ;;  %v13489_v34 = vadd.s32 %v3922_v21, %v3918_v50  ;;  %v18139_v32 = vand.u32 2147483647, %v13398_v44 }
 0x443   : > { %v13494_v33 = vshrl.u32 %v18622_v42, %v13469_v27  ;;  %v13498_v41 = vshll.u32 %v18622_v42, %v13445_v4  ;;  %v13500_v46 = vsel %vm10979_vm4, 0, %v10978_v5  ;;  %v4086_v0 = vsub.s32 32, %v4085_v49 }
 0x444   : > { %v13503_v62 = vmul.f32 %v3529_v37, %v3527_v22  ;;  %v13507_v63 = vshrl.u32 %v18623_v20, %v13469_v27  ;;  %v13509_v54 = vadd.s32 1, %v10980_v58  ;;  %v3971_v51 = vshrl.u32 %v3970_v29, 23 }
 0x445   : > { %v4089_v55 = vshrl.u32 %v18641_v8, %v4086_v0  ;;  %v4092_v18 = vshrl.u32 %v18642_v61, %v4086_v0  ;;  %v4095_v15 = vshrl.u32 %v18633_v47, %v4086_v0  ;;  %v3731_v5 = vsub.s32 4294967266, %v13500_v46 }
 0x446   : > { %v3924_v36 = vadd.s32 536870912, %v13489_v34  ;;  %v4078_v38 = vand.u32 8388607, %v18139_v32  ;;  %v4098_v45 = vshrl.u32 %v18622_v42, %v4086_v0  ;;  %v4088_v21 = vshll.u32 %v18636_v48, %v4085_v49 }
 0x447   : > { %v4091_v58 = vshll.u32 %v18641_v8, %v4085_v49  ;;  %v4094_v22 = vshll.u32 %v18642_v61, %v4085_v49  ;;  %v4097_v50 = vshll.u32 %v18633_v47, %v4085_v49  ;;  %v3711_v29 = vadd.s32 %v13301_v7, %v13313_v31 }
 0x448   : > { %v4084_v37 = vshrl.u32 %v4083_v19, 5  ;;  %v4100_v52 = vshll.u32 %v18622_v42, %v4085_v49  ;;  %v4101_v26 = vshrl.u32 %v18623_v20, %v4086_v0  ;;  %v4090_v24 = vor.u32 %v4089_v55, %v4088_v21 }
 0x449   : > { %v4093_v32 = vor.u32 %v4092_v18, %v4091_v58  ;;  %v4096_v17 = vor.u32 %v4095_v15, %v4094_v22  ;;  %v4099_v59 = vor.u32 %v4098_v45, %v4097_v50  ;;  %vm18207_vm12 = vcmp.lt.s32.totalorder %v12828_v9, 0 }
 0x44a   : > { %v3531_v4 = vxor.u32 2147483648, %v13503_v62  ;;  %vm3770_vm14 = vcmp.gt.s32.totalorder %v13509_v54, 0  ;;  %v10988_v27 = vadd.s32 4294967169, %v3971_v51  ;;  %v4102_v43 = vor.u32 %v4101_v26, %v4100_v52 }
 0x44b   : > { %vm18197_vm13 = vcmp.lt.s32.totalorder %v13032_v39, 0  ;;  %v3727_v7 = vsub.s32 32, %v13500_v46  ;;  %v3732_v31 = vadd.s32 127, %v3731_v5  ;;  %v13532_v19 = vshrl.u32 %v3924_v36, 30 }
 0x44c   : > { %v4079_v49 = vor.u32 8388608, %v4078_v38  ;;  %vm4103_vm10 = vcmp.lt.s32.totalorder %v4084_v37, 1  ;;  %vm4105_vm0 = vcmp.lt.s32.totalorder %v4084_v37, 3  ;;  %vm4106_vm4 = vcmp.lt.s32.totalorder %v4084_v37, 4 }
 0x44d   : > { %18685 = vst [vmem:[#allocation68_spill] sm:$0xff] %v13532_v19  ;;  %v13535_v55 = vadd.f32 %v2388_v3, %v12634_v13  ;;  %v18687_v18 = vand.u32 2147483647, %v12828_v9  ;;  %v18688_v15 = vmov 0  ;;  %v4108_v26 = vsel %vm4106_vm4, %v4096_v17, 2102212464 }
 0x44e   : > { %v4111_v52 = vsel %vm4103_vm10, %v4090_v24, %v4093_v32  ;;  %v4112_v51 = vsel %vm4106_vm4, %v4099_v59, 920167782  ;;  %v4115_v5 = vsel %vm4103_vm10, %v4093_v32, %v4096_v17  ;;  %v4087_v36 = vshrl.u32 %v18636_v48, %v4086_v0 }
 0x44f   : > { %18686 = vst [vmem:[#allocation69_spill] sm:$0xff] %v13535_v55  ;;  %vm13539_vm3 = vcmp.le.f32.partialorder %v18687_v18, 0.7853982  ;;  %vm4104_vm15 = vcmp.lt.s32.totalorder %v4084_v37, 2  ;;  %v4113_v38 = vsel %vm4105_vm0, %v4096_v17, %v4112_v51  ;;  %v4116_v45 = vsel %vm4106_vm4, %v4102_v43, 1326507024 }
 0x450   : > { %v18689_v15 = vsel %vm13539_vm3, 4294967295, %v18688_v15  ;;  %v18691_v3 = vand.u32 2147483647, %v13032_v39  ;;  %v18692_v21 = vmov 0  ;;  %v3733_v58 = vshll.u32 %v3732_v31, 23 }
 0x451   : > { %18690 = vst [vmem:[#allocation70_spill] sm:$0xff] %v18689_v15  ;;  %v4114_v22 = vsel %vm4104_vm15, %v4111_v52, %v4113_v38  ;;  %v4117_v50 = vsel %vm4105_vm0, %v4099_v59, %v4116_v45  ;;  %v4119_v18 = vshll.u32 %v4079_v49, 8  ;;  %v3926_v28 = vshll.u32 %v13532_v19, 30 }
 0x452   : > { %vm13549_vm6 = vcmp.le.f32.partialorder %v18691_v3, 0.7853982  ;;  %v4107_v0 = vsel %vm4103_vm10, %v4087_v36, %v4090_v24  ;;  %v4109_v56 = vsel %vm4105_vm0, %v4093_v32, %v4108_v26  ;;  %v4118_v43 = vsel %vm4104_vm15, %v4115_v5, %v4117_v50 }
 0x453   : > { %v18693_v21 = vsel %vm13549_vm6, 4294967295, %v18692_v21  ;;  %v13559_v17 = vmul.u32.u64.low %v4119_v18, %v4118_v43  ;;  %v13560_v51 = vmul.u32.u64.high %v4119_v18, %v4118_v43, %v13559_v17  ;;  %v13568_v31 = vor.u32 %v13494_v33, %v13487_v25 }
 0x454   : > { %18694 = vst [vmem:[#allocation71_spill] sm:$0xff] %v18693_v21  ;;  %v13562_v3 = vmul.u32.u64.low %v4119_v18, %v4114_v22  ;;  %v13563_v10 = vmul.u32.u64.high %v4119_v18, %v4114_v22, %v13562_v3  ;;  %vm18208_vm4 = vcmp.lt.s32.totalorder %v13466_v53, 4  ;;  %v3977_v59 = vadd.s32 1, %v10988_v27 }
 0x455   : > { %18695 = vst [vmem:[#allocation72_spill] sm:$0xff] %v13568_v31  ;;  %v4282_v24 = vand.u32 2139095040, %v13535_v55  ;;  %v18696_v32 = vxor.u32 2147483648, %v13471_v14  ;;  %v3582_v26 = vor.u32 %v13507_v63, %v13498_v41  ;;  %v3729_v52 = vshrl.u32 %v3711_v29, %v3727_v7  ;;  %v2317_v63 = vpop.f32.mrf.mxu0 }
 0x456   : > { %v4110_v5 = vsel %vm4104_vm15, %v4107_v0, %v4109_v56  ;;  %v3532_v25 = vsel %vm18197_vm13, %v3531_v4, %v13503_v62  ;;  %v3728_v27 = vshll.u32 %v13379_v6, %v13500_v46  ;;  %v13588_v33 = vsel %vm3770_vm14, %v13509_v54, 0 }
 0x457   : > { %v3324_v49 = vsel %vm18207_vm12, %v18696_v32, %v13471_v14  ;;  %v4283_v36 = vshrl.u32 %v4282_v24, 23  ;;  %v3734_v14 = vor.u32 4788187, %v3733_v58  ;;  %v13591_v38 = vsub.s32 %v13489_v34, %v3926_v28  ;;  %v2319_v24 = vpop.f32.mrf.mxu0 }
 0x458   : > { %vm4128_vm15 = vc.u32 %v13560_v51, %v13562_v3  ;;  %v4129_v56 = vadd.s32 1, %v13563_v10  ;;  %v3327_v4 = vsel %vm13539_vm3, %v12828_v9, %v3324_v49  ;;  %vm3978_vm10 = vcmp.gt.s32.totalorder %v3977_v59, 0 }
 0x459   : > { %v4126_v6 = vmul.u32 %v4119_v18, %v4110_v5  ;;  %v11000_v41 = vadd.s32 4294967169, %v4283_v36  ;;  %v13602_v46 = vsel %vm18208_vm4, %v13568_v31, 920167782  ;;  %v3730_v62 = vor.u32 %v3729_v52, %v3728_v27  ;;  %v2390_v18 = vpop.f32.mrf.mxu1 }
 0x45a   : > { %18697 = vst [vmem:[#allocation73_spill] sm:$0xff] %v13602_v46  ;;  %v4130_v28 = vsel %vm4128_vm15, %v4129_v56, %v13563_v10  ;;  %v18158_v34 = vand.u32 2147483647, %v13535_v55  ;;  %v13609_v54 = vsel %vm13549_vm6, %v13032_v39, %v3532_v25  ;;  %v13612_v29 = vand.u32 31, %v13588_v33 }
 0x45b   : > { %v4131_v37 = vadd.s32 %v4130_v28, %v4126_v6  ;;  %v4289_v7 = vadd.s32 1, %v11000_v41  ;;  %11522 = vcosq.f32 %v3327_v4  ;;  %v3735_v45 = vand.u32 2147483647, %v3734_v14 }
 0x45c   : > { %18698 = vst [vmem:[#allocation74_spill] sm:$0xff] %v13612_v29  ;;  %v3929_v58 = vsub.s32 0, %v13591_v38  ;;  %v13615_v22 = vsel %vm3978_vm10, %v3977_v59, 0  ;;  %11524 = vsinq.f32 %v3327_v4  ;;  %v13619_v10 = vsel %vm18208_vm4, %v3582_v26, 1326507024 }
 0x45d   : > { %18699 = vst [vmem:[#allocation75_spill] sm:$0xff] %v13619_v10  ;;  %v4132_v50 = vadd.s32 536870912, %v4131_v37  ;;  %vm4290_vm14 = vcmp.gt.s32.totalorder %v4289_v7, 0  ;;  %11526 = vcosq.f32 %v13609_v54  ;;  %v3737_v0 = vcvt.s32.f32 %v3730_v62 }
 0x45e   : > { %v4286_v43 = vand.u32 8388607, %v18158_v34  ;;  %v4291_v17 = vsel %vm4290_vm14, %v4289_v7, 0  ;;  %v13625_v32 = vsub.s32 32, %v13612_v29  ;;  %v13628_v59 = vand.u32 31, %v13615_v22 }
 0x45f   : > { %v13630_v49 = vshrl.u32 %v4132_v50, 30  ;;  %v4293_v26 = vand.u32 31, %v4291_v17  ;;  %v13632_v52 = vmul.f32 %v3737_v0, %v3735_v45  ;;  %v13635_v5 = vmin.u32 %v3929_v58, %v13591_v38 }
 0x460   : > { %18700 = vst [vmem:[#allocation76_spill] sm:$0xff] %v13625_v32  ;;  %18701 = vst [vmem:[#allocation77_spill] sm:$0xff] %v13628_v59  ;;  %v13638_v25 = vadd.f32 %v2317_v63, %v12634_v13  ;;  %v13641_v27 = vadd.f32 %v2390_v18, %v12634_v13  ;;  %v4292_v14 = vshrl.u32 %v4291_v17, 5  ;;  %v13645_v4 = vadd.f32 %v2319_v24, %v12636_v11 }
 0x461   : > { %18702 = vst [vmem:[#allocation78_spill] sm:$0xff] %v13630_v49  ;;  %v4134_v36 = vshll.u32 %v13630_v49, 30  ;;  %v4294_v56 = vsub.s32 32, %v4293_v26  ;;  %v4287_v6 = vor.u32 8388608, %v4286_v43  ;;  %v4296_v41 = vshll.u32 %v18636_v48, %v4293_v26 }
 0x462   : > { %18703 = vst [vmem:[#allocation79_spill] sm:$0xff] %v13638_v25  ;;  %18704 = vst [vmem:[#allocation80_spill] sm:$0xff] %v13641_v27  ;;  %v4299_v62 = vshll.u32 %v18641_v8, %v4293_v26  ;;  %v4302_v28 = vshll.u32 %v18642_v61, %v4293_v26  ;;  %v4305_v45 = vshll.u32 %v18633_v47, %v4293_v26  ;;  %vm4311_vm0 = vcmp.lt.s32.totalorder %v4292_v14, 1 }
 0x463   : > { %18705 = vst [vmem:[#allocation81_spill] sm:$0xff] %v13645_v4  ;;  %v13650_v7 = vsub.s32 %v4131_v37, %v4134_v36  ;;  %v4297_v63 = vshrl.u32 %v18641_v8, %v4294_v56  ;;  %v4300_v13 = vshrl.u32 %v18642_v61, %v4294_v56  ;;  %v4303_v58 = vshrl.u32 %v18633_v47, %v4294_v56 }
 0x464   : > { %v4306_v50 = vshrl.u32 %v18622_v42, %v4294_v56  ;;  %v4308_v18 = vshll.u32 %v18622_v42, %v4293_v26  ;;  %v4309_v0 = vshrl.u32 %v18623_v20, %v4294_v56  ;;  %v4490_v37 = vand.u32 2139095040, %v13645_v4 }
 0x465   : > { %v4298_v43 = vor.u32 %v4297_v63, %v4296_v41  ;;  %v4301_v17 = vor.u32 %v4300_v13, %v4299_v62  ;;  %v4137_v24 = vsub.s32 0, %v13650_v7  ;;  %v4304_v36 = vor.u32 %v4303_v58, %v4302_v28 }
 0x466   : > { %v4307_v34 = vor.u32 %v4306_v50, %v4305_v45  ;;  %v4310_v19 = vor.u32 %v4309_v0, %v4308_v18  ;;  %vm4313_vm15 = vcmp.lt.s32.totalorder %v4292_v14, 3  ;;  %vm4314_vm10 = vcmp.lt.s32.totalorder %v4292_v14, 4 }
 0x467   : > { %v4319_v21 = vsel %vm4311_vm0, %v4298_v43, %v4301_v17  ;;  %v4327_v39 = vshll.u32 %v4287_v6, 8  ;;  %v4316_v15 = vsel %vm4314_vm10, %v4304_v36, 2102212464  ;;  %v4323_v26 = vsel %vm4311_vm0, %v4301_v17, %v4304_v36 }
 0x468   : > { %v4320_v9 = vsel %vm4314_vm10, %v4307_v34, 920167782  ;;  %v4324_v31 = vsel %vm4314_vm10, %v4310_v19, 1326507024  ;;  %v13663_v41 = vpop.eup %11522  ;;  %v4295_v62 = vshrl.u32 %v18636_v48, %v4294_v56  ;;  %vm4312_vm14 = vcmp.lt.s32.totalorder %v4292_v14, 2 }
 0x469   : > { %18706 = vst [vmem:[#allocation82_spill] sm:$0xff] %v13663_v41  ;;  %v4321_v63 = vsel %vm4313_vm15, %v4304_v36, %v4320_v9  ;;  %v4325_v28 = vsel %vm4313_vm15, %v4307_v34, %v4324_v31  ;;  %v13668_v13 = vpop.eup %11524  ;;  %vm18206_vm2 = vcmp.lt.s32.totalorder %v13189_v16, 0  ;;  %v10993_v6 = vmin.u32 %v4137_v24, %v13650_v7 }
 0x46a   : > { %18707 = vst [vmem:[#allocation83_spill] sm:$0xff] %v13668_v13  ;;  %v4322_v45 = vsel %vm4312_vm14, %v4319_v21, %v4321_v63  ;;  %v4326_v58 = vsel %vm4312_vm14, %v4323_v26, %v4325_v28  ;;  %v4491_v19 = vshrl.u32 %v4490_v37, 23  ;;  %v13674_v50 = vpop.eup %11526  ;;  %v4315_v56 = vsel %vm4311_vm0, %v4295_v62, %v4298_v43 }
 0x46b   : > { %18708 = vst [vmem:[#allocation84_spill] sm:$0xff] %v13674_v50  ;;  %v4317_v18 = vsel %vm4313_vm15, %v4301_v17, %v4316_v15  ;;  %v13678_v9 = vmul.u32.u64.low %v4327_v39, %v4326_v58  ;;  %v13679_v0 = vmul.u32.u64.high %v4327_v39, %v4326_v58, %v13678_v9  ;;  %v3931_v31 = vclz %v13635_v5 }
 0x46c   : > { %v13683_v34 = vshrl.u32 %v13588_v33, 5  ;;  %v13685_v24 = vmul.u32.u64.low %v4327_v39, %v4322_v45  ;;  %v13686_v36 = vmul.u32.u64.high %v4327_v39, %v4322_v45, %v13685_v24  ;;  %11528 = vsinq.f32 %v13609_v54 }
 0x46d   : > { %v18710_v21 = vand.u32 2147483647, %v13189_v16  ;;  %v18711_v43 = vmov 0  ;;  %v3786_v15 = vshrl.u32 %v18622_v42, %v13625_v32  ;;  %v3789_v5 = vshrl.u32 %v18623_v20, %v13625_v32 }
 0x46e   : > { %18709 = vst [vmem:[#allocation85_spill] sm:$0xff] %v13683_v34  ;;  %v13701_v33 = vsub.s32 32, %v13628_v59  ;;  %v3785_v17 = vshll.u32 %v18633_v47, %v13612_v29  ;;  %v4139_v37 = vclz %v10993_v6  ;;  %v4318_v54 = vsel %vm4312_vm14, %v4315_v56, %v4317_v18 }
 0x46f   : > { %vm13692_vm10 = vcmp.le.f32.partialorder %v18710_v21, 0.7853982  ;;  %v11008_v26 = vadd.s32 4294967169, %v4491_v19  ;;  %v3739_v62 = vxor.u32 2147483648, %v13632_v52  ;;  %v3788_v63 = vshll.u32 %v18622_v42, %v13612_v29 }
 0x470   : > { %v18712_v43 = vsel %vm13692_vm10, 4294967295, %v18711_v43  ;;  %18714 = vst [vmem:[#allocation87_spill] sm:$0xff] %v13701_v33  ;;  %v4178_v28 = vand.u32 2139095040, %v13638_v25  ;;  %v4386_v45 = vand.u32 2139095040, %v13641_v27  ;;  %v10986_v58 = vadd.s32 4294967294, %v3931_v31 }
 0x471   : > { %18713 = vst [vmem:[#allocation86_spill] sm:$0xff] %v18712_v43  ;;  %vm18218_vm0 = vcmp.lt.s32.totalorder %v13683_v34, 4  ;;  %vm4336_vm15 = vc.u32 %v13679_v0, %v13685_v24  ;;  %v4337_v6 = vadd.s32 1, %v13686_v36  ;;  %v13715_v14 = vor.u32 %v3786_v15, %v3785_v17 }
 0x472   : > { %v3790_v19 = vor.u32 %v3789_v5, %v3788_v63  ;;  %v3994_v56 = vshrl.u32 %v18622_v42, %v13701_v33  ;;  %v4334_v18 = vmul.u32 %v4327_v39, %v4318_v54  ;;  %v3993_v9 = vshll.u32 %v18633_v47, %v13628_v59  ;;  %v2392_v54 = vpop.f32.mrf.mxu1 }
 0x473   : > { %18715 = vst [vmem:[#allocation88_spill] sm:$0xff] %v13715_v14  ;;  %v10994_v21 = vadd.s32 4294967294, %v4139_v37  ;;  %v4338_v31 = vsel %vm4336_vm15, %v4337_v6, %v13686_v36  ;;  %v4497_v50 = vadd.s32 1, %v11008_v26  ;;  %v3740_v41 = vsel %vm18206_vm2, %v3739_v62, %v13632_v52 }
 0x474   : > { %v4339_v13 = vadd.s32 %v4338_v31, %v4334_v18  ;;  %v4179_v10 = vshrl.u32 %v4178_v28, 23  ;;  %v4387_v15 = vshrl.u32 %v4386_v45, 23  ;;  %v13727_v5 = vadd.s32 %v13412_v40, %v13422_v23 }
 0x475   : > { %vm10987_vm14 = vcmp.lt.s32.totalorder %v10986_v58, 0  ;;  %v13730_v39 = vshrl.u32 %v13615_v22, 5  ;;  %v13734_v17 = vshrl.u32 %v18623_v20, %v13701_v33  ;;  %v13739_v36 = vsel %vm18218_vm0, %v13715_v14, 920167782 }
 0x476   : > { %18718 = vst [vmem:[#allocation91_spill] sm:$0xff] %v13739_v36  ;;  %v13743_v52 = vsel %vm18218_vm0, %v3790_v19, 1326507024  ;;  %v13745_v37 = vor.u32 %v3994_v56, %v3993_v9  ;;  %v4340_v40 = vadd.s32 536870912, %v4339_v13  ;;  %v13750_v23 = vsel %vm13692_vm10, %v13189_v16, %v3740_v41 }
 0x477   : > { %18716 = vst [vmem:[#allocation89_spill] sm:$0xff] %v13730_v39  ;;  %18717 = vst [vmem:[#allocation90_spill] sm:$0xff] %v13734_v17  ;;  %v13754_v22 = vshll.u32 %v18622_v42, %v13628_v59  ;;  %vm10995_vm15 = vcmp.lt.s32.totalorder %v10994_v21, 0  ;;  %vm4498_vm5 = vcmp.gt.s32.totalorder %v4497_v50, 0  ;;  %v13756_v26 = vsel %vm10987_vm14, 0, %v10986_v58 }
 0x478   : > { %18719 = vst [vmem:[#allocation92_spill] sm:$0xff] %v13743_v52  ;;  %18720 = vst [vmem:[#allocation93_spill] sm:$0xff] %v13745_v37  ;;  %v13758_v62 = vshrl.u32 %v4340_v40, 30  ;;  %v10996_v63 = vadd.s32 4294967169, %v4179_v10  ;;  %v11004_v28 = vadd.s32 4294967169, %v4387_v15  ;;  %vm18256_vm1 = vcmp.lt.s32.totalorder %v13730_v39, 4 }
 0x479   : > { %18721 = vst [vmem:[#allocation94_spill] sm:$0xff] %v13750_v23  ;;  %18722 = vst [vmem:[#allocation95_spill] sm:$0xff] %v13754_v22  ;;  %v4499_v6 = vsel %vm4498_vm5, %v4497_v50, 0  ;;  %v13767_v19 = vsel %vm18256_vm1, %v13745_v37, 920167782  ;;  %v13769_v56 = vsel %vm10995_vm15, 0, %v10994_v21  ;;  %v13773_v10 = vadd.f32 %v2392_v54, %v12636_v11  ;;  %v13775_v18 = vpop.eup %11528 }
 0x47a   : > { %18723 = vst [vmem:[#allocation96_spill] sm:$0xff] %v13758_v62  ;;  %18724 = vst [vmem:[#allocation97_spill] sm:$0xff] %v13767_v19  ;;  %v4342_v58 = vshll.u32 %v13758_v62, 30  ;;  %11530 = vcosq.f32 %v13750_v23  ;;  %v3935_v9 = vsub.s32 32, %v13756_v26  ;;  %v3939_v50 = vsub.s32 4294967266, %v13756_v26 }
 0x47b   : > { %18725 = vst [vmem:[#allocation98_spill] sm:$0xff] %v13773_v10  ;;  %18726 = vst [vmem:[#allocation99_spill] sm:$0xff] %v13775_v18  ;;  %v4501_v31 = vand.u32 31, %v4499_v6  ;;  %v4127_v15 = vadd.s32 %v13562_v3, %v13560_v51  ;;  %v13784_v21 = vadd.s32 1, %v10996_v63  ;;  %v13786_v45 = vadd.s32 1, %v11004_v28 }
 0x47c   : > { %v13782_v40 = vsub.s32 %v4339_v13, %v4342_v58  ;;  %v4143_v54 = vsub.s32 32, %v13769_v56  ;;  %v4147_v41 = vsub.s32 4294967266, %v13769_v56  ;;  %v18727_v18 = vand.u32 2147483647, %v13645_v4 }
 0x47d   : > { %v4502_v16 = vsub.s32 32, %v4501_v31  ;;  %v4500_v19 = vshrl.u32 %v4499_v6, 5  ;;  %v4504_v33 = vshll.u32 %v18636_v48, %v4501_v31  ;;  %v4698_v51 = vand.u32 2139095040, %v13773_v10 }
 0x47e   : > { %v4494_v43 = vand.u32 8388607, %v18727_v18  ;;  %v4345_v37 = vsub.s32 0, %v13782_v40  ;;  %v4507_v13 = vshll.u32 %v18641_v8, %v4501_v31  ;;  %v4510_v28 = vshll.u32 %v18642_v61, %v4501_v31 }
 0x47f   : > { %v4505_v3 = vshrl.u32 %v18641_v8, %v4502_v16  ;;  %v4508_v63 = vshrl.u32 %v18642_v61, %v4502_v16  ;;  %v4511_v18 = vshrl.u32 %v18633_v47, %v4502_v16  ;;  %v4513_v59 = vshll.u32 %v18633_v47, %v4501_v31 }
 0x480   : > { %v11001_v58 = vmin.u32 %v4345_v37, %v13782_v40  ;;  %v4514_v6 = vshrl.u32 %v18622_v42, %v4502_v16  ;;  %v4516_v36 = vshll.u32 %v18622_v42, %v4501_v31  ;;  %v4517_v14 = vshrl.u32 %v18623_v20, %v4502_v16 }
 0x481   : > { %v4506_v46 = vor.u32 %v4505_v3, %v4504_v33  ;;  %v4509_v53 = vor.u32 %v4508_v63, %v4507_v13  ;;  %v4495_v34 = vor.u32 8388608, %v4494_v43  ;;  %v4512_v29 = vor.u32 %v4511_v18, %v4510_v28 }
 0x482   : > { %v4347_v52 = vclz %v11001_v58  ;;  %v4515_v32 = vor.u32 %v4514_v6, %v4513_v59  ;;  %v4503_v60 = vshrl.u32 %v18636_v48, %v4502_v16  ;;  %v4518_v1 = vor.u32 %v4517_v14, %v4516_v36 }
 0x483   : > { %vm4519_vm5 = vcmp.lt.s32.totalorder %v4500_v19, 1  ;;  %v4699_v37 = vshrl.u32 %v4698_v51, 23  ;;  %vm4521_vm14 = vcmp.lt.s32.totalorder %v4500_v19, 3  ;;  %vm4522_vm15 = vcmp.lt.s32.totalorder %v4500_v19, 4  ;;  %v2321_v51 = vpop.f32.mrf.mxu0 }
 0x484   : > { %v11002_v30 = vadd.s32 4294967294, %v4347_v52  ;;  %v4527_v57 = vsel %vm4519_vm5, %v4506_v46, %v4509_v53  ;;  %v4524_v33 = vsel %vm4522_vm15, %v4512_v29, 2102212464  ;;  %v4528_v3 = vsel %vm4522_vm15, %v4515_v32, 920167782 }
 0x485   : > { %v4531_v31 = vsel %vm4519_vm5, %v4509_v53, %v4512_v29  ;;  %v4532_v13 = vsel %vm4522_vm15, %v4518_v1, 1326507024  ;;  %vm4520_vm13 = vcmp.lt.s32.totalorder %v4500_v19, 2  ;;  %v4529_v43 = vsel %vm4521_vm14, %v4512_v29, %v4528_v3 }
 0x486   : > { %vm11003_vm7 = vcmp.lt.s32.totalorder %v11002_v30, 0  ;;  %v4533_v59 = vsel %vm4521_vm14, %v4515_v32, %v4532_v13  ;;  %v4530_v14 = vsel %vm4520_vm13, %v4527_v57, %v4529_v43  ;;  %v4535_v52 = vshll.u32 %v4495_v34, 8 }
 0x487   : > { %v13810_v16 = vsel %vm11003_vm7, 0, %v11002_v30  ;;  %v4534_v36 = vsel %vm4520_vm13, %v4531_v31, %v4533_v59  ;;  %v13814_v63 = vpop.eup %11530  ;;  %v4523_v1 = vsel %vm4519_vm5, %v4503_v60, %v4506_v46  ;;  %v4525_v58 = vsel %vm4521_vm14, %v4509_v53, %v4524_v33 }
 0x488   : > { %18728 = vst [vmem:[#allocation100_spill] sm:$0xff] %v13814_v63  ;;  %v4355_v28 = vsub.s32 4294967266, %v13810_v16  ;;  %v11016_v18 = vadd.s32 4294967169, %v4699_v37  ;;  %v13819_v29 = vmul.u32.u64.low %v4535_v52, %v4534_v36  ;;  %v13820_v6 = vmul.u32.u64.high %v4535_v52, %v4534_v36, %v13819_v29 }
 0x489   : > { %v13822_v30 = vmul.u32.u64.low %v4535_v52, %v4530_v14  ;;  %v13823_v32 = vmul.u32.u64.high %v4535_v52, %v4530_v14, %v13822_v30  ;;  %v13827_v57 = vshrl.u32 %v13727_v5, %v3935_v9  ;;  %v13829_v34 = vadd.s32 127, %v3939_v50 }
 0x48a   : > { %v4705_v3 = vadd.s32 1, %v11016_v18  ;;  %v13832_v31 = vadd.f32 %v2321_v51, %v12636_v11  ;;  %v4145_v60 = vshrl.u32 %v4127_v15, %v4143_v54  ;;  %v4148_v46 = vadd.s32 127, %v4147_v41 }
 0x48b   : > { %vm4186_vm7 = vcmp.gt.s32.totalorder %v13784_v21, 0  ;;  %v4526_v53 = vsel %vm4520_vm13, %v4523_v1, %v4525_v58  ;;  %v4144_v37 = vshll.u32 %v13650_v7, %v13769_v56  ;;  %vm4394_vm5 = vcmp.gt.s32.totalorder %v13786_v45, 0 }
 0x48c   : > { %18729 = vst [vmem:[#allocation101_spill] sm:$0xff] %v13832_v31  ;;  %v18198_v5 = vand.u32 2147483647, %v13773_v10  ;;  %vm4706_vm14 = vcmp.gt.s32.totalorder %v4705_v3, 0  ;;  %v4356_v9 = vadd.s32 127, %v4355_v28  ;;  %vm4544_vm15 = vc.u32 %v13820_v6, %v13822_v30 }
 0x48d   : > { %v4545_v50 = vadd.s32 1, %v13823_v32  ;;  %v4707_v15 = vsel %vm4706_vm14, %v4705_v3, 0  ;;  %v4335_v41 = vadd.s32 %v13685_v24, %v13679_v0  ;;  %v13846_v19 = vsel %vm4186_vm7, %v13784_v21, 0 }
 0x48e   : > { %v4542_v54 = vmul.u32 %v4535_v52, %v4526_v53  ;;  %v4709_v7 = vand.u32 31, %v4707_v15  ;;  %v13848_v56 = vor.u32 %v4145_v60, %v4144_v37  ;;  %v4149_v33 = vshll.u32 %v4148_v46, 23 }
 0x48f   : > { %v13851_v13 = vsel %vm4394_vm5, %v13786_v45, 0  ;;  %v4546_v43 = vsel %vm4544_vm15, %v4545_v50, %v13823_v32  ;;  %v4351_v59 = vsub.s32 32, %v13810_v16  ;;  %v4702_v36 = vand.u32 8388607, %v18198_v5 }
 0x490   : > { %v4547_v14 = vadd.s32 %v4546_v43, %v4542_v54  ;;  %v4710_v0 = vsub.s32 32, %v4709_v7  ;;  %v4357_v24 = vshll.u32 %v4356_v9, 23  ;;  %v4708_v21 = vshrl.u32 %v4707_v15, 5  ;;  %v2325_v9 = vpop.f32.mrf.mxu0 }
 0x491   : > { %v4712_v52 = vshll.u32 %v18636_v48, %v4709_v7  ;;  %v4715_v51 = vshll.u32 %v18641_v8, %v4709_v7  ;;  %v4718_v45 = vshll.u32 %v18642_v61, %v4709_v7  ;;  %v4721_v58 = vshll.u32 %v18633_v47, %v4709_v7 }
 0x492   : > { %v4548_v28 = vadd.s32 536870912, %v4547_v14  ;;  %v4713_v1 = vshrl.u32 %v18641_v8, %v4710_v0  ;;  %v4716_v18 = vshrl.u32 %v18642_v61, %v4710_v0  ;;  %v4719_v29 = vshrl.u32 %v18633_v47, %v4710_v0 }
 0x493   : > { %v4722_v32 = vshrl.u32 %v18622_v42, %v4710_v0  ;;  %v4725_v3 = vshrl.u32 %v18623_v20, %v4710_v0  ;;  %v4150_v60 = vor.u32 4788187, %v4149_v33  ;;  %v4352_v46 = vshll.u32 %v13782_v40, %v13810_v16 }
 0x494   : > { %v4714_v53 = vor.u32 %v4713_v1, %v4712_v52  ;;  %v4724_v37 = vshll.u32 %v18622_v42, %v4709_v7  ;;  %v4703_v50 = vor.u32 8388608, %v4702_v36  ;;  %v4717_v15 = vor.u32 %v4716_v18, %v4715_v51 }
 0x495   : > { %v4720_v54 = vor.u32 %v4719_v29, %v4718_v45  ;;  %v4723_v43 = vor.u32 %v4722_v32, %v4721_v58  ;;  %v4353_v5 = vshrl.u32 %v4335_v41, %v4351_v59  ;;  %v13869_v63 = vshrl.u32 %v4548_v28, 30 }
 0x496   : > { %v4726_v2 = vor.u32 %v4725_v3, %v4724_v37  ;;  %vm4727_vm13 = vcmp.lt.s32.totalorder %v4708_v21, 1  ;;  %v4358_v12 = vor.u32 4788187, %v4357_v24  ;;  %vm4730_vm7 = vcmp.lt.s32.totalorder %v4708_v21, 4 }
 0x497   : > { %18730 = vst [vmem:[#allocation102_spill] sm:$0xff] %v13869_v63  ;;  %v4735_v39 = vsel %vm4727_vm13, %v4714_v53, %v4717_v15  ;;  %v13872_v33 = vadd.f32 %v2325_v9, %v12630_v35  ;;  %v4711_v40 = vshrl.u32 %v18636_v48, %v4710_v0  ;;  %vm4729_vm5 = vcmp.lt.s32.totalorder %v4708_v21, 3 }
 0x498   : > { %v4732_v16 = vsel %vm4730_vm7, %v4720_v54, 2102212464  ;;  %v4736_v7 = vsel %vm4730_vm7, %v4723_v43, 920167782  ;;  %vm4728_vm14 = vcmp.lt.s32.totalorder %v4708_v21, 2  ;;  %v4739_v52 = vsel %vm4727_vm13, %v4717_v15, %v4720_v54 }
 0x499   : > { %v4737_v36 = vsel %vm4729_vm5, %v4720_v54, %v4736_v7  ;;  %v4743_v51 = vshll.u32 %v4703_v50, 8  ;;  %v4550_v41 = vshll.u32 %v13869_v63, 30  ;;  %v4731_v59 = vsel %vm4727_vm13, %v4711_v40, %v4714_v53 }
 0x49a   : > { %v4738_v28 = vsel %vm4728_vm14, %v4735_v39, %v4737_v36  ;;  %v4740_v24 = vsel %vm4730_vm7, %v4726_v2, 1326507024  ;;  %v4733_v1 = vsel %vm4729_vm5, %v4717_v15, %v4732_v16  ;;  %v3941_v0 = vshll.u32 %v13829_v34, 23 }
 0x49b   : > { %v4741_v45 = vsel %vm4729_vm5, %v4723_v43, %v4740_v24  ;;  %v13877_v58 = vmul.u32.u64.low %v4743_v51, %v4738_v28  ;;  %v13878_v18 = vmul.u32.u64.high %v4743_v51, %v4738_v28, %v13877_v58  ;;  %v13883_v29 = vand.u32 31, %v13846_v19 }
 0x49c   : > { %v13886_v32 = vand.u32 31, %v13851_v13  ;;  %v4742_v3 = vsel %vm4728_vm14, %v4739_v52, %v4741_v45  ;;  %v4151_v53 = vand.u32 2147483647, %v4150_v60  ;;  %v4354_v37 = vor.u32 %v4353_v5, %v4352_v46 }
 0x49d   : > { %18731 = vst [vmem:[#allocation103_spill] sm:$0xff] %v13883_v29  ;;  %v13889_v39 = vmul.u32.u64.low %v4743_v51, %v4742_v3  ;;  %v13890_v2 = vmul.u32.u64.high %v4743_v51, %v4742_v3, %v13889_v39  ;;  %v13892_v9 = vsub.s32 %v4547_v14, %v4550_v41  ;;  %v4734_v50 = vsel %vm4728_vm14, %v4731_v59, %v4733_v1 }
 0x49e   : > { %18732 = vst [vmem:[#allocation104_spill] sm:$0xff] %v13886_v32  ;;  %v4594_v15 = vand.u32 2139095040, %v13832_v31  ;;  %v4906_v34 = vand.u32 2139095040, %v13872_v33  ;;  %v3936_v54 = vshll.u32 %v13591_v38, %v13756_v26  ;;  %v4153_v43 = vcvt.s32.f32 %v13848_v56 }
 0x49f   : > { %v4359_v40 = vand.u32 2147483647, %v4358_v12  ;;  %v4753_v60 = vadd.s32 1, %v13878_v18  ;;  %v13901_v5 = vor.u32 4788187, %v3941_v0  ;;  %vm18280_vm15 = vcmp.lt.s32.totalorder %v13398_v44, 0 }
 0x4a0   : > { %v13905_v14 = vsub.s32 32, %v13883_v29  ;;  %v13908_v21 = vsub.s32 32, %v13886_v32  ;;  %v4907_v46 = vshrl.u32 %v4906_v34, 23  ;;  %v4154_v16 = vmul.f32 %v4153_v43, %v4151_v53 }
 0x4a1   : > { %18733 = vst [vmem:[#allocation105_spill] sm:$0xff] %v13901_v5  ;;  %v4361_v7 = vcvt.s32.f32 %v4354_v37  ;;  %v4750_v36 = vmul.u32 %v4743_v51, %v4734_v50  ;;  %vm4752_vm13 = vc.u32 %v13890_v2, %v13877_v58  ;;  %v13913_v12 = vor.u32 %v13827_v57, %v3936_v54  ;;  %v2394_v54 = vpop.f32.mrf.mxu1 }
 0x4a2   : > { %18734 = vst [vmem:[#allocation106_spill] sm:$0xff] %v13905_v14  ;;  %18735 = vst [vmem:[#allocation107_spill] sm:$0xff] %v13908_v21  ;;  %v4553_v38 = vsub.s32 0, %v13892_v9  ;;  %v4754_v26 = vsel %vm4752_vm13, %v4753_v60, %v13878_v18  ;;  %v4595_v56 = vshrl.u32 %v4594_v15, 23  ;;  %v18737_v52 = vand.u32 2147483647, %v13398_v44 }
 0x4a3   : > { %18736 = vst [vmem:[#allocation108_spill] sm:$0xff] %v13913_v12  ;;  %v18738_v41 = vmov 0  ;;  %vm18268_vm5 = vcmp.lt.s32.totalorder %v13535_v55, 0  ;;  %v4362_v51 = vmul.f32 %v4361_v7, %v4359_v40  ;;  %v4755_v59 = vadd.s32 %v4754_v26, %v4750_v36 }
 0x4a4   : > { %vm13919_vm7 = vcmp.le.f32.partialorder %v18737_v52, 0.7853982  ;;  %v11024_v28 = vadd.s32 4294967169, %v4907_v46  ;;  %v13926_v57 = vshrl.u32 %v13846_v19, 5  ;;  %v4202_v1 = vshrl.u32 %v18622_v42, %v13905_v14 }
 0x4a5   : > { %v18739_v41 = vsel %vm13919_vm7, 4294967295, %v18738_v41  ;;  %v4205_v45 = vshrl.u32 %v18623_v20, %v13905_v14  ;;  %v4155_v18 = vxor.u32 2147483648, %v4154_v16  ;;  %v18742_v0 = vand.u32 2147483647, %v13535_v55 }
 0x4a6   : > { %18740 = vst [vmem:[#allocation109_spill] sm:$0xff] %v18739_v41  ;;  %18741 = vst [vmem:[#allocation110_spill] sm:$0xff] %v13926_v57  ;;  %v18743_v3 = vmov 0  ;;  %v4201_v53 = vshll.u32 %v18633_v47, %v13883_v29  ;;  %v4410_v19 = vshrl.u32 %v18622_v42, %v13908_v21  ;;  %v4756_v37 = vadd.s32 536870912, %v4755_v59 }
 0x4a7   : > { %vm13934_vm14 = vcmp.le.f32.partialorder %v18742_v0, 0.7853982  ;;  %v4204_v39 = vshll.u32 %v18622_v42, %v13883_v29  ;;  %v4413_v50 = vshrl.u32 %v18623_v20, %v13908_v21  ;;  %v11009_v15 = vmin.u32 %v4553_v38, %v13892_v9 }
 0x4a8   : > { %v18744_v3 = vsel %vm13934_vm14, 4294967295, %v18743_v3  ;;  %v11012_v34 = vadd.s32 4294967169, %v4595_v56  ;;  %v4363_v43 = vxor.u32 2147483648, %v4362_v51  ;;  %v4409_v40 = vshll.u32 %v18633_v47, %v13886_v32 }
 0x4a9   : > { %18745 = vst [vmem:[#allocation111_spill] sm:$0xff] %v18744_v3  ;;  %v13949_v60 = vshrl.u32 %v4756_v37, 30  ;;  %v4913_v46 = vadd.s32 1, %v11024_v28  ;;  %v13951_v7 = vor.u32 %v4202_v1, %v4201_v53  ;;  %v4206_v36 = vor.u32 %v4205_v45, %v4204_v39 }
 0x4aa   : > { %v13954_v26 = vshrl.u32 %v13851_v13, 5  ;;  %v4412_v52 = vshll.u32 %v18622_v42, %v13886_v32  ;;  %v4156_v38 = vsel %vm18280_vm15, %v4155_v18, %v4154_v16  ;;  %v13960_v56 = vor.u32 %v4410_v19, %v4409_v40  ;;  %v2398_v40 = vpop.f32.mrf.mxu1 }
 0x4ab   : > { %18746 = vst [vmem:[#allocation112_spill] sm:$0xff] %v13949_v60  ;;  %18747 = vst [vmem:[#allocation113_spill] sm:$0xff] %v13951_v7  ;;  %v13963_v0 = vadd.f32 %v2394_v54, %v12636_v11  ;;  %vm4914_vm13 = vcmp.gt.s32.totalorder %v4913_v46, 0  ;;  %vm18283_vm2 = vcmp.lt.s32.totalorder %v13926_v57, 4  ;;  %v4555_v1 = vclz %v11009_v15 }
 0x4ac   : > { %18748 = vst [vmem:[#allocation114_spill] sm:$0xff] %v13954_v26  ;;  %18749 = vst [vmem:[#allocation115_spill] sm:$0xff] %v13960_v56  ;;  %v4414_v28 = vor.u32 %v4413_v50, %v4412_v52  ;;  %v4601_v45 = vadd.s32 1, %v11012_v34  ;;  %v4364_v13 = vsel %vm18268_vm5, %v4363_v43, %v4362_v51  ;;  %v4758_v53 = vshll.u32 %v13949_v60, 30 }
 0x4ad   : > { %18750 = vst [vmem:[#allocation116_spill] sm:$0xff] %v13963_v0  ;;  %v18209_v37 = vand.u32 2147483647, %v13872_v33  ;;  %v4915_v39 = vsel %vm4914_vm13, %v4913_v46, 0  ;;  %v4159_v16 = vsel %vm13919_vm7, %v13398_v44, %v4156_v38  ;;  %v13976_v11 = vsel %vm18283_vm2, %v13951_v7, 920167782 }
 0x4ae   : > { %18751 = vst [vmem:[#allocation117_spill] sm:$0xff] %v13976_v11  ;;  %vm18281_vm12 = vcmp.lt.s32.totalorder %v13954_v26, 4  ;;  %v4917_v18 = vand.u32 31, %v4915_v39  ;;  %v13982_v51 = vsel %vm18283_vm2, %v4206_v36, 1326507024  ;;  %v4802_v15 = vand.u32 2139095040, %v13963_v0 }
 0x4af   : > { %18752 = vst [vmem:[#allocation118_spill] sm:$0xff] %v13982_v51  ;;  %v13987_v50 = vsel %vm18281_vm12, %v13960_v56, 920167782  ;;  %v13993_v34 = vsel %vm13934_vm14, %v13535_v55, %v4364_v13  ;;  %v11010_v54 = vadd.s32 4294967294, %v4555_v1  ;;  %vm4602_vm13 = vcmp.gt.s32.totalorder %v4601_v45, 0 }
 0x4b0   : > { %18753 = vst [vmem:[#allocation119_spill] sm:$0xff] %v13987_v50  ;;  %18754 = vst [vmem:[#allocation120_spill] sm:$0xff] %v13993_v34  ;;  %v4918_v43 = vsub.s32 32, %v4917_v18  ;;  %11532 = vcosq.f32 %v4159_v16  ;;  %v13997_v46 = vsel %vm18281_vm12, %v4414_v28, 1326507024  ;;  %v13999_v36 = vsub.s32 %v4755_v59, %v4758_v53 }
 0x4b1   : > { %18755 = vst [vmem:[#allocation121_spill] sm:$0xff] %v13997_v46  ;;  %v4910_v52 = vand.u32 8388607, %v18209_v37  ;;  %11534 = vsinq.f32 %v4159_v16  ;;  %v14005_v38 = vadd.s32 %v13822_v30, %v13820_v6  ;;  %v4603_v19 = vsel %vm4602_vm13, %v4601_v45, 0 }
 0x4b2   : > { %v4921_v1 = vshrl.u32 %v18641_v8, %v4918_v43  ;;  %v4924_v13 = vshrl.u32 %v18642_v61, %v4918_v43  ;;  %11536 = vcosq.f32 %v13993_v34  ;;  %v4803_v24 = vshrl.u32 %v4802_v15, 23 }
 0x4b3   : > { %v14011_v28 = vadd.f32 %v2398_v40, %v12630_v35  ;;  %vm11011_vm4 = vcmp.lt.s32.totalorder %v11010_v54, 0  ;;  %v4920_v59 = vshll.u32 %v18636_v48, %v4917_v18  ;;  %v4923_v53 = vshll.u32 %v18641_v8, %v4917_v18 }
 0x4b4   : > { %v4927_v16 = vshrl.u32 %v18633_v47, %v4918_v43  ;;  %v4761_v6 = vsub.s32 0, %v13999_v36  ;;  %v4911_v30 = vor.u32 8388608, %v4910_v52  ;;  %v4916_v37 = vshrl.u32 %v4915_v39, 5 }
 0x4b5   : > { %18756 = vst [vmem:[#allocation122_spill] sm:$0xff] %v14011_v28  ;;  %v4926_v22 = vshll.u32 %v18642_v61, %v4917_v18  ;;  %v4922_v17 = vor.u32 %v4921_v1, %v4920_v59  ;;  %v4925_v23 = vor.u32 %v4924_v13, %v4923_v53  ;;  %v4929_v45 = vshll.u32 %v18633_v47, %v4917_v18 }
 0x4b6   : > { %v4930_v15 = vshrl.u32 %v18622_v42, %v4918_v43  ;;  %v14020_v40 = vsel %vm11011_vm4, 0, %v11010_v54  ;;  %v4932_v12 = vshll.u32 %v18622_v42, %v4917_v18  ;;  %v4933_v5 = vshrl.u32 %v18623_v20, %v4918_v43 }
 0x4b7   : > { %v4928_v60 = vor.u32 %v4927_v16, %v4926_v22  ;;  %v14026_v3 = vadd.s32 %v13877_v58, %v13890_v2  ;;  %v14028_v39 = vshrl.u32 %v4603_v19, 5  ;;  %v11020_v52 = vadd.s32 4294967169, %v4803_v24 }
 0x4b8   : > { %v4931_v1 = vor.u32 %v4930_v15, %v4929_v45  ;;  %v11017_v13 = vmin.u32 %v4761_v6, %v13999_v36  ;;  %v14031_v59 = vand.u32 31, %v4603_v19  ;;  %v4934_v53 = vor.u32 %v4933_v5, %v4932_v12 }
 0x4b9   : > { %18757 = vst [vmem:[#allocation123_spill] sm:$0xff] %v14028_v39  ;;  %vm4935_vm4 = vcmp.lt.s32.totalorder %v4916_v37, 1  ;;  %v4559_v22 = vsub.s32 32, %v14020_v40  ;;  %vm4938_vm13 = vcmp.lt.s32.totalorder %v4916_v37, 4  ;;  %v4951_v54 = vshll.u32 %v4911_v30, 8 }
 0x4ba   : > { %18758 = vst [vmem:[#allocation124_spill] sm:$0xff] %v14031_v59  ;;  %v4943_v18 = vsel %vm4935_vm4, %v4922_v17, %v4925_v23  ;;  %v4919_v16 = vshrl.u32 %v18636_v48, %v4918_v43  ;;  %vm4937_vm0 = vcmp.lt.s32.totalorder %v4916_v37, 3  ;;  %v4940_v58 = vsel %vm4938_vm13, %v4928_v60, 2102212464  ;;  %v2327_v43 = vpop.f32.mrf.mxu0 }
 0x4bb   : > { %v4944_v2 = vsel %vm4938_vm13, %v4931_v1, 920167782  ;;  %vm4936_vm8 = vcmp.lt.s32.totalorder %v4916_v37, 2  ;;  %v4947_v24 = vsel %vm4935_vm4, %v4925_v23, %v4928_v60  ;;  %v4948_v45 = vsel %vm4938_vm13, %v4934_v53, 1326507024 }
 0x4bc   : > { %v4945_v55 = vsel %vm4937_vm0, %v4928_v60, %v4944_v2  ;;  %v4563_v6 = vsub.s32 4294967266, %v14020_v40  ;;  %v4763_v19 = vclz %v11017_v13  ;;  %v4939_v15 = vsel %vm4935_vm4, %v4919_v16, %v4922_v17 }
 0x4bd   : > { %v4946_v5 = vsel %vm4936_vm8, %v4943_v18, %v4945_v55  ;;  %v14037_v12 = vpop.eup %11532  ;;  %v4941_v62 = vsel %vm4937_vm0, %v4925_v23, %v4940_v58  ;;  %v4949_v63 = vsel %vm4937_vm0, %v4931_v1, %v4948_v45  ;;  %v14046_v60 = vsub.s32 32, %v14031_v59 }
 0x4be   : > { %18759 = vst [vmem:[#allocation125_spill] sm:$0xff] %v14037_v12  ;;  %v14039_v30 = vmul.u32.u64.low %v4951_v54, %v4946_v5  ;;  %v14040_v41 = vmul.u32.u64.high %v4951_v54, %v4946_v5, %v14039_v30  ;;  %v14043_v44 = vpop.eup %11534  ;;  %v4809_v53 = vadd.s32 1, %v11020_v52  ;;  %v4950_v13 = vsel %vm4936_vm8, %v4947_v24, %v4949_v63 }
 0x4bf   : > { %18760 = vst [vmem:[#allocation126_spill] sm:$0xff] %v14043_v44  ;;  %18761 = vst [vmem:[#allocation127_spill] sm:$0xff] %v14046_v60  ;;  %v18231_v17 = vand.u32 2147483647, %v14011_v28  ;;  %v14050_v55 = vpop.eup %11536  ;;  %v4560_v23 = vshll.u32 %v13892_v9, %v14020_v40  ;;  %v14054_v1 = vmul.u32.u64.low %v4951_v54, %v4950_v13  ;;  %v14055_v18 = vmul.u32.u64.high %v4951_v54, %v4950_v13, %v14054_v1  ;;  %v2329_v40 = vpop.f32.mrf.mxu0 }
 0x4c0   : > { %18762 = vst [vmem:[#allocation128_spill] sm:$0xff] %v14050_v55  ;;  %v5114_v16 = vand.u32 2139095040, %v14011_v28  ;;  %v11018_v58 = vadd.s32 4294967294, %v4763_v19  ;;  %v4617_v2 = vshll.u32 %v18633_v47, %v14031_v59  ;;  %v4942_v52 = vsel %vm4936_vm8, %v4939_v15, %v4941_v62  ;;  %v18763_v1 = vld [vmem:[#allocation2_spill] sm:$0xff] }
 0x4c1   : > { %v14062_v63 = vadd.f32 %v2327_v43, %v12630_v35  ;;  %v4561_v24 = vshrl.u32 %v14005_v38, %v4559_v22  ;;  %v4564_v45 = vadd.s32 127, %v4563_v6  ;;  %v4961_v5 = vadd.s32 1, %v14040_v41  ;;  %v2400_v22 = vpop.f32.mrf.mxu1 }
 0x4c2   : > { %v5115_v9 = vshrl.u32 %v5114_v16, 23  ;;  %v4618_v13 = vshrl.u32 %v18622_v42, %v14046_v60  ;;  %v14070_v19 = vshrl.u32 %v18623_v20, %v14046_v60  ;;  %v5118_v62 = vand.u32 8388607, %v18231_v17 }
 0x4c3   : > { %v5010_v37 = vand.u32 2139095040, %v14062_v63  ;;  %vm4810_vm8 = vcmp.gt.s32.totalorder %v4809_v53, 0  ;;  %v4958_v15 = vmul.u32 %v4951_v54, %v4942_v52  ;;  %vm4960_vm0 = vc.u32 %v14055_v18, %v14039_v30 }
 0x4c4   : > { %v11032_v38 = vadd.s32 4294967169, %v5115_v9  ;;  %vm11019_vm4 = vcmp.lt.s32.totalorder %v11018_v58, 0  ;;  %v4962_v6 = vsel %vm4960_vm0, %v4961_v5, %v14040_v41  ;;  %v14079_v16 = vadd.f32 %v2329_v40, %v18763_v1 }
 0x4c5   : > { %v5011_v43 = vshrl.u32 %v5010_v37, 23  ;;  %v14081_v55 = vor.u32 %v4561_v24, %v4560_v23  ;;  %v4565_v12 = vshll.u32 %v4564_v45, 23  ;;  %v4963_v17 = vadd.s32 %v4962_v6, %v4958_v15 }
 0x4c6   : > { %v5121_v44 = vadd.s32 1, %v11032_v38  ;;  %v14085_v54 = vshll.u32 %v18622_v42, %v14031_v59  ;;  %v14087_v52 = vsel %vm4810_vm8, %v4809_v53, 0  ;;  %v5119_v9 = vor.u32 8388608, %v5118_v62 }
 0x4c7   : > { %v14090_v49 = vadd.f32 %v2400_v22, %v12630_v35  ;;  %v14092_v41 = vsel %vm11019_vm4, 0, %v11018_v58  ;;  %v4964_v5 = vadd.s32 536870912, %v4963_v17  ;;  %v11028_v40 = vadd.s32 4294967169, %v5011_v43 }
 0x4c8   : > { %vm5122_vm13 = vcmp.gt.s32.totalorder %v5121_v44, 0  ;;  %v14094_v23 = vor.u32 %v4618_v13, %v4617_v2  ;;  %v5322_v37 = vand.u32 2139095040, %v14079_v16  ;;  %v14099_v15 = vor.u32 4788187, %v4565_v12 }
 0x4c9   : > { %v5123_v45 = vsel %vm5122_vm13, %v5121_v44, 0  ;;  %v14102_v62 = vshrl.u32 %v4964_v5, 30  ;;  %v4767_v58 = vsub.s32 32, %v14092_v41  ;;  %v14106_v38 = vand.u32 31, %v14087_v52 }
 0x4ca   : > { %18764 = vst [vmem:[#allocation2_spill] sm:$0xff] %v14094_v23  ;;  %v5125_v35 = vand.u32 31, %v5123_v45  ;;  %v14108_v2 = vshll.u32 %v5119_v9, 8  ;;  %v5218_v13 = vand.u32 2139095040, %v14090_v49  ;;  %v5124_v22 = vshrl.u32 %v5123_v45, 5 }
 0x4cb   : > { %18765 = vst [vmem:[#allocation129_spill] sm:$0xff] %v14106_v38  ;;  %v4966_v44 = vshll.u32 %v14102_v62, 30  ;;  %v5017_v12 = vadd.s32 1, %v11028_v40  ;;  %v5323_v24 = vshrl.u32 %v5322_v37, 23  ;;  %vm18282_vm8 = vcmp.lt.s32.totalorder %v14028_v39, 4 }
 0x4cc   : > { %v5126_v6 = vsub.s32 32, %v5125_v35  ;;  %v5128_v43 = vshll.u32 %v18636_v48, %v5125_v35  ;;  %v5131_v5 = vshll.u32 %v18641_v8, %v5125_v35  ;;  %v5134_v53 = vshll.u32 %v18642_v61, %v5125_v35 }
 0x4cd   : > { %v14115_v0 = vsub.s32 %v4963_v17, %v4966_v44  ;;  %v5137_v56 = vshll.u32 %v18633_v47, %v5125_v35  ;;  %v5140_v46 = vshll.u32 %v18622_v42, %v5125_v35  ;;  %vm5143_vm0 = vcmp.lt.s32.totalorder %v5124_v22, 1 }
 0x4ce   : > { %v5129_v34 = vshrl.u32 %v18641_v8, %v5126_v6  ;;  %v5132_v9 = vshrl.u32 %v18642_v61, %v5126_v6  ;;  %v5135_v45 = vshrl.u32 %v18633_v47, %v5126_v6  ;;  %v5138_v40 = vshrl.u32 %v18622_v42, %v5126_v6 }
 0x4cf   : > { %v5141_v50 = vshrl.u32 %v18623_v20, %v5126_v6  ;;  %v4969_v37 = vsub.s32 0, %v14115_v0  ;;  %v5127_v10 = vshrl.u32 %v18636_v48, %v5126_v6  ;;  %vm5145_vm4 = vcmp.lt.s32.totalorder %v5124_v22, 3 }
 0x4d0   : > { %v5130_v17 = vor.u32 %v5129_v34, %v5128_v43  ;;  %v5133_v44 = vor.u32 %v5132_v9, %v5131_v5  ;;  %v5136_v26 = vor.u32 %v5135_v45, %v5134_v53  ;;  %v5139_v32 = vor.u32 %v5138_v40, %v5137_v56 }
 0x4d1   : > { %v5142_v21 = vor.u32 %v5141_v50, %v5140_v46  ;;  %v11025_v27 = vmin.u32 %v4969_v37, %v14115_v0  ;;  %vm5146_vm13 = vcmp.lt.s32.totalorder %v5124_v22, 4  ;;  %vm5144_vm1 = vcmp.lt.s32.totalorder %v5124_v22, 2 }
 0x4d2   : > { %v5151_v60 = vsel %vm5143_vm0, %v5130_v17, %v5133_v44  ;;  %v5148_v59 = vsel %vm5146_vm13, %v5136_v26, 2102212464  ;;  %v5152_v35 = vsel %vm5146_vm13, %v5139_v32, 920167782  ;;  %v5155_v31 = vsel %vm5143_vm0, %v5133_v44, %v5136_v26 }
 0x4d3   : > { %v5156_v7 = vsel %vm5146_vm13, %v5142_v21, 1326507024  ;;  %v4971_v51 = vclz %v11025_v27  ;;  %v5153_v34 = vsel %vm5145_vm4, %v5136_v26, %v5152_v35  ;;  %v4771_v56 = vsub.s32 4294967266, %v14092_v41 }
 0x4d4   : > { %v5157_v6 = vsel %vm5145_vm4, %v5139_v32, %v5156_v7  ;;  %v5147_v50 = vsel %vm5143_vm0, %v5127_v10, %v5130_v17  ;;  %v5154_v46 = vsel %vm5144_vm1, %v5151_v60, %v5153_v34  ;;  %v5149_v5 = vsel %vm5145_vm4, %v5133_v44, %v5148_v59 }
 0x4d5   : > { %v5158_v53 = vsel %vm5144_vm1, %v5155_v31, %v5157_v6  ;;  %v11026_v43 = vadd.s32 4294967294, %v4971_v51  ;;  %v14142_v27 = vmul.u32.u64.low %v14108_v2, %v5154_v46  ;;  %v14143_v26 = vmul.u32.u64.high %v14108_v2, %v5154_v46, %v14142_v27 }
 0x4d6   : > { %v14138_v9 = vmul.u32.u64.low %v14108_v2, %v5158_v53  ;;  %v14139_v21 = vmul.u32.u64.high %v14108_v2, %v5158_v53, %v14138_v9  ;;  %vm5018_vm13 = vcmp.gt.s32.totalorder %v5017_v12, 0  ;;  %v5219_v32 = vshrl.u32 %v5218_v13, 23  ;;  %v2402_v53 = vpop.f32.mrf.mxu1 }
 0x4d7   : > { %v4567_v10 = vand.u32 2147483647, %v14099_v15  ;;  %v14150_v31 = vsel %vm18282_vm8, %v14094_v23, 920167782  ;;  %vm11027_vm0 = vcmp.lt.s32.totalorder %v11026_v43, 0  ;;  %v11040_v7 = vadd.s32 4294967169, %v5323_v24 }
 0x4d8   : > { %18766 = vst [vmem:[#allocation130_spill] sm:$0xff] %v14150_v31  ;;  %v4772_v51 = vadd.s32 127, %v4771_v56  ;;  %v18767_v59 = vor.u32 %v14070_v19, %v14085_v54  ;;  %v14159_v45 = vsel %vm11027_vm0, 0, %v11026_v43  ;;  %v5150_v13 = vsel %vm5144_vm1, %v5147_v50, %v5149_v5 }
 0x4d9   : > { %v4769_v15 = vshrl.u32 %v14026_v3, %v4767_v58  ;;  %v14164_v40 = vsub.s32 32, %v14106_v38  ;;  %v4979_v37 = vsub.s32 4294967266, %v14159_v45  ;;  %v14167_v24 = vsel %vm5018_vm13, %v5017_v12, 0 }
 0x4da   : > { %v14157_v60 = vsel %vm18282_vm8, %v18767_v59, 1326507024  ;;  %vm5168_vm4 = vc.u32 %v14139_v21, %v14142_v27  ;;  %v5169_v19 = vadd.s32 1, %v14143_v26  ;;  %v11036_v54 = vadd.s32 4294967169, %v5219_v32 }
 0x4db   : > { %18768 = vst [vmem:[#allocation131_spill] sm:$0xff] %v14157_v60  ;;  %18769 = vst [vmem:[#allocation132_spill] sm:$0xff] %v14164_v40  ;;  %v18257_v17 = vand.u32 2147483647, %v14079_v16  ;;  %v18770_v22 = vcvt.s32.f32 %v14081_v55  ;;  %v4768_v3 = vshll.u32 %v13999_v36, %v14092_v41  ;;  %v5166_v58 = vmul.u32 %v14108_v2, %v5150_v13 }
 0x4dc   : > { %v5329_v35 = vadd.s32 1, %v11040_v7  ;;  %v4773_v12 = vshll.u32 %v4772_v51, 23  ;;  %v14181_v34 = vshrl.u32 %v14087_v52, 5  ;;  %v5170_v6 = vsel %vm5168_vm4, %v5169_v19, %v14143_v26 }
 0x4dd   : > { %v14175_v44 = vmul.f32 %v18770_v22, %v4567_v10  ;;  %v14185_v56 = vand.u32 31, %v14167_v24  ;;  %v14187_v50 = vor.u32 %v4769_v15, %v4768_v3  ;;  %v14191_v55 = vshll.u32 %v18633_v47, %v14106_v38 }
 0x4de   : > { %18772 = vst [vmem:[#allocation134_spill] sm:$0xff] %v14181_v34  ;;  %v4980_v46 = vadd.s32 127, %v4979_v37  ;;  %v5171_v36 = vadd.s32 %v5170_v6, %v5166_v58  ;;  %v14195_v41 = vshll.u32 %v18622_v42, %v14106_v38  ;;  %v5225_v2 = vadd.s32 1, %v11036_v54 }
 0x4df   : > { %18771 = vst [vmem:[#allocation133_spill] sm:$0xff] %v14175_v44  ;;  %18773 = vst [vmem:[#allocation135_spill] sm:$0xff] %v14187_v50  ;;  %v5326_v52 = vand.u32 8388607, %v18257_v17  ;;  %vm5330_vm1 = vcmp.gt.s32.totalorder %v5329_v35, 0  ;;  %v14202_v5 = vshrl.u32 %v18622_v42, %v14164_v40  ;;  %v14206_v9 = vshrl.u32 %v18623_v20, %v14164_v40 }
 0x4e0   : > { %18774 = vst [vmem:[#allocation136_spill] sm:$0xff] %v14191_v55  ;;  %18775 = vst [vmem:[#allocation137_spill] sm:$0xff] %v14195_v41  ;;  %v5172_v26 = vadd.s32 536870912, %v5171_v36  ;;  %v14208_v32 = vor.u32 4788187, %v4773_v12  ;;  %v4975_v10 = vsub.s32 32, %v14159_v45  ;;  %v14218_v37 = vadd.f32 %v2402_v53, %v18763_v1 }
 0x4e1   : > { %18776 = vst [vmem:[#allocation138_spill] sm:$0xff] %v14202_v5  ;;  %18777 = vst [vmem:[#allocation139_spill] sm:$0xff] %v14206_v9  ;;  %v14212_v7 = vsub.s32 32, %v14185_v56  ;;  %v5331_v51 = vsel %vm5330_vm1, %v5329_v35, 0  ;;  %v4981_v13 = vshll.u32 %v4980_v46, 23  ;;  %v4959_v19 = vadd.s32 %v14039_v30, %v14055_v18 }
 0x4e2   : > { %18778 = vst [vmem:[#allocation140_spill] sm:$0xff] %v14208_v32  ;;  %v14215_v15 = vshrl.u32 %v5172_v26, 30  ;;  %vm5226_vm13 = vcmp.gt.s32.totalorder %v5225_v2, 0  ;;  %v5327_v54 = vor.u32 8388608, %v5326_v52  ;;  %v5333_v22 = vand.u32 31, %v5331_v51 }
 0x4e3   : > { %v4976_v3 = vshll.u32 %v14115_v0, %v14159_v45  ;;  %v14227_v35 = vshll.u32 %v18633_v47, %v14185_v56  ;;  %v14231_v12 = vshll.u32 %v18622_v42, %v14185_v56  ;;  %v4977_v6 = vshrl.u32 %v4959_v19, %v4975_v10 }
 0x4e4   : > { %v5174_v58 = vshll.u32 %v14215_v15, 30  ;;  %v14235_v30 = vshrl.u32 %v18622_v42, %v14212_v7  ;;  %v14239_v18 = vshrl.u32 %v18623_v20, %v14212_v7  ;;  %v5334_v0 = vsub.s32 32, %v5333_v22 }
 0x4e5   : > { %v4982_v45 = vor.u32 4788187, %v4981_v13  ;;  %v5332_v52 = vshrl.u32 %v5331_v51, 5  ;;  %v5336_v53 = vshll.u32 %v18636_v48, %v5333_v22  ;;  %v5339_v59 = vshll.u32 %v18641_v8, %v5333_v22 }
 0x4e6   : > { %v14241_v46 = vsub.s32 %v5171_v36, %v5174_v58  ;;  %v5337_v26 = vshrl.u32 %v18641_v8, %v5334_v0  ;;  %v5340_v10 = vshrl.u32 %v18642_v61, %v5334_v0  ;;  %v5343_v19 = vshrl.u32 %v18633_v47, %v5334_v0 }
 0x4e7   : > { %v5342_v17 = vshll.u32 %v18642_v61, %v5333_v22  ;;  %v5345_v38 = vshll.u32 %v18633_v47, %v5333_v22  ;;  %v5346_v36 = vshrl.u32 %v18622_v42, %v5334_v0  ;;  %v4978_v13 = vor.u32 %v4977_v6, %v4976_v3 }
 0x4e8   : > { %v5177_v43 = vsub.s32 0, %v14241_v46  ;;  %v14253_v51 = vsel %vm5226_vm13, %v5225_v2, 0  ;;  %v5338_v58 = vor.u32 %v5337_v26, %v5336_v53  ;;  %v5341_v40 = vor.u32 %v5340_v10, %v5339_v59 }
 0x4e9   : > { %v5344_v9 = vor.u32 %v5343_v19, %v5342_v17  ;;  %v5347_v41 = vor.u32 %v5346_v36, %v5345_v38  ;;  %v5367_v31 = vshll.u32 %v5327_v54, 8  ;;  %v4983_v23 = vand.u32 2147483647, %v4982_v45 }
 0x4ea   : > { %v11033_v34 = vmin.u32 %v5177_v43, %v14241_v46  ;;  %v5335_v60 = vshrl.u32 %v18636_v48, %v5334_v0  ;;  %v5348_v39 = vshll.u32 %v18622_v42, %v5333_v22  ;;  %v5349_v11 = vshrl.u32 %v18623_v20, %v5334_v0 }
 0x4eb   : > { %vm5351_vm0 = vcmp.lt.s32.totalorder %v5332_v52, 1  ;;  %vm5352_vm4 = vcmp.lt.s32.totalorder %v5332_v52, 2  ;;  %vm5354_vm1 = vcmp.lt.s32.totalorder %v5332_v52, 4  ;;  %vm5353_vm13 = vcmp.lt.s32.totalorder %v5332_v52, 3 }
 0x4ec   : > { %v5179_v57 = vclz %v11033_v34  ;;  %v5350_v2 = vor.u32 %v5349_v11, %v5348_v39  ;;  %v5359_v3 = vsel %vm5351_vm0, %v5338_v58, %v5341_v40  ;;  %v5360_v59 = vsel %vm5354_vm1, %v5347_v41, 920167782  ;;  %v2331_v11 = vpop.f32.mrf.mxu0 }
 0x4ed   : > { %v5356_v43 = vsel %vm5354_vm1, %v5344_v9, 2102212464  ;;  %v5361_v38 = vsel %vm5353_vm13, %v5344_v9, %v5360_v59  ;;  %v5363_v17 = vsel %vm5351_vm0, %v5341_v40, %v5344_v9  ;;  %v4985_v54 = vcvt.s32.f32 %v4978_v13 }
 0x4ee   : > { %v11034_v6 = vadd.s32 4294967294, %v5179_v57  ;;  %v5355_v45 = vsel %vm5351_vm0, %v5335_v60, %v5338_v58  ;;  %v5362_v53 = vsel %vm5352_vm4, %v5359_v3, %v5361_v38  ;;  %v5364_v22 = vsel %vm5354_vm1, %v5350_v2, 1326507024 }
 0x4ef   : > { %v5365_v34 = vsel %vm5353_vm13, %v5347_v41, %v5364_v22  ;;  %v14262_v0 = vmul.u32.u64.low %v5367_v31, %v5362_v53  ;;  %v14263_v26 = vmul.u32.u64.high %v5367_v31, %v5362_v53, %v14262_v0  ;;  %v5357_v57 = vsel %vm5353_vm13, %v5341_v40, %v5356_v43 }
 0x4f0   : > { %vm11035_vm5 = vcmp.lt.s32.totalorder %v11034_v6, 0  ;;  %v5366_v10 = vsel %vm5352_vm4, %v5363_v17, %v5365_v34  ;;  %v5530_v9 = vand.u32 2139095040, %v14218_v37  ;;  %v4986_v19 = vmul.f32 %v4985_v54, %v4983_v23 }
 0x4f1   : > { %v5182_v39 = vsel %vm11035_vm5, 0, %v11034_v6  ;;  %v14270_v36 = vand.u32 31, %v14253_v51  ;;  %v18269_v13 = vand.u32 2147483647, %v14218_v37  ;;  %vm18285_vm0 = vcmp.lt.s32.totalorder %v13872_v33, 0 }
 0x4f2   : > { %v5187_v60 = vsub.s32 4294967266, %v5182_v39  ;;  %v14274_v41 = vmul.u32.u64.low %v5367_v31, %v5366_v10  ;;  %v14275_v58 = vmul.u32.u64.high %v5367_v31, %v5366_v10, %v14274_v41  ;;  %v5531_v2 = vshrl.u32 %v5530_v9, 23 }
 0x4f3   : > { %v14278_v3 = vadd.f32 %v2331_v11, %v18763_v1  ;;  %v5183_v40 = vsub.s32 32, %v5182_v39  ;;  %v5358_v6 = vsel %vm5352_vm4, %v5355_v45, %v5357_v57  ;;  %v5377_v23 = vadd.s32 1, %v14263_v26 }
 0x4f4   : > { %v5188_v59 = vadd.s32 127, %v5187_v60  ;;  %v14284_v38 = vshrl.u32 %v14167_v24, 5  ;;  %v11048_v17 = vadd.s32 4294967169, %v5531_v2  ;;  %v5167_v53 = vadd.s32 %v14142_v27, %v14139_v21  ;;  %v2404_v60 = vpop.f32.mrf.mxu1 }
 0x4f5   : > { %v5426_v54 = vand.u32 2139095040, %v14278_v3  ;;  %v14291_v34 = vor.u32 %v14235_v30, %v14227_v35  ;;  %v14296_v45 = vsub.s32 32, %v14270_v36  ;;  %v5374_v11 = vmul.u32 %v5367_v31, %v5358_v6 }
 0x4f6   : > { %v5189_v22 = vshll.u32 %v5188_v59, 23  ;;  %vm5376_vm5 = vc.u32 %v14275_v58, %v14262_v0  ;;  %v5537_v24 = vadd.s32 1, %v11048_v17  ;;  %v4987_v57 = vxor.u32 2147483648, %v4986_v19 }
 0x4f7   : > { %v5185_v10 = vshrl.u32 %v5167_v53, %v5183_v40  ;;  %v5378_v21 = vsel %vm5376_vm5, %v5377_v23, %v14263_v26  ;;  %v5534_v27 = vand.u32 8388607, %v18269_v13  ;;  %v5427_v9 = vshrl.u32 %v5426_v54, 23 }
 0x4f8   : > { %v5190_v35 = vor.u32 4788187, %v5189_v22  ;;  %v5379_v30 = vadd.s32 %v5378_v21, %v5374_v11  ;;  %vm5538_vm4 = vcmp.gt.s32.totalorder %v5537_v24, 0  ;;  %v5184_v41 = vshll.u32 %v14241_v46, %v5182_v39 }
 0x4f9   : > { %v14305_v31 = vshrl.u32 %v14253_v51, 5  ;;  %v14309_v2 = vshll.u32 %v18633_v47, %v14270_v36  ;;  %v5539_v40 = vsel %vm5538_vm4, %v5537_v24, 0  ;;  %v5242_v26 = vshrl.u32 %v18622_v42, %v14296_v45 }
 0x4fa   : > { %v14315_v59 = vshrl.u32 %v18623_v20, %v14296_v45  ;;  %v5380_v6 = vadd.s32 536870912, %v5379_v30  ;;  %v5541_v23 = vand.u32 31, %v5539_v40  ;;  %v14319_v46 = vsel %vm18285_vm0, %v4987_v57, %v4986_v19 }
 0x4fb   : > { %v5186_v51 = vor.u32 %v5185_v10, %v5184_v41  ;;  %v5535_v39 = vor.u32 8388608, %v5534_v27  ;;  %v14322_v17 = vadd.f32 %v2404_v60, %v18763_v1  ;;  %v5191_v54 = vand.u32 2147483647, %v5190_v35 }
 0x4fc   : > { %v14324_v53 = vshrl.u32 %v5380_v6, 30  ;;  %v5542_v22 = vsub.s32 32, %v5541_v23  ;;  %v11044_v11 = vadd.s32 4294967169, %v5427_v9  ;;  %v5540_v24 = vshrl.u32 %v5539_v40, 5 }
 0x4fd   : > { %v5544_v21 = vshll.u32 %v18636_v48, %v5541_v23  ;;  %v5547_v43 = vshll.u32 %v18641_v8, %v5541_v23  ;;  %v5550_v13 = vshll.u32 %v18642_v61, %v5541_v23  ;;  %v5553_v1 = vshll.u32 %v18633_v47, %v5541_v23 }
 0x4fe   : > { %v5382_v19 = vshll.u32 %v14324_v53, 30  ;;  %v5545_v57 = vshrl.u32 %v18641_v8, %v5542_v22  ;;  %v5548_v10 = vshrl.u32 %v18642_v61, %v5542_v22  ;;  %v5551_v27 = vshrl.u32 %v18633_v47, %v5542_v22 }
 0x4ff   : > { %v5554_v35 = vshrl.u32 %v18622_v42, %v5542_v22  ;;  %v5556_v9 = vshll.u32 %v18622_v42, %v5541_v23  ;;  %v5557_v60 = vshrl.u32 %v18623_v20, %v5542_v22  ;;  %v5193_v41 = vcvt.s32.f32 %v5186_v51 }
 0x500   : > { %v14337_v40 = vsub.s32 %v5379_v30, %v5382_v19  ;;  %v5546_v6 = vor.u32 %v5545_v57, %v5544_v21  ;;  %v5549_v52 = vor.u32 %v5548_v10, %v5547_v43  ;;  %v18779_v29 = vand.u32 2147483647, %v13872_v33 }
 0x501   : > { %v5552_v25 = vor.u32 %v5551_v27, %v5550_v13  ;;  %v5555_v50 = vor.u32 %v5554_v35, %v5553_v1  ;;  %v5558_v32 = vor.u32 %v5557_v60, %v5556_v9  ;;  %v5575_v5 = vshll.u32 %v5535_v39, 8 }
 0x502   : > { %vm14341_vm1 = vcmp.le.f32.partialorder %v18779_v29, 0.7853982  ;;  %v5194_v55 = vmul.f32 %v5193_v41, %v5191_v54  ;;  %v5385_v23 = vsub.s32 0, %v14337_v40  ;;  %vm5559_vm13 = vcmp.lt.s32.totalorder %v5540_v24, 1 }
 0x503   : > { %v5433_v44 = vadd.s32 1, %v11044_v11  ;;  %v5543_v30 = vshrl.u32 %v18636_v48, %v5542_v22  ;;  %vm5561_vm5 = vcmp.lt.s32.totalorder %v5540_v24, 3  ;;  %vm5562_vm4 = vcmp.lt.s32.totalorder %v5540_v24, 4 }
 0x504   : > { %v5567_v43 = vsel %vm5559_vm13, %v5546_v6, %v5549_v52  ;;  %v11041_v51 = vmin.u32 %v5385_v23, %v14337_v40  ;;  %v5564_v29 = vsel %vm5562_vm4, %v5552_v25, 2102212464  ;;  %v5568_v21 = vsel %vm5562_vm4, %v5555_v50, 920167782 }
 0x505   : > { %v5571_v19 = vsel %vm5559_vm13, %v5549_v52, %v5552_v25  ;;  %vm5560_vm15 = vcmp.lt.s32.totalorder %v5540_v24, 2  ;;  %v5563_v13 = vsel %vm5559_vm13, %v5543_v30, %v5546_v6  ;;  %v5569_v57 = vsel %vm5561_vm5, %v5552_v25, %v5568_v21 }
 0x506   : > { %v5572_v39 = vsel %vm5562_vm4, %v5558_v32, 1326507024  ;;  %vm18284_vm12 = vcmp.lt.s32.totalorder %v14011_v28, 0  ;;  %v5387_v54 = vclz %v11041_v51  ;;  %v5570_v11 = vsel %vm5560_vm15, %v5567_v43, %v5569_v57 }
 0x507   : > { %v5573_v22 = vsel %vm5561_vm5, %v5555_v50, %v5572_v39  ;;  %vm5434_vm8 = vcmp.gt.s32.totalorder %v5433_v44, 0  ;;  %v5565_v10 = vsel %vm5561_vm5, %v5549_v52, %v5564_v29  ;;  %v5244_v9 = vshll.u32 %v18622_v42, %v14270_v36 }
 0x508   : > { %v5574_v1 = vsel %vm5560_vm15, %v5571_v19, %v5573_v22  ;;  %v14354_v27 = vmul.u32.u64.low %v5575_v5, %v5570_v11  ;;  %v14355_v35 = vmul.u32.u64.high %v5575_v5, %v5570_v11, %v14354_v27  ;;  %v11042_v25 = vadd.s32 4294967294, %v5387_v54 }
 0x509   : > { %v14359_v32 = vmul.u32.u64.low %v5575_v5, %v5574_v1  ;;  %v14360_v60 = vmul.u32.u64.high %v5575_v5, %v5574_v1, %v14359_v32  ;;  %v18782_v41 = vand.u32 2147483647, %v14011_v28  ;;  %v18783_v6 = vmov 0 }
 0x50a   : > { %vm5042_vm5 = vcmp.lt.s32.totalorder %v14284_v38, 4  ;;  %v14370_v50 = vor.u32 %v5242_v26, %v14309_v2  ;;  %v5435_v52 = vsel %vm5434_vm8, %v5433_v44, 0  ;;  %v5634_v23 = vand.u32 2139095040, %v14322_v17 }
 0x50b   : > { %vm14364_vm13 = vcmp.le.f32.partialorder %v18782_v41, 0.7853982  ;;  %v4991_v30 = vsel %vm14341_vm1, %v13872_v33, %v14319_v46  ;;  %v5246_v43 = vor.u32 %v14315_v59, %v5244_v9  ;;  %vm11043_vm4 = vcmp.lt.s32.totalorder %v11042_v25, 0 }
 0x50c   : > { %v18784_v6 = vsel %vm14364_vm13, 4294967295, %v18783_v6  ;;  %v5566_v51 = vsel %vm5560_vm15, %v5563_v13, %v5565_v10  ;;  %v5195_v29 = vxor.u32 2147483648, %v5194_v55  ;;  %v5048_v21 = vsel %vm5042_vm5, %v14291_v34, 920167782 }
 0x50d   : > { %18785 = vst [vmem:[#allocation141_spill] sm:$0xff] %v18784_v6  ;;  %v5585_v2 = vadd.s32 1, %v14355_v35  ;;  %v18287_v44 = vand.u32 2147483647, %v14062_v63  ;;  %v18786_v26 = vor.u32 %v14239_v18, %v14231_v12  ;;  %vm18295_vm8 = vcmp.lt.s32.totalorder %v14305_v31, 4 }
 0x50e   : > { %v5390_v59 = vsel %vm11043_vm4, 0, %v11042_v25  ;;  %v14390_v24 = vand.u32 31, %v5435_v52  ;;  %11538 = vcosq.f32 %v4991_v30  ;;  %v5582_v19 = vmul.u32 %v5575_v5, %v5566_v51 }
 0x50f   : > { %v5052_v46 = vsel %vm5042_vm5, %v18786_v26, 1326507024  ;;  %vm5584_vm15 = vc.u32 %v14360_v60, %v14354_v27  ;;  %v5635_v13 = vshrl.u32 %v5634_v23, 23  ;;  %11540 = vsinq.f32 %v4991_v30 }
 0x510   : > { %v14396_v57 = vsel %vm18295_vm8, %v14370_v50, 920167782  ;;  %v14400_v12 = vsel %vm18295_vm8, %v5246_v43, 1326507024  ;;  %v5586_v18 = vsel %vm5584_vm15, %v5585_v2, %v14355_v35  ;;  %v5196_v39 = vsel %vm18284_vm12, %v5195_v29, %v5194_v55 }
 0x511   : > { %v5395_v54 = vsub.s32 4294967266, %v5390_v59  ;;  %v5587_v5 = vadd.s32 %v5586_v18, %v5582_v19  ;;  %v5014_v11 = vand.u32 8388607, %v18287_v44  ;;  %v5375_v22 = vadd.s32 %v14262_v0, %v14275_v58 }
 0x512   : > { %v14410_v10 = vsub.s32 32, %v14390_v24  ;;  %v5025_v1 = vshrl.u32 %v18641_v8, %v14212_v7  ;;  %v5028_v35 = vshrl.u32 %v18642_v61, %v14212_v7  ;;  %v11052_v25 = vadd.s32 4294967169, %v5635_v13 }
 0x513   : > { %v5588_v9 = vadd.s32 536870912, %v5587_v5  ;;  %v5023_v55 = vshrl.u32 %v18636_v48, %v14212_v7  ;;  %v5024_v32 = vshll.u32 %v18636_v48, %v14185_v56  ;;  %v14423_v0 = vsel %vm14364_vm13, %v14011_v28, %v5196_v39 }
 0x514   : > { %v5391_v58 = vsub.s32 32, %v5390_v59  ;;  %v14425_v41 = vshrl.u32 %v5435_v52, 5  ;;  %v5027_v23 = vshll.u32 %v18641_v8, %v14185_v56  ;;  %v5396_v30 = vadd.s32 127, %v5395_v54 }
 0x515   : > { %v14429_v43 = vshrl.u32 %v5588_v9, 30  ;;  %v5015_v51 = vor.u32 8388608, %v5014_v11  ;;  %v5031_v29 = vshrl.u32 %v18633_v47, %v14212_v7  ;;  %v5450_v2 = vshrl.u32 %v18622_v42, %v14410_v10 }
 0x516   : > { %v5026_v26 = vor.u32 %v5025_v1, %v5024_v32  ;;  %v5029_v19 = vor.u32 %v5028_v35, %v5027_v23  ;;  %v5030_v13 = vshll.u32 %v18642_v61, %v14185_v56  ;;  %v5392_v52 = vshll.u32 %v14337_v40, %v5390_v59 }
 0x517   : > { %18787 = vst [vmem:[#allocation142_spill] sm:$0xff] %v14429_v43  ;;  %v5590_v18 = vshll.u32 %v14429_v43, 30  ;;  %v5449_v39 = vshll.u32 %v18633_v47, %v14390_v24  ;;  %v5641_v54 = vadd.s32 1, %v11052_v25  ;;  %v5393_v11 = vshrl.u32 %v5375_v22, %v5391_v58 }
 0x518   : > { %v14442_v9 = vadd.s32 %v14354_v27, %v14360_v60  ;;  %v5453_v7 = vshrl.u32 %v18623_v20, %v14410_v10  ;;  %v5032_v1 = vor.u32 %v5031_v29, %v5030_v13  ;;  %v5397_v35 = vshll.u32 %v5396_v30, 23 }
 0x519   : > { %v14446_v32 = vsub.s32 %v5587_v5, %v5590_v18  ;;  %vm5039_vm4 = vcmp.lt.s32.totalorder %v14284_v38, 1  ;;  %vm5041_vm15 = vcmp.lt.s32.totalorder %v14284_v38, 3  ;;  %v14450_v56 = vor.u32 %v5450_v2, %v5449_v39 }
 0x51a   : > { %v5452_v40 = vshll.u32 %v18622_v42, %v14390_v24  ;;  %v5047_v27 = vsel %vm5039_vm4, %v5026_v26, %v5029_v19  ;;  %v5049_v60 = vsel %vm5041_vm15, %v5032_v1, %v5048_v21  ;;  %vm5458_vm2 = vcmp.lt.s32.totalorder %v14425_v41, 4 }
 0x51b   : > { %v5593_v59 = vsub.s32 0, %v14446_v32  ;;  %vm5642_vm12 = vcmp.gt.s32.totalorder %v5641_v54, 0  ;;  %v5051_v5 = vsel %vm5039_vm4, %v5029_v19, %v5032_v1  ;;  %v14462_v22 = vpop.eup %11538  ;;  %vm5040_vm0 = vcmp.lt.s32.totalorder %v14284_v38, 2 }
 0x51c   : > { %18788 = vst [vmem:[#allocation143_spill] sm:$0xff] %v14462_v22  ;;  %v5454_v25 = vor.u32 %v5453_v7, %v5452_v40  ;;  %v5044_v58 = vsel %vm5042_vm5, %v5032_v1, 2102212464  ;;  %v5053_v21 = vsel %vm5041_vm15, %v14291_v34, %v5052_v46  ;;  %v14470_v23 = vpop.eup %11540  ;;  %v5394_v30 = vor.u32 %v5393_v11, %v5392_v52 }
 0x51d   : > { %18789 = vst [vmem:[#allocation144_spill] sm:$0xff] %v14470_v23  ;;  %v5398_v29 = vor.u32 4788187, %v5397_v35  ;;  %v11049_v2 = vmin.u32 %v5593_v59, %v14446_v32  ;;  %v5050_v13 = vsel %vm5040_vm0, %v5047_v27, %v5049_v60  ;;  %v5464_v18 = vsel %vm5458_vm2, %v14450_v56, 920167782 }
 0x51e   : > { %v14478_v39 = vsel %vm5642_vm12, %v5641_v54, 0  ;;  %v5054_v7 = vsel %vm5040_vm0, %v5051_v5, %v5053_v21  ;;  %v5055_v1 = vshll.u32 %v5015_v51, 8  ;;  %v5043_v46 = vsel %vm5039_vm4, %v5023_v55, %v5026_v26 }
 0x51f   : > { %v5595_v34 = vclz %v11049_v2  ;;  %v5045_v52 = vsel %vm5041_vm15, %v5029_v19, %v5044_v58  ;;  %v18286_v11 = vand.u32 2147483647, %v14278_v3  ;;  %v5399_v54 = vand.u32 2147483647, %v5398_v29 }
 0x520   : > { %v14487_v35 = vmul.u32.u64.low %v5055_v1, %v5054_v7  ;;  %v14488_v40 = vmul.u32.u64.high %v5055_v1, %v5054_v7, %v14487_v35  ;;  %v14490_v27 = vmul.u32.u64.low %v5055_v1, %v5050_v13  ;;  %v14491_v60 = vmul.u32.u64.high %v5055_v1, %v5050_v13, %v14490_v27 }
 0x521   : > { %v11050_v59 = vadd.s32 4294967294, %v5595_v34  ;;  %v5468_v51 = vsel %vm5458_vm2, %v5454_v25, 1326507024  ;;  %v14497_v5 = vand.u32 31, %v14478_v39  ;;  %v5046_v55 = vsel %vm5040_vm0, %v5043_v46, %v5045_v52 }
 0x522   : > { %v5430_v26 = vand.u32 8388607, %v18286_v11  ;;  %v5441_v19 = vshrl.u32 %v18641_v8, %v14410_v10  ;;  %v5444_v58 = vshrl.u32 %v18642_v61, %v14410_v10  ;;  %v5440_v21 = vshll.u32 %v18636_v48, %v14390_v24 }
 0x523   : > { %vm11051_vm12 = vcmp.lt.s32.totalorder %v11050_v59, 0  ;;  %v5443_v25 = vshll.u32 %v18641_v8, %v14390_v24  ;;  %v5447_v38 = vshrl.u32 %v18633_v47, %v14410_v10  ;;  %vm5064_vm0 = vc.u32 %v14488_v40, %v14490_v27 }
 0x524   : > { %v5598_v29 = vsel %vm11051_vm12, 0, %v11050_v59  ;;  %v5065_v2 = vadd.s32 1, %v14491_v60  ;;  %v5446_v13 = vshll.u32 %v18642_v61, %v14390_v24  ;;  %v5401_v7 = vcvt.s32.f32 %v5394_v30 }
 0x525   : > { %v5603_v34 = vsub.s32 4294967266, %v5598_v29  ;;  %v5062_v46 = vmul.u32 %v5055_v1, %v5046_v55  ;;  %v5442_v52 = vor.u32 %v5441_v19, %v5440_v21  ;;  %v14519_v35 = vsub.s32 32, %v14497_v5 }
 0x526   : > { %v5066_v11 = vsel %vm5064_vm0, %v5065_v2, %v14491_v60  ;;  %v5445_v44 = vor.u32 %v5444_v58, %v5443_v25  ;;  %v5448_v43 = vor.u32 %v5447_v38, %v5446_v13  ;;  %v5599_v59 = vsub.s32 32, %v5598_v29 }
 0x527   : > { %v5604_v6 = vadd.s32 127, %v5603_v34  ;;  %v5067_v4 = vadd.s32 %v5066_v11, %v5062_v46  ;;  %vm5455_vm5 = vcmp.lt.s32.totalorder %v14425_v41, 1  ;;  %v5402_v28 = vmul.f32 %v5401_v7, %v5399_v54 }
 0x528   : > { %v5657_v24 = vshll.u32 %v18633_v47, %v14497_v5  ;;  %v5431_v30 = vor.u32 8388608, %v5430_v26  ;;  %v5463_v1 = vsel %vm5455_vm5, %v5442_v52, %v5445_v44  ;;  %vm5456_vm4 = vcmp.lt.s32.totalorder %v14425_v41, 2 }
 0x529   : > { %v5605_v55 = vshll.u32 %v5604_v6, 23  ;;  %v5068_v19 = vadd.s32 536870912, %v5067_v4  ;;  %vm5457_vm15 = vcmp.lt.s32.totalorder %v14425_v41, 3  ;;  %vm18297_vm12 = vcmp.lt.s32.totalorder %v14062_v63, 0 }
 0x52a   : > { %v5460_v11 = vsel %vm5458_vm2, %v5448_v43, 2102212464  ;;  %v5465_v60 = vsel %vm5457_vm15, %v5448_v43, %v5464_v18  ;;  %v5467_v54 = vsel %vm5455_vm5, %v5445_v44, %v5448_v43  ;;  %v5469_v6 = vsel %vm5457_vm15, %v14450_v56, %v5468_v51 }
 0x52b   : > { %v5601_v26 = vshrl.u32 %v14442_v9, %v5599_v59  ;;  %v5069_v58 = vshrl.u32 %v5068_v19, 30  ;;  %v5439_v21 = vshrl.u32 %v18636_v48, %v14410_v10  ;;  %v5466_v25 = vsel %vm5456_vm4, %v5463_v1, %v5465_v60 }
 0x52c   : > { %vm18296_vm2 = vcmp.lt.s32.totalorder %v14079_v16, 0  ;;  %v5600_v18 = vshll.u32 %v14446_v32, %v5598_v29  ;;  %v5658_v43 = vshrl.u32 %v18622_v42, %v14519_v35  ;;  %v5470_v38 = vsel %vm5456_vm4, %v5467_v54, %v5469_v6 }
 0x52d   : > { %v5471_v56 = vshll.u32 %v5431_v30, 8  ;;  %v5606_v51 = vor.u32 4788187, %v5605_v55  ;;  %v18790_v9 = vand.u32 2147483647, %v14062_v63  ;;  %v5070_v10 = vshll.u32 %v5069_v58, 30 }
 0x52e   : > { %v5459_v13 = vsel %vm5455_vm5, %v5439_v21, %v5442_v52  ;;  %v5461_v32 = vsel %vm5457_vm15, %v5445_v44, %v5460_v11  ;;  %v18793_v59 = vand.u32 2147483647, %v14079_v16  ;;  %v5602_v1 = vor.u32 %v5601_v26, %v5600_v18 }
 0x52f   : > { %vm14552_vm0 = vcmp.le.f32.partialorder %v18790_v9, 0.7853982  ;;  %v14560_v29 = vmul.u32.u64.low %v5471_v56, %v5470_v38  ;;  %v14561_v7 = vmul.u32.u64.high %v5471_v56, %v5470_v38, %v14560_v29  ;;  %v14575_v52 = vshrl.u32 %v18623_v20, %v14519_v35 }
 0x530   : > { %v14563_v34 = vmul.u32.u64.low %v5471_v56, %v5466_v25  ;;  %v14564_v46 = vmul.u32.u64.high %v5471_v56, %v5466_v25, %v14563_v34  ;;  %vm14569_vm8 = vcmp.le.f32.partialorder %v18793_v59, 0.7853982  ;;  %v14577_v55 = vsub.s32 %v5067_v4, %v5070_v10 }
 0x531   : > { %v5093_v44 = vsub.s32 4, %v5069_v58  ;;  %11542 = vcosq.f32 %v14423_v0  ;;  %v5403_v19 = vxor.u32 2147483648, %v5402_v28  ;;  %v14581_v11 = vshrl.u32 %v14478_v39, 5 }
 0x532   : > { %v14585_v60 = vshll.u32 %v18622_v42, %v14497_v5  ;;  %v5607_v54 = vand.u32 2147483647, %v5606_v51  ;;  %v14587_v6 = vor.u32 %v5658_v43, %v5657_v24  ;;  %v5073_v26 = vsub.s32 0, %v14577_v55 }
 0x533   : > { %v5462_v4 = vsel %vm5456_vm4, %v5459_v13, %v5461_v32  ;;  %vm5480_vm5 = vc.u32 %v14561_v7, %v14563_v34  ;;  %v5481_v21 = vadd.s32 1, %v14564_v46  ;;  %v5215_v39 = vand.u32 2147483647, %v14090_v49 }
 0x534   : > { %v5233_v25 = vshrl.u32 %v18641_v8, %v14296_v45  ;;  %v5609_v18 = vcvt.s32.f32 %v5602_v1  ;;  %v5662_v24 = vor.u32 %v14575_v52, %v14585_v60  ;;  %v11029_v43 = vmin.u32 %v5073_v26, %v14577_v55 }
 0x535   : > { %v5094_v41 = vsel %vm18297_vm12, %v5093_v44, %v5069_v58  ;;  %v5478_v38 = vmul.u32 %v5471_v56, %v5462_v4  ;;  %v5482_v51 = vsel %vm5480_vm5, %v5481_v21, %v14564_v46  ;;  %v5232_v9 = vshll.u32 %v18636_v48, %v14270_v36 }
 0x536   : > { %v5236_v10 = vshrl.u32 %v18642_v61, %v14296_v45  ;;  %v5404_v13 = vsel %vm18296_vm2, %v5403_v19, %v5402_v28  ;;  %v14610_v32 = vmul.f32 %v5609_v18, %v5607_v54  ;;  %v5075_v29 = vclz %v11029_v43 }
 0x537   : > { %v5235_v59 = vshll.u32 %v18641_v8, %v14270_v36  ;;  %v14616_v58 = vsel %vm14552_vm0, 0, %v5094_v41  ;;  %v5483_v56 = vadd.s32 %v5482_v51, %v5478_v38  ;;  %v5222_v46 = vand.u32 8388607, %v5215_v39 }
 0x538   : > { %18796 = vst [vmem:[#allocation145_spill] sm:$0xff] %v14616_v58  ;;  %v5234_v1 = vor.u32 %v5233_v25, %v5232_v9  ;;  %v11030_v52 = vadd.s32 4294967294, %v5075_v29  ;;  %v5238_v28 = vshll.u32 %v18642_v61, %v14270_v36  ;;  %v5239_v19 = vshrl.u32 %v18633_v47, %v14296_v45 }
 0x539   : > { %v5237_v44 = vor.u32 %v5236_v10, %v5235_v59  ;;  %v5407_v60 = vsel %vm14569_vm8, %v14079_v16, %v5404_v13  ;;  %v5063_v54 = vadd.s32 %v14490_v27, %v14488_v40  ;;  %v5484_v26 = vadd.s32 536870912, %v5483_v56 }
 0x53a   : > { %v5231_v4 = vshrl.u32 %v18636_v48, %v14296_v45  ;;  %v5611_v21 = vxor.u32 2147483648, %v14610_v32  ;;  %vm11031_vm15 = vcmp.lt.s32.totalorder %v11030_v52, 0  ;;  %v5100_v36 = vadd.s32 3, %v14616_v58 }
 0x53b   : > { %v5240_v25 = vor.u32 %v5239_v19, %v5238_v28  ;;  %v5078_v18 = vsel %vm11031_vm15, 0, %v11030_v52  ;;  %v14634_v43 = vshrl.u32 %v5484_v26, 30  ;;  %v5223_v41 = vor.u32 8388608, %v5222_v46 }
 0x53c   : > { %vm5247_vm5 = vcmp.lt.s32.totalorder %v14305_v31, 1  ;;  %vm18298_vm2 = vcmp.lt.s32.totalorder %v14218_v37, 0  ;;  %v5079_v40 = vsub.s32 32, %v5078_v18  ;;  %v5083_v27 = vsub.s32 4294967266, %v5078_v18 }
 0x53d   : > { %vm5249_vm12 = vcmp.lt.s32.totalorder %v14305_v31, 3  ;;  %v5255_v45 = vsel %vm5247_vm5, %v5234_v1, %v5237_v44  ;;  %v5486_v38 = vshll.u32 %v14634_v43, 30  ;;  %vm5248_vm4 = vcmp.lt.s32.totalorder %v14305_v31, 2 }
 0x53e   : > { %v5257_v51 = vsel %vm5249_vm12, %v5240_v25, %v14396_v57  ;;  %v5261_v9 = vsel %vm5249_vm12, %v14370_v50, %v14400_v12  ;;  %v14650_v10 = vpop.eup %11542  ;;  %v5080_v13 = vshll.u32 %v14577_v55, %v5078_v18  ;;  %v5081_v29 = vshrl.u32 %v5063_v54, %v5079_v40 }
 0x53f   : > { %18797 = vst [vmem:[#allocation146_spill] sm:$0xff] %v14650_v10  ;;  %v5084_v59 = vadd.s32 127, %v5083_v27  ;;  %vm18798_vm15 = vcmp.lt.s32.totalorder %v14305_v31, 4  ;;  %v14655_v52 = vsub.s32 %v5483_v56, %v5486_v38  ;;  %v5258_v28 = vsel %vm5248_vm4, %v5255_v45, %v5257_v51 }
 0x540   : > { %v5252_v46 = vsel %vm18798_vm15, %v5240_v25, 2102212464  ;;  %v5259_v57 = vsel %vm5247_vm5, %v5237_v44, %v5240_v25  ;;  %v5263_v19 = vshll.u32 %v5223_v41, 8  ;;  %v5082_v26 = vor.u32 %v5081_v29, %v5080_v13 }
 0x541   : > { %v5085_v50 = vshll.u32 %v5084_v59, 23  ;;  %v5251_v12 = vsel %vm5247_vm5, %v5231_v4, %v5234_v1  ;;  %v5262_v55 = vsel %vm5248_vm4, %v5259_v57, %v5261_v9  ;;  %v5489_v54 = vsub.s32 0, %v14655_v52 }
 0x542   : > { %v5253_v56 = vsel %vm5249_vm12, %v5237_v44, %v5252_v46  ;;  %v14668_v18 = vmul.u32.u64.low %v5263_v19, %v5262_v55  ;;  %v14669_v40 = vmul.u32.u64.high %v5263_v19, %v5262_v55, %v14668_v18  ;;  %11544 = vcosq.f32 %v5407_v60 }
 0x543   : > { %v5086_v27 = vor.u32 4788187, %v5085_v50  ;;  %v14671_v25 = vmul.u32.u64.low %v5263_v19, %v5258_v28  ;;  %v14672_v41 = vmul.u32.u64.high %v5263_v19, %v5258_v28, %v14671_v25  ;;  %11546 = vsinq.f32 %v5407_v60 }
 0x544   : > { %vm18799_vm5 = vcmp.lt.s32.totalorder %v14581_v11, 4  ;;  %v11045_v44 = vmin.u32 %v5489_v54, %v14655_v52  ;;  %v5089_v38 = vcvt.s32.f32 %v5082_v26  ;;  %v5479_v51 = vadd.s32 %v14563_v34, %v14561_v7 }
 0x545   : > { %v5672_v1 = vsel %vm18799_vm5, %v14587_v6, 920167782  ;;  %vm18800_vm15 = vmmov %vm18799_vm5  ;;  %v5087_v45 = vand.u32 2147483647, %v5086_v27  ;;  %v5254_v9 = vsel %vm5248_vm4, %v5251_v12, %v5253_v56  ;;  %v14690_v60 = vsel %vm18298_vm2, %v5611_v21, %v14610_v32 }
 0x546   : > { %v14680_v4 = vsel %vm18800_vm15, %v5662_v24, 1326507024  ;;  %v14692_v13 = vand.u32 3, %v5100_v36  ;;  %v5491_v29 = vclz %v11045_v44  ;;  %v5631_v24 = vand.u32 2147483647, %v14322_v17 }
 0x547   : > { %v5090_v59 = vmul.f32 %v5089_v38, %v5087_v45  ;;  %vm5272_vm12 = vc.u32 %v14669_v40, %v14671_v25  ;;  %v5273_v46 = vadd.s32 1, %v14672_v41  ;;  %v5649_v31 = vshrl.u32 %v18641_v8, %v14519_v35 }
 0x548   : > { %vm5425_vm4 = vcmp.lt.s32.totalorder %v14278_v3, 0  ;;  %v11046_v7 = vadd.s32 4294967294, %v5491_v29  ;;  %v5509_v34 = vsub.s32 4, %v14634_v43  ;;  %v5270_v32 = vmul.u32 %v5263_v19, %v5254_v9 }
 0x549   : > { %v5648_v21 = vshll.u32 %v18636_v48, %v14497_v5  ;;  %v5091_v36 = vxor.u32 2147483648, %v5090_v59  ;;  %v5274_v28 = vsel %vm5272_vm12, %v5273_v46, %v14672_v41  ;;  %v5651_v57 = vshll.u32 %v18641_v8, %v14497_v5 }
 0x54a   : > { %v5652_v26 = vshrl.u32 %v18642_v61, %v14519_v35  ;;  %vm11047_vm5 = vcmp.lt.s32.totalorder %v11046_v7, 0  ;;  %v5275_v50 = vadd.s32 %v5274_v28, %v5270_v32  ;;  %v5638_v12 = vand.u32 8388607, %v5631_v24 }
 0x54b   : > { %v5655_v19 = vshrl.u32 %v18633_v47, %v14519_v35  ;;  %vm18801_vm15 = vcmp.lt.s32.totalorder %v14062_v63, 0  ;;  %v5494_v54 = vsel %vm11047_vm5, 0, %v11046_v7  ;;  %v5650_v56 = vor.u32 %v5649_v31, %v5648_v21 }
 0x54c   : > { %v5092_v55 = vsel %vm18801_vm15, %v5091_v36, %v5090_v59  ;;  %v5654_v18 = vshll.u32 %v18642_v61, %v14497_v5  ;;  %v18802_v27 = vand.u32 2147483647, %v14218_v37  ;;  %v5495_v45 = vsub.s32 32, %v5494_v54 }
 0x54d   : > { %v5095_v44 = vsel %vm14552_vm0, %v14062_v63, %v5092_v55  ;;  %v5499_v38 = vsub.s32 4294967266, %v5494_v54  ;;  %v5653_v9 = vor.u32 %v5652_v26, %v5651_v57  ;;  %v18805_v29 = vand.u32 2147483647, %v14278_v3 }
 0x54e   : > { %vm14719_vm12 = vcmp.le.f32.partialorder %v18802_v27, 0.7853982  ;;  %11548 = vcosq.f32 %v5095_v44  ;;  %v5276_v5 = vadd.s32 536870912, %v5275_v50  ;;  %v5647_v46 = vshrl.u32 %v18636_v48, %v14519_v35 }
 0x54f   : > { %vm14728_vm5 = vcmp.le.f32.partialorder %v18805_v29, 0.7853982  ;;  %v5656_v31 = vor.u32 %v5655_v19, %v5654_v18  ;;  %11550 = vsinq.f32 %v5095_v44  ;;  %v5496_v7 = vshll.u32 %v14655_v52, %v5494_v54  ;;  %v14739_v28 = vpop.eup %11544 }
 0x550   : > { %v5497_v2 = vshrl.u32 %v5479_v51, %v5495_v45  ;;  %v5500_v32 = vadd.s32 127, %v5499_v38  ;;  %v14735_v21 = vshrl.u32 %v5276_v5, 30  ;;  %v5639_v36 = vor.u32 8388608, %v5638_v12  ;;  %18808 = vst [vmem:[#allocation147_spill] sm:$0xff] %v14739_v28  ;;  %v14743_v19 = vpop.eup %11546 }
 0x551   : > { %vm5663_vm0 = vcmp.lt.s32.totalorder %v14581_v11, 1  ;;  %vm5665_vm15 = vcmp.lt.s32.totalorder %v14581_v11, 3  ;;  %18809 = vst [vmem:[#allocation148_spill] sm:$0xff] %v14743_v19  ;;  %v5510_v52 = vsel %vm5425_vm4, %v5509_v34, %v14634_v43  ;;  %vm5664_vm2 = vcmp.lt.s32.totalorder %v14581_v11, 2 }
 0x552   : > { %v5498_v57 = vor.u32 %v5497_v2, %v5496_v7  ;;  %v5501_v26 = vshll.u32 %v5500_v32, 23  ;;  %v5671_v55 = vsel %vm5663_vm0, %v5650_v56, %v5653_v9  ;;  %v5673_v35 = vsel %vm5665_vm15, %v5656_v31, %v5672_v1 }
 0x553   : > { %v5278_v51 = vshll.u32 %v14735_v21, 30  ;;  %vm18810_vm9 = vcmp.lt.s32.totalorder %v14581_v11, 4  ;;  %v5667_v18 = vsel %vm5663_vm0, %v5647_v46, %v5650_v56  ;;  %v5675_v27 = vsel %vm5663_vm0, %v5653_v9, %v5656_v31 }
 0x554   : > { %v5668_v12 = vsel %vm18810_vm9, %v5656_v31, 2102212464  ;;  %v5502_v54 = vor.u32 4788187, %v5501_v26  ;;  %v5677_v1 = vsel %vm5665_vm15, %v14587_v6, %v14680_v4  ;;  %v5674_v43 = vsel %vm5664_vm2, %v5671_v55, %v5673_v35 }
 0x555   : > { %v14756_v44 = vsub.s32 %v5275_v50, %v5278_v51  ;;  %v5678_v34 = vsel %vm5664_vm2, %v5675_v27, %v5677_v1  ;;  %v5679_v45 = vshll.u32 %v5639_v36, 8  ;;  %v5505_v29 = vcvt.s32.f32 %v5498_v57 }
 0x556   : > { %v5503_v38 = vand.u32 2147483647, %v5502_v54  ;;  %v5669_v56 = vsel %vm5665_vm15, %v5653_v9, %v5668_v12  ;;  %v4989_v5 = vsub.s32 4, %v14102_v62  ;;  %v5615_v6 = vsel %vm14719_vm12, %v14218_v37, %v14690_v60 }
 0x557   : > { %v5281_v4 = vsub.s32 0, %v14756_v44  ;;  %v14770_v50 = vmul.u32.u64.low %v5679_v45, %v5678_v34  ;;  %v14771_v46 = vmul.u32.u64.high %v5679_v45, %v5678_v34, %v14770_v50  ;;  %v14775_v7 = vsel %vm14728_vm5, 0, %v5510_v52 }
 0x558   : > { %v5506_v31 = vmul.f32 %v5505_v29, %v5503_v38  ;;  %18811 = vst [vmem:[#allocation149_spill] sm:$0xff] %v14775_v7  ;;  %v14777_v2 = vmul.u32.u64.low %v5679_v45, %v5674_v43  ;;  %v14778_v32 = vmul.u32.u64.high %v5679_v45, %v5674_v43, %v14777_v2  ;;  %11552 = vsinq.f32 %v14423_v0 }
 0x559   : > { %v11037_v60 = vmin.u32 %v5281_v4, %v14756_v44  ;;  %v5670_v9 = vsel %vm5664_vm2, %v5667_v18, %v5669_v56  ;;  %11554 = vcosq.f32 %v5615_v6  ;;  %vm14788_vm0 = vcmp.le.f32.partialorder %v5215_v39, 0.7853982 }
 0x55a   : > { %v5507_v36 = vxor.u32 2147483648, %v5506_v31  ;;  %vm18814_vm15 = vcmp.lt.s32.totalorder %v13872_v33, 0  ;;  %11556 = vsinq.f32 %v5615_v6  ;;  %v5516_v0 = vadd.s32 3, %v14775_v7 }
 0x55b   : > { %v4990_v26 = vsel %vm18814_vm15, %v4989_v5, %v14102_v62  ;;  %v5283_v55 = vclz %v11037_v60  ;;  %v5301_v35 = vsub.s32 4, %v14735_v21  ;;  %v14797_v11 = vpop.eup %11548  ;;  %v5686_v52 = vmul.u32 %v5679_v45, %v5670_v9 }
 0x55c   : > { %18815 = vst [vmem:[#allocation150_spill] sm:$0xff] %v14797_v11  ;;  %v5508_v39 = vsel %vm5425_vm4, %v5507_v36, %v5506_v31  ;;  %vm5688_vm9 = vc.u32 %v14771_v46, %v14777_v2  ;;  %v5689_v51 = vadd.s32 1, %v14778_v32  ;;  %v14805_v62 = vpop.eup %11550  ;;  %v18307_v12 = vxor.u32 2147483648, %v14797_v11 }
 0x55d   : > { %18816 = vst [vmem:[#allocation151_spill] sm:$0xff] %v14805_v62  ;;  %v5511_v54 = vsel %vm14728_vm5, %v14278_v3, %v5508_v39  ;;  %v11038_v18 = vadd.s32 4294967294, %v5283_v55  ;;  %v14813_v27 = vsel %vm14341_vm1, 0, %v4990_v26  ;;  %v18308_v1 = vxor.u32 2147483648, %v14805_v62 }
 0x55e   : > { %18817 = vst [vmem:[#allocation152_spill] sm:$0xff] %v14813_v27  ;;  %11558 = vcosq.f32 %v5511_v54  ;;  %v5690_v43 = vsel %vm5688_vm9, %v5689_v51, %v14778_v32  ;;  %v5405_v34 = vsub.s32 4, %v14324_v53  ;;  %vm18300_vm4 = vweird.f32 %v14062_v63 }
 0x55f   : > { %vm5103_vm15 = vcmp.eq.s32.totalorder %v14692_v13, 0  ;;  %11560 = vsinq.f32 %v5511_v54  ;;  %vm11039_vm2 = vcmp.lt.s32.totalorder %v11038_v18, 0  ;;  %v5691_v59 = vadd.s32 %v5690_v43, %v5686_v52 }
 0x560   : > { %vm5106_vm5 = vcmp.eq.s32.totalorder %v14692_v13, 2  ;;  %v5286_v45 = vsel %vm11039_vm2, 0, %v11038_v18  ;;  %vm18818_vm1 = vcmp.lt.s32.totalorder %v14090_v49, 0  ;;  %v4996_v38 = vadd.s32 3, %v14813_v27 }
 0x561   : > { %v5302_v14 = vsel %vm18818_vm1, %v5301_v35, %v14735_v21  ;;  %v5271_v29 = vadd.s32 %v14671_v25, %v14669_v40  ;;  %v5287_v56 = vsub.s32 32, %v5286_v45  ;;  %v5291_v5 = vsub.s32 4294967266, %v5286_v45 }
 0x562   : > { %vm18819_vm9 = vcmp.lt.s32.totalorder %v14079_v16, 0  ;;  %v5105_v4 = vsel %vm5103_vm15, %v14797_v11, %v18308_v1  ;;  %v5108_v50 = vsel %vm5106_vm5, %v18307_v12, %v14805_v62  ;;  %v14836_v21 = vand.u32 3, %v5516_v0 }
 0x563   : > { %v5406_v6 = vsel %vm18819_vm9, %v5405_v34, %v14324_v53  ;;  %v5692_v31 = vadd.s32 536870912, %v5691_v59  ;;  %v5288_v32 = vshll.u32 %v14756_v44, %v5286_v45  ;;  %v5289_v40 = vshrl.u32 %v5271_v29, %v5287_v56 }
 0x564   : > { %v5292_v25 = vadd.s32 127, %v5291_v5  ;;  %v14841_v60 = vsel %vm14788_vm0, 0, %v5302_v14  ;;  %v4997_v9 = vand.u32 3, %v4996_v38  ;;  %v18303_v36 = vxor.u32 2147483648, %v14470_v23 }
 0x565   : > { %18820 = vst [vmem:[#allocation153_spill] sm:$0xff] %v14841_v60  ;;  %v5693_v53 = vshrl.u32 %v5692_v31, 30  ;;  %v14846_v26 = vsel %vm14569_vm8, 0, %v5406_v6  ;;  %vm18822_vm15 = vcmp.lt.s32.totalorder %v14692_v13, 2  ;;  %v5290_v44 = vor.u32 %v5289_v40, %v5288_v32  ;;  %v14852_v39 = vpop.eup %11552 }
 0x566   : > { %18821 = vst [vmem:[#allocation154_spill] sm:$0xff] %v14846_v26  ;;  %v5109_v0 = vsel %vm18822_vm15, %v5105_v4, %v5108_v50  ;;  %v5293_v55 = vshll.u32 %v5292_v25, 23  ;;  %v5412_v35 = vadd.s32 3, %v14846_v26  ;;  %18823 = vst [vmem:[#allocation155_spill] sm:$0xff] %v14852_v39  ;;  %vm5522_vm1 = vcmp.eq.s32.totalorder %v14836_v21, 2  ;;  %v14860_v54 = vpop.eup %11554  ;;  %v18830_v25 = vld [vmem:[#allocation122_spill] sm:$0xff] }
 0x567   : > { %v14857_v52 = vadd.s32 3, %v14841_v60  ;;  %v5694_v30 = vshll.u32 %v5693_v53, 30  ;;  %v18302_v51 = vxor.u32 2147483648, %v14743_v19  ;;  %18824 = vst [vmem:[#allocation156_spill] sm:$0xff] %v14860_v54  ;;  %v18304_v18 = vxor.u32 2147483648, %v14462_v22  ;;  %v14865_v45 = vpop.eup %11556  ;;  %v18896_v26 = vld [vmem:[#allocation134_spill] sm:$0xff] }
 0x568   : > { %v5294_v13 = vor.u32 4788187, %v5293_v55  ;;  %v5413_v43 = vand.u32 3, %v5412_v35  ;;  %v18301_v34 = vxor.u32 2147483648, %v14739_v28  ;;  %18825 = vst [vmem:[#allocation157_spill] sm:$0xff] %v14865_v45  ;;  %v14869_v14 = vsel %vm18300_vm4, nan, %v5109_v0 }
 0x569   : > { %18826 = vst [vmem:[#allocation158_spill] sm:$0xff] %v14869_v14  ;;  %vm14874_vm15 = vcmp.le.f32.partialorder %v5631_v24, 0.7853982  ;;  %v14878_v29 = vsub.s32 %v5691_v59, %v5694_v30  ;;  %vm4999_vm8 = vcmp.eq.s32.totalorder %v4997_v9, 0  ;;  %v5197_v56 = vsub.s32 4, %v14215_v15  ;;  %v18833_v55 = vld [vmem:[#allocation81_spill] sm:$0xff] }
 0x56a   : > { %v5295_v5 = vand.u32 2147483647, %v5294_v13  ;;  %v5297_v6 = vcvt.s32.f32 %v5290_v44  ;;  %v5001_v4 = vsel %vm4999_vm8, %v14462_v22, %v18303_v36  ;;  %vm5415_vm4 = vcmp.eq.s32.totalorder %v5413_v43, 0 }
 0x56b   : > { %v5697_v50 = vsub.s32 0, %v14878_v29  ;;  %v5717_v24 = vsub.s32 4, %v5693_v53  ;;  %v5417_v59 = vsel %vm5415_vm4, %v14739_v28, %v18302_v51  ;;  %vm5418_vm9 = vcmp.eq.s32.totalorder %v5413_v43, 2  ;;  %v14889_v31 = vpop.eup %11558  ;;  %v18877_v28 = vld [vmem:[#allocation123_spill] sm:$0xff] }
 0x56c   : > { %18829 = vst [vmem:[#allocation159_spill] sm:$0xff] %v14889_v31  ;;  %v5298_v32 = vmul.f32 %v5297_v6, %v5295_v5  ;;  %vm5002_vm2 = vcmp.eq.s32.totalorder %v4997_v9, 2  ;;  %v5420_v40 = vsel %vm5418_vm9, %v18301_v34, %v14743_v19  ;;  %vm18831_vm8 = vcmp.lt.s32.totalorder %v18830_v25, 0  ;;  %v14897_v44 = vpop.eup %11560 }
 0x56d   : > { %v5198_v0 = vsel %vm18831_vm8, %v5197_v56, %v14215_v15  ;;  %18832 = vst [vmem:[#allocation122_spill] sm:$0xff] %v14897_v44  ;;  %v18305_v35 = vxor.u32 2147483648, %v14889_v31  ;;  %v11053_v30 = vmin.u32 %v5697_v50, %v14878_v29  ;;  %v5004_v13 = vsel %vm5002_vm2, %v18304_v18, %v14470_v23  ;;  %v18852_v18 = vld [vmem:[#allocation138_spill] sm:$0xff] }
 0x56e   : > { %vm5414_vm4 = vcmp.lt.s32.totalorder %v5413_v43, 2  ;;  %v18306_v5 = vxor.u32 2147483648, %v14897_v44  ;;  %v5299_v6 = vxor.u32 2147483648, %v5298_v32  ;;  %vm4998_vm9 = vcmp.lt.s32.totalorder %v4997_v9, 2 }
 0x56f   : > { %v5421_v34 = vsel %vm5414_vm4, %v5417_v59, %v5420_v40  ;;  %v5524_v15 = vsel %vm5522_vm1, %v18305_v35, %v14897_v44  ;;  %v5699_v56 = vclz %v11053_v30  ;;  %vm18834_vm8 = vcmp.lt.s32.totalorder %v14322_v17, 0 }
 0x570   : > { %v5718_v50 = vsel %vm18834_vm8, %v5717_v24, %v5693_v53  ;;  %v14915_v36 = vsel %vm14364_vm13, 0, %v5198_v0  ;;  %vm18837_vm2 = vcmp.eq.s32.totalorder %v14836_v21, 0  ;;  %vm18838_vm4 = vcmp.lt.s32.totalorder %v14090_v49, 0 }
 0x571   : > { %18836 = vst [vmem:[#allocation141_spill] sm:$0xff] %v14915_v36  ;;  %v5521_v9 = vsel %vm18837_vm2, %v14889_v31, %v18306_v5  ;;  %v5300_v43 = vsel %vm18838_vm4, %v5299_v6, %v5298_v32  ;;  %v5005_v59 = vsel %vm4998_vm9, %v5001_v4, %v5004_v13  ;;  %vm18318_vm1 = vweird.f32 %v14079_v16  ;;  %v18844_v32 = vld [vmem:[#allocation142_spill] sm:$0xff] }
 0x572   : > { %vm18839_vm5 = vcmp.lt.s32.totalorder %v14836_v21, 2  ;;  %v5303_v53 = vsel %vm14788_vm0, %v14090_v49, %v5300_v43  ;;  %v11054_v51 = vadd.s32 4294967294, %v5699_v56  ;;  %v14932_v24 = vsel %vm18318_vm1, nan, %v5421_v34 }
 0x573   : > { %v5525_v40 = vsel %vm18839_vm5, %v5521_v9, %v5524_v15  ;;  %18840 = vst [vmem:[#allocation160_spill] sm:$0xff] %v14932_v24  ;;  %vm18841_vm13 = vweird.f32 %v14278_v3  ;;  %v14940_v4 = vsel %vm14874_vm15, 0, %v5718_v50  ;;  %v5204_v21 = vadd.s32 3, %v14915_v36 }
 0x574   : > { %v14936_v0 = vsel %vm18841_vm13, nan, %v5525_v40  ;;  %18843 = vst [vmem:[#allocation162_spill] sm:$0xff] %v14940_v4  ;;  %v5613_v30 = vsub.s32 4, %v18844_v32  ;;  %11562 = vcosq.f32 %v5303_v53  ;;  %vm11055_vm0 = vcmp.lt.s32.totalorder %v11054_v51, 0  ;;  %v18848_v40 = vld [vmem:[#allocation133_spill] sm:$0xff] }
 0x575   : > { %18842 = vst [vmem:[#allocation161_spill] sm:$0xff] %v14936_v0  ;;  %v9205_v57 = vpack.c.bf16 %v14936_v0, %v14869_v14  ;;  %vm18845_vm5 = vweird.f32 %v13872_v33  ;;  %11564 = vsinq.f32 %v5303_v53  ;;  %v5702_v13 = vsel %vm11055_vm0, 0, %v11054_v51  ;;  %v18851_v51 = vld [vmem:[#allocation136_spill] sm:$0xff] }
 0x576   : > { %v14948_v34 = vsel %vm18845_vm5, nan, %v5005_v59  ;;  %vm18847_vm9 = vcmp.lt.s32.totalorder %v14218_v37, 0  ;;  %v5687_v56 = vadd.s32 %v14777_v2, %v14771_v46  ;;  %v5703_v50 = vsub.s32 32, %v5702_v13  ;;  %v18854_v2 = vld [vmem:[#allocation140_spill] sm:$0xff] }
 0x577   : > { %18846 = vst [vmem:[#allocation142_spill] sm:$0xff] %v14948_v34  ;;  %v9204_v6 = vpack.c.bf16 %v14932_v24, %v14948_v34  ;;  %v5614_v15 = vsel %vm18847_vm9, %v5613_v30, %v18844_v32  ;;  %9248 = vmatprep.subr.bf16.mxu0 %v9205_v57  ;;  %v5707_v9 = vsub.s32 4294967266, %v5702_v13  ;;  %v5724_v43 = vadd.s32 3, %v14940_v4  ;;  %v18856_v57 = vld [vmem:[#allocation135_spill] sm:$0xff] }
 0x578   : > { %v18849_v59 = vxor.u32 2147483648, %v18848_v40  ;;  %vm18850_vm8 = vcmp.lt.s32.totalorder %v18833_v55, 0  ;;  %v14967_v35 = vor.u32 %v18852_v18, %v18851_v51  ;;  %v5205_v32 = vand.u32 3, %v5204_v21 }
 0x579   : > { %9249 = vmatpush1.bf16.msra.mxu0 %v9204_v6  ;;  %v14971_v46 = vsel %vm14719_vm12, 0, %v5614_v15  ;;  %v18855_v30 = vand.u32 2147483647, %v18854_v2  ;;  %v18857_v5 = vcvt.s32.f32 %v18856_v57  ;;  %v5704_v1 = vshll.u32 %v14878_v29, %v5702_v13  ;;  %v18858_v2 = vld [vmem:[#allocation79_spill] sm:$0xff]  ;;  %v18859_v13 = vld [vmem:[#allocation106_spill] sm:$0xff] }
 0x57a   : > { %v14963_v53 = vsel %vm18850_vm8, %v18849_v59, %v18848_v40  ;;  %18853 = vst [vmem:[#allocation133_spill] sm:$0xff] %v14971_v46  ;;  %v5705_v40 = vshrl.u32 %v5687_v56, %v5703_v50  ;;  %v5708_v59 = vadd.s32 127, %v5707_v9  ;;  %v14981_v24 = vand.u32 3, %v14857_v52  ;;  %v18860_v9 = vld [vmem:[#allocation103_spill] sm:$0xff] }
 0x57b   : > { %v14977_v12 = vmul.f32 %v18857_v5, %v18855_v30  ;;  %v18315_v18 = vxor.u32 2147483648, %v14852_v39  ;;  %v18316_v21 = vxor.u32 2147483648, %v14650_v10  ;;  %v5620_v41 = vadd.s32 3, %v14971_v46 }
 0x57c   : > { %v5706_v6 = vor.u32 %v5705_v40, %v5704_v1  ;;  %v5709_v15 = vshll.u32 %v5708_v59, 23  ;;  %v14986_v51 = vand.u32 3, %v5724_v43  ;;  %v18317_v5 = vand.u32 2147483647, %v18858_v2 }
 0x57d   : > { %vm5207_vm12 = vcmp.eq.s32.totalorder %v5205_v32, 0  ;;  %vm5210_vm2 = vcmp.eq.s32.totalorder %v5205_v32, 2  ;;  %v4193_v52 = vshrl.u32 %v18641_v8, %v18859_v13  ;;  %v5621_v50 = vand.u32 3, %v5620_v41 }
 0x57e   : > { %v5710_v56 = vor.u32 4788187, %v5709_v15  ;;  %v4192_v30 = vshll.u32 %v18636_v48, %v18860_v9  ;;  %v4196_v1 = vshrl.u32 %v18642_v61, %v18859_v13  ;;  %vm5206_vm4 = vcmp.lt.s32.totalorder %v5205_v32, 2 }
 0x57f   : > { %v5209_v43 = vsel %vm5207_vm12, %v14650_v10, %v18315_v18  ;;  %v5212_v57 = vsel %vm5210_vm2, %v18316_v21, %v14852_v39  ;;  %v4195_v40 = vshll.u32 %v18641_v8, %v18860_v9  ;;  %v5713_v41 = vcvt.s32.f32 %v5706_v6  ;;  %v18869_v10 = vld [vmem:[#allocation113_spill] sm:$0xff] }
 0x580   : > { %v5711_v59 = vand.u32 2147483647, %v5710_v56  ;;  %v4182_v15 = vand.u32 8388607, %v18317_v5  ;;  %v4194_v29 = vor.u32 %v4193_v52, %v4192_v30  ;;  %v18323_v34 = vxor.u32 2147483648, %v14860_v54  ;;  %v18862_v30 = vld [vmem:[#allocation110_spill] sm:$0xff] }
 0x581   : > { %v4197_v32 = vor.u32 %v4196_v1, %v4195_v40  ;;  %v4198_v0 = vshll.u32 %v18642_v61, %v18860_v9  ;;  %v4199_v18 = vshrl.u32 %v18633_v47, %v18859_v13  ;;  %vm5311_vm13 = vcmp.eq.s32.totalorder %v14981_v24, 0  ;;  %v15018_v52 = vpop.eup %11562 }
 0x582   : > { %vm5314_vm0 = vcmp.eq.s32.totalorder %v14981_v24, 2  ;;  %v5714_v21 = vmul.f32 %v5713_v41, %v5711_v59  ;;  %v15013_v56 = vsel %vm5206_vm4, %v5209_v43, %v5212_v57  ;;  %vm5622_vm9 = vcmp.lt.s32.totalorder %v5621_v50, 2  ;;  %18861 = vst [vmem:[#allocation136_spill] sm:$0xff] %v15018_v52  ;;  %v15021_v1 = vpop.eup %11564 }
 0x583   : > { %v4191_v6 = vshrl.u32 %v18636_v48, %v18859_v13  ;;  %vm5623_vm8 = vcmp.eq.s32.totalorder %v5621_v50, 0  ;;  %vm5626_vm12 = vcmp.eq.s32.totalorder %v5621_v50, 2  ;;  %v4200_v9 = vor.u32 %v4199_v18, %v4198_v0  ;;  %18863 = vst [vmem:[#allocation138_spill] sm:$0xff] %v15021_v1  ;;  %v18865_v0 = vld [vmem:[#allocation117_spill] sm:$0xff] }
 0x584   : > { %vm4207_vm2 = vcmp.lt.s32.totalorder %v18862_v30, 1  ;;  %v5715_v40 = vxor.u32 2147483648, %v5714_v21  ;;  %v4183_v5 = vor.u32 8388608, %v4182_v15  ;;  %vm4209_vm4 = vcmp.lt.s32.totalorder %v18862_v30, 3 }
 0x585   : > { %v4215_v43 = vsel %vm4207_vm2, %v4194_v29, %v4197_v32  ;;  %v18864_v57 = vxor.u32 2147483648, %v14865_v45  ;;  %v5628_v59 = vsel %vm5626_vm12, %v18323_v34, %v14865_v45  ;;  %v4217_v18 = vsel %vm4209_vm4, %v4200_v9, %v18865_v0  ;;  %v18868_v45 = vld [vmem:[#allocation118_spill] sm:$0xff] }
 0x586   : > { %v4219_v41 = vsel %vm4207_vm2, %v4197_v32, %v4200_v9  ;;  %vm18866_vm1 = vcmp.lt.s32.totalorder %v14322_v17, 0  ;;  %vm4208_vm5 = vcmp.lt.s32.totalorder %v18862_v30, 2  ;;  %v4221_v15 = vsel %vm4209_vm4, %v18869_v10, %v18868_v45 }
 0x587   : > { %v5625_v13 = vsel %vm5623_vm8, %v14860_v54, %v18864_v57  ;;  %v5716_v14 = vsel %vm18866_vm1, %v5715_v40, %v5714_v21  ;;  %vm18867_vm8 = vcmp.lt.s32.totalorder %v18862_v30, 4  ;;  %v4218_v0 = vsel %vm4208_vm5, %v4215_v43, %v4217_v18  ;;  %v18870_v43 = vld [vmem:[#allocation101_spill] sm:$0xff] }
 0x588   : > { %v4212_v57 = vsel %vm18867_vm8, %v4200_v9, 2102212464  ;;  %v5719_v34 = vsel %vm14874_vm15, %v14322_v17, %v5716_v14  ;;  %v5629_v21 = vsel %vm5622_vm9, %v5625_v13, %v5628_v59  ;;  %v4222_v9 = vsel %vm4208_vm5, %v4219_v41, %v4221_v15  ;;  %v18875_v59 = vld [vmem:[#allocation124_spill] sm:$0xff]  ;;  %v18876_v15 = vld [vmem:[#allocation127_spill] sm:$0xff] }
 0x589   : > { %11566 = vcosq.f32 %v5719_v34  ;;  %v4223_v40 = vshll.u32 %v4183_v5, 8  ;;  %vm5310_vm1 = vcmp.lt.s32.totalorder %v14981_v24, 2  ;;  %v4211_v14 = vsel %vm4207_vm2, %v4191_v6, %v4194_v29 }
 0x58a   : > { %11568 = vsinq.f32 %v5719_v34  ;;  %v4213_v38 = vsel %vm4209_vm4, %v4197_v32, %v4212_v57  ;;  %v18328_v18 = vand.u32 2147483647, %v18870_v43  ;;  %v18871_v5 = vxor.u32 2147483648, %v15021_v1 }
 0x58b   : > { %v15062_v54 = vmul.u32.u64.low %v4223_v40, %v4222_v9  ;;  %v15063_v10 = vmul.u32.u64.high %v4223_v40, %v4222_v9, %v15062_v54  ;;  %v15065_v45 = vmul.u32.u64.low %v4223_v40, %v4218_v0  ;;  %v15066_v50 = vmul.u32.u64.high %v4223_v40, %v4218_v0, %v15065_v45 }
 0x58c   : > { %v5313_v34 = vsel %vm5311_vm13, %v15018_v52, %v18871_v5  ;;  %v18872_v29 = vxor.u32 2147483648, %v15018_v52  ;;  %vm18873_vm15 = vweird.f32 %v14218_v37  ;;  %v4598_v54 = vand.u32 8388607, %v18328_v18 }
 0x58d   : > { %v15081_v6 = vsel %vm18873_vm15, nan, %v5629_v21  ;;  %v4214_v13 = vsel %vm4208_vm5, %v4211_v14, %v4213_v38  ;;  %v4608_v41 = vshll.u32 %v18636_v48, %v18875_v59  ;;  %v4609_v57 = vshrl.u32 %v18641_v8, %v18876_v15 }
 0x58e   : > { %v5316_v32 = vsel %vm5314_vm0, %v18872_v29, %v15021_v1  ;;  %18874 = vst [vmem:[#allocation140_spill] sm:$0xff] %v15081_v6  ;;  %v4612_v0 = vshrl.u32 %v18642_v61, %v18876_v15  ;;  %v4607_v9 = vshrl.u32 %v18636_v48, %v18876_v15  ;;  %v4611_v21 = vshll.u32 %v18641_v8, %v18875_v59 }
 0x58f   : > { %v4614_v5 = vshll.u32 %v18642_v61, %v18875_v59  ;;  %v4615_v30 = vshrl.u32 %v18633_v47, %v18876_v15  ;;  %vm18354_vm13 = vweird.f32 %v14090_v49  ;;  %vm4232_vm0 = vc.u32 %v15063_v10, %v15065_v45  ;;  %v18878_v59 = vld [vmem:[#allocation131_spill] sm:$0xff]  ;;  %v18879_v15 = vld [vmem:[#allocation2_spill] sm:$0xff] }
 0x590   : > { %v4233_v14 = vadd.s32 1, %v15066_v50  ;;  %v4599_v38 = vor.u32 8388608, %v4598_v54  ;;  %v4610_v29 = vor.u32 %v4609_v57, %v4608_v41  ;;  %v4230_v18 = vmul.u32 %v4223_v40, %v4214_v13  ;;  %v18881_v13 = vld [vmem:[#allocation130_spill] sm:$0xff] }
 0x591   : > { %v4613_v39 = vor.u32 %v4612_v0, %v4611_v21  ;;  %v4616_v46 = vor.u32 %v4615_v30, %v4614_v5  ;;  %vm4625_vm5 = vcmp.lt.s32.totalorder %v18877_v28, 3  ;;  %vm4623_vm9 = vcmp.lt.s32.totalorder %v18877_v28, 1 }
 0x592   : > { %v4234_v19 = vsel %vm4232_vm0, %v4233_v14, %v15066_v50  ;;  %vm4624_vm12 = vcmp.lt.s32.totalorder %v18877_v28, 2  ;;  %v4637_v36 = vsel %vm4625_vm5, %v18879_v15, %v18878_v59  ;;  %vm18880_vm2 = vcmp.lt.s32.totalorder %v18877_v28, 4 }
 0x593   : > { %v4235_v22 = vadd.s32 %v4234_v19, %v4230_v18  ;;  %v4628_v54 = vsel %vm18880_vm2, %v4616_v46, 2102212464  ;;  %v4631_v40 = vsel %vm4623_vm9, %v4610_v29, %v4613_v39  ;;  %v4633_v41 = vsel %vm4625_vm5, %v4616_v46, %v18881_v13 }
 0x594   : > { %v5317_v50 = vsel %vm5310_vm1, %v5313_v34, %v5316_v32  ;;  %vm18353_vm4 = vweird.f32 %v14322_v17  ;;  %v4634_v57 = vsel %vm4624_vm12, %v4631_v40, %v4633_v41  ;;  %v4635_v0 = vsel %vm4623_vm9, %v4613_v39, %v4616_v46 }
 0x595   : > { %v4639_v21 = vshll.u32 %v4599_v38, 8  ;;  %v4236_v5 = vadd.s32 536870912, %v4235_v22  ;;  %v4627_v19 = vsel %vm4623_vm9, %v4607_v9, %v4610_v29  ;;  %v4629_v18 = vsel %vm4625_vm5, %v4613_v39, %v4628_v54 }
 0x596   : > { %v4638_v30 = vsel %vm4624_vm12, %v4635_v0, %v4637_v36  ;;  %v15134_v32 = vpop.eup %11566  ;;  %v18883_v46 = vand.u32 2147483647, %v18833_v55  ;;  %vm5726_vm1 = vcmp.lt.s32.totalorder %v14986_v51, 2  ;;  %vm5727_vm15 = vcmp.eq.s32.totalorder %v14986_v51, 0 }
 0x597   : > { %v15127_v14 = vmul.u32.u64.low %v4639_v21, %v4638_v30  ;;  %v15128_v59 = vmul.u32.u64.high %v4639_v21, %v4638_v30, %v15127_v14  ;;  %v15130_v24 = vmul.u32.u64.low %v4639_v21, %v4634_v57  ;;  %v15131_v34 = vmul.u32.u64.high %v4639_v21, %v4634_v57, %v15130_v24  ;;  %18882 = vst [vmem:[#allocation135_spill] sm:$0xff] %v15134_v32  ;;  %v15147_v39 = vpop.eup %11568 }
 0x598   : > { %vm15138_vm8 = vcmp.le.f32.partialorder %v18883_v46, 0.7853982  ;;  %vm18352_vm0 = vweird.f32 %v18830_v25  ;;  %v15145_v36 = vshrl.u32 %v4236_v5, 30  ;;  %18886 = vst [vmem:[#allocation79_spill] sm:$0xff] %v15147_v39  ;;  %vm5730_vm5 = vcmp.eq.s32.totalorder %v14986_v51, 2 }
 0x599   : > { %v18339_v9 = vxor.u32 2147483648, %v15134_v32  ;;  %v15154_v29 = vsel %vm18352_vm0, nan, %v15013_v56  ;;  %v4630_v15 = vsel %vm4624_vm12, %v4627_v19, %v4629_v18  ;;  %v15160_v54 = vsel %vm18354_vm13, nan, %v5317_v50  ;;  %v18889_v56 = vld [vmem:[#allocation80_spill] sm:$0xff]  ;;  %v18890_v18 = vld [vmem:[#allocation107_spill] sm:$0xff] }
 0x59a   : > { %18887 = vst [vmem:[#allocation106_spill] sm:$0xff] %v15154_v29  ;;  %18888 = vst [vmem:[#allocation103_spill] sm:$0xff] %v15160_v54  ;;  %v18342_v40 = vxor.u32 2147483648, %v15147_v39  ;;  %v9206_v13 = vpack.c.bf16 %v15081_v6, %v15154_v29  ;;  %v4238_v41 = vshll.u32 %v15145_v36, 30  ;;  %vm4648_vm9 = vc.u32 %v15128_v59, %v15130_v24 }
 0x59b   : > { %v5732_v57 = vsel %vm5730_vm5, %v18339_v9, %v15147_v39  ;;  %v4649_v28 = vadd.s32 1, %v15131_v34  ;;  %v4646_v19 = vmul.u32 %v4639_v21, %v4630_v15  ;;  %v4401_v30 = vshrl.u32 %v18641_v8, %v18890_v18  ;;  %v18891_v9 = vld [vmem:[#allocation104_spill] sm:$0xff] }
 0x59c   : > { %v5729_v50 = vsel %vm5727_vm15, %v15134_v32, %v18342_v40  ;;  %v15178_v5 = vsub.s32 %v4235_v22, %v4238_v41  ;;  %vm4177_vm12 = vcmp.lt.s32.totalorder %v18858_v2, 0  ;;  %v4400_v0 = vshll.u32 %v18636_v48, %v18891_v9 }
 0x59d   : > { %v5733_v14 = vsel %vm5726_vm1, %v5729_v50, %v5732_v57  ;;  %v4650_v46 = vsel %vm4648_vm9, %v4649_v28, %v15131_v34  ;;  %v4404_v29 = vshrl.u32 %v18642_v61, %v18890_v18  ;;  %v4403_v41 = vshll.u32 %v18641_v8, %v18891_v9 }
 0x59e   : > { %v15192_v22 = vsel %vm18353_vm4, nan, %v5733_v14  ;;  %v4241_v21 = vsub.s32 0, %v15178_v5  ;;  %v4651_v15 = vadd.s32 %v4650_v46, %v4646_v19  ;;  %v18893_v34 = vand.u32 2147483647, %v18889_v56 }
 0x59f   : > { %18892 = vst [vmem:[#allocation110_spill] sm:$0xff] %v15192_v22  ;;  %v9207_v51 = vpack.c.bf16 %v15192_v22, %v15160_v54  ;;  %v4406_v28 = vshll.u32 %v18642_v61, %v18891_v9  ;;  %v4407_v50 = vshrl.u32 %v18633_v47, %v18890_v18  ;;  %v4402_v6 = vor.u32 %v4401_v30, %v4400_v0  ;;  %v18894_v54 = vld [vmem:[#allocation137_spill] sm:$0xff] }
 0x5a0   : > { %v4390_v57 = vand.u32 8388607, %v18893_v34  ;;  %v10997_v14 = vmin.u32 %v4241_v21, %v15178_v5  ;;  %v4652_v40 = vadd.s32 536870912, %v4651_v15  ;;  %v4405_v19 = vor.u32 %v4404_v29, %v4403_v41  ;;  %v18895_v34 = vld [vmem:[#allocation139_spill] sm:$0xff] }
 0x5a1   : > { %v4575_v46 = vsel %vm15138_vm8, %v18833_v55, %v14963_v53  ;;  %v4779_v22 = vxor.u32 2147483648, %v14977_v12  ;;  %v4830_v23 = vor.u32 %v18895_v34, %v18894_v54  ;;  %9321 = vmatprep.subr.bf16.mxu1 %v9207_v51  ;;  %v4408_v9 = vor.u32 %v4407_v50, %v4406_v28  ;;  %v18900_v51 = vld [vmem:[#allocation114_spill] sm:$0xff]  ;;  %v18902_v34 = vld [vmem:[#allocation119_spill] sm:$0xff] }
 0x5a2   : > { %vm4834_vm2 = vcmp.lt.s32.totalorder %v18896_v26, 4  ;;  %9322 = vmatpush1.bf16.msra.mxu1 %v9206_v13  ;;  %v18897_v21 = vand.u32 2147483647, %v18858_v2  ;;  %v4231_v29 = vadd.s32 %v15065_v45, %v15063_v10  ;;  %v4243_v53 = vclz %v10997_v14  ;;  %v18901_v13 = vld [vmem:[#allocation98_spill] sm:$0xff]  ;;  %v18904_v14 = vld [vmem:[#allocation121_spill] sm:$0xff] }
 0x5a3   : > { %v4261_v30 = vsub.s32 4, %v15145_v36  ;;  %v15223_v41 = vshrl.u32 %v4652_v40, 30  ;;  %v4391_v54 = vor.u32 8388608, %v4390_v57  ;;  %vm4415_vm15 = vcmp.lt.s32.totalorder %v18900_v51, 1 }
 0x5a4   : > { %vm15216_vm1 = vcmp.le.f32.partialorder %v18897_v21, 0.7853982  ;;  %vm4417_vm5 = vcmp.lt.s32.totalorder %v18900_v51, 3  ;;  %vm18373_vm9 = vcmp.lt.s32.totalorder %v18901_v13, 0  ;;  %v10998_v28 = vadd.s32 4294967294, %v4243_v53  ;;  %v18905_v21 = vld [vmem:[#allocation115_spill] sm:$0xff] }
 0x5a5   : > { %v4423_v50 = vsel %vm4415_vm15, %v4402_v6, %v4405_v19  ;;  %v4425_v10 = vsel %vm4417_vm5, %v4408_v9, %v18902_v34  ;;  %v4427_v45 = vsel %vm4415_vm15, %v4405_v19, %v4408_v9  ;;  %v4654_v40 = vshll.u32 %v15223_v41, 30 }
 0x5a6   : > { %vm4416_vm0 = vcmp.lt.s32.totalorder %v18900_v51, 2  ;;  %vm18903_vm4 = vcmp.lt.s32.totalorder %v18900_v51, 4  ;;  %v4429_v53 = vsel %vm4417_vm5, %v18905_v21, %v18904_v14  ;;  %vm10999_vm13 = vcmp.lt.s32.totalorder %v10998_v28, 0 }
 0x5a7   : > { %v4420_v57 = vsel %vm18903_vm4, %v4408_v9, 2102212464  ;;  %v4262_v34 = vsel %vm4177_vm12, %v4261_v30, %v15145_v36  ;;  %v4399_v32 = vshrl.u32 %v18636_v48, %v18890_v18  ;;  %v4430_v39 = vsel %vm4416_vm0, %v4427_v45, %v4429_v53 }
 0x5a8   : > { %v4246_v52 = vsel %vm10999_vm13, 0, %v10998_v28  ;;  %v15250_v1 = vsub.s32 %v4651_v15, %v4654_v40  ;;  %v4426_v9 = vsel %vm4416_vm0, %v4423_v50, %v4425_v10  ;;  %v4431_v31 = vshll.u32 %v4391_v54, 8  ;;  %v18906_v54 = vld [vmem:[#allocation120_spill] sm:$0xff] }
 0x5a9   : > { %v4247_v44 = vsub.s32 32, %v4246_v52  ;;  %v4251_v14 = vsub.s32 4294967266, %v4246_v52  ;;  %v4419_v21 = vsel %vm4415_vm15, %v4399_v32, %v4402_v6  ;;  %v4421_v36 = vsel %vm4417_vm5, %v4405_v19, %v4420_v57 }
 0x5aa   : > { %v4248_v18 = vshll.u32 %v15178_v5, %v4246_v52  ;;  %v4657_v30 = vsub.s32 0, %v15250_v1  ;;  %v15260_v45 = vmul.u32.u64.low %v4431_v31, %v4430_v39  ;;  %v15261_v28 = vmul.u32.u64.high %v4431_v31, %v4430_v39, %v15260_v45 }
 0x5ab   : > { %v4249_v15 = vshrl.u32 %v4231_v29, %v4247_v44  ;;  %v4252_v40 = vadd.s32 127, %v4251_v14  ;;  %v15263_v53 = vmul.u32.u64.low %v4431_v31, %v4426_v9  ;;  %v15264_v50 = vmul.u32.u64.high %v4431_v31, %v4426_v9, %v15263_v53  ;;  %v18908_v9 = vld [vmem:[#allocation116_spill] sm:$0xff] }
 0x5ac   : > { %11570 = vsinq.f32 %v18906_v54  ;;  %v15271_v6 = vsel %vm4834_vm2, %v14967_v35, 920167782  ;;  %v15275_v52 = vsel %vm15216_vm1, 0, %v4262_v34  ;;  %v11013_v32 = vmin.u32 %v4657_v30, %v15250_v1 }
 0x5ad   : > { %18907 = vst [vmem:[#allocation117_spill] sm:$0xff] %v15275_v52  ;;  %11572 = vcosq.f32 %v4575_v46  ;;  %v15280_v44 = vsel %vm4834_vm2, %v4830_v23, 1326507024  ;;  %v4250_v39 = vor.u32 %v4249_v15, %v4248_v18  ;;  %v4253_v5 = vshll.u32 %v4252_v40, 23 }
 0x5ae   : > { %11574 = vsinq.f32 %v4575_v46  ;;  %v15285_v19 = vsel %vm18373_vm9, %v4779_v22, %v14977_v12  ;;  %vm4593_vm13 = vcmp.lt.s32.totalorder %v18870_v43, 0  ;;  %v4659_v29 = vclz %v11013_v32 }
 0x5af   : > { %v4422_v10 = vsel %vm4416_vm0, %v4419_v21, %v4421_v36  ;;  %v4254_v57 = vor.u32 4788187, %v4253_v5  ;;  %v15291_v34 = vadd.s32 3, %v15275_v52  ;;  %v4647_v23 = vadd.s32 %v15130_v24, %v15128_v59  ;;  %v18909_v36 = vld [vmem:[#allocation132_spill] sm:$0xff]  ;;  %v18910_v59 = vld [vmem:[#allocation129_spill] sm:$0xff] }
 0x5b0   : > { %vm4440_vm4 = vc.u32 %v15261_v28, %v15263_v53  ;;  %v11014_v46 = vadd.s32 4294967294, %v4659_v29  ;;  %v4677_v12 = vsub.s32 4, %v15223_v41  ;;  %v4441_v22 = vadd.s32 1, %v15264_v50 }
 0x5b1   : > { %v18367_v14 = vand.u32 2147483647, %v18908_v9  ;;  %v4255_v18 = vand.u32 2147483647, %v4254_v57  ;;  %v4257_v51 = vcvt.s32.f32 %v4250_v39  ;;  %v4438_v21 = vmul.u32 %v4431_v31, %v4422_v10 }
 0x5b2   : > { %v4817_v30 = vshrl.u32 %v18641_v8, %v18909_v36  ;;  %vm11015_vm0 = vcmp.lt.s32.totalorder %v11014_v46, 0  ;;  %v4442_v45 = vsel %vm4440_vm4, %v4441_v22, %v15264_v50  ;;  %v4816_v24 = vshll.u32 %v18636_v48, %v18910_v59 }
 0x5b3   : > { %v4820_v15 = vshrl.u32 %v18642_v61, %v18909_v36  ;;  %v4258_v40 = vmul.f32 %v4257_v51, %v4255_v18  ;;  %v4662_v54 = vsel %vm11015_vm0, 0, %v11014_v46  ;;  %v4443_v32 = vadd.s32 %v4442_v45, %v4438_v21 }
 0x5b4   : > { %v4823_v5 = vshrl.u32 %v18633_v47, %v18909_v36  ;;  %v4663_v39 = vsub.s32 32, %v4662_v54  ;;  %v4667_v31 = vsub.s32 4294967266, %v4662_v54  ;;  %v4806_v29 = vand.u32 8388607, %v18367_v14 }
 0x5b5   : > { %v4819_v50 = vshll.u32 %v18641_v8, %v18910_v59  ;;  %v18911_v10 = vand.u32 2147483647, %v18901_v13  ;;  %v4259_v22 = vxor.u32 2147483648, %v4258_v40  ;;  %v18914_v46 = vand.u32 2147483647, %v18870_v43 }
 0x5b6   : > { %v4444_v51 = vadd.s32 536870912, %v4443_v32  ;;  %v4818_v21 = vor.u32 %v4817_v30, %v4816_v24  ;;  %v4822_v45 = vshll.u32 %v18642_v61, %v18910_v59  ;;  %v4664_v14 = vshll.u32 %v15250_v1, %v4662_v54 }
 0x5b7   : > { %vm15315_vm15 = vcmp.le.f32.partialorder %v18911_v10, 0.7853982  ;;  %vm15321_vm5 = vcmp.le.f32.partialorder %v18914_v46, 0.7853982  ;;  %v4665_v52 = vshrl.u32 %v4647_v23, %v4663_v39  ;;  %v4668_v27 = vadd.s32 127, %v4667_v31 }
 0x5b8   : > { %v4821_v10 = vor.u32 %v4820_v15, %v4819_v50  ;;  %v4260_v4 = vsel %vm4177_vm12, %v4259_v22, %v4258_v40  ;;  %v4678_v46 = vsel %vm4593_vm13, %v4677_v12, %v15223_v41  ;;  %v15333_v60 = vshrl.u32 %v4444_v51, 30 }
 0x5b9   : > { %v4824_v7 = vor.u32 %v4823_v5, %v4822_v45  ;;  %v4263_v30 = vsel %vm15216_vm1, %v18858_v2, %v4260_v4  ;;  %v4666_v59 = vor.u32 %v4665_v52, %v4664_v14  ;;  %v4669_v24 = vshll.u32 %v4668_v27, 23  ;;  %v15340_v23 = vpop.eup %11570 }
 0x5ba   : > { %v4815_v1 = vshrl.u32 %v18636_v48, %v18909_v36  ;;  %18917 = vst [vmem:[#allocation118_spill] sm:$0xff] %v15340_v23  ;;  %11576 = vcosq.f32 %v4263_v30  ;;  %v4446_v15 = vshll.u32 %v15333_v60, 30  ;;  %v4807_v40 = vor.u32 8388608, %v4806_v29  ;;  %v15344_v41 = vpop.eup %11572 }
 0x5bb   : > { %vm4831_vm12 = vcmp.lt.s32.totalorder %v18896_v26, 1  ;;  %18918 = vst [vmem:[#allocation113_spill] sm:$0xff] %v15344_v41  ;;  %11578 = vsinq.f32 %v4263_v30  ;;  %v4670_v12 = vor.u32 4788187, %v4669_v24  ;;  %vm4833_vm4 = vcmp.lt.s32.totalorder %v18896_v26, 3  ;;  %v15349_v4 = vpop.eup %11574 }
 0x5bc   : > { %v4839_v27 = vsel %vm4831_vm12, %v4818_v21, %v4821_v10  ;;  %18919 = vst [vmem:[#allocation101_spill] sm:$0xff] %v15349_v4  ;;  %v15351_v0 = vsub.s32 %v4443_v32, %v4446_v15  ;;  %vm4832_vm1 = vcmp.lt.s32.totalorder %v18896_v26, 2  ;;  %v4841_v52 = vsel %vm4833_vm4, %v4824_v7, %v15271_v6 }
 0x5bd   : > { %v4843_v14 = vsel %vm4831_vm12, %v4821_v10, %v4824_v7  ;;  %v4671_v36 = vand.u32 2147483647, %v4670_v12  ;;  %v4673_v54 = vcvt.s32.f32 %v4666_v59  ;;  %v4836_v5 = vsel %vm4834_vm2, %v4824_v7, 2102212464 }
 0x5be   : > { %v4845_v32 = vsel %vm4833_vm4, %v14967_v35, %v15280_v44  ;;  %v4449_v39 = vsub.s32 0, %v15351_v0  ;;  %v4842_v31 = vsel %vm4832_vm1, %v4839_v27, %v4841_v52  ;;  %v4847_v29 = vshll.u32 %v4807_v40, 8  ;;  %v18921_v35 = vld [vmem:[#allocation78_spill] sm:$0xff] }
 0x5bf   : > { %v4846_v6 = vsel %vm4832_vm1, %v4843_v14, %v4845_v32  ;;  %v4783_v50 = vsel %vm15315_vm15, %v18901_v13, %v15285_v19  ;;  %v4674_v7 = vmul.f32 %v4673_v54, %v4671_v36  ;;  %v15376_v22 = vsel %vm15321_vm5, 0, %v4678_v46  ;;  %v18926_v32 = vld [vmem:[#allocation102_spill] sm:$0xff] }
 0x5c0   : > { %18920 = vst [vmem:[#allocation124_spill] sm:$0xff] %v15376_v22  ;;  %v4157_v44 = vsub.s32 4, %v18921_v35  ;;  %v11005_v51 = vmin.u32 %v4449_v39, %v15351_v0  ;;  %v4835_v45 = vsel %vm4831_vm12, %v4815_v1, %v4818_v21  ;;  %v4837_v15 = vsel %vm4833_vm4, %v4821_v10, %v4836_v5  ;;  %v18922_v1 = vld [vmem:[#allocation57_spill] sm:$0xff] }
 0x5c1   : > { %v15382_v30 = vmul.u32.u64.low %v4847_v29, %v4846_v6  ;;  %v15383_v59 = vmul.u32.u64.high %v4847_v29, %v4846_v6, %v15382_v30  ;;  %v4675_v24 = vxor.u32 2147483648, %v4674_v7  ;;  %11580 = vcosq.f32 %v4783_v50 }
 0x5c2   : > { %v15387_v19 = vmul.u32.u64.low %v4847_v29, %v4842_v31  ;;  %v15388_v40 = vmul.u32.u64.high %v4847_v29, %v4842_v31, %v15387_v19  ;;  %v15392_v46 = vand.u32 3, %v15291_v34  ;;  %v4684_v12 = vadd.s32 3, %v15376_v22 }
 0x5c3   : > { %v4451_v27 = vclz %v11005_v51  ;;  %vm18374_vm2 = vcmp.lt.s32.totalorder %v18889_v56, 0  ;;  %11582 = vsinq.f32 %v4783_v50  ;;  %v4676_v21 = vsel %vm4593_vm13, %v4675_v24, %v4674_v7 }
 0x5c4   : > { %vm18923_vm0 = vcmp.lt.s32.totalorder %v18922_v1, 0  ;;  %v4679_v52 = vsel %vm15321_vm5, %v18870_v43, %v4676_v21  ;;  %v4838_v34 = vsel %vm4832_vm1, %v4835_v45, %v4837_v15  ;;  %vm4856_vm12 = vc.u32 %v15383_v59, %v15387_v19 }
 0x5c5   : > { %v4158_v10 = vsel %vm18923_vm0, %v4157_v44, %v18921_v35  ;;  %v11006_v14 = vadd.s32 4294967294, %v4451_v27  ;;  %11584 = vcosq.f32 %v4679_v52  ;;  %v4857_v36 = vadd.s32 1, %v15388_v40 }
 0x5c6   : > { %v15411_v5 = vsel %vm13919_vm7, 0, %v4158_v10  ;;  %v4573_v39 = vsub.s32 4, %v18926_v32  ;;  %vm4271_vm13 = vcmp.eq.s32.totalorder %v15392_v46, 0  ;;  %11586 = vsinq.f32 %v4679_v52 }
 0x5c7   : > { %18925 = vst [vmem:[#allocation127_spill] sm:$0xff] %v15411_v5  ;;  %v15415_v18 = vand.u32 3, %v4684_v12  ;;  %vm11007_vm5 = vcmp.lt.s32.totalorder %v11006_v14, 0  ;;  %v4164_v26 = vadd.s32 3, %v15411_v5  ;;  %v15418_v31 = vpop.eup %11576  ;;  %v4854_v50 = vmul.u32 %v4847_v29, %v4838_v34 }
 0x5c8   : > { %18927 = vst [vmem:[#allocation123_spill] sm:$0xff] %v15418_v31  ;;  %v4454_v6 = vsel %vm11007_vm5, 0, %v11006_v14  ;;  %v4858_v7 = vsel %vm4856_vm12, %v4857_v36, %v15388_v40  ;;  %vm18928_vm7 = vcmp.lt.s32.totalorder %v18833_v55, 0  ;;  %v15424_v44 = vpop.eup %11578  ;;  %v4439_v51 = vadd.s32 %v15263_v53, %v15261_v28  ;;  %v18931_v14 = vld [vmem:[#allocation126_spill] sm:$0xff] }
 0x5c9   : > { %v4574_v35 = vsel %vm18928_vm7, %v4573_v39, %v18926_v32  ;;  %18929 = vst [vmem:[#allocation131_spill] sm:$0xff] %v15424_v44  ;;  %v4455_v45 = vsub.s32 32, %v4454_v6  ;;  %v4459_v30 = vsub.s32 4294967266, %v4454_v6  ;;  %v4469_v24 = vsub.s32 4, %v15333_v60  ;;  %v18932_v32 = vld [vmem:[#allocation125_spill] sm:$0xff] }
 0x5ca   : > { %vm4274_vm4 = vcmp.eq.s32.totalorder %v15392_v46, 2  ;;  %v4456_v15 = vshll.u32 %v15351_v0, %v4454_v6  ;;  %v4859_v29 = vadd.s32 %v4858_v7, %v4854_v50  ;;  %v15433_v40 = vsel %vm15138_vm8, 0, %v4574_v35 }
 0x5cb   : > { %18930 = vst [vmem:[#allocation2_spill] sm:$0xff] %v15433_v40  ;;  %v4457_v12 = vshrl.u32 %v4439_v51, %v4455_v45  ;;  %v4460_v27 = vadd.s32 127, %v4459_v30  ;;  %v4165_v21 = vand.u32 3, %v4164_v26  ;;  %v4580_v10 = vadd.s32 3, %v15433_v40  ;;  %v18942_v40 = vld [vmem:[#allocation96_spill] sm:$0xff] }
 0x5cc   : > { %v18377_v28 = vxor.u32 2147483648, %v15424_v44  ;;  %v18375_v53 = vxor.u32 2147483648, %v15418_v31  ;;  %v4860_v52 = vadd.s32 536870912, %v4859_v29  ;;  %v18376_v34 = vxor.u32 2147483648, %v18931_v14 }
 0x5cd   : > { %vm4270_vm1 = vcmp.lt.s32.totalorder %v15392_v46, 2  ;;  %vm4690_vm0 = vcmp.eq.s32.totalorder %v15415_v18, 2  ;;  %v4458_v0 = vor.u32 %v4457_v12, %v4456_v15  ;;  %v4461_v38 = vshll.u32 %v4460_v27, 23 }
 0x5ce   : > { %v4470_v36 = vsel %vm18374_vm2, %v4469_v24, %v15333_v60  ;;  %vm4687_vm12 = vcmp.eq.s32.totalorder %v15415_v18, 0  ;;  %v4861_v54 = vshrl.u32 %v4860_v52, 30  ;;  %v18386_v39 = vxor.u32 2147483648, %v18932_v32  ;;  %v15457_v51 = vpop.eup %11580 }
 0x5cf   : > { %v4581_v26 = vand.u32 3, %v4580_v10  ;;  %v18380_v6 = vxor.u32 2147483648, %v15349_v4  ;;  %v18933_v50 = vand.u32 2147483647, %v18889_v56  ;;  %v4462_v35 = vor.u32 4788187, %v4461_v38 }
 0x5d0   : > { %vm4167_vm9 = vcmp.eq.s32.totalorder %v4165_v21, 0  ;;  %v18381_v60 = vxor.u32 2147483648, %v15344_v41  ;;  %18936 = vst [vmem:[#allocation130_spill] sm:$0xff] %v15457_v51  ;;  %v4273_v45 = vsel %vm4271_vm13, %v15418_v31, %v18377_v28  ;;  %v4276_v30 = vsel %vm4274_vm4, %v18375_v53, %v15424_v44  ;;  %v15475_v12 = vpop.eup %11582 }
 0x5d1   : > { %vm15451_vm7 = vcmp.le.f32.partialorder %v18933_v50, 0.7853982  ;;  %v4862_v24 = vshll.u32 %v4861_v54, 30  ;;  %vm18452_vm5 = vweird.f32 %v18922_v1  ;;  %v4169_v15 = vsel %vm4167_vm9, %v18932_v32, %v18376_v34  ;;  %18937 = vst [vmem:[#allocation80_spill] sm:$0xff] %v15475_v12 }
 0x5d2   : > { %v4463_v27 = vand.u32 2147483647, %v4462_v35  ;;  %v4465_v10 = vcvt.s32.f32 %v4458_v0  ;;  %v18938_v52 = vand.u32 2147483647, %v18908_v9  ;;  %vm4583_vm4 = vcmp.eq.s32.totalorder %v4581_v26, 0  ;;  %v15491_v0 = vpop.eup %11584 }
 0x5d3   : > { %vm4586_vm2 = vcmp.eq.s32.totalorder %v4581_v26, 2  ;;  %v15483_v50 = vsub.s32 %v4859_v29, %v4862_v24  ;;  %vm4170_vm8 = vcmp.eq.s32.totalorder %v4165_v21, 2  ;;  %v4585_v53 = vsel %vm4583_vm4, %v15344_v41, %v18380_v6  ;;  %18941 = vst [vmem:[#allocation107_spill] sm:$0xff] %v15491_v0  ;;  %v15497_v24 = vpop.eup %11586 }
 0x5d4   : > { %vm15479_vm13 = vcmp.le.f32.partialorder %v18938_v52, 0.7853982  ;;  %v4588_v35 = vsel %vm4586_vm2, %v18381_v60, %v15349_v4  ;;  %v4466_v34 = vmul.f32 %v4465_v10, %v4463_v27  ;;  %v4885_v52 = vsub.s32 4, %v4861_v54  ;;  %18943 = vst [vmem:[#allocation104_spill] sm:$0xff] %v15497_v24  ;;  %v18944_v27 = vld [vmem:[#allocation69_spill] sm:$0xff] }
 0x5d5   : > { %v4172_v28 = vsel %vm4170_vm8, %v18386_v39, %v18931_v14  ;;  %v4365_v29 = vsub.s32 4, %v18942_v40  ;;  %v18388_v5 = vxor.u32 2147483648, %v15491_v0  ;;  %v4865_v6 = vsub.s32 0, %v15483_v50 }
 0x5d6   : > { %vm4166_vm9 = vcmp.lt.s32.totalorder %v4165_v21, 2  ;;  %vm4582_vm4 = vcmp.lt.s32.totalorder %v4581_v26, 2  ;;  %v18389_v60 = vxor.u32 2147483648, %v15497_v24  ;;  %v4467_v41 = vxor.u32 2147483648, %v4466_v34 }
 0x5d7   : > { %v4589_v4 = vsel %vm4582_vm4, %v4585_v53, %v4588_v35  ;;  %vm18945_vm2 = vcmp.lt.s32.totalorder %v18944_v27, 0  ;;  %v4277_v39 = vsel %vm4270_vm1, %v4273_v45, %v4276_v30  ;;  %v4692_v32 = vsel %vm4690_vm0, %v18388_v5, %v15497_v24  ;;  %v18965_v45 = vld [vmem:[#allocation94_spill] sm:$0xff]  ;;  %v18969_v5 = vld [vmem:[#allocation89_spill] sm:$0xff]  ;;  %v18987_v24 = vld [vmem:[#allocation67_spill] sm:$0xff] }
 0x5d8   : > { %v4366_v10 = vsel %vm18945_vm2, %v4365_v29, %v18942_v40  ;;  %v11021_v21 = vmin.u32 %v4865_v6, %v15483_v50  ;;  %v4173_v26 = vsel %vm4166_vm9, %v4169_v15, %v4172_v28  ;;  %v4689_v53 = vsel %vm4687_vm12, %v15491_v0, %v18389_v60  ;;  %v18960_v29 = vld [vmem:[#allocation105_spill] sm:$0xff] }
 0x5d9   : > { %vm18946_vm8 = vcmp.lt.s32.totalorder %v18889_v56, 0  ;;  %vm18947_vm1 = vcmp.lt.s32.totalorder %v18908_v9, 0  ;;  %v15524_v30 = vsel %vm13934_vm14, 0, %v4366_v10  ;;  %vm18950_vm0 = vcmp.lt.s32.totalorder %v15415_v18, 2 }
 0x5da   : > { %v4468_v40 = vsel %vm18946_vm8, %v4467_v41, %v4466_v34  ;;  %v4886_v46 = vsel %vm18947_vm1, %v4885_v52, %v4861_v54  ;;  %18949 = vst [vmem:[#allocation137_spill] sm:$0xff] %v15524_v30  ;;  %v4693_v6 = vsel %vm18950_vm0, %v4689_v53, %v4692_v32  ;;  %v4867_v15 = vclz %v11021_v21  ;;  %v18962_v21 = vld [vmem:[#allocation108_spill] sm:$0xff] }
 0x5db   : > { %v4471_v28 = vsel %vm15451_vm7, %v18889_v56, %v4468_v40  ;;  %vm18951_vm12 = vweird.f32 %v18833_v55  ;;  %vm18953_vm9 = vweird.f32 %v18858_v2  ;;  %vm18955_vm4 = vweird.f32 %v18870_v43  ;;  %v18964_v53 = vld [vmem:[#allocation112_spill] sm:$0xff] }
 0x5dc   : > { %v15533_v35 = vsel %vm18951_vm12, nan, %v4589_v4  ;;  %v15537_v41 = vsel %vm18953_vm9, nan, %v4277_v39  ;;  %v15541_v34 = vsel %vm18955_vm4, nan, %v4693_v6  ;;  %v15545_v18 = vsel %vm15451_vm7, 0, %v4470_v36  ;;  %v18966_v6 = vld [vmem:[#allocation90_spill] sm:$0xff] }
 0x5dd   : > { %18952 = vst [vmem:[#allocation139_spill] sm:$0xff] %v15533_v35  ;;  %18954 = vst [vmem:[#allocation134_spill] sm:$0xff] %v15537_v41  ;;  %v15549_v54 = vsel %vm18452_vm5, nan, %v4173_v26  ;;  %v9201_v4 = vpack.c.bf16 %v15541_v34, %v15537_v41  ;;  %v11022_v32 = vadd.s32 4294967294, %v4867_v15  ;;  %v15555_v39 = vsel %vm15479_vm13, 0, %v4886_v46  ;;  %v18967_v15 = vld [vmem:[#allocation95_spill] sm:$0xff] }
 0x5de   : > { %18956 = vst [vmem:[#allocation114_spill] sm:$0xff] %v15541_v34  ;;  %18957 = vst [vmem:[#allocation119_spill] sm:$0xff] %v15545_v18  ;;  %v4372_v52 = vadd.s32 3, %v15524_v30  ;;  %v18961_v10 = vand.u32 2147483647, %v18960_v29  ;;  %v18963_v7 = vcvt.s32.f32 %v18962_v21  ;;  %11588 = vcosq.f32 %v4471_v28  ;;  %v18975_v41 = vld [vmem:[#allocation59_spill] sm:$0xff] }
 0x5df   : > { %18958 = vst [vmem:[#allocation121_spill] sm:$0xff] %v15549_v54  ;;  %18959 = vst [vmem:[#allocation115_spill] sm:$0xff] %v15555_v39  ;;  %v9200_v26 = vpack.c.bf16 %v15533_v35, %v15549_v54  ;;  %v4781_v40 = vsub.s32 4, %v18964_v53  ;;  %11590 = vsinq.f32 %v18965_v45  ;;  %v18968_v46 = vor.u32 %v18966_v6, %v18967_v15  ;;  %9250 = vmatprep.subr.bf16.mxu0 %v9201_v4  ;;  %v18972_v54 = vld [vmem:[#allocation128_spill] sm:$0xff] }
 0x5e0   : > { %v15562_v36 = vmul.f32 %v18963_v7, %v18961_v10  ;;  %vm18970_vm14 = vcmp.lt.s32.totalorder %v18969_v5, 4  ;;  %v4476_v29 = vadd.s32 3, %v15545_v18  ;;  %vm11023_vm7 = vcmp.lt.s32.totalorder %v11022_v32, 0  ;;  %v18988_v18 = vld [vmem:[#allocation62_spill] sm:$0xff] }
 0x5e1   : > { %v15573_v60 = vsel %vm18970_vm14, %v18968_v46, 1326507024  ;;  %v4855_v10 = vadd.s32 %v15387_v19, %v15383_v59  ;;  %v4870_v21 = vsel %vm11023_vm7, 0, %v11022_v32  ;;  %v4892_v7 = vadd.s32 3, %v15555_v39  ;;  %9251 = vmatpush1.bf16.msra.mxu0 %v9200_v26 }
 0x5e2   : > { %vm18971_vm2 = vcmp.lt.s32.totalorder %v18901_v13, 0  ;;  %11592 = vsinq.f32 %v4471_v28  ;;  %v4871_v6 = vsub.s32 32, %v4870_v21  ;;  %v4875_v15 = vsub.s32 4294967266, %v4870_v21 }
 0x5e3   : > { %v4782_v45 = vsel %vm18971_vm2, %v4781_v40, %v18964_v53  ;;  %v4373_v46 = vand.u32 3, %v4372_v52  ;;  %v4872_v19 = vshll.u32 %v15483_v50, %v4870_v21  ;;  %v15591_v28 = vand.u32 3, %v4476_v29  ;;  %v18974_v52 = vld [vmem:[#allocation19_spill] sm:$0xff] }
 0x5e4   : > { %v15587_v59 = vsel %vm15315_vm15, 0, %v4782_v45  ;;  %v4873_v32 = vshrl.u32 %v4855_v10, %v4871_v6  ;;  %v4876_v26 = vadd.s32 127, %v4875_v15  ;;  %v15593_v40 = vand.u32 3, %v4892_v7  ;;  %v18977_v21 = vld [vmem:[#allocation55_spill] sm:$0xff] }
 0x5e5   : > { %18973 = vst [vmem:[#allocation120_spill] sm:$0xff] %v15587_v59  ;;  %v4788_v53 = vadd.s32 3, %v15587_v59  ;;  %v18404_v4 = vand.u32 2147483647, %v18974_v52  ;;  %v3361_v35 = vshrl.u32 %v18641_v8, %v18975_v41  ;;  %vm4375_vm8 = vcmp.eq.s32.totalorder %v4373_v46, 0 }
 0x5e6   : > { %v4874_v34 = vor.u32 %v4873_v32, %v4872_v19  ;;  %v4877_v14 = vshll.u32 %v4876_v26, 23  ;;  %vm4378_vm15 = vcmp.eq.s32.totalorder %v4373_v46, 2  ;;  %v18976_v57 = vxor.u32 2147483648, %v15340_v23 }
 0x5e7   : > { %v4789_v10 = vand.u32 3, %v4788_v53  ;;  %v3360_v29 = vshll.u32 %v18636_v48, %v18977_v21  ;;  %v3364_v7 = vshrl.u32 %v18642_v61, %v18975_v41  ;;  %v18978_v6 = vxor.u32 2147483648, %v18972_v54 }
 0x5e8   : > { %v4377_v50 = vsel %vm4375_vm8, %v18972_v54, %v18976_v57  ;;  %v4878_v45 = vor.u32 4788187, %v4877_v14  ;;  %v3363_v32 = vshll.u32 %v18641_v8, %v18977_v21  ;;  %vm4374_vm1 = vcmp.lt.s32.totalorder %v4373_v46, 2 }
 0x5e9   : > { %v4380_v15 = vsel %vm4378_vm15, %v18978_v6, %v15340_v23  ;;  %v3350_v26 = vand.u32 8388607, %v18404_v4  ;;  %v3362_v53 = vor.u32 %v3361_v35, %v3360_v29  ;;  %v3366_v57 = vshll.u32 %v18642_v61, %v18977_v21 }
 0x5ea   : > { %v4879_v59 = vand.u32 2147483647, %v4878_v45  ;;  %v4881_v30 = vcvt.s32.f32 %v4874_v34  ;;  %v3365_v14 = vor.u32 %v3364_v7, %v3363_v32  ;;  %v3367_v54 = vshrl.u32 %v18633_v47, %v18975_v41  ;;  %v18982_v45 = vld [vmem:[#allocation58_spill] sm:$0xff] }
 0x5eb   : > { %v15617_v6 = vsel %vm4374_vm1, %v4377_v50, %v4380_v15  ;;  %vm4791_vm0 = vcmp.eq.s32.totalorder %v4789_v10, 0  ;;  %v18412_v19 = vxor.u32 2147483648, %v15457_v51  ;;  %v3359_v46 = vshrl.u32 %v18636_v48, %v18975_v41  ;;  %v15622_v23 = vpop.eup %11588 }
 0x5ec   : > { %18979 = vst [vmem:[#allocation132_spill] sm:$0xff] %v15622_v23  ;;  %v4882_v35 = vmul.f32 %v4881_v30, %v4879_v59  ;;  %vm4790_vm12 = vcmp.lt.s32.totalorder %v4789_v10, 2  ;;  %v18980_v21 = vxor.u32 2147483648, %v15475_v12  ;;  %v3368_v29 = vor.u32 %v3367_v54, %v3366_v57  ;;  %v15627_v7 = vpop.eup %11590  ;;  %v18984_v30 = vld [vmem:[#allocation66_spill] sm:$0xff] }
 0x5ed   : > { %18981 = vst [vmem:[#allocation129_spill] sm:$0xff] %v15627_v7  ;;  %vm4794_vm9 = vcmp.eq.s32.totalorder %v4789_v10, 2  ;;  %v3351_v50 = vor.u32 8388608, %v3350_v26  ;;  %vm3375_vm4 = vcmp.lt.s32.totalorder %v18982_v45, 1  ;;  %vm3377_vm14 = vcmp.lt.s32.totalorder %v18982_v45, 3 }
 0x5ee   : > { %v4793_v34 = vsel %vm4791_vm0, %v15457_v51, %v18980_v21  ;;  %v4883_v15 = vxor.u32 2147483648, %v4882_v35  ;;  %vm18983_vm7 = vcmp.lt.s32.totalorder %v18982_v45, 4  ;;  %v3383_v32 = vsel %vm3375_vm4, %v3362_v53, %v3365_v14 }
 0x5ef   : > { %v3380_v41 = vsel %vm18983_vm7, %v3368_v29, 2102212464  ;;  %v3385_v59 = vsel %vm3377_vm14, %v3368_v29, %v18984_v30  ;;  %v15634_v4 = vpop.eup %11592  ;;  %v4796_v54 = vsel %vm4794_vm9, %v18412_v19, %v15475_v12  ;;  %vm3376_vm2 = vcmp.lt.s32.totalorder %v18982_v45, 2 }
 0x5f0   : > { %18985 = vst [vmem:[#allocation78_spill] sm:$0xff] %v15634_v4  ;;  %v3387_v26 = vsel %vm3375_vm4, %v3365_v14, %v3368_v29  ;;  %vm18986_vm8 = vcmp.lt.s32.totalorder %v18908_v9, 0  ;;  %v3379_v39 = vsel %vm3375_vm4, %v3359_v46, %v3362_v53  ;;  %v3381_v0 = vsel %vm3377_vm14, %v3365_v14, %v3380_v41  ;;  %v18989_v14 = vld [vmem:[#allocation60_spill] sm:$0xff] }
 0x5f1   : > { %v4884_v57 = vsel %vm18986_vm8, %v4883_v15, %v4882_v35  ;;  %v3389_v22 = vsel %vm3377_vm14, %v18988_v18, %v18987_v24  ;;  %v3386_v21 = vsel %vm3376_vm2, %v3383_v32, %v3385_v59  ;;  %v3391_v51 = vshll.u32 %v3351_v50, 8  ;;  %v18991_v15 = vld [vmem:[#allocation74_spill] sm:$0xff] }
 0x5f2   : > { %v4887_v30 = vsel %vm15479_vm13, %v18908_v9, %v4884_v57  ;;  %v3390_v19 = vsel %vm3376_vm2, %v3387_v26, %v3389_v22  ;;  %v4797_v53 = vsel %vm4790_vm12, %v4793_v34, %v4796_v54  ;;  %v18415_v46 = vand.u32 2147483647, %v18989_v14  ;;  %v18990_v34 = vld [vmem:[#allocation76_spill] sm:$0xff]  ;;  %v18992_v57 = vld [vmem:[#allocation85_spill] sm:$0xff] }
 0x5f3   : > { %11594 = vcosq.f32 %v4887_v30  ;;  %vm4479_vm15 = vcmp.eq.s32.totalorder %v15591_v28, 0  ;;  %vm4482_vm1 = vcmp.eq.s32.totalorder %v15591_v28, 2  ;;  %v3382_v38 = vsel %vm3376_vm2, %v3379_v39, %v3381_v0 }
 0x5f4   : > { %11596 = vsinq.f32 %v4887_v30  ;;  %v15659_v24 = vmul.u32.u64.low %v3391_v51, %v3390_v19  ;;  %v15660_v18 = vmul.u32.u64.high %v3391_v51, %v3390_v19, %v15659_v24  ;;  %v3766_v10 = vand.u32 8388607, %v18415_v46 }
 0x5f5   : > { %v15662_v22 = vmul.u32.u64.low %v3391_v51, %v3386_v21  ;;  %v15663_v35 = vmul.u32.u64.high %v3391_v51, %v3386_v21, %v15662_v22  ;;  %v3775_v50 = vshrl.u32 %v18636_v48, %v18990_v34  ;;  %v3776_v41 = vshll.u32 %v18636_v48, %v18991_v15 }
 0x5f6   : > { %v3777_v45 = vshrl.u32 %v18641_v8, %v18990_v34  ;;  %v3779_v0 = vshll.u32 %v18641_v8, %v18991_v15  ;;  %v3780_v39 = vshrl.u32 %v18642_v61, %v18990_v34  ;;  %vm18451_vm13 = vweird.f32 %v18944_v27 }
 0x5f7   : > { %v3398_v19 = vmul.u32 %v3391_v51, %v3382_v38  ;;  %v3767_v32 = vor.u32 8388608, %v3766_v10  ;;  %v3782_v59 = vshll.u32 %v18642_v61, %v18991_v15  ;;  %v3783_v21 = vshrl.u32 %v18633_v47, %v18990_v34  ;;  %v18993_v10 = vld [vmem:[#allocation92_spill] sm:$0xff] }
 0x5f8   : > { %vm4478_vm0 = vcmp.lt.s32.totalorder %v15591_v28, 2  ;;  %vm3400_vm12 = vc.u32 %v15660_v18, %v15662_v22  ;;  %v3778_v54 = vor.u32 %v3777_v45, %v3776_v41  ;;  %v3781_v26 = vor.u32 %v3780_v39, %v3779_v0  ;;  %v18994_v34 = vld [vmem:[#allocation88_spill] sm:$0xff]  ;;  %v18996_v45 = vld [vmem:[#allocation91_spill] sm:$0xff] }
 0x5f9   : > { %vm3791_vm9 = vcmp.lt.s32.totalorder %v18992_v57, 1  ;;  %v3401_v30 = vadd.s32 1, %v15663_v35  ;;  %v3784_v24 = vor.u32 %v3783_v21, %v3782_v59  ;;  %vm3792_vm4 = vcmp.lt.s32.totalorder %v18992_v57, 2 }
 0x5fa   : > { %vm3793_vm14 = vcmp.lt.s32.totalorder %v18992_v57, 3  ;;  %v3795_v51 = vsel %vm3791_vm9, %v3775_v50, %v3778_v54  ;;  %v3799_v38 = vsel %vm3791_vm9, %v3778_v54, %v3781_v26  ;;  %v3807_v46 = vshll.u32 %v3767_v32, 8 }
 0x5fb   : > { %v3805_v15 = vsel %vm3793_vm14, %v18994_v34, %v18993_v10  ;;  %v3402_v29 = vsel %vm3400_vm12, %v3401_v30, %v15663_v35  ;;  %vm18995_vm7 = vcmp.lt.s32.totalorder %v18992_v57, 4  ;;  %v3801_v0 = vsel %vm3793_vm14, %v3784_v24, %v18996_v45  ;;  %v18999_v34 = vld [vmem:[#allocation39_spill] sm:$0xff] }
 0x5fc   : > { %v3796_v41 = vsel %vm18995_vm7, %v3784_v24, 2102212464  ;;  %v3803_v39 = vsel %vm3791_vm9, %v3781_v26, %v3784_v24  ;;  %v3403_v12 = vadd.s32 %v3402_v29, %v3398_v19  ;;  %v3802_v21 = vsel %vm3792_vm4, %v3799_v38, %v3801_v0 }
 0x5fd   : > { %v3797_v59 = vsel %vm3793_vm14, %v3781_v26, %v3796_v41  ;;  %v3806_v50 = vsel %vm3792_vm4, %v3803_v39, %v3805_v15  ;;  %vm18454_vm2 = vweird.f32 %v18889_v56  ;;  %v18997_v32 = vxor.u32 2147483648, %v15634_v4  ;;  %v19000_v15 = vld [vmem:[#allocation44_spill] sm:$0xff] }
 0x5fe   : > { %v18998_v54 = vxor.u32 2147483648, %v15622_v23  ;;  %vm18453_vm8 = vweird.f32 %v18908_v9  ;;  %v15712_v19 = vmul.u32.u64.low %v3807_v46, %v3806_v50  ;;  %v15713_v26 = vmul.u32.u64.high %v3807_v46, %v3806_v50, %v15712_v19 }
 0x5ff   : > { %v4481_v35 = vsel %vm4479_vm15, %v15622_v23, %v18997_v32  ;;  %v3404_v30 = vadd.s32 536870912, %v3403_v12  ;;  %v3798_v24 = vsel %vm3792_vm4, %v3795_v51, %v3797_v59  ;;  %vm18455_vm15 = vcmp.lt.s32.totalorder %v18999_v34, 0  ;;  %v19005_v19 = vld [vmem:[#allocation65_spill] sm:$0xff] }
 0x600   : > { %v4484_v29 = vsel %vm4482_vm1, %v18998_v54, %v15634_v4  ;;  %v15717_v38 = vmul.u32.u64.low %v3807_v46, %v3802_v21  ;;  %v15718_v10 = vmul.u32.u64.high %v3807_v46, %v3802_v21, %v15717_v38  ;;  %vm4894_vm12 = vcmp.lt.s32.totalorder %v15593_v40, 2  ;;  %v15726_v45 = vpop.eup %11594 }
 0x601   : > { %vm4895_vm9 = vcmp.eq.s32.totalorder %v15593_v40, 0  ;;  %vm18442_vm1 = vweird.f32 %v18901_v13  ;;  %v18423_v41 = vand.u32 2147483647, %v19000_v15  ;;  %19001 = vst [vmem:[#allocation109_spill] sm:$0xff] %v15726_v45  ;;  %vm4898_vm14 = vcmp.eq.s32.totalorder %v15593_v40, 2  ;;  %v15738_v39 = vpop.eup %11596 }
 0x602   : > { %v15732_v57 = vsel %vm18451_vm13, nan, %v15617_v6  ;;  %v15736_v51 = vsel %vm18442_vm1, nan, %v4797_v53  ;;  %v3405_v0 = vshrl.u32 %v3404_v30, 30  ;;  %19004 = vst [vmem:[#allocation111_spill] sm:$0xff] %v15738_v39  ;;  %v4485_v59 = vsel %vm4478_vm0, %v4481_v35, %v4484_v29  ;;  %v19006_v35 = vld [vmem:[#allocation61_spill] sm:$0xff] }
 0x603   : > { %19002 = vst [vmem:[#allocation102_spill] sm:$0xff] %v15732_v57  ;;  %19003 = vst [vmem:[#allocation96_spill] sm:$0xff] %v15736_v51  ;;  %v18420_v21 = vxor.u32 2147483648, %v15726_v45  ;;  %v3814_v50 = vmul.u32 %v3807_v46, %v3798_v24  ;;  %vm3816_vm4 = vc.u32 %v15713_v26, %v15717_v38  ;;  %v3817_v54 = vadd.s32 1, %v15718_v10 }
 0x604   : > { %v3406_v6 = vshll.u32 %v3405_v0, 30  ;;  %v3569_v53 = vshrl.u32 %v18641_v8, %v19005_v19  ;;  %v3558_v28 = vand.u32 8388607, %v18423_v41  ;;  %v3568_v46 = vshll.u32 %v18636_v48, %v19006_v35 }
 0x605   : > { %v4900_v30 = vsel %vm4898_vm14, %v18420_v21, %v15738_v39  ;;  %v3572_v29 = vshrl.u32 %v18642_v61, %v19005_v19  ;;  %v19007_v24 = vand.u32 2147483647, %v18999_v34  ;;  %v19010_v23 = vxor.u32 2147483648, %v15738_v39 }
 0x606   : > { %v15769_v4 = vsub.s32 %v3403_v12, %v3406_v6  ;;  %v3818_v41 = vsel %vm3816_vm4, %v3817_v54, %v15718_v10  ;;  %v3571_v31 = vshll.u32 %v18641_v8, %v19006_v35  ;;  %vm3345_vm7 = vcmp.lt.s32.totalorder %v18974_v52, 0 }
 0x607   : > { %vm15760_vm0 = vcmp.le.f32.partialorder %v19007_v24, 0.7853982  ;;  %v4897_v21 = vsel %vm4895_vm9, %v15726_v45, %v19010_v23  ;;  %v3819_v44 = vadd.s32 %v3818_v41, %v3814_v50  ;;  %v3574_v39 = vshll.u32 %v18642_v61, %v19006_v35 }
 0x608   : > { %v4901_v24 = vsel %vm4894_vm12, %v4897_v21, %v4900_v30  ;;  %v3575_v11 = vshrl.u32 %v18633_v47, %v19005_v19  ;;  %v15783_v23 = vsel %vm18454_vm2, nan, %v4485_v59  ;;  %v3409_v10 = vsub.s32 0, %v15769_v4 }
 0x609   : > { %19011 = vst [vmem:[#allocation105_spill] sm:$0xff] %v15783_v23  ;;  %v15787_v12 = vsel %vm18453_vm8, nan, %v4901_v24  ;;  %v3570_v6 = vor.u32 %v3569_v53, %v3568_v46  ;;  %vm3761_vm12 = vcmp.lt.s32.totalorder %v18989_v14, 0  ;;  %v3820_v41 = vadd.s32 536870912, %v3819_v44 }
 0x60a   : > { %19012 = vst [vmem:[#allocation108_spill] sm:$0xff] %v15787_v12  ;;  %v9203_v40 = vpack.c.bf16 %v15787_v12, %v15783_v23  ;;  %v3573_v21 = vor.u32 %v3572_v29, %v3571_v31  ;;  %v3576_v50 = vor.u32 %v3575_v11, %v3574_v39  ;;  %v19013_v54 = vxor.u32 2147483648, %v15562_v36  ;;  %v19014_v23 = vld [vmem:[#allocation64_spill] sm:$0xff] }
 0x60b   : > { %v9202_v30 = vpack.c.bf16 %v15736_v51, %v15732_v57  ;;  %v10965_v35 = vmin.u32 %v3409_v10, %v15769_v4  ;;  %v3567_v53 = vshrl.u32 %v18636_v48, %v19005_v19  ;;  %v3821_v46 = vshrl.u32 %v3820_v41, 30  ;;  %v19016_v57 = vld [vmem:[#allocation73_spill] sm:$0xff]  ;;  %v19018_v12 = vld [vmem:[#allocation72_spill] sm:$0xff] }
 0x60c   : > { %v3948_v59 = vsel %vm18455_vm15, %v19013_v54, %v15562_v36  ;;  %9323 = vmatprep.subr.bf16.mxu1 %v9203_v40  ;;  %v3559_v24 = vor.u32 8388608, %v3558_v28  ;;  %vm3583_vm9 = vcmp.lt.s32.totalorder %v19014_v23, 1  ;;  %vm19015_vm14 = vcmp.lt.s32.totalorder %v19014_v23, 4  ;;  %v19017_v28 = vld [vmem:[#allocation75_spill] sm:$0xff] }
 0x60d   : > { %v3588_v11 = vsel %vm19015_vm14, %v3576_v50, 2102212464  ;;  %9324 = vmatpush1.bf16.msra.mxu1 %v9202_v30  ;;  %v3411_v31 = vclz %v10965_v35  ;;  %v3429_v39 = vsub.s32 4, %v3405_v0  ;;  %vm3585_vm4 = vcmp.lt.s32.totalorder %v19014_v23, 3 }
 0x60e   : > { %v3587_v36 = vsel %vm3583_vm9, %v3567_v53, %v3570_v6  ;;  %v3822_v29 = vshll.u32 %v3821_v46, 30  ;;  %v3845_v54 = vsub.s32 4, %v3821_v46  ;;  %v3591_v10 = vsel %vm3583_vm9, %v3570_v6, %v3573_v21 }
 0x60f   : > { %v3593_v51 = vsel %vm3585_vm4, %v3576_v50, %v19016_v57  ;;  %v10966_v19 = vadd.s32 4294967294, %v3411_v31  ;;  %v3589_v40 = vsel %vm3585_vm4, %v3573_v21, %v3588_v11  ;;  %v3595_v41 = vsel %vm3583_vm9, %v3573_v21, %v3576_v50 }
 0x610   : > { %v3597_v45 = vsel %vm3585_vm4, %v19018_v12, %v19017_v28  ;;  %v15813_v30 = vsel %vm15760_vm0, %v18999_v34, %v3948_v59  ;;  %v3399_v35 = vadd.s32 %v15662_v22, %v15660_v18  ;;  %v15817_v53 = vsub.s32 %v3819_v44, %v3822_v29  ;;  %v19019_v44 = vld [vmem:[#allocation63_spill] sm:$0xff] }
 0x611   : > { %vm3584_vm14 = vcmp.lt.s32.totalorder %v19014_v23, 2  ;;  %vm10967_vm1 = vcmp.lt.s32.totalorder %v10966_v19, 0  ;;  %v3430_v57 = vsel %vm3345_vm7, %v3429_v39, %v3405_v0  ;;  %v3599_v31 = vshll.u32 %v3559_v24, 8 }
 0x612   : > { %v3594_v6 = vsel %vm3584_vm14, %v3591_v10, %v3593_v51  ;;  %v3598_v21 = vsel %vm3584_vm14, %v3595_v41, %v3597_v45  ;;  %v3414_v50 = vsel %vm10967_vm1, 0, %v10966_v19  ;;  %v3825_v12 = vsub.s32 0, %v15817_v53 }
 0x613   : > { %v3590_v11 = vsel %vm3584_vm14, %v3587_v36, %v3589_v40  ;;  %v3415_v59 = vsub.s32 32, %v3414_v50  ;;  %v3419_v28 = vsub.s32 4294967266, %v3414_v50  ;;  %v3846_v18 = vsel %vm3761_vm12, %v3845_v54, %v3821_v46 }
 0x614   : > { %v18445_v22 = vand.u32 2147483647, %v19019_v44  ;;  %v3416_v23 = vshll.u32 %v15769_v4, %v3414_v50  ;;  %v10981_v29 = vmin.u32 %v3825_v12, %v15817_v53  ;;  %11598 = vcosq.f32 %v15813_v30 }
 0x615   : > { %v15828_v62 = vmul.u32.u64.low %v3599_v31, %v3598_v21  ;;  %v15829_v0 = vmul.u32.u64.high %v3599_v31, %v3598_v21, %v15828_v62  ;;  %v3417_v45 = vshrl.u32 %v3399_v35, %v3415_v59  ;;  %v3420_v51 = vadd.s32 127, %v3419_v28 }
 0x616   : > { %v15831_v39 = vmul.u32.u64.low %v3599_v31, %v3594_v6  ;;  %v15832_v10 = vmul.u32.u64.high %v3599_v31, %v3594_v6, %v15831_v39  ;;  %v19020_v24 = vand.u32 2147483647, %v18974_v52  ;;  %v19023_v4 = vand.u32 2147483647, %v18989_v14 }
 0x617   : > { %v3827_v62 = vclz %v10981_v29  ;;  %v3418_v54 = vor.u32 %v3417_v45, %v3416_v23  ;;  %v3421_v19 = vshll.u32 %v3420_v51, 23  ;;  %v3815_v41 = vadd.s32 %v15717_v38, %v15713_v26  ;;  %v19029_v26 = vld [vmem:[#allocation87_spill] sm:$0xff] }
 0x618   : > { %vm15838_vm1 = vcmp.le.f32.partialorder %v19020_v24, 0.7853982  ;;  %vm15844_vm9 = vcmp.le.f32.partialorder %v19023_v4, 0.7853982  ;;  %v3606_v21 = vmul.u32 %v3599_v31, %v3590_v11  ;;  %vm3608_vm4 = vc.u32 %v15829_v0, %v15831_v39 }
 0x619   : > { %v15850_v40 = vsel %vm15838_vm1, 0, %v3430_v57  ;;  %v10982_v35 = vadd.s32 4294967294, %v3827_v62  ;;  %v15856_v6 = vsel %vm15844_vm9, 0, %v3846_v18  ;;  %v3422_v50 = vor.u32 4788187, %v3421_v19  ;;  %v19028_v57 = vld [vmem:[#allocation77_spill] sm:$0xff] }
 0x61a   : > { %19026 = vst [vmem:[#allocation112_spill] sm:$0xff] %v15850_v40  ;;  %19027 = vst [vmem:[#allocation94_spill] sm:$0xff] %v15856_v6  ;;  %v3609_v12 = vadd.s32 1, %v15832_v10  ;;  %v3974_v59 = vand.u32 8388607, %v18445_v22  ;;  %v3984_v28 = vshll.u32 %v18636_v48, %v19028_v57  ;;  %v3425_v23 = vcvt.s32.f32 %v3418_v54 }
 0x61b   : > { %vm10983_vm14 = vcmp.lt.s32.totalorder %v10982_v35, 0  ;;  %v3985_v38 = vshrl.u32 %v18641_v8, %v19029_v26  ;;  %v3988_v11 = vshrl.u32 %v18642_v61, %v19029_v26  ;;  %v3423_v31 = vand.u32 2147483647, %v3422_v50 }
 0x61c   : > { %v3830_v18 = vsel %vm10983_vm14, 0, %v10982_v35  ;;  %v3610_v29 = vsel %vm3608_vm4, %v3609_v12, %v15832_v10  ;;  %v3987_v45 = vshll.u32 %v18641_v8, %v19028_v57  ;;  %v3990_v62 = vshll.u32 %v18642_v61, %v19028_v57 }
 0x61d   : > { %v3831_v51 = vsub.s32 32, %v3830_v18  ;;  %v3835_v24 = vsub.s32 4294967266, %v3830_v18  ;;  %v3611_v4 = vadd.s32 %v3610_v29, %v3606_v21  ;;  %v3426_v54 = vmul.f32 %v3425_v23, %v3423_v31 }
 0x61e   : > { %v3986_v19 = vor.u32 %v3985_v38, %v3984_v28  ;;  %v3989_v22 = vor.u32 %v3988_v11, %v3987_v45  ;;  %v3991_v13 = vshrl.u32 %v18633_v47, %v19029_v26  ;;  %v3832_v50 = vshll.u32 %v15817_v53, %v3830_v18  ;;  %v19030_v11 = vld [vmem:[#allocation97_spill] sm:$0xff] }
 0x61f   : > { %v3833_v35 = vshrl.u32 %v3815_v41, %v3831_v51  ;;  %v3836_v27 = vadd.s32 127, %v3835_v24  ;;  %v3612_v10 = vadd.s32 536870912, %v3611_v4  ;;  %v3427_v12 = vxor.u32 2147483648, %v3426_v54 }
 0x620   : > { %v3436_v55 = vadd.s32 3, %v15850_v40  ;;  %v3852_v1 = vadd.s32 3, %v15856_v6  ;;  %v3992_v21 = vor.u32 %v3991_v13, %v3990_v62  ;;  %vm3999_vm4 = vcmp.lt.s32.totalorder %v18969_v5, 1  ;;  %v19033_v62 = vld [vmem:[#allocation93_spill] sm:$0xff] }
 0x621   : > { %v3834_v29 = vor.u32 %v3833_v35, %v3832_v50  ;;  %v3837_v58 = vshll.u32 %v3836_v27, 23  ;;  %v3613_v57 = vshrl.u32 %v3612_v10, 30  ;;  %v3428_v28 = vsel %vm3345_vm7, %v3427_v12, %v3426_v54  ;;  %v15891_v31 = vpop.eup %11598 }
 0x622   : > { %v3975_v23 = vor.u32 8388608, %v3974_v59  ;;  %vm4001_vm14 = vcmp.lt.s32.totalorder %v18969_v5, 3  ;;  %v4007_v53 = vsel %vm3999_vm4, %v3986_v19, %v3989_v22  ;;  %v3431_v41 = vsel %vm15838_vm1, %v18974_v52, %v3428_v28  ;;  %19031 = vst [vmem:[#allocation90_spill] sm:$0xff] %v15891_v31 }
 0x623   : > { %v3838_v38 = vor.u32 4788187, %v3837_v58  ;;  %v3614_v13 = vshll.u32 %v3613_v57, 30  ;;  %v4009_v27 = vsel %vm4001_vm14, %v3992_v21, %v19030_v11  ;;  %11600 = vcosq.f32 %v3431_v41 }
 0x624   : > { %v3983_v59 = vshrl.u32 %v18636_v48, %v19029_v26  ;;  %vm4000_vm7 = vcmp.lt.s32.totalorder %v18969_v5, 2  ;;  %vm19032_vm13 = vcmp.lt.s32.totalorder %v18969_v5, 4  ;;  %11602 = vsinq.f32 %v3431_v41 }
 0x625   : > { %v4004_v18 = vsel %vm19032_vm13, %v3992_v21, 2102212464  ;;  %v3839_v46 = vand.u32 2147483647, %v3838_v38  ;;  %v3841_v45 = vcvt.s32.f32 %v3834_v29  ;;  %v15898_v58 = vsub.s32 %v3611_v4, %v3614_v13  ;;  %v19034_v38 = vld [vmem:[#allocation56_spill] sm:$0xff] }
 0x626   : > { %v4010_v51 = vsel %vm4000_vm7, %v4007_v53, %v4009_v27  ;;  %v4011_v24 = vsel %vm3999_vm4, %v3989_v22, %v3992_v21  ;;  %v4013_v26 = vsel %vm4001_vm14, %v19033_v62, %v15573_v60  ;;  %v4015_v54 = vshll.u32 %v3975_v23, 8 }
 0x627   : > { %v3842_v50 = vmul.f32 %v3841_v45, %v3839_v46  ;;  %v3617_v35 = vsub.s32 0, %v15898_v58  ;;  %v4003_v10 = vsel %vm3999_vm4, %v3983_v59, %v3986_v19  ;;  %v4014_v4 = vsel %vm4000_vm7, %v4011_v24, %v4013_v26  ;;  %v19036_v19 = vld [vmem:[#allocation53_spill] sm:$0xff] }
 0x628   : > { %v3637_v12 = vsub.s32 4, %v3613_v57  ;;  %v4005_v29 = vsel %vm4001_vm14, %v3989_v22, %v4004_v18  ;;  %v15915_v21 = vmul.u32.u64.low %v4015_v54, %v4014_v4  ;;  %v15916_v28 = vmul.u32.u64.high %v4015_v54, %v4014_v4, %v15915_v21  ;;  %v19038_v22 = vld [vmem:[#allocation34_spill] sm:$0xff] }
 0x629   : > { %v3843_v53 = vxor.u32 2147483648, %v3842_v50  ;;  %v10973_v60 = vmin.u32 %v3617_v35, %v15898_v58  ;;  %v15919_v23 = vmul.u32.u64.low %v4015_v54, %v4010_v51  ;;  %v15920_v41 = vmul.u32.u64.high %v4015_v54, %v4010_v51, %v15919_v23  ;;  %v19044_v21 = vld [vmem:[#allocation54_spill] sm:$0xff] }
 0x62a   : > { %v19035_v13 = vand.u32 2147483647, %v19034_v38  ;;  %v19037_v11 = vcvt.s32.f32 %v19036_v19  ;;  %vm3553_vm13 = vcmp.lt.s32.totalorder %v19000_v15, 0  ;;  %11604 = vsinq.f32 %v15813_v30  ;;  %v19048_v38 = vld [vmem:[#allocation35_spill] sm:$0xff] }
 0x62b   : > { %v3325_v59 = vsub.s32 4, %v19038_v22  ;;  %v15932_v18 = vand.u32 3, %v3436_v55  ;;  %v3844_v46 = vsel %vm3761_vm12, %v3843_v53, %v3842_v50  ;;  %v19039_v45 = vand.u32 2147483647, %v19000_v15 }
 0x62c   : > { %v15927_v27 = vmul.f32 %v19037_v11, %v19035_v13  ;;  %v3619_v24 = vclz %v10973_v60  ;;  %v3847_v62 = vsel %vm15844_vm9, %v18989_v14, %v3844_v46  ;;  %v15945_v26 = vand.u32 3, %v3852_v1  ;;  %v19042_v1 = vld [vmem:[#allocation9_spill] sm:$0xff] }
 0x62d   : > { %vm15938_vm1 = vcmp.le.f32.partialorder %v19039_v45, 0.7853982  ;;  %v3607_v55 = vadd.s32 %v15831_v39, %v15829_v0  ;;  %v4006_v30 = vsel %vm4000_vm7, %v4003_v10, %v4005_v29  ;;  %11606 = vcosq.f32 %v3847_v62  ;;  %v19047_v29 = vld [vmem:[#allocation83_spill] sm:$0xff] }
 0x62e   : > { %v10974_v50 = vadd.s32 4294967294, %v3619_v24  ;;  %v3638_v35 = vsel %vm3553_vm13, %v3637_v12, %v3613_v57  ;;  %vm4024_vm12 = vc.u32 %v15916_v28, %v15919_v23  ;;  %11608 = vsinq.f32 %v3847_v62 }
 0x62f   : > { %v4025_v36 = vadd.s32 1, %v15920_v41  ;;  %vm19043_vm9 = vcmp.lt.s32.totalorder %v19042_v1, 0  ;;  %v3741_v0 = vsub.s32 4, %v19044_v21  ;;  %v4022_v5 = vmul.u32 %v4015_v54, %v4006_v30 }
 0x630   : > { %v3326_v4 = vsel %vm19043_vm9, %v3325_v59, %v19038_v22  ;;  %vm10975_vm4 = vcmp.lt.s32.totalorder %v10974_v50, 0  ;;  %v18459_v57 = vxor.u32 2147483648, %v19047_v29  ;;  %vm3438_vm14 = vcmp.lt.s32.totalorder %v15932_v18, 2  ;;  %v15971_v19 = vpop.eup %11600  ;;  %v19051_v59 = vld [vmem:[#allocation82_spill] sm:$0xff] }
 0x631   : > { %v15962_v10 = vsel %vm13539_vm3, 0, %v3326_v4  ;;  %v3622_v12 = vsel %vm10975_vm4, 0, %v10974_v50  ;;  %v4026_v53 = vsel %vm4024_vm12, %v4025_v36, %v15920_v41  ;;  %vm19049_vm7 = vcmp.lt.s32.totalorder %v19048_v38, 0  ;;  %19050 = vst [vmem:[#allocation89_spill] sm:$0xff] %v15971_v19  ;;  %v15974_v45 = vpop.eup %11602 }
 0x632   : > { %19046 = vst [vmem:[#allocation95_spill] sm:$0xff] %v15962_v10  ;;  %v3332_v60 = vadd.s32 3, %v15962_v10  ;;  %v3742_v13 = vsel %vm19049_vm7, %v3741_v0, %v19044_v21  ;;  %v3623_v54 = vsub.s32 32, %v3622_v12  ;;  %v3627_v11 = vsub.s32 4294967266, %v3622_v12  ;;  %19052 = vst [vmem:[#allocation59_spill] sm:$0xff] %v15974_v45 }
 0x633   : > { %v4027_v22 = vadd.s32 %v4026_v53, %v4022_v5  ;;  %v18460_v46 = vxor.u32 2147483648, %v19051_v59  ;;  %v18456_v24 = vxor.u32 2147483648, %v15971_v19  ;;  %v3624_v62 = vshll.u32 %v15898_v58, %v3622_v12 }
 0x634   : > { %v3333_v41 = vand.u32 3, %v3332_v60  ;;  %v15980_v50 = vsel %vm13692_vm10, 0, %v3742_v13  ;;  %v18457_v36 = vxor.u32 2147483648, %v15974_v45  ;;  %v3625_v4 = vshrl.u32 %v3607_v55, %v3623_v54 }
 0x635   : > { %19054 = vst [vmem:[#allocation55_spill] sm:$0xff] %v15980_v50  ;;  %v3628_v21 = vadd.s32 127, %v3627_v11  ;;  %v4028_v0 = vadd.s32 536870912, %v4027_v22  ;;  %vm3439_vm3 = vcmp.eq.s32.totalorder %v15932_v18, 0  ;;  %vm3442_vm12 = vcmp.eq.s32.totalorder %v15932_v18, 2 }
 0x636   : > { %vm3858_vm9 = vcmp.eq.s32.totalorder %v15945_v26, 2  ;;  %v15988_v5 = vsel %vm15938_vm1, 0, %v3638_v35  ;;  %vm3969_vm4 = vcmp.lt.s32.totalorder %v19019_v44, 0  ;;  %v3444_v58 = vsel %vm3442_vm12, %v18456_v24, %v15974_v45 }
 0x637   : > { %19055 = vst [vmem:[#allocation58_spill] sm:$0xff] %v15988_v5  ;;  %vm3855_vm10 = vcmp.eq.s32.totalorder %v15945_v26, 0  ;;  %v3626_v55 = vor.u32 %v3625_v4, %v3624_v62  ;;  %v3629_v39 = vshll.u32 %v3628_v21, 23  ;;  %v4029_v12 = vshrl.u32 %v4028_v0, 30  ;;  %v16000_v60 = vpop.eup %11604  ;;  %v19066_v0 = vld [vmem:[#allocation40_spill] sm:$0xff] }
 0x638   : > { %v3441_v53 = vsel %vm3439_vm3, %v15971_v19, %v18457_v36  ;;  %vm3854_vm7 = vcmp.lt.s32.totalorder %v15945_v26, 2  ;;  %vm3335_vm5 = vcmp.eq.s32.totalorder %v3333_v41, 0  ;;  %vm3338_vm8 = vcmp.eq.s32.totalorder %v3333_v41, 2  ;;  %19056 = vst [vmem:[#allocation66_spill] sm:$0xff] %v16000_v60  ;;  %v19061_v36 = vld [vmem:[#allocation5_spill] sm:$0xff] }
 0x639   : > { %v3748_v35 = vadd.s32 3, %v15980_v50  ;;  %vm18535_vm2 = vweird.f32 %v18974_v52  ;;  %v3630_v13 = vor.u32 4788187, %v3629_v39  ;;  %v4030_v54 = vshll.u32 %v4029_v12, 30  ;;  %v19060_v39 = vld [vmem:[#allocation100_spill] sm:$0xff] }
 0x63a   : > { %v3337_v11 = vsel %vm3335_vm5, %v19051_v59, %v18459_v57  ;;  %v3340_v62 = vsel %vm3338_vm8, %v18460_v46, %v19047_v29  ;;  %v19057_v30 = vand.u32 2147483647, %v19019_v44  ;;  %vm3334_vm15 = vcmp.lt.s32.totalorder %v3333_v41, 2  ;;  %v16028_v10 = vpop.eup %11606 }
 0x63b   : > { %v3749_v21 = vand.u32 3, %v3748_v35  ;;  %v19062_v50 = vand.u32 2147483647, %v19061_v36  ;;  %v3445_v46 = vsel %vm3438_vm14, %v3441_v53, %v3444_v58  ;;  %v3631_v59 = vand.u32 2147483647, %v3630_v13  ;;  %19065 = vst [vmem:[#allocation67_spill] sm:$0xff] %v16028_v10  ;;  %v16031_v19 = vpop.eup %11608 }
 0x63c   : > { %vm16012_vm3 = vcmp.le.f32.partialorder %v19057_v30, 0.7853982  ;;  %v3633_v30 = vcvt.s32.f32 %v3626_v55  ;;  %v16026_v29 = vsub.s32 %v4027_v22, %v4030_v54  ;;  %v4053_v41 = vsub.s32 4, %v4029_v12  ;;  %19067 = vst [vmem:[#allocation62_spill] sm:$0xff] %v16031_v19 }
 0x63d   : > { %vm16020_vm12 = vcmp.le.f32.partialorder %v19062_v50, 0.7853982  ;;  %v3341_v35 = vsel %vm3334_vm15, %v3337_v11, %v3340_v62  ;;  %vm3751_vm5 = vcmp.eq.s32.totalorder %v3749_v21, 0  ;;  %v3533_v24 = vsub.s32 4, %v19066_v0 }
 0x63e   : > { %v18469_v50 = vxor.u32 2147483648, %v16028_v10  ;;  %v3634_v45 = vmul.f32 %v3633_v30, %v3631_v59  ;;  %v4033_v6 = vsub.s32 0, %v16026_v29  ;;  %vm3754_vm8 = vcmp.eq.s32.totalorder %v3749_v21, 2  ;;  %v19070_v30 = vld [vmem:[#allocation8_spill] sm:$0xff] }
 0x63f   : > { %v18470_v18 = vxor.u32 2147483648, %v16031_v19  ;;  %vm3750_vm14 = vcmp.lt.s32.totalorder %v3749_v21, 2  ;;  %v19068_v22 = vxor.u32 2147483648, %v15627_v7  ;;  %v19069_v55 = vxor.u32 2147483648, %v19060_v39 }
 0x640   : > { %v3860_v59 = vsel %vm3858_vm9, %v18469_v50, %v16031_v19  ;;  %v3635_v13 = vxor.u32 2147483648, %v3634_v45  ;;  %v10989_v54 = vmin.u32 %v4033_v6, %v16026_v29  ;;  %v4054_v21 = vsel %vm3969_vm4, %v4053_v41, %v4029_v12 }
 0x641   : > { %v3753_v58 = vsel %vm3751_vm5, %v19060_v39, %v19068_v22  ;;  %v3756_v53 = vsel %vm3754_vm8, %v19069_v55, %v15627_v7  ;;  %v3857_v62 = vsel %vm3855_vm10, %v16028_v10, %v18470_v18  ;;  %vm18532_vm15 = vweird.f32 %v19042_v1  ;;  %v19092_v7 = vld [vmem:[#allocation12_spill] sm:$0xff]  ;;  %v19103_v1 = vld [vmem:[#allocation17_spill] sm:$0xff] }
 0x642   : > { %v3757_v11 = vsel %vm3750_vm14, %v3753_v58, %v3756_v53  ;;  %vm18488_vm5 = vweird.f32 %v19048_v38  ;;  %vm3033_vm8 = vcmp.lt.s32.totalorder %v19070_v30, 0  ;;  %v3861_v22 = vsel %vm3854_vm7, %v3857_v62, %v3860_v59  ;;  %v19076_v53 = vld [vmem:[#allocation21_spill] sm:$0xff]  ;;  %v19080_v62 = vld [vmem:[#allocation47_spill] sm:$0xff]  ;;  %v19102_v38 = vld [vmem:[#allocation22_spill] sm:$0xff] }
 0x643   : > { %v3636_v6 = vsel %vm3553_vm13, %v3635_v13, %v3634_v45  ;;  %v4035_v58 = vclz %v10989_v54  ;;  %v16064_v55 = vsel %vm18488_vm5, nan, %v3757_v11  ;;  %v16068_v12 = vsel %vm18535_vm2, nan, %v3445_v46  ;;  %v19079_v11 = vld [vmem:[#allocation52_spill] sm:$0xff] }
 0x644   : > { %19071 = vst [vmem:[#allocation76_spill] sm:$0xff] %v16064_v55  ;;  %19072 = vst [vmem:[#allocation74_spill] sm:$0xff] %v16068_v12  ;;  %vm19073_vm9 = vweird.f32 %v18989_v14  ;;  %v16076_v26 = vsel %vm18532_vm15, nan, %v3341_v35  ;;  %vm19077_vm13 = vcmp.lt.s32.totalorder %v19076_v53, 0  ;;  %v3639_v46 = vsel %vm15938_vm1, %v19000_v15, %v3636_v6 }
 0x645   : > { %v16072_v41 = vsel %vm19073_vm9, nan, %v3861_v22  ;;  %19075 = vst [vmem:[#allocation92_spill] sm:$0xff] %v16076_v26  ;;  %v3534_v45 = vsel %vm19077_vm13, %v3533_v24, %v19066_v0  ;;  %v10990_v13 = vadd.s32 4294967294, %v4035_v58  ;;  %v16088_v54 = vsel %vm16012_vm3, 0, %v4054_v21  ;;  %v19083_v58 = vld [vmem:[#allocation68_spill] sm:$0xff] }
 0x646   : > { %19074 = vst [vmem:[#allocation85_spill] sm:$0xff] %v16072_v41  ;;  %v9197_v59 = vpack.c.bf16 %v16072_v41, %v16068_v12  ;;  %19078 = vst [vmem:[#allocation88_spill] sm:$0xff] %v16088_v54  ;;  %v16094_v35 = vsel %vm16020_vm12, %v19061_v36, %v19079_v11  ;;  %v3162_v24 = vshrl.u32 %v18622_v42, %v19080_v62  ;;  %v3115_v22 = vxor.u32 2147483648, %v15927_v27  ;;  %v19084_v21 = vld [vmem:[#allocation48_spill] sm:$0xff]  ;;  %v19086_v12 = vld [vmem:[#allocation6_spill] sm:$0xff] }
 0x647   : > { %v16100_v0 = vshrl.u32 %v18623_v20, %v19080_v62  ;;  %v9196_v51 = vpack.c.bf16 %v16064_v55, %v16076_v26  ;;  %vm10991_vm1 = vcmp.lt.s32.totalorder %v10990_v13, 0  ;;  %v16107_v6 = vsel %vm13549_vm6, 0, %v3534_v45 }
 0x648   : > { %9252 = vmatprep.subr.bf16.mxu0 %v9197_v59  ;;  %19082 = vst [vmem:[#allocation91_spill] sm:$0xff] %v16107_v6  ;;  %v3949_v11 = vsub.s32 4, %v19083_v58  ;;  %11610 = vcosq.f32 %v3639_v46  ;;  %v3644_v42 = vadd.s32 3, %v15988_v5  ;;  %v4038_v50 = vsel %vm10991_vm1, 0, %v10990_v13 }
 0x649   : > { %v4060_v20 = vadd.s32 3, %v16088_v54  ;;  %9253 = vmatpush1.bf16.msra.mxu0 %v9196_v51  ;;  %11612 = vsinq.f32 %v3639_v46  ;;  %v4023_v18 = vadd.s32 %v15919_v23, %v15916_v28  ;;  %v4039_v55 = vsub.s32 32, %v4038_v50 }
 0x64a   : > { %v4043_v59 = vsub.s32 4294967266, %v4038_v50  ;;  %11614 = vcosq.f32 %v16094_v35  ;;  %v16116_v45 = vor.u32 %v3162_v24, %v19084_v21  ;;  %v3540_v26 = vadd.s32 3, %v16107_v6 }
 0x64b   : > { %vm19085_vm6 = vcmp.lt.s32.totalorder %v18999_v34, 0  ;;  %v4040_v41 = vshll.u32 %v16026_v29, %v4038_v50  ;;  %v4041_v51 = vshrl.u32 %v4023_v18, %v4039_v55  ;;  %v16127_v28 = vsel %vm3033_vm8, %v3115_v22, %v15927_v27  ;;  %v19088_v29 = vld [vmem:[#allocation99_spill] sm:$0xff]  ;;  %v19090_v22 = vld [vmem:[#allocation14_spill] sm:$0xff] }
 0x64c   : > { %v3950_v13 = vsel %vm19085_vm6, %v3949_v11, %v19083_v58  ;;  %v4044_v46 = vadd.s32 127, %v4043_v59  ;;  %v16129_v23 = vand.u32 3, %v3644_v42  ;;  %v16131_v24 = vand.u32 3, %v4060_v20  ;;  %v19089_v59 = vld [vmem:[#allocation84_spill] sm:$0xff] }
 0x64d   : > { %v16135_v21 = vsel %vm15760_vm0, 0, %v3950_v13  ;;  %v4042_v58 = vor.u32 %v4041_v51, %v4040_v41  ;;  %v16139_v55 = vand.u32 3, %v3540_v26  ;;  %v2529_v42 = vshrl.u32 %v18641_v8, %v19090_v22 }
 0x64e   : > { %19087 = vst [vmem:[#allocation65_spill] sm:$0xff] %v16135_v21  ;;  %v4045_v11 = vshll.u32 %v4044_v46, 23  ;;  %v3956_v18 = vadd.s32 3, %v16135_v21  ;;  %v19091_v32 = vand.u32 2147483647, %v19086_v12  ;;  %v2528_v41 = vshll.u32 %v18636_v48, %v19092_v7 }
 0x64f   : > { %v2531_v51 = vshll.u32 %v18641_v8, %v19092_v7  ;;  %v2532_v26 = vshrl.u32 %v18642_v61, %v19090_v22  ;;  %v2534_v27 = vshll.u32 %v18642_v61, %v19092_v7  ;;  %v2535_v39 = vshrl.u32 %v18633_v47, %v19090_v22 }
 0x650   : > { %v4046_v20 = vor.u32 4788187, %v4045_v11  ;;  %v2518_v13 = vand.u32 8388607, %v19091_v32  ;;  %v3957_v46 = vand.u32 3, %v3956_v18  ;;  %v4049_v50 = vcvt.s32.f32 %v4042_v58 }
 0x651   : > { %v18494_v32 = vxor.u32 2147483648, %v15891_v31  ;;  %v2527_v21 = vshrl.u32 %v18636_v48, %v19090_v22  ;;  %vm3543_vm0 = vcmp.eq.s32.totalorder %v16139_v55, 0  ;;  %v2530_v6 = vor.u32 %v2529_v42, %v2528_v41 }
 0x652   : > { %v4047_v11 = vand.u32 2147483647, %v4046_v20  ;;  %v2533_v18 = vor.u32 %v2532_v26, %v2531_v51  ;;  %v2536_v10 = vor.u32 %v2535_v39, %v2534_v27  ;;  %vm3650_vm10 = vcmp.eq.s32.totalorder %v16129_v23, 2  ;;  %v19097_v51 = vld [vmem:[#allocation13_spill] sm:$0xff] }
 0x653   : > { %vm3542_vm7 = vcmp.lt.s32.totalorder %v16139_v55, 2  ;;  %v19093_v7 = vxor.u32 2147483648, %v19088_v29  ;;  %vm3546_vm14 = vcmp.eq.s32.totalorder %v16139_v55, 2  ;;  %v2519_v58 = vor.u32 8388608, %v2518_v13 }
 0x654   : > { %v4050_v19 = vmul.f32 %v4049_v50, %v4047_v11  ;;  %vm3647_vm9 = vcmp.eq.s32.totalorder %v16129_v23, 0  ;;  %v19094_v22 = vxor.u32 2147483648, %v19089_v59  ;;  %vm3958_vm13 = vcmp.lt.s32.totalorder %v3957_v46, 2 }
 0x655   : > { %v3545_v20 = vsel %vm3543_vm0, %v19089_v59, %v19093_v7  ;;  %vm3959_vm1 = vcmp.eq.s32.totalorder %v3957_v46, 0  ;;  %vm3962_vm6 = vcmp.eq.s32.totalorder %v3957_v46, 2  ;;  %v16171_v39 = vpop.eup %11610  ;;  %v19096_v27 = vxor.u32 2147483648, %v16000_v60 }
 0x656   : > { %v3548_v42 = vsel %vm3546_vm14, %v19094_v22, %v19088_v29  ;;  %19095 = vst [vmem:[#allocation61_spill] sm:$0xff] %v16171_v39  ;;  %v4051_v50 = vxor.u32 2147483648, %v4050_v19  ;;  %vm2543_vm0 = vcmp.lt.s32.totalorder %v19097_v51, 1  ;;  %vm2545_vm5 = vcmp.lt.s32.totalorder %v19097_v51, 3  ;;  %v16178_v13 = vpop.eup %11612  ;;  %v19100_v22 = vld [vmem:[#allocation18_spill] sm:$0xff] }
 0x657   : > { %v3961_v41 = vsel %vm3959_vm1, %v15891_v31, %v19096_v27  ;;  %19098 = vst [vmem:[#allocation64_spill] sm:$0xff] %v16178_v13  ;;  %v3964_v26 = vsel %vm3962_vm6, %v18494_v32, %v16000_v60  ;;  %vm19099_vm14 = vcmp.lt.s32.totalorder %v19097_v51, 4  ;;  %v2551_v7 = vsel %vm2543_vm0, %v2530_v6, %v2533_v18  ;;  %v16188_v29 = vpop.eup %11614 }
 0x658   : > { %v2548_v11 = vsel %vm19099_vm14, %v2536_v10, 2102212464  ;;  %v2553_v59 = vsel %vm2545_vm5, %v2536_v10, %v19100_v22  ;;  %19101 = vst [vmem:[#allocation73_spill] sm:$0xff] %v16188_v29  ;;  %v4052_v27 = vsel %vm3969_vm4, %v4051_v50, %v4050_v19  ;;  %vm2544_vm1 = vcmp.lt.s32.totalorder %v19097_v51, 2 }
 0x659   : > { %v2547_v54 = vsel %vm2543_vm0, %v2527_v21, %v2530_v6  ;;  %v2549_v31 = vsel %vm2545_vm5, %v2533_v18, %v2548_v11  ;;  %v4055_v60 = vsel %vm16012_vm3, %v19019_v44, %v4052_v27  ;;  %v2554_v5 = vsel %vm2544_vm1, %v2551_v7, %v2553_v59  ;;  %v19104_v11 = vld [vmem:[#allocation10_spill] sm:$0xff] }
 0x65a   : > { %v2555_v40 = vsel %vm2543_vm0, %v2533_v18, %v2536_v10  ;;  %v18501_v22 = vxor.u32 2147483648, %v16178_v13  ;;  %11616 = vcosq.f32 %v4055_v60  ;;  %v2557_v19 = vsel %vm2545_vm5, %v19103_v1, %v19102_v38 }
 0x65b   : > { %v2559_v6 = vshll.u32 %v2519_v58, 8  ;;  %vm3646_vm4 = vcmp.lt.s32.totalorder %v16129_v23, 2  ;;  %11618 = vsinq.f32 %v4055_v60  ;;  %v2550_v21 = vsel %vm2544_vm1, %v2547_v54, %v2549_v31  ;;  %v19106_v60 = vld [vmem:[#allocation20_spill] sm:$0xff]  ;;  %v19107_v58 = vld [vmem:[#allocation25_spill] sm:$0xff] }
 0x65c   : > { %v2558_v50 = vsel %vm2544_vm1, %v2555_v40, %v2557_v19  ;;  %v18502_v32 = vand.u32 2147483647, %v19104_v11  ;;  %v19105_v18 = vxor.u32 2147483648, %v16171_v39  ;;  %v3549_v38 = vsel %vm3542_vm7, %v3545_v20, %v3548_v42 }
 0x65d   : > { %v16206_v4 = vmul.u32.u64.low %v2559_v6, %v2558_v50  ;;  %v16207_v27 = vmul.u32.u64.high %v2559_v6, %v2558_v50, %v16206_v4  ;;  %v16209_v10 = vmul.u32.u64.low %v2559_v6, %v2554_v5  ;;  %v16210_v59 = vmul.u32.u64.high %v2559_v6, %v2554_v5, %v16209_v10 }
 0x65e   : > { %v3652_v1 = vsel %vm3650_vm10, %v19105_v18, %v16178_v13  ;;  %v3965_v40 = vsel %vm3958_vm13, %v3961_v41, %v3964_v26  ;;  %v2934_v31 = vand.u32 8388607, %v18502_v32  ;;  %v3649_v5 = vsel %vm3647_vm9, %v16171_v39, %v18501_v22  ;;  %v19108_v4 = vld [vmem:[#allocation24_spill] sm:$0xff]  ;;  %v19110_v22 = vld [vmem:[#allocation30_spill] sm:$0xff] }
 0x65f   : > { %v2944_v54 = vshll.u32 %v18636_v48, %v19106_v60  ;;  %v2945_v51 = vshrl.u32 %v18641_v8, %v19107_v58  ;;  %v2948_v55 = vshrl.u32 %v18642_v61, %v19107_v58  ;;  %vm18520_vm3 = vweird.f32 %v19076_v53 }
 0x660   : > { %v2566_v46 = vmul.u32 %v2559_v6, %v2550_v21  ;;  %v2947_v20 = vshll.u32 %v18641_v8, %v19106_v60  ;;  %v2950_v42 = vshll.u32 %v18642_v61, %v19106_v60  ;;  %v2951_v41 = vshrl.u32 %v18633_v47, %v19107_v58  ;;  %v19109_v60 = vld [vmem:[#allocation42_spill] sm:$0xff] }
 0x661   : > { %vm18534_vm5 = vweird.f32 %v19000_v15  ;;  %vm2568_vm10 = vc.u32 %v16207_v27, %v16209_v10  ;;  %v2569_v26 = vadd.s32 1, %v16210_v59  ;;  %v2935_v7 = vor.u32 8388608, %v2934_v31 }
 0x662   : > { %v2946_v19 = vor.u32 %v2945_v51, %v2944_v54  ;;  %v2943_v6 = vshrl.u32 %v18636_v48, %v19107_v58  ;;  %v2949_v21 = vor.u32 %v2948_v55, %v2947_v20  ;;  %v2952_v50 = vor.u32 %v2951_v41, %v2950_v42  ;;  %v19112_v55 = vld [vmem:[#allocation37_spill] sm:$0xff] }
 0x663   : > { %vm2961_vm7 = vcmp.lt.s32.totalorder %v19108_v4, 3  ;;  %vm4063_vm9 = vcmp.eq.s32.totalorder %v16131_v24, 0  ;;  %v2570_v18 = vsel %vm2568_vm10, %v2569_v26, %v16210_v59  ;;  %vm2959_vm13 = vcmp.lt.s32.totalorder %v19108_v4, 1 }
 0x664   : > { %vm2960_vm6 = vcmp.lt.s32.totalorder %v19108_v4, 2  ;;  %v2973_v31 = vsel %vm2961_vm7, %v19110_v22, %v19109_v60  ;;  %vm4062_vm0 = vcmp.lt.s32.totalorder %v16131_v24, 2  ;;  %v2571_v54 = vadd.s32 %v2570_v18, %v2566_v46 }
 0x665   : > { %vm19111_vm14 = vcmp.lt.s32.totalorder %v19108_v4, 4  ;;  %v2967_v51 = vsel %vm2959_vm13, %v2946_v19, %v2949_v21  ;;  %v2969_v59 = vsel %vm2961_vm7, %v2952_v50, %v19112_v55  ;;  %v3653_v20 = vsel %vm3646_vm4, %v3649_v5, %v3652_v1 }
 0x666   : > { %v2964_v58 = vsel %vm19111_vm14, %v2952_v50, 2102212464  ;;  %vm18533_vm1 = vweird.f32 %v19019_v44  ;;  %v2970_v42 = vsel %vm2960_vm6, %v2967_v51, %v2969_v59  ;;  %v2971_v22 = vsel %vm2959_vm13, %v2949_v21, %v2952_v50  ;;  %v19120_v59 = vld [vmem:[#allocation31_spill] sm:$0xff] }
 0x667   : > { %v2975_v41 = vshll.u32 %v2935_v7, 8  ;;  %v2572_v26 = vadd.s32 536870912, %v2571_v54  ;;  %v2963_v46 = vsel %vm2959_vm13, %v2943_v6, %v2946_v19  ;;  %v2965_v18 = vsel %vm2961_vm7, %v2949_v21, %v2964_v58  ;;  %v16278_v5 = vpop.eup %11616  ;;  %v19117_v6 = vld [vmem:[#allocation15_spill] sm:$0xff] }
 0x668   : > { %v2974_v60 = vsel %vm2960_vm6, %v2971_v22, %v2973_v31  ;;  %19113 = vst [vmem:[#allocation75_spill] sm:$0xff] %v16278_v5  ;;  %v19114_v50 = vand.u32 2147483647, %v19070_v30  ;;  %vm4066_vm10 = vcmp.eq.s32.totalorder %v16131_v24, 2  ;;  %vm18519_vm7 = vweird.f32 %v18999_v34 }
 0x669   : > { %v16271_v32 = vmul.u32.u64.low %v2975_v41, %v2974_v60  ;;  %v16272_v55 = vmul.u32.u64.high %v2975_v41, %v2974_v60, %v16271_v32  ;;  %v16274_v23 = vmul.u32.u64.low %v2975_v41, %v2970_v42  ;;  %v16275_v1 = vmul.u32.u64.high %v2975_v41, %v2970_v42, %v16274_v23 }
 0x66a   : > { %vm16282_vm4 = vcmp.le.f32.partialorder %v19114_v50, 0.7853982  ;;  %v2573_v19 = vshrl.u32 %v2572_v26, 30  ;;  %v16289_v32 = vpop.eup %11618  ;;  %vm2513_vm13 = vcmp.lt.s32.totalorder %v19086_v12, 0  ;;  %v18505_v31 = vxor.u32 2147483648, %v16278_v5 }
 0x66b   : > { %19118 = vst [vmem:[#allocation72_spill] sm:$0xff] %v16289_v32  ;;  %v16295_v58 = vsel %vm18520_vm3, nan, %v3549_v38  ;;  %v2966_v51 = vsel %vm2960_vm6, %v2963_v46, %v2965_v18  ;;  %v2737_v42 = vshrl.u32 %v18641_v8, %v19120_v59  ;;  %v16303_v22 = vsel %vm18534_vm5, nan, %v3653_v20  ;;  %v19123_v20 = vld [vmem:[#allocation29_spill] sm:$0xff] }
 0x66c   : > { %19119 = vst [vmem:[#allocation77_spill] sm:$0xff] %v16295_v58  ;;  %19121 = vst [vmem:[#allocation87_spill] sm:$0xff] %v16303_v22  ;;  %v18514_v26 = vxor.u32 2147483648, %v16289_v32  ;;  %v16308_v60 = vsel %vm18519_vm7, nan, %v3965_v40  ;;  %v2574_v50 = vshll.u32 %v2573_v19, 30  ;;  %v4068_v38 = vsel %vm4066_vm10, %v18505_v31, %v16289_v32 }
 0x66d   : > { %19122 = vst [vmem:[#allocation97_spill] sm:$0xff] %v16308_v60  ;;  %vm2984_vm6 = vc.u32 %v16272_v55, %v16274_v23  ;;  %v2985_v4 = vadd.s32 1, %v16275_v1  ;;  %v2736_v46 = vshll.u32 %v18636_v48, %v19123_v20  ;;  %v2982_v21 = vmul.u32 %v2975_v41, %v2966_v51 }
 0x66e   : > { %v4065_v40 = vsel %vm4063_vm9, %v16278_v5, %v18514_v26  ;;  %v16325_v18 = vsub.s32 %v2571_v54, %v2574_v50  ;;  %v19124_v39 = vand.u32 2147483647, %v19117_v6  ;;  %v2597_v34 = vsub.s32 4, %v2573_v19 }
 0x66f   : > { %v4069_v13 = vsel %vm4062_vm0, %v4065_v40, %v4068_v38  ;;  %v2986_v53 = vsel %vm2984_vm6, %v2985_v4, %v16275_v1  ;;  %v2738_v15 = vor.u32 %v2737_v42, %v2736_v46  ;;  %v2739_v54 = vshll.u32 %v18641_v8, %v19123_v20  ;;  %v19130_v46 = vld [vmem:[#allocation46_spill] sm:$0xff] }
 0x670   : > { %v2726_v31 = vand.u32 8388607, %v19124_v39  ;;  %v16334_v32 = vsel %vm18533_vm1, nan, %v4069_v13  ;;  %v2577_v14 = vsub.s32 0, %v16325_v18  ;;  %v2987_v26 = vadd.s32 %v2986_v53, %v2982_v21  ;;  %v19126_v13 = vld [vmem:[#allocation49_spill] sm:$0xff] }
 0x671   : > { %19125 = vst [vmem:[#allocation93_spill] sm:$0xff] %v16334_v32  ;;  %v9199_v39 = vpack.c.bf16 %v16334_v32, %v16303_v22  ;;  %v2740_v24 = vshrl.u32 %v18642_v61, %v19120_v59  ;;  %v2742_v41 = vshll.u32 %v18642_v61, %v19123_v20  ;;  %v2743_v1 = vshrl.u32 %v18633_v47, %v19120_v59 }
 0x672   : > { %v3166_v51 = vor.u32 %v16100_v0, %v19126_v13  ;;  %v9198_v53 = vpack.c.bf16 %v16308_v60, %v16295_v58  ;;  %v10933_v21 = vmin.u32 %v2577_v14, %v16325_v18  ;;  %v2988_v42 = vadd.s32 536870912, %v2987_v26  ;;  %v19131_v13 = vld [vmem:[#allocation28_spill] sm:$0xff] }
 0x673   : > { %v16356_v50 = vsel %vm16282_vm4, %v19070_v30, %v16127_v28  ;;  %9325 = vmatprep.subr.bf16.mxu1 %v9199_v39  ;;  %v19127_v38 = vand.u32 2147483647, %v19086_v12  ;;  %v2741_v0 = vor.u32 %v2740_v24, %v2739_v54  ;;  %v2744_v20 = vor.u32 %v2743_v1, %v2742_v41  ;;  %v19132_v24 = vld [vmem:[#allocation38_spill] sm:$0xff]  ;;  %v19135_v1 = vld [vmem:[#allocation41_spill] sm:$0xff] }
 0x674   : > { %vm3170_vm0 = vcmp.lt.s32.totalorder %v19130_v46, 4  ;;  %9326 = vmatpush1.bf16.msra.mxu1 %v9198_v53  ;;  %v2567_v14 = vadd.s32 %v16209_v10, %v16207_v27  ;;  %v2579_v40 = vclz %v10933_v21  ;;  %v2598_v28 = vsel %vm2513_vm13, %v2597_v34, %v2573_v19  ;;  %v19136_v53 = vld [vmem:[#allocation36_spill] sm:$0xff] }
 0x675   : > { %vm16360_vm9 = vcmp.le.f32.partialorder %v19127_v38, 0.7853982  ;;  %vm2751_vm14 = vcmp.lt.s32.totalorder %v19131_v13, 1  ;;  %v2989_v39 = vshrl.u32 %v2988_v42, 30  ;;  %v2727_v58 = vor.u32 8388608, %v2726_v31 }
 0x676   : > { %vm2753_vm10 = vcmp.lt.s32.totalorder %v19131_v13, 3  ;;  %v2759_v38 = vsel %vm2751_vm14, %v2738_v15, %v2741_v0  ;;  %v10934_v60 = vadd.s32 4294967294, %v2579_v40  ;;  %v2735_v54 = vshrl.u32 %v18636_v48, %v19120_v59 }
 0x677   : > { %v2761_v41 = vsel %vm2753_vm10, %v2744_v20, %v19132_v24  ;;  %v2763_v27 = vsel %vm2751_vm14, %v2741_v0, %v2744_v20  ;;  %v16378_v10 = vsel %vm16360_vm9, 0, %v2598_v28  ;;  %v2990_v34 = vshll.u32 %v2989_v39, 30 }
 0x678   : > { %19133 = vst [vmem:[#allocation56_spill] sm:$0xff] %v16378_v10  ;;  %vm2752_vm6 = vcmp.lt.s32.totalorder %v19131_v13, 2  ;;  %vm19134_vm7 = vcmp.lt.s32.totalorder %v19131_v13, 4  ;;  %vm10935_vm3 = vcmp.lt.s32.totalorder %v10934_v60, 0  ;;  %v2755_v31 = vsel %vm2751_vm14, %v2735_v54, %v2738_v15 }
 0x679   : > { %v2756_v19 = vsel %vm19134_vm7, %v2744_v20, 2102212464  ;;  %v2762_v59 = vsel %vm2752_vm6, %v2759_v38, %v2761_v41  ;;  %v2765_v21 = vsel %vm2753_vm10, %v19136_v53, %v19135_v1  ;;  %v2582_v42 = vsel %vm10935_vm3, 0, %v10934_v60 }
 0x67a   : > { %v16389_v40 = vsub.s32 %v2987_v26, %v2990_v34  ;;  %v2766_v28 = vsel %vm2752_vm6, %v2763_v27, %v2765_v21  ;;  %v2767_v24 = vshll.u32 %v2727_v58, 8  ;;  %v2583_v22 = vsub.s32 32, %v2582_v42 }
 0x67b   : > { %v2587_v32 = vsub.s32 4294967266, %v2582_v42  ;;  %v3013_v20 = vsub.s32 4, %v2989_v39  ;;  %v2757_v15 = vsel %vm2753_vm10, %v2741_v0, %v2756_v19  ;;  %v2584_v38 = vshll.u32 %v16325_v18, %v2582_v42 }
 0x67c   : > { %v2993_v54 = vsub.s32 0, %v16389_v40  ;;  %v16397_v41 = vmul.u32.u64.low %v2767_v24, %v2766_v28  ;;  %v16398_v5 = vmul.u32.u64.high %v2767_v24, %v2766_v28, %v16397_v41  ;;  %v2585_v60 = vshrl.u32 %v2567_v14, %v2583_v22 }
 0x67d   : > { %v2588_v26 = vadd.s32 127, %v2587_v32  ;;  %v16400_v34 = vmul.u32.u64.low %v2767_v24, %v2762_v59  ;;  %v16401_v1 = vmul.u32.u64.high %v2767_v24, %v2762_v59, %v16400_v34  ;;  %11620 = vsinq.f32 %v16094_v35 }
 0x67e   : > { %v16408_v58 = vsel %vm3170_vm0, %v16116_v45, 920167782  ;;  %v10949_v18 = vmin.u32 %v2993_v54, %v16389_v40  ;;  %v16413_v0 = vsel %vm3170_vm0, %v3166_v51, 1326507024  ;;  %v2586_v27 = vor.u32 %v2585_v60, %v2584_v38 }
 0x67f   : > { %v2589_v22 = vshll.u32 %v2588_v26, 23  ;;  %v2604_v32 = vadd.s32 3, %v16378_v10  ;;  %11622 = vcosq.f32 %v16356_v50  ;;  %vm2929_vm3 = vcmp.lt.s32.totalorder %v19104_v11, 0 }
 0x680   : > { %v2995_v35 = vclz %v10949_v18  ;;  %v2758_v14 = vsel %vm2752_vm6, %v2755_v31, %v2757_v15  ;;  %v19137_v59 = vand.u32 2147483647, %v19104_v11  ;;  %v3014_v51 = vsel %vm2929_vm3, %v3013_v20, %v2989_v39  ;;  %v19140_v31 = vld [vmem:[#allocation26_spill] sm:$0xff] }
 0x681   : > { %v2590_v19 = vor.u32 4788187, %v2589_v22  ;;  %vm2776_vm14 = vc.u32 %v16398_v5, %v16400_v34  ;;  %v2983_v21 = vadd.s32 %v16274_v23, %v16272_v55  ;;  %v2777_v13 = vadd.s32 1, %v16401_v1 }
 0x682   : > { %vm16422_vm7 = vcmp.le.f32.partialorder %v19137_v59, 0.7853982  ;;  %v10950_v42 = vadd.s32 4294967294, %v2995_v35  ;;  %v18527_v28 = vand.u32 2147483647, %v19140_v31  ;;  %v2593_v38 = vcvt.s32.f32 %v2586_v27 }
 0x683   : > { %v2591_v15 = vand.u32 2147483647, %v2590_v19  ;;  %v16434_v54 = vand.u32 3, %v2604_v32  ;;  %v2774_v41 = vmul.u32 %v2767_v24, %v2758_v14  ;;  %vm2721_vm10 = vcmp.lt.s32.totalorder %v19117_v6, 0  ;;  %v19141_v32 = vld [vmem:[#allocation43_spill] sm:$0xff] }
 0x684   : > { %vm10951_vm6 = vcmp.lt.s32.totalorder %v10950_v42, 0  ;;  %v16439_v39 = vsel %vm16422_vm7, 0, %v3014_v51  ;;  %v2778_v20 = vsel %vm2776_vm14, %v2777_v13, %v16401_v1  ;;  %v3153_v55 = vshrl.u32 %v18641_v8, %v19080_v62 }
 0x685   : > { %v2594_v23 = vmul.f32 %v2593_v38, %v2591_v15  ;;  %v2998_v60 = vsel %vm10951_vm6, 0, %v10950_v42  ;;  %v2779_v26 = vadd.s32 %v2778_v20, %v2774_v41  ;;  %v3156_v18 = vshrl.u32 %v18642_v61, %v19080_v62 }
 0x686   : > { %v2999_v27 = vsub.s32 32, %v2998_v60  ;;  %v3003_v24 = vsub.s32 4294967266, %v2998_v60  ;;  %v3142_v22 = vand.u32 8388607, %v18527_v28  ;;  %v3152_v35 = vshll.u32 %v18636_v48, %v19141_v32 }
 0x687   : > { %v2595_v14 = vxor.u32 2147483648, %v2594_v23  ;;  %v19142_v1 = vand.u32 2147483647, %v19117_v6  ;;  %v2780_v59 = vadd.s32 536870912, %v2779_v26  ;;  %v3155_v51 = vshll.u32 %v18641_v8, %v19141_v32 }
 0x688   : > { %v3159_v42 = vshrl.u32 %v18633_v47, %v19080_v62  ;;  %v3000_v13 = vshll.u32 %v16389_v40, %v2998_v60  ;;  %v3001_v15 = vshrl.u32 %v2983_v21, %v2999_v27  ;;  %v3004_v38 = vadd.s32 127, %v3003_v24 }
 0x689   : > { %vm16452_vm14 = vcmp.le.f32.partialorder %v19142_v1, 0.7853982  ;;  %v3158_v41 = vshll.u32 %v18642_v61, %v19141_v32  ;;  %v2596_v20 = vsel %vm2513_vm13, %v2595_v14, %v2594_v23  ;;  %v2781_v1 = vshrl.u32 %v2780_v59, 30 }
 0x68a   : > { %v3154_v28 = vor.u32 %v3153_v55, %v3152_v35  ;;  %v3157_v10 = vor.u32 %v3156_v18, %v3155_v51  ;;  %v2599_v8 = vsel %vm16360_vm9, %v19086_v12, %v2596_v20  ;;  %v3002_v44 = vor.u32 %v3001_v15, %v3000_v13  ;;  %v16468_v9 = vpop.eup %11620 }
 0x68b   : > { %v3005_v52 = vshll.u32 %v3004_v38, 23  ;;  %v3160_v47 = vor.u32 %v3159_v42, %v3158_v41  ;;  %19145 = vst [vmem:[#allocation53_spill] sm:$0xff] %v16468_v9  ;;  %11624 = vcosq.f32 %v2599_v8  ;;  %v3020_v40 = vadd.s32 3, %v16439_v39  ;;  %v19147_v38 = vld [vmem:[#allocation7_spill] sm:$0xff] }
 0x68c   : > { %v2782_v21 = vshll.u32 %v2781_v1, 30  ;;  %v2805_v61 = vsub.s32 4, %v2781_v1  ;;  %11626 = vsinq.f32 %v2599_v8  ;;  %v3143_v23 = vor.u32 8388608, %v3142_v22  ;;  %v16472_v55 = vpop.eup %11622 }
 0x68d   : > { %v3006_v60 = vor.u32 4788187, %v3005_v52  ;;  %vm3167_vm13 = vcmp.lt.s32.totalorder %v19130_v46, 1  ;;  %19146 = vst [vmem:[#allocation34_spill] sm:$0xff] %v16472_v55  ;;  %v3009_v18 = vcvt.s32.f32 %v3002_v44  ;;  %vm3169_vm9 = vcmp.lt.s32.totalorder %v19130_v46, 3 }
 0x68e   : > { %v16474_v4 = vsub.s32 %v2779_v26, %v2782_v21  ;;  %v2806_v27 = vsel %vm2721_vm10, %v2805_v61, %v2781_v1  ;;  %v3175_v32 = vsel %vm3167_vm13, %v3154_v28, %v3157_v10  ;;  %v3177_v52 = vsel %vm3169_vm9, %v3160_v47, %v16408_v58  ;;  %v19148_v61 = vld [vmem:[#allocation3_spill] sm:$0xff] }
 0x68f   : > { %v3007_v24 = vand.u32 2147483647, %v3006_v60  ;;  %v3179_v22 = vsel %vm3167_vm13, %v3157_v10, %v3160_v47  ;;  %vm3168_vm6 = vcmp.lt.s32.totalorder %v19130_v46, 2  ;;  %v3172_v26 = vsel %vm3170_vm0, %v3160_v47, 2102212464 }
 0x690   : > { %v2785_v44 = vsub.s32 0, %v16474_v4  ;;  %v3181_v35 = vsel %vm3169_vm9, %v16116_v45, %v16413_v0  ;;  %v16496_v59 = vsel %vm16452_vm14, 0, %v2806_v27  ;;  %v3183_v51 = vshll.u32 %v3143_v23, 8 }
 0x691   : > { %v3010_v14 = vmul.f32 %v3009_v18, %v3007_v24  ;;  %v3182_v58 = vsel %vm3168_vm6, %v3179_v22, %v3181_v35  ;;  %v3151_v13 = vshrl.u32 %v18636_v48, %v19080_v62  ;;  %v3178_v15 = vsel %vm3168_vm6, %v3175_v32, %v3177_v52  ;;  %v19152_v35 = vld [vmem:[#allocation11_spill] sm:$0xff] }
 0x692   : > { %v10941_v42 = vmin.u32 %v2785_v44, %v16474_v4  ;;  %v2493_v41 = vsub.s32 4, %v19147_v38  ;;  %11628 = vsinq.f32 %v16356_v50  ;;  %vm2607_vm0 = vcmp.eq.s32.totalorder %v16434_v54, 0 }
 0x693   : > { %v3011_v45 = vxor.u32 2147483648, %v3010_v14  ;;  %v16507_v0 = vmul.u32.u64.low %v3183_v51, %v3182_v58  ;;  %v16508_v20 = vmul.u32.u64.high %v3183_v51, %v3182_v58, %v16507_v0  ;;  %vm2610_vm15 = vcmp.eq.s32.totalorder %v16434_v54, 2 }
 0x694   : > { %v2787_v1 = vclz %v10941_v42  ;;  %v2812_v8 = vadd.s32 3, %v16496_v59  ;;  %v3171_v48 = vsel %vm3167_vm13, %v3151_v13, %v3154_v28  ;;  %v3173_v62 = vsel %vm3169_vm9, %v3157_v10, %v3172_v26 }
 0x695   : > { %v3012_v50 = vsel %vm2929_vm3, %v3011_v45, %v3010_v14  ;;  %v16519_v47 = vmul.u32.u64.low %v3183_v51, %v3178_v15  ;;  %v16520_v21 = vmul.u32.u64.high %v3183_v51, %v3178_v15, %v16519_v47  ;;  %vm19149_vm1 = vcmp.lt.s32.totalorder %v19148_v61, 0  ;;  %v19154_v45 = vld [vmem:[#allocation33_spill] sm:$0xff] }
 0x696   : > { %v2494_v60 = vsel %vm19149_vm1, %v2493_v41, %v19147_v38  ;;  %v3015_v23 = vsel %vm16422_vm7, %v19104_v11, %v3012_v50  ;;  %v16528_v18 = vand.u32 3, %v3020_v40  ;;  %v10942_v28 = vadd.s32 4294967294, %v2787_v1  ;;  %v19153_v38 = vld [vmem:[#allocation45_spill] sm:$0xff] }
 0x697   : > { %v16532_v10 = vsel %vm13051_vm11, 0, %v2494_v60  ;;  %vm2606_vm3 = vcmp.lt.s32.totalorder %v16434_v54, 2  ;;  %11630 = vcosq.f32 %v3015_v23  ;;  %v2775_v24 = vadd.s32 %v16400_v34, %v16398_v5 }
 0x698   : > { %19151 = vst [vmem:[#allocation54_spill] sm:$0xff] %v16532_v10  ;;  %v3174_v32 = vsel %vm3168_vm6, %v3171_v48, %v3173_v62  ;;  %v2500_v52 = vadd.s32 3, %v16532_v10  ;;  %11632 = vsinq.f32 %v3015_v23  ;;  %vm10943_vm1 = vcmp.lt.s32.totalorder %v10942_v28, 0  ;;  %v16543_v40 = vpop.eup %11624 }
 0x699   : > { %v16540_v53 = vand.u32 3, %v2812_v8  ;;  %vm3192_vm7 = vc.u32 %v16508_v20, %v16519_v47  ;;  %v2790_v22 = vsel %vm10943_vm1, 0, %v10942_v28  ;;  %v3193_v44 = vadd.s32 1, %v16520_v21  ;;  %v16547_v5 = vpop.eup %11626 }
 0x69a   : > { %v2501_v26 = vand.u32 3, %v2500_v52  ;;  %v2909_v14 = vsub.s32 4, %v19152_v35  ;;  %vm2603_vm11 = vweird.f32 %v19086_v12  ;;  %v18540_v46 = vxor.u32 2147483648, %v16543_v40 }
 0x69b   : > { %v2791_v34 = vsub.s32 32, %v2790_v22  ;;  %v2795_v58 = vsub.s32 4294967266, %v2790_v22  ;;  %v3190_v42 = vmul.u32 %v3183_v51, %v3174_v32  ;;  %v18545_v13 = vxor.u32 2147483648, %v16547_v5 }
 0x69c   : > { %vm3137_vm13 = vcmp.lt.s32.totalorder %v19140_v31, 0  ;;  %v3194_v15 = vsel %vm3192_vm7, %v3193_v44, %v16520_v21  ;;  %v18537_v41 = vxor.u32 2147483648, %v19153_v38  ;;  %v18536_v0 = vxor.u32 2147483648, %v19154_v45  ;;  %v19155_v21 = vld [vmem:[#allocation4_spill] sm:$0xff] }
 0x69d   : > { %v2792_v1 = vshll.u32 %v16474_v4, %v2790_v22  ;;  %v2793_v8 = vshrl.u32 %v2775_v24, %v2791_v34  ;;  %v2796_v48 = vadd.s32 127, %v2795_v58  ;;  %v3195_v62 = vadd.s32 %v3194_v15, %v3190_v42  ;;  %v19160_v22 = vld [vmem:[#allocation32_spill] sm:$0xff] }
 0x69e   : > { %v2609_v51 = vsel %vm2607_vm0, %v16543_v40, %v18545_v13  ;;  %v2612_v50 = vsel %vm2610_vm15, %v18540_v46, %v16547_v5  ;;  %vm2503_vm9 = vcmp.eq.s32.totalorder %v2501_v26, 0  ;;  %vm19156_vm6 = vcmp.lt.s32.totalorder %v19155_v21, 0 }
 0x69f   : > { %v2910_v4 = vsel %vm19156_vm6, %v2909_v14, %v19152_v35  ;;  %vm3026_vm1 = vcmp.eq.s32.totalorder %v16528_v18, 2  ;;  %v2794_v60 = vor.u32 %v2793_v8, %v2792_v1  ;;  %v2797_v23 = vshll.u32 %v2796_v48, 23  ;;  %v16589_v35 = vpop.eup %11628  ;;  %v19164_v8 = vld [vmem:[#allocation16_spill] sm:$0xff] }
 0x6a0   : > { %v19157_v28 = vand.u32 2147483647, %v19140_v31  ;;  %v3196_v24 = vadd.s32 536870912, %v3195_v62  ;;  %vm2506_vm0 = vcmp.eq.s32.totalorder %v2501_v26, 2  ;;  %vm3023_vm5 = vcmp.eq.s32.totalorder %v16528_v18, 0  ;;  %19163 = vst [vmem:[#allocation86_spill] sm:$0xff] %v16589_v35 }
 0x6a1   : > { %vm2499_vm15 = vweird.f32 %v19148_v61  ;;  %v2505_v32 = vsel %vm2503_vm9, %v19154_v45, %v18537_v41  ;;  %v2508_v52 = vsel %vm2506_vm0, %v18536_v0, %v19153_v38  ;;  %vm19161_vm6 = vnez %v19160_v22 }
 0x6a2   : > { %vm16573_vm7 = vcmp.le.f32.partialorder %v19157_v28, 0.7853982  ;;  %v16587_v44 = vsel %vm19161_vm6, 0, %v2910_v4  ;;  %v2613_v14 = vsel %vm2606_vm3, %v2609_v51, %v2612_v50  ;;  %vm3022_vm2 = vcmp.lt.s32.totalorder %v16528_v18, 2 }
 0x6a3   : > { %19162 = vst [vmem:[#allocation70_spill] sm:$0xff] %v16587_v44  ;;  %v2798_v34 = vor.u32 4788187, %v2797_v23  ;;  %v16595_v58 = vadd.s32 %v16519_v47, %v16508_v20  ;;  %v3197_v42 = vshrl.u32 %v3196_v24, 30  ;;  %vm3019_vm9 = vweird.f32 %v19104_v11  ;;  %v19166_v20 = vld [vmem:[#allocation51_spill] sm:$0xff] }
 0x6a4   : > { %v2801_v15 = vcvt.s32.f32 %v2794_v60  ;;  %vm2502_vm0 = vcmp.lt.s32.totalorder %v2501_v26, 2  ;;  %v2916_v1 = vadd.s32 3, %v16587_v44  ;;  %v2701_v48 = vsub.s32 4, %v19164_v8  ;;  %v16608_v26 = vpop.eup %11630 }
 0x6a5   : > { %v2799_v4 = vand.u32 2147483647, %v2798_v34  ;;  %v3198_v28 = vshll.u32 %v3197_v42, 30  ;;  %v3221_v22 = vsub.s32 4, %v3197_v42  ;;  %v2509_v54 = vsel %vm2502_vm0, %v2505_v32, %v2508_v52  ;;  %19168 = vst [vmem:[#allocation40_spill] sm:$0xff] %v16608_v26  ;;  %v16619_v52 = vpop.eup %11632 }
 0x6a6   : > { %v16602_v51 = vsel %vm2603_vm11, nan, %v2613_v14  ;;  %v2917_v50 = vand.u32 3, %v2916_v1  ;;  %v18538_v47 = vxor.u32 2147483648, %v19166_v20  ;;  %vm19167_vm3 = vcmp.lt.s32.totalorder %v19061_v36, 0  ;;  %19170 = vst [vmem:[#allocation52_spill] sm:$0xff] %v16619_v52 }
 0x6a7   : > { %19165 = vst [vmem:[#allocation5_spill] sm:$0xff] %v16602_v51  ;;  %v2702_v60 = vsel %vm19167_vm3, %v2701_v48, %v19164_v8  ;;  %v2802_v23 = vmul.f32 %v2801_v15, %v2799_v4  ;;  %v16610_v24 = vsub.s32 %v3195_v62, %v3198_v28  ;;  %v3222_v34 = vsel %vm3137_vm13, %v3221_v22, %v3197_v42  ;;  %v19172_v15 = vld [vmem:[#allocation50_spill] sm:$0xff] }
 0x6a8   : > { %vm2915_vm6 = vweird.f32 %v19155_v21  ;;  %v16617_v32 = vsel %vm16020_vm12, 0, %v2702_v60  ;;  %v18539_v14 = vxor.u32 2147483648, %v16608_v26  ;;  %v16624_v1 = vsel %vm2499_vm15, nan, %v2509_v54 }
 0x6a9   : > { %19169 = vst [vmem:[#allocation8_spill] sm:$0xff] %v16617_v32  ;;  %19171 = vst [vmem:[#allocation47_spill] sm:$0xff] %v16624_v1  ;;  %v18544_v62 = vxor.u32 2147483648, %v19172_v15  ;;  %v18542_v8 = vxor.u32 2147483648, %v16468_v9  ;;  %v18541_v42 = vxor.u32 2147483648, %v16619_v52  ;;  %v2803_v48 = vxor.u32 2147483648, %v2802_v23 }
 0x6aa   : > { %v3201_v4 = vsub.s32 0, %v16610_v24  ;;  %vm2919_vm0 = vcmp.eq.s32.totalorder %v2917_v50, 0  ;;  %v3028_v57 = vsel %vm3026_vm1, %v18539_v14, %v16619_v52  ;;  %v16637_v28 = vsel %vm16573_vm7, 0, %v3222_v34 }
 0x6ab   : > { %v2921_v22 = vsel %vm2919_vm0, %v19172_v15, %v18538_v47  ;;  %v2708_v54 = vadd.s32 3, %v16617_v32  ;;  %v3025_v60 = vsel %vm3023_vm5, %v16608_v26, %v18541_v42  ;;  %v2804_v0 = vsel %vm2721_vm10, %v2803_v48, %v2802_v23  ;;  %v19188_v15 = vld [vmem:[#allocation63_spill] sm:$0xff] }
 0x6ac   : > { %v10957_v41 = vmin.u32 %v3201_v4, %v16610_v24  ;;  %vm2922_vm12 = vcmp.eq.s32.totalorder %v2917_v50, 2  ;;  %v3029_v34 = vsel %vm3022_vm2, %v3025_v60, %v3028_v57  ;;  %v2807_v47 = vsel %vm16452_vm14, %v19117_v6, %v2804_v0 }
 0x6ad   : > { %v2924_v14 = vsel %vm2922_vm12, %v18544_v62, %v19166_v20  ;;  %v2709_v46 = vand.u32 3, %v2708_v54  ;;  %v16661_v42 = vsel %vm3019_vm9, nan, %v3029_v34  ;;  %11634 = vcosq.f32 %v2807_v47  ;;  %v19175_v54 = vld [vmem:[#allocation27_spill] sm:$0xff] }
 0x6ae   : > { %19173 = vst [vmem:[#allocation71_spill] sm:$0xff] %v16661_v42  ;;  %v3203_v23 = vclz %v10957_v41  ;;  %v18543_v48 = vxor.u32 2147483648, %v16188_v29  ;;  %v9193_v18 = vpack.c.bf16 %v16661_v42, %v16602_v51  ;;  %11636 = vsinq.f32 %v2807_v47  ;;  %v19185_v51 = vld [vmem:[#allocation19_spill] sm:$0xff] }
 0x6af   : > { %v3228_v19 = vadd.s32 3, %v16637_v28  ;;  %vm2918_vm2 = vcmp.lt.s32.totalorder %v2917_v50, 2  ;;  %vm18581_vm5 = vweird.f32 %v19061_v36  ;;  %vm2711_vm10 = vcmp.eq.s32.totalorder %v2709_v46, 0  ;;  %v16742_v42 = vld [vmem:[%s18048_s7 + $0x28] sm:$0xff]  }
 0x6b0   : > { %v10958_v0 = vadd.s32 4294967294, %v3203_v23  ;;  %v2925_v4 = vsel %vm2918_vm2, %v2921_v22, %v2924_v14  ;;  %9254 = vmatprep.subr.bf16.mxu0 %v9193_v18  ;;  %v2713_v41 = vsel %vm2711_vm10, %v16188_v29, %v18542_v8  ;;  %vm2714_vm14 = vcmp.eq.s32.totalorder %v2709_v46, 2  ;;  %v16689_v18 = vld [vmem:[%s18048_s7 + $0x20] sm:$0xff]   ;;  %v19186_v29 = vld [vmem:[#allocation60_spill] sm:$0xff] }
 0x6b1   : > { %v16670_v57 = vsel %vm2915_vm6, nan, %v2925_v4  ;;  %v3117_v47 = vsub.s32 4, %v19175_v54  ;;  %vm2710_vm3 = vcmp.lt.s32.totalorder %v2709_v46, 2  ;;  %v2716_v14 = vsel %vm2714_vm14, %v18543_v48, %v16468_v9  ;;  %v19182_v48 = vld [vmem:[#allocation81_spill] sm:$0xff]  ;;  %v19187_v9 = vld [vmem:[#allocation44_spill] sm:$0xff] }
 0x6b2   : > { %19174 = vst [vmem:[#allocation68_spill] sm:$0xff] %v16670_v57  ;;  %vm10959_vm1 = vcmp.lt.s32.totalorder %v10958_v0, 0  ;;  %v9192_v50 = vpack.c.bf16 %v16670_v57, %v16624_v1  ;;  %v16681_v60 = vand.u32 3, %v3228_v19  ;;  %v2717_v34 = vsel %vm2710_vm3, %v2713_v41, %v2716_v14  ;;  %v19181_v14 = vld [vmem:[#allocation57_spill] sm:$0xff]  ;;  %v19184_v1 = vld [vmem:[#allocation98_spill] sm:$0xff] }
 0x6b3   : > { %v3206_v22 = vsel %vm10959_vm1, 0, %v10958_v0  ;;  %v3118_v23 = vsel %vm3033_vm8, %v3117_v47, %v19175_v54  ;;  %vm2818_vm0 = vcmp.eq.s32.totalorder %v16540_v53, 2  ;;  %v16696_v19 = vsel %vm18581_vm5, nan, %v2717_v34  ;;  %v19183_v57 = vld [vmem:[#allocation69_spill] sm:$0xff] }
 0x6b4   : > { %v3207_v4 = vsub.s32 32, %v3206_v22  ;;  %v3208_v46 = vshll.u32 %v16610_v24, %v3206_v22  ;;  %v3211_v8 = vsub.s32 4294967266, %v3206_v22  ;;  %9255 = vmatpush1.bf16.msra.mxu0 %v9192_v50  ;;  %v16700_v0 = vsel %vm16282_vm4, 0, %v3118_v23 }
 0x6b5   : > { %19176 = vst [vmem:[#allocation48_spill] sm:$0xff] %v16700_v0  ;;  %vm18578_vm8 = vweird.f32 %v19070_v30  ;;  %v9180_v41 = vpack.c.bf16 %v14278_v3, %v14062_v63  ;;  %vm2815_vm12 = vcmp.eq.s32.totalorder %v16540_v53, 0  ;;  %v3124_v50 = vadd.s32 3, %v16700_v0 }
 0x6b6   : > { %v3209_v54 = vshrl.u32 %v16595_v58, %v3207_v4  ;;  %v3212_v47 = vadd.s32 127, %v3211_v8  ;;  %v9179_v7 = vpack.c.bf16 %v14079_v16, %v13872_v33  ;;  %vm19177_vm4 = vcmask 523264   ;;  %v19178_v58 = vld [vmem:[#allocation116_spill] sm:$0xff] }
 0x6b7   : > { %9426 = vmatprep.subr.bf16.mxu0 %v9180_v41  ;;  %11196 = vmatmul.mubr.msk.bf16.vlgmr.msra.gmra.mxu0 %vm19177_vm4, %v16689_v18  ;;  %v9176_v34 = vpack.c.bf16 %v18870_v43, %v18858_v2  ;;  %vm2814_vm2 = vcmp.lt.s32.totalorder %v16540_v53, 2  ;;  %v3125_v62 = vand.u32 3, %v3124_v50  ;;  %v19179_v13 = vmov 0   ;;  %v19180_v41 = vld [vmem:[#allocation145_spill] sm:$0xff]  ;;  %vm19195_vm3 = vmmov %vm19177_vm4 }
 0x6b8   : > { %v3210_v23 = vor.u32 %v3209_v54, %v3208_v46  ;;  %v3213_v4 = vshll.u32 %v3212_v47, 23  ;;  %9427 = vmatpush1.bf16.msra.mxu0 %v9179_v7  ;;  %9282 = vmatprep.mubr.bf16.mxu0 %v19179_v13  ;;  %v8403_v24 = vand.u32 3, %v19180_v41  ;;  %v9175_v22 = vpack.c.bf16 %v19182_v48, %v19181_v14  ;;  %v19189_v50 = vld [vmem:[#allocation9_spill] sm:$0xff]  ;;  %v19190_v7 = vld [vmem:[#allocation35_spill] sm:$0xff] }
 0x6b9   : > { %9428 = vmatprep.subr.bf16.mxu0 %v9176_v34  ;;  %v9172_v8 = vpack.c.bf16 %v19186_v29, %v19185_v51  ;;  %vm3127_vm10 = vcmp.eq.s32.totalorder %v3125_v62, 0  ;;  %v9171_v20 = vpack.c.bf16 %v19190_v7, %v19189_v50  ;;  %vm3126_vm14 = vcmp.lt.s32.totalorder %v3125_v62, 2  ;;  %v19192_v46 = vld [vmem:[#allocation21_spill] sm:$0xff] }
 0x6ba   : > { %v3214_v54 = vor.u32 4788187, %v3213_v4  ;;  %v3217_v47 = vcvt.s32.f32 %v3210_v23  ;;  %v16734_v41 = vpop.eup %11634  ;;  %v19191_v34 = vxor.u32 2147483648, %v16589_v35  ;;  %vm3130_vm1 = vcmp.eq.s32.totalorder %v3125_v62, 2  ;;  %v19193_v4 = vld [vmem:[#allocation39_spill] sm:$0xff] }
 0x6bb   : > { %v16746_v38 = vpop.eup %11636  ;;  %v18570_v0 = vxor.u32 2147483648, %v16734_v41  ;;  %v19194_v44 = vxor.u32 2147483648, %v16472_v55  ;;  %v9168_v62 = vpack.c.bf16 %v19104_v11, %v19086_v12  ;;  %v9167_v52 = vpack.c.bf16 %v19155_v21, %v19148_v61  ;;  %v19201_v61 = vld [vmem:[#allocation153_spill] sm:$0xff] }
 0x6bc   : > { %v3129_v45 = vsel %vm3127_vm10, %v16472_v55, %v19191_v34  ;;  %v3215_v32 = vand.u32 2147483647, %v3214_v54  ;;  %9429 = vmatpush1.bf16.msra.mxu0 %v9175_v22  ;;  %v18573_v34 = vxor.u32 2147483648, %v16746_v38  ;;  %vm8404_vm4 = vcmp.lt.s32.totalorder %v8403_v24, 2 }
 0x6bd   : > { %v3132_v10 = vsel %vm3130_vm1, %v19194_v44, %v16589_v35  ;;  %9430 = vmatprep.subr.bf16.mxu0 %v9172_v8  ;;  %v2820_v44 = vsel %vm2818_vm0, %v18570_v0, %v16746_v38  ;;  %vm8405_vm10 = vcmp.eq.s32.totalorder %v8403_v24, 0  ;;  %vm8408_vm0 = vcmp.eq.s32.totalorder %v8403_v24, 2  ;;  %v19196_v8 = vld [vmem:[#allocation151_spill] sm:$0xff]  ;;  %v19198_v0 = vld [vmem:[#allocation150_spill] sm:$0xff]  ;;  %v19200_v35 = vld [vmem:[#allocation149_spill] sm:$0xff] }
 0x6be   : > { %v3133_v26 = vsel %vm3126_vm14, %v3129_v45, %v3132_v10  ;;  %v3218_v22 = vmul.f32 %v3217_v47, %v3215_v32  ;;  %v2817_v45 = vsel %vm2815_vm12, %v16734_v41, %v18573_v34  ;;  %v19197_v47 = vxor.u32 2147483648, %v19196_v8 }
 0x6bf   : > { %v16766_v54 = vsel %vm18578_vm8, nan, %v3133_v26  ;;  %11197 = vmatmul.mubr.msk.bf16.gmra.mxu0 %vm19195_vm3, %v16742_v42  ;;  %v19199_v23 = vxor.u32 2147483648, %v19198_v0  ;;  %v2821_v34 = vsel %vm2814_vm2, %v2817_v45, %v2820_v44  ;;  %v8815_v21 = vand.u32 3, %v19200_v35  ;;  %v19212_v45 = vld [vmem:[#allocation138_spill] sm:$0xff] }
 0x6c0   : > { %v3219_v32 = vxor.u32 2147483648, %v3218_v22  ;;  %9431 = vmatpush1.bf16.msra.mxu0 %v9171_v20  ;;  %v8407_v10 = vsel %vm8405_vm10, %v19198_v0, %v19197_v47  ;;  %9292 = vmatprep.mubr.bf16.mxu0 %v19179_v13  ;;  %v8609_v26 = vand.u32 3, %v19201_v61  ;;  %vm2811_vm12 = vweird.f32 %v19117_v6  ;;  %v19205_v47 = vld [vmem:[#allocation152_spill] sm:$0xff] }
 0x6c1   : > { %v8410_v55 = vsel %vm8408_vm0, %v19199_v23, %v19196_v8  ;;  %9432 = vmatprep.subr.bf16.mxu0 %v9168_v62  ;;  %vm19202_vm14 = vweird.f32 %v14062_v63  ;;  %v19204_v23 = vld [vmem:[#allocation162_spill] sm:$0xff]  ;;  %v8300_v53 = vand.u32 3, %v19205_v47  ;;  %vm8816_vm2 = vcmp.lt.s32.totalorder %v8815_v21, 2  ;;  %v16805_v61 = vld [vmem:[%s18048_s7 + $0x30] sm:$0xff]   ;;  %v19208_v62 = vld [vmem:[#allocation159_spill] sm:$0xff] }
 0x6c2   : > { %v8411_v24 = vsel %vm8404_vm4, %v8407_v10, %v8410_v55  ;;  %v3220_v20 = vsel %vm3137_vm13, %v3219_v32, %v3218_v22  ;;  %v9021_v8 = vand.u32 3, %v19204_v23  ;;  %vm8817_vm1 = vcmp.eq.s32.totalorder %v8815_v21, 0  ;;  %v19206_v63 = vld [vmem:[#allocation122_spill] sm:$0xff] }
 0x6c3   : > { %v16795_v0 = vsel %vm19202_vm14, nan, %v8411_v24  ;;  %v3223_v55 = vsel %vm16573_vm7, %v19140_v31, %v3220_v20  ;;  %vm8820_vm3 = vcmp.eq.s32.totalorder %v8815_v21, 2  ;;  %v19207_v35 = vxor.u32 2147483648, %v19206_v63 }
 0x6c4   : > { %19203 = vst [vmem:[#allocation6_spill] sm:$0xff] %v16795_v0  ;;  %11638 = vcosq.f32 %v3223_v55  ;;  %9433 = vmatpush1.bf16.msra.mxu0 %v9167_v52  ;;  %v19209_v22 = vxor.u32 2147483648, %v19208_v62  ;;  %vm8610_vm13 = vcmp.lt.s32.totalorder %v8609_v26, 2  ;;  %vm8611_vm7 = vcmp.eq.s32.totalorder %v8609_v26, 0  ;;  %v19214_v52 = vld [vmem:[#allocation136_spill] sm:$0xff] }
 0x6c5   : > { %v8819_v44 = vsel %vm8817_vm1, %v19208_v62, %v19207_v35  ;;  %11640 = vsinq.f32 %v3223_v55  ;;  %vm8614_vm4 = vcmp.eq.s32.totalorder %v8609_v26, 2  ;;  %vm19210_vm10 = vweird.f32 %v14278_v3  ;;  %v19218_v26 = vld [vmem:[#allocation79_spill] sm:$0xff] }
 0x6c6   : > { %v8822_v10 = vsel %vm8820_vm3, %v19209_v22, %v19206_v63  ;;  %v19213_v32 = vxor.u32 2147483648, %v19212_v45  ;;  %v19215_v20 = vxor.u32 2147483648, %v19214_v52  ;;  %vm9022_vm0 = vcmp.lt.s32.totalorder %v9021_v8, 2  ;;  %v19220_v35 = vld [vmem:[#allocation135_spill] sm:$0xff] }
 0x6c7   : > { %v8823_v27 = vsel %vm8816_vm2, %v8819_v44, %v8822_v10  ;;  %vm9023_vm14 = vcmp.eq.s32.totalorder %v9021_v8, 0  ;;  %vm9026_vm2 = vcmp.eq.s32.totalorder %v9021_v8, 2  ;;  %vm19216_vm1 = vcmask 523264   ;;  %v19222_v10 = vld [vmem:[#allocation154_spill] sm:$0xff] }
 0x6c8   : > { %v16815_v21 = vsel %vm19210_vm10, nan, %v8823_v27  ;;  %v8613_v24 = vsel %vm8611_vm7, %v19214_v52, %v19213_v32  ;;  %v8616_v23 = vsel %vm8614_vm4, %v19215_v20, %v19212_v45  ;;  %11198 = vmatmul.mubr.msk.bf16.gmra.mxu0 %vm19216_vm1, %v16805_v61  ;;  %vm19217_vm3 = vweird.f32 %v14090_v49  ;;  %v19224_v32 = vld [vmem:[#allocation144_spill] sm:$0xff] }
 0x6c9   : > { %19211 = vst [vmem:[#allocation14_spill] sm:$0xff] %v16815_v21  ;;  %v9586_v47 = vpack.c.bf16 %v16815_v21, %v16795_v0  ;;  %v8617_v55 = vsel %vm8610_vm13, %v8613_v24, %v8616_v23  ;;  %v19219_v63 = vxor.u32 2147483648, %v19218_v26  ;;  %v19221_v44 = vxor.u32 2147483648, %v19220_v35  ;;  %9302 = vmatprep.mubr.bf16.mxu0 %v19179_v13  ;;  %v19226_v24 = vld [vmem:[#allocation143_spill] sm:$0xff]  ;;  %v19239_v21 = vld [vmem:[#allocation117_spill] sm:$0xff] }
 0x6ca   : > { %v16829_v3 = vsel %vm19217_vm3, nan, %v8617_v55  ;;  %vm8301_vm13 = vcmp.lt.s32.totalorder %v8300_v53, 2  ;;  %vm8302_vm7 = vcmp.eq.s32.totalorder %v8300_v53, 0  ;;  %vm8305_vm4 = vcmp.eq.s32.totalorder %v8300_v53, 2 }
 0x6cb   : > { %v9025_v62 = vsel %vm9023_vm14, %v19220_v35, %v19219_v63  ;;  %v9028_v22 = vsel %vm9026_vm2, %v19221_v44, %v19218_v26  ;;  %9629 = vmatprep.subr.bf16.mxu0 %v9586_v47  ;;  %v8712_v27 = vand.u32 3, %v19222_v10  ;;  %vm19223_vm10 = vweird.f32 %v14322_v17  ;;  %v19228_v26 = vld [vmem:[#allocation141_spill] sm:$0xff]  ;;  %v19230_v44 = vld [vmem:[#allocation148_spill] sm:$0xff] }
 0x6cc   : > { %v9029_v8 = vsel %vm9022_vm0, %v9025_v62, %v9028_v22  ;;  %v19225_v52 = vxor.u32 2147483648, %v19224_v32  ;;  %v19227_v23 = vxor.u32 2147483648, %v19226_v24  ;;  %v8506_v63 = vand.u32 3, %v19228_v26  ;;  %v16860_v35 = vld [vmem:[%s18048_s7 + $0x38] sm:$0xff]   ;;  %v19237_v26 = vld [vmem:[#allocation146_spill] sm:$0xff] }
 0x6cd   : > { %v16841_v45 = vsel %vm19223_vm10, nan, %v9029_v8  ;;  %v16852_v47 = vsel %vm2811_vm12, nan, %v2821_v34  ;;  %vm3234_vm0 = vcmp.eq.s32.totalorder %v16681_v60, 2  ;;  %vm8714_vm14 = vcmp.eq.s32.totalorder %v8712_v27, 0  ;;  %v19232_v8 = vld [vmem:[#allocation147_spill] sm:$0xff] }
 0x6ce   : > { %v8304_v20 = vsel %vm8302_vm7, %v19226_v24, %v19225_v52  ;;  %v8307_v55 = vsel %vm8305_vm4, %v19227_v23, %v19224_v32  ;;  %19229 = vst [vmem:[#allocation12_spill] sm:$0xff] %v16852_v47  ;;  %vm3231_vm2 = vcmp.eq.s32.totalorder %v16681_v60, 0  ;;  %vm8713_vm1 = vcmp.lt.s32.totalorder %v8712_v27, 2  ;;  %v19234_v52 = vld [vmem:[#allocation133_spill] sm:$0xff]  ;;  %v19235_v23 = vld [vmem:[#allocation155_spill] sm:$0xff] }
 0x6cf   : > { %v8308_v62 = vsel %vm8301_vm13, %v8304_v20, %v8307_v55  ;;  %v19231_v22 = vxor.u32 2147483648, %v19230_v44  ;;  %vm8717_vm3 = vcmp.eq.s32.totalorder %v8712_v27, 2  ;;  %vm8507_vm7 = vcmp.lt.s32.totalorder %v8506_v63, 2 }
 0x6d0   : > { %vm3230_vm4 = vcmp.lt.s32.totalorder %v16681_v60, 2  ;;  %v19233_v10 = vxor.u32 2147483648, %v19232_v8  ;;  %vm8508_vm10 = vcmp.eq.s32.totalorder %v8506_v63, 0  ;;  %vm8511_vm8 = vcmp.eq.s32.totalorder %v8506_v63, 2 }
 0x6d1   : > { %v8716_v34 = vsel %vm8714_vm14, %v19232_v8, %v19231_v22  ;;  %v8918_v24 = vand.u32 3, %v19234_v52  ;;  %vm3227_vm13 = vweird.f32 %v19140_v31  ;;  %v19236_v55 = vxor.u32 2147483648, %v19235_v23 }
 0x6d2   : > { %v8719_v32 = vsel %vm8717_vm3, %v19233_v10, %v19230_v44  ;;  %v19238_v27 = vxor.u32 2147483648, %v19237_v26  ;;  %v7579_v0 = vand.u32 3, %v19239_v21  ;;  %vm19240_vm14 = vcmask 523264   ;;  %v19244_v21 = vld [vmem:[#allocation157_spill] sm:$0xff] }
 0x6d3   : > { %v8720_v20 = vsel %vm8713_vm1, %v8716_v34, %v8719_v32  ;;  %v8510_v53 = vsel %vm8508_vm10, %v19237_v26, %v19236_v55  ;;  %11199 = vmatmul.mubr.msk.bf16.gmra.mxu0 %vm19240_vm14, %v16860_v35  ;;  %vm19241_vm3 = vweird.f32 %v13872_v33  ;;  %vm19242_vm5 = vweird.f32 %v14079_v16  ;;  %v19246_v32 = vld [vmem:[#allocation156_spill] sm:$0xff]  ;;  %v16895_v33 = vpop.eup %11638  ;;  %v19248_v55 = vld [vmem:[#allocation131_spill] sm:$0xff] }
 0x6d4   : > { %v8513_v22 = vsel %vm8511_vm8, %v19238_v27, %v19235_v23  ;;  %v16883_v63 = vsel %vm19241_vm3, nan, %v8308_v62  ;;  %v16887_v44 = vsel %vm19242_vm5, nan, %v8720_v20  ;;  %vm8920_vm1 = vcmp.eq.s32.totalorder %v8918_v24, 0  ;;  %9450 = vmatprep.mubr.bf16.mxu0 %v19179_v13  ;;  %v19250_v27 = vld [vmem:[#allocation123_spill] sm:$0xff] }
 0x6d5   : > { %19243 = vst [vmem:[#allocation13_spill] sm:$0xff] %v16887_v44  ;;  %v8514_v8 = vsel %vm8507_vm7, %v8510_v53, %v8513_v22  ;;  %v9585_v34 = vpack.c.bf16 %v16887_v44, %v16883_v63  ;;  %vm8919_vm8 = vcmp.lt.s32.totalorder %v8918_v24, 2  ;;  %v19245_v10 = vxor.u32 2147483648, %v19244_v21  ;;  %v16900_v53 = vpop.eup %11640 }
 0x6d6   : > { %vm8923_vm10 = vcmp.eq.s32.totalorder %v8918_v24, 2  ;;  %v19247_v16 = vxor.u32 2147483648, %v19246_v32  ;;  %vm7580_vm5 = vcmp.lt.s32.totalorder %v7579_v0, 2  ;;  %vm7581_vm7 = vcmp.eq.s32.totalorder %v7579_v0, 0 }
 0x6d7   : > { %v8922_v52 = vsel %vm8920_vm1, %v19246_v32, %v19245_v10  ;;  %vm7584_vm14 = vcmp.eq.s32.totalorder %v7579_v0, 2  ;;  %v18583_v20 = vxor.u32 2147483648, %v16895_v33  ;;  %v19249_v26 = vxor.u32 2147483648, %v19248_v55 }
 0x6d8   : > { %v8925_v62 = vsel %vm8923_vm10, %v19247_v16, %v19244_v21  ;;  %v19251_v24 = vxor.u32 2147483648, %v19250_v27  ;;  %v18584_v44 = vxor.u32 2147483648, %v16900_v53  ;;  %v16913_v21 = vld [vmem:[%s18048_s7] sm:$0xff]   ;;  %vm19252_vm3 = vweird.f32 %v18830_v25 }
 0x6d9   : > { %v8926_v23 = vsel %vm8919_vm8, %v8922_v52, %v8925_v62  ;;  %v7583_v22 = vsel %vm7581_vm7, %v19250_v27, %v19249_v26  ;;  %v16917_v0 = vsel %vm19252_vm3, nan, %v8514_v8  ;;  %v19253_v52 = vld [vmem:[#allocation124_spill] sm:$0xff]  ;;  %v3236_v62 = vsel %vm3234_vm0, %v18583_v20, %v16900_v53  ;;  %v19256_v27 = vld [vmem:[#allocation119_spill] sm:$0xff] }
 0x6da   : > { %v7586_v10 = vsel %vm7584_vm14, %v19251_v24, %v19248_v55  ;;  %v7991_v16 = vand.u32 3, %v19253_v52  ;;  %vm19254_vm1 = vweird.f32 %v14218_v37  ;;  %vm19255_vm8 = vweird.f32 %v18858_v2  ;;  %v19259_v52 = vld [vmem:[#allocation107_spill] sm:$0xff] }
 0x6db   : > { %v7587_v32 = vsel %vm7580_vm5, %v7583_v22, %v7586_v10  ;;  %v16927_v55 = vsel %vm19254_vm1, nan, %v8926_v23  ;;  %v7785_v8 = vand.u32 3, %v19256_v27  ;;  %v3233_v22 = vsel %vm3231_vm2, %v16895_v33, %v18584_v44  ;;  %v19257_v23 = vld [vmem:[#allocation104_spill] sm:$0xff]  ;;  %v19269_v44 = vld [vmem:[#allocation127_spill] sm:$0xff] }
 0x6dc   : > { %v16931_v26 = vsel %vm19255_vm8, nan, %v7587_v32  ;;  %vm7992_vm10 = vcmp.lt.s32.totalorder %v7991_v16, 2  ;;  %vm7993_vm5 = vcmp.eq.s32.totalorder %v7991_v16, 0  ;;  %vm7996_vm7 = vcmp.eq.s32.totalorder %v7991_v16, 2 }
 0x6dd   : > { %v3237_v24 = vsel %vm3230_vm4, %v3233_v22, %v3236_v62  ;;  %v19258_v10 = vxor.u32 2147483648, %v19257_v23  ;;  %v19260_v32 = vxor.u32 2147483648, %v19259_v52  ;;  %vm7786_vm0 = vcmp.lt.s32.totalorder %v7785_v8, 2  ;;  %v19264_v22 = vld [vmem:[#allocation78_spill] sm:$0xff] }
 0x6de   : > { %v16949_v20 = vsel %vm3227_vm13, nan, %v3237_v24  ;;  %vm19262_vm2 = vcmask 523264   ;;  %vm7787_vm14 = vcmp.eq.s32.totalorder %v7785_v8, 0  ;;  %vm7790_vm3 = vcmp.eq.s32.totalorder %v7785_v8, 2 }
 0x6df   : > { %v7995_v2 = vsel %vm7993_vm5, %v19259_v52, %v19258_v10  ;;  %v7998_v27 = vsel %vm7996_vm7, %v19260_v32, %v19257_v23  ;;  %19261 = vst [vmem:[#allocation18_spill] sm:$0xff] %v16949_v20  ;;  %11208 = vmatmul.mubr.msk.bf16.vlgmr.msra.gmra.mxu0 %vm19262_vm2, %v16913_v21  ;;  %v9195_v60 = vpack.c.bf16 %v16949_v20, %v16852_v47  ;;  %vm19263_vm4 = vweird.f32 %v18870_v43  ;;  %v19266_v10 = vld [vmem:[#allocation132_spill] sm:$0xff] }
 0x6e0   : > { %v7999_v16 = vsel %vm7992_vm10, %v7995_v2, %v7998_v27  ;;  %9630 = vmatpush1.bf16.msra.mxu0 %v9585_v34  ;;  %v19265_v23 = vxor.u32 2147483648, %v19264_v22  ;;  %v19267_v24 = vxor.u32 2147483648, %v19266_v10  ;;  %9460 = vmatprep.mubr.bf16.mxu0 %v19179_v13  ;;  %v19268_v27 = vld [vmem:[#allocation115_spill] sm:$0xff]  ;;  %v7476_v43 = vand.u32 3, %v19269_v44  ;;  %v19274_v44 = vld [vmem:[#allocation120_spill] sm:$0xff] }
 0x6e1   : > { %v16957_v62 = vsel %vm19263_vm4, nan, %v7999_v16  ;;  %v8197_v34 = vand.u32 3, %v19268_v27  ;;  %9327 = vmatprep.subr.bf16.mxu1 %v9195_v60  ;;  %vm19270_vm1 = vweird.f32 %v18889_v56  ;;  %v19273_v20 = vpack.c.bf16 %v16766_v54, %v16696_v19  ;;  %v19278_v27 = vld [vmem:[#allocation109_spill] sm:$0xff] }
 0x6e2   : > { %v7789_v52 = vsel %vm7787_vm14, %v19266_v10, %v19265_v23  ;;  %v7792_v32 = vsel %vm7790_vm3, %v19267_v24, %v19264_v22  ;;  %v9582_v8 = vpack.c.bf16 %v16957_v62, %v16931_v26  ;;  %v19271_v10 = vld [vmem:[#allocation2_spill] sm:$0xff]  ;;  %v19272_v24 = vld [vmem:[#allocation137_spill] sm:$0xff]  ;;  %v8094_v60 = vand.u32 3, %v19274_v44 }
 0x6e3   : > { %v7793_v2 = vsel %vm7786_vm0, %v7789_v52, %v7792_v32  ;;  %v7888_v22 = vand.u32 3, %v19271_v10  ;;  %v7682_v47 = vand.u32 3, %v19272_v24  ;;  %9328 = vmatpush1.bf16.msra.mxu1 %v19273_v20  ;;  %vm8198_vm8 = vcmp.lt.s32.totalorder %v8197_v34, 2  ;;  %v19276_v32 = vld [vmem:[#allocation111_spill] sm:$0xff] }
 0x6e4   : > { %v16974_v23 = vsel %vm19270_vm1, nan, %v7793_v2  ;;  %9631 = vmatprep.subr.bf16.mxu0 %v9582_v8  ;;  %vm8199_vm10 = vcmp.eq.s32.totalorder %v8197_v34, 0  ;;  %vm8202_vm5 = vcmp.eq.s32.totalorder %v8197_v34, 2  ;;  %v19275_v52 = vpack.c.bf16 %v14322_v17, %v14090_v49  ;;  %v16994_v20 = vld [vmem:[%s18048_s7 + $0x8] sm:$0xff]   ;;  %v19280_v34 = vld [vmem:[#allocation126_spill] sm:$0xff]  ;;  %v19282_v17 = vld [vmem:[#allocation125_spill] sm:$0xff] }
 0x6e5   : > { %v19277_v2 = vxor.u32 2147483648, %v19276_v32  ;;  %v19279_v24 = vxor.u32 2147483648, %v19278_v27  ;;  %vm7478_vm7 = vcmp.eq.s32.totalorder %v7476_v43, 0  ;;  %vm7481_vm0 = vcmp.eq.s32.totalorder %v7476_v43, 2 }
 0x6e6   : > { %9499 = vmatprep.subr.bf16.mxu1 %v19275_v52  ;;  %vm7477_vm2 = vcmp.lt.s32.totalorder %v7476_v43, 2  ;;  %v19281_v49 = vxor.u32 2147483648, %v19280_v34  ;;  %v19283_v52 = vxor.u32 2147483648, %v19282_v17  ;;  %vm19284_vm14 = vcmask 523264  }
 0x6e7   : > { %v8201_v10 = vsel %vm8199_vm10, %v19278_v27, %v19277_v2  ;;  %v8204_v16 = vsel %vm8202_vm5, %v19279_v24, %v19276_v32  ;;  %11200 = vmatmul.mubr.msk.bf16.vlgmr.msra.gmra.mxu1 %vm19284_vm14, %v16689_v18  ;;  %vm19285_vm3 = vweird.f32 %v19178_v58  ;;  %vm7890_vm4 = vcmp.eq.s32.totalorder %v7888_v22, 0  ;;  %v19289_v18 = vld [vmem:[#allocation113_spill] sm:$0xff] }
 0x6e8   : > { %v8205_v8 = vsel %vm8198_vm8, %v8201_v10, %v8204_v16  ;;  %v7480_v44 = vsel %vm7478_vm7, %v19282_v17, %v19281_v49  ;;  %v7483_v2 = vsel %vm7481_vm0, %v19283_v52, %v19280_v34  ;;  %vm7893_vm1 = vcmp.eq.s32.totalorder %v7888_v22, 2  ;;  %9355 = vmatprep.mubr.bf16.mxu1 %v19179_v13  ;;  %v19287_v10 = vld [vmem:[#allocation101_spill] sm:$0xff]  ;;  %vm19293_vm0 = vmmov %vm19284_vm14 }
 0x6e9   : > { %v17006_v32 = vsel %vm19285_vm3, nan, %v8205_v8  ;;  %v7484_v27 = vsel %vm7477_vm2, %v7480_v44, %v7483_v2  ;;  %v19286_v43 = vpack.c.bf16 %v14218_v37, %v18830_v25  ;;  %vm7889_vm8 = vcmp.lt.s32.totalorder %v7888_v22, 2  ;;  %11209 = vmatmul.mubr.msk.bf16.gmra.mxu0 %vm19293_vm0, %v16994_v20  ;;  %v19295_v44 = vld [vmem:[#allocation118_spill] sm:$0xff]  ;;  %v19297_v2 = vld [vmem:[#allocation128_spill] sm:$0xff] }
 0x6ea   : > { %v9584_v16 = vpack.c.bf16 %v17006_v32, %v16974_v23  ;;  %v19288_v24 = vxor.u32 2147483648, %v19287_v10  ;;  %v19290_v8 = vxor.u32 2147483648, %v19289_v18  ;;  %v19291_v17 = vpack.c.bf16 %v19178_v58, %v18889_v56  ;;  %9470 = vmatprep.mubr.bf16.mxu0 %v19179_v13 }
 0x6eb   : > { %9500 = vmatpush1.bf16.msra.mxu1 %v19286_v43  ;;  %vm19292_vm10 = vweird.f32 %v19181_v14  ;;  %vm7684_vm5 = vcmp.eq.s32.totalorder %v7682_v47, 0  ;;  %vm7687_vm7 = vcmp.eq.s32.totalorder %v7682_v47, 2  ;;  %vm19294_vm2 = vweird.f32 %v19182_v48 }
 0x6ec   : > { %v7892_v34 = vsel %vm7890_vm4, %v19289_v18, %v19288_v24  ;;  %v7895_v49 = vsel %vm7893_vm1, %v19290_v8, %v19287_v10  ;;  %9501 = vmatprep.subr.bf16.mxu1 %v19291_v17  ;;  %v17025_v37 = vsel %vm19292_vm10, nan, %v7484_v27  ;;  %vm7683_vm14 = vcmp.lt.s32.totalorder %v7682_v47, 2  ;;  %v19300_v47 = vld [vmem:[#allocation80_spill] sm:$0xff]  ;;  %v19302_v24 = vld [vmem:[#allocation130_spill] sm:$0xff] }
 0x6ed   : > { %v7896_v25 = vsel %vm7889_vm8, %v7892_v34, %v7895_v49  ;;  %v19296_v52 = vxor.u32 2147483648, %v19295_v44  ;;  %v19298_v14 = vxor.u32 2147483648, %v19297_v2  ;;  %vm8096_vm3 = vcmp.eq.s32.totalorder %v8094_v60, 0  ;;  %v19304_v49 = vld [vmem:[#allocation112_spill] sm:$0xff] }
 0x6ee   : > { %v17031_v22 = vsel %vm19294_vm2, nan, %v7896_v25  ;;  %vm8099_vm4 = vcmp.eq.s32.totalorder %v8094_v60, 2  ;;  %v19299_v48 = vpack.c.bf16 %v19184_v1, %v19183_v57  ;;  %vm8095_vm1 = vcmp.lt.s32.totalorder %v8094_v60, 2 }
 0x6ef   : > { %v7686_v56 = vsel %vm7684_vm5, %v19297_v2, %v19296_v52  ;;  %v7689_v58 = vsel %vm7687_vm7, %v19298_v14, %v19295_v44  ;;  %v9581_v27 = vpack.c.bf16 %v17031_v22, %v17025_v37  ;;  %v19301_v10 = vxor.u32 2147483648, %v19300_v47  ;;  %v19307_v52 = vld [vmem:[#allocation94_spill] sm:$0xff]  ;;  %11201 = vmatmul.mubr.msk.bf16.gmra.mxu1 %vm19293_vm0, %v16742_v42 }
 0x6f0   : > { %v7690_v43 = vsel %vm7683_vm14, %v7686_v56, %v7689_v58  ;;  %9502 = vmatpush1.bf16.msra.mxu1 %v19299_v48  ;;  %v19303_v34 = vxor.u32 2147483648, %v19302_v24  ;;  %v6755_v17 = vand.u32 3, %v19304_v49  ;;  %v19305_v25 = vpack.c.bf16 %v19188_v15, %v19187_v9  ;;  %v19308_v56 = vld [vmem:[#allocation58_spill] sm:$0xff]  ;;  %v17064_v58 = vld [vmem:[%s18048_s7 + $0x10] sm:$0xff]   ;;  %9365 = vmatprep.mubr.bf16.mxu1 %v19179_v13 }
 0x6f1   : > { %v8098_v18 = vsel %vm8096_vm3, %v19302_v24, %v19301_v10  ;;  %9632 = vmatpush1.bf16.msra.mxu0 %v9581_v27  ;;  %vm19306_vm8 = vweird.f32 %v19183_v57  ;;  %v7167_v2 = vand.u32 3, %v19307_v52  ;;  %v6961_v14 = vand.u32 3, %v19308_v56  ;;  %v19310_v27 = vld [vmem:[#allocation88_spill] sm:$0xff]  ;;  %v19313_v10 = vld [vmem:[#allocation89_spill] sm:$0xff] }
 0x6f2   : > { %v8101_v8 = vsel %vm8099_vm4, %v19303_v34, %v19300_v47  ;;  %9503 = vmatprep.subr.bf16.mxu1 %v19305_v25  ;;  %v17057_v44 = vsel %vm19306_vm8, nan, %v7690_v43  ;;  %vm19309_vm10 = vweird.f32 %v19184_v1  ;;  %vm6757_vm5 = vcmp.eq.s32.totalorder %v6755_v17, 0  ;;  %v19311_v43 = vld [vmem:[#allocation59_spill] sm:$0xff] }
 0x6f3   : > { %v8102_v60 = vsel %vm8095_vm1, %v8098_v18, %v8101_v8  ;;  %vm6760_vm7 = vcmp.eq.s32.totalorder %v6755_v17, 2  ;;  %v7373_v57 = vand.u32 3, %v19310_v27  ;;  %vm6756_vm2 = vcmp.lt.s32.totalorder %v6755_v17, 2  ;;  %v19318_v17 = vld [vmem:[#allocation62_spill] sm:$0xff] }
 0x6f4   : > { %v17068_v48 = vsel %vm19309_vm10, nan, %v8102_v60  ;;  %v19312_v47 = vxor.u32 2147483648, %v19311_v43  ;;  %v19314_v18 = vxor.u32 2147483648, %v19313_v10  ;;  %vm7168_vm14 = vcmp.lt.s32.totalorder %v7167_v2, 2  ;;  %v19320_v60 = vld [vmem:[#allocation67_spill] sm:$0xff] }
 0x6f5   : > { %v19315_v1 = vpack.c.bf16 %v19193_v4, %v19192_v46  ;;  %vm7169_vm3 = vcmp.eq.s32.totalorder %v7167_v2, 0  ;;  %vm7172_vm4 = vcmp.eq.s32.totalorder %v7167_v2, 2  ;;  %vm6962_vm1 = vcmp.lt.s32.totalorder %v6961_v14, 2 }
 0x6f6   : > { %v6759_v24 = vsel %vm6757_vm5, %v19313_v10, %v19312_v47  ;;  %v6762_v34 = vsel %vm6760_vm7, %v19314_v18, %v19311_v43  ;;  %v19316_v42 = vpack.c.bf16 %v19140_v31, %v19117_v6  ;;  %vm19317_vm8 = vweird.f32 %v19185_v51  ;;  %vm19322_vm5 = vmmov %vm19293_vm0  ;;  %v19323_v43 = vld [vmem:[#allocation64_spill] sm:$0xff]  ;;  %v19325_v10 = vld [vmem:[#allocation61_spill] sm:$0xff] }
 0x6f7   : > { %9504 = vmatpush1.bf16.msra.mxu1 %v19315_v1  ;;  %v6763_v8 = vsel %vm6756_vm2, %v6759_v24, %v6762_v34  ;;  %v19319_v25 = vxor.u32 2147483648, %v19318_v17  ;;  %v19321_v56 = vxor.u32 2147483648, %v19320_v60  ;;  %vm6963_vm10 = vcmp.eq.s32.totalorder %v6961_v14, 0  ;;  %11210 = vmatmul.mubr.msk.bf16.gmra.mxu0 %vm19322_vm5, %v17064_v58  ;;  %v19380_v6 = vld [vmem:[#allocation158_spill] sm:$0xff]  ;;  %v19381_v31 = vld [vmem:[#allocation45_spill] sm:$0xff] }
 0x6f8   : > { %9505 = vmatprep.subr.bf16.mxu1 %v19316_v42  ;;  %v17088_v49 = vsel %vm19317_vm8, nan, %v6763_v8  ;;  %v19324_v47 = vxor.u32 2147483648, %v19323_v43  ;;  %vm6966_vm7 = vcmp.eq.s32.totalorder %v6961_v14, 2  ;;  %vm7374_vm0 = vcmp.lt.s32.totalorder %v7373_v57, 2  ;;  %9480 = vmatprep.mubr.bf16.mxu0 %v19179_v13  ;;  %v19335_v14 = vld [vmem:[#allocation55_spill] sm:$0xff]  ;;  %vm19340_vm8 = vmmov %vm19322_vm5 }
 0x6f9   : > { %v7171_v52 = vsel %vm7169_vm3, %v19320_v60, %v19319_v25  ;;  %v7174_v27 = vsel %vm7172_vm4, %v19321_v56, %v19318_v17  ;;  %vm19326_vm2 = vweird.f32 %v19186_v29  ;;  %v19327_v18 = vxor.u32 2147483648, %v19325_v10  ;;  %v19329_v17 = vld [vmem:[#allocation72_spill] sm:$0xff]  ;;  %v19331_v29 = vld [vmem:[#allocation75_spill] sm:$0xff]  ;;  %11202 = vmatmul.mubr.msk.bf16.gmra.mxu1 %vm19340_vm8, %v16805_v61 }
 0x6fa   : > { %v7175_v2 = vsel %vm7168_vm14, %v7171_v52, %v7174_v27  ;;  %v6965_v24 = vsel %vm6963_vm10, %v19325_v10, %v19324_v47  ;;  %vm7375_vm3 = vcmp.eq.s32.totalorder %v7373_v57, 0  ;;  %vm7378_vm4 = vcmp.eq.s32.totalorder %v7373_v57, 2  ;;  %9375 = vmatprep.mubr.bf16.mxu1 %v19179_v13 }
 0x6fb   : > { %v17104_v51 = vsel %vm19326_vm2, nan, %v7175_v2  ;;  %v6968_v34 = vsel %vm6966_vm7, %v19327_v18, %v19323_v43  ;;  %v19328_v1 = vpack.c.bf16 %v19070_v30, %v19061_v36  ;;  %v19330_v25 = vxor.u32 2147483648, %v19329_v17  ;;  %v19334_v43 = vld [vmem:[#allocation95_spill] sm:$0xff] }
 0x6fc   : > { %v9578_v8 = vpack.c.bf16 %v17104_v51, %v17088_v49  ;;  %v6969_v42 = vsel %vm6962_vm1, %v6965_v24, %v6968_v34  ;;  %v19332_v52 = vxor.u32 2147483648, %v19331_v29  ;;  %v19333_v57 = vpack.c.bf16 %v16841_v45, %v16829_v3  ;;  %v17131_v24 = vld [vmem:[%s18048_s7 + $0x18] sm:$0xff]  }
 0x6fd   : > { %9506 = vmatpush1.bf16.msra.mxu1 %v19328_v1  ;;  %v7377_v60 = vsel %vm7375_vm3, %v19331_v29, %v19330_v25  ;;  %v9583_v27 = vpack.c.bf16 %v17068_v48, %v17057_v44  ;;  %v6652_v47 = vand.u32 3, %v19334_v43  ;;  %v7064_v10 = vand.u32 3, %v19335_v14  ;;  %v19338_v1 = vld [vmem:[#allocation91_spill] sm:$0xff]  ;;  %v19339_v25 = vld [vmem:[#allocation65_spill] sm:$0xff] }
 0x6fe   : > { %v7380_v56 = vsel %vm7378_vm4, %v19332_v52, %v19329_v17  ;;  %9702 = vmatprep.subr.bf16.mxu1 %v19333_v57  ;;  %9633 = vmatprep.subr.bf16.mxu0 %v9578_v8  ;;  %vm19336_vm14 = vweird.f32 %v19187_v9  ;;  %vm19337_vm1 = vweird.f32 %v19188_v15  ;;  %v6858_v17 = vand.u32 3, %v19338_v1  ;;  %v19341_v8 = vld [vmem:[#allocation56_spill] sm:$0xff]  ;;  %v19342_v15 = vld [vmem:[#allocation83_spill] sm:$0xff]  ;;  %v19344_v52 = vld [vmem:[#allocation82_spill] sm:$0xff] }
 0x6ff   : > { %v7381_v2 = vsel %vm7374_vm0, %v7377_v60, %v7380_v56  ;;  %v17135_v18 = vsel %vm19336_vm14, nan, %v6969_v42  ;;  %v7270_v29 = vand.u32 3, %v19339_v25  ;;  %vm6654_vm10 = vcmp.eq.s32.totalorder %v6652_v47, 0  ;;  %v19346_v43 = vld [vmem:[#allocation129_spill] sm:$0xff]  ;;  %v19348_v1 = vld [vmem:[#allocation100_spill] sm:$0xff]  ;;  %vm19349_vm4 = vmmov %vm19340_vm8 }
 0x700   : > { %v17139_v34 = vsel %vm19337_vm1, nan, %v7381_v2  ;;  %vm6657_vm5 = vcmp.eq.s32.totalorder %v6652_v47, 2  ;;  %v5931_v9 = vand.u32 3, %v19341_v8  ;;  %vm6653_vm7 = vcmp.lt.s32.totalorder %v6652_v47, 2  ;;  %11211 = vmatmul.mubr.msk.bf16.gmra.mxu0 %vm19349_vm4, %v17131_v24 }
 0x701   : > { %v9580_v60 = vpack.c.bf16 %v17139_v34, %v17135_v18  ;;  %v19343_v42 = vxor.u32 2147483648, %v19342_v15  ;;  %v19345_v57 = vxor.u32 2147483648, %v19344_v52  ;;  %vm7066_vm0 = vcmp.eq.s32.totalorder %v7064_v10, 0  ;;  %9653 = vmatprep.mubr.bf16.mxu0 %v19179_v13 }
 0x702   : > { %vm7065_vm2 = vcmp.lt.s32.totalorder %v7064_v10, 2  ;;  %v19347_v14 = vxor.u32 2147483648, %v19346_v43  ;;  %vm7069_vm3 = vcmp.eq.s32.totalorder %v7064_v10, 2  ;;  %v19350_v47 = vxor.u32 2147483648, %v19348_v1  ;;  %v19354_v10 = vld [vmem:[#allocation84_spill] sm:$0xff] }
 0x703   : > { %v6656_v56 = vsel %vm6654_vm10, %v19344_v52, %v19343_v42  ;;  %v6659_v2 = vsel %vm6657_vm5, %v19345_v57, %v19342_v15  ;;  %vm6859_vm14 = vcmp.lt.s32.totalorder %v6858_v17, 2  ;;  %vm6860_vm1 = vcmp.eq.s32.totalorder %v6858_v17, 0  ;;  %v19352_v52 = vld [vmem:[#allocation99_spill] sm:$0xff] }
 0x704   : > { %v6660_v61 = vsel %vm6653_vm7, %v6656_v56, %v6659_v2  ;;  %v7068_v25 = vsel %vm7066_vm0, %v19348_v1, %v19347_v14  ;;  %v7071_v8 = vsel %vm7069_vm3, %v19350_v47, %v19346_v43  ;;  %vm6863_vm8 = vcmp.eq.s32.totalorder %v6858_v17, 2 }
 0x705   : > { %vm19351_vm10 = vweird.f32 %v19189_v50  ;;  %v7072_v42 = vsel %vm7065_vm2, %v7068_v25, %v7071_v8  ;;  %v19353_v56 = vxor.u32 2147483648, %v19352_v52  ;;  %v19355_v2 = vxor.u32 2147483648, %v19354_v10  ;;  %v19359_v25 = vld [vmem:[#allocation90_spill] sm:$0xff] }
 0x706   : > { %v17166_v15 = vsel %vm19351_vm10, nan, %v6660_v61  ;;  %vm19356_vm5 = vweird.f32 %v19190_v7  ;;  %vm7272_vm7 = vcmp.eq.s32.totalorder %v7270_v29, 0  ;;  %vm7275_vm0 = vcmp.eq.s32.totalorder %v7270_v29, 2  ;;  %v19357_v61 = vld [vmem:[#allocation66_spill] sm:$0xff] }
 0x707   : > { %v6862_v57 = vsel %vm6860_vm1, %v19354_v10, %v19353_v56  ;;  %v6865_v14 = vsel %vm6863_vm8, %v19355_v2, %v19352_v52  ;;  %v17176_v43 = vsel %vm19356_vm5, nan, %v7072_v42  ;;  %vm7271_vm3 = vcmp.lt.s32.totalorder %v7270_v29, 2 }
 0x708   : > { %v6866_v17 = vsel %vm6859_vm14, %v6862_v57, %v6865_v14  ;;  %v9577_v50 = vpack.c.bf16 %v17176_v43, %v17166_v15  ;;  %v19358_v1 = vxor.u32 2147483648, %v19357_v61  ;;  %v19360_v8 = vxor.u32 2147483648, %v19359_v25 }
 0x709   : > { %vm19361_vm2 = vweird.f32 %v19192_v46  ;;  %vm5933_vm4 = vcmp.eq.s32.totalorder %v5931_v9, 0  ;;  %vm5936_vm14 = vcmp.eq.s32.totalorder %v5931_v9, 2  ;;  %vm19362_vm1 = vcmask 523264  }
 0x70a   : > { %v7274_v47 = vsel %vm7272_vm7, %v19359_v25, %v19358_v1  ;;  %v7277_v56 = vsel %vm7275_vm0, %v19360_v8, %v19357_v61  ;;  %v17188_v7 = vsel %vm19361_vm2, nan, %v6866_v17  ;;  %11203 = vmatmul.mubr.msk.bf16.gmra.mxu1 %vm19362_vm1, %v16860_v35  ;;  %9634 = vmatpush1.bf16.msra.mxu0 %v9577_v50  ;;  %vm5932_vm8 = vcmp.lt.s32.totalorder %v5931_v9, 2 }
 0x70b   : > { %v7278_v42 = vsel %vm7271_vm3, %v7274_v47, %v7277_v56  ;;  %v19363_v29 = vxor.u32 2147483648, %v16547_v5  ;;  %v19364_v10 = vxor.u32 2147483648, %v16543_v40  ;;  %v6343_v46 = vand.u32 3, %v16439_v39  ;;  %9523 = vmatprep.mubr.bf16.mxu1 %v19179_v13 }
 0x70c   : > { %vm19365_vm10 = vweird.f32 %v19193_v4  ;;  %v6137_v35 = vand.u32 3, %v16496_v59  ;;  %v6549_v9 = vand.u32 3, %v16637_v28  ;;  %v19370_v28 = vxor.u32 2147483648, %v16746_v38 }
 0x70d   : > { %v5935_v52 = vsel %vm5933_vm4, %v16543_v40, %v19363_v29  ;;  %v5938_v57 = vsel %vm5936_vm14, %v19364_v10, %v16547_v5  ;;  %v17202_v2 = vsel %vm19365_vm10, nan, %v7278_v42  ;;  %vm6344_vm5 = vcmp.lt.s32.totalorder %v6343_v46, 2  ;;  %v19366_v40 = vld [vmem:[#allocation52_spill] sm:$0xff] }
 0x70e   : > { %v5939_v14 = vsel %vm5932_vm8, %v5935_v52, %v5938_v57  ;;  %vm6345_vm7 = vcmp.eq.s32.totalorder %v6343_v46, 0  ;;  %vm6348_vm0 = vcmp.eq.s32.totalorder %v6343_v46, 2  ;;  %v19367_v39 = vxor.u32 2147483648, %v19366_v40  ;;  %v19368_v5 = vld [vmem:[#allocation40_spill] sm:$0xff]  ;;  %v19375_v46 = vld [vmem:[#allocation70_spill] sm:$0xff] }
 0x70f   : > { %v17208_v17 = vsel %vm2603_vm11, nan, %v5939_v14  ;;  %v19369_v4 = vxor.u32 2147483648, %v19368_v5  ;;  %vm6138_vm3 = vcmp.lt.s32.totalorder %v6137_v35, 2  ;;  %vm6139_vm2 = vcmp.eq.s32.totalorder %v6137_v35, 0 }
 0x710   : > { %v6347_v50 = vsel %vm6345_vm7, %v19368_v5, %v19367_v39  ;;  %v6141_v12 = vsel %vm6139_vm2, %v16734_v41, %v19370_v28  ;;  %vm6142_vm11 = vcmp.eq.s32.totalorder %v6137_v35, 2  ;;  %vm6550_vm4 = vcmp.lt.s32.totalorder %v6549_v9, 2 }
 0x711   : > { %v6350_v61 = vsel %vm6348_vm0, %v19369_v4, %v19366_v40  ;;  %v19371_v25 = vxor.u32 2147483648, %v16734_v41  ;;  %vm6551_vm14 = vcmp.eq.s32.totalorder %v6549_v9, 0  ;;  %vm6554_vm1 = vcmp.eq.s32.totalorder %v6549_v9, 2  ;;  %v19374_v41 = vld [vmem:[#allocation54_spill] sm:$0xff]  ;;  %v19378_v40 = vld [vmem:[#allocation48_spill] sm:$0xff] }
 0x712   : > { %v6351_v59 = vsel %vm6344_vm5, %v6347_v50, %v6350_v61  ;;  %v19372_v42 = vxor.u32 2147483648, %v16900_v53  ;;  %v19373_v52 = vxor.u32 2147483648, %v16895_v33  ;;  %v9579_v10 = vpack.c.bf16 %v17202_v2, %v17188_v7  ;;  %v19383_v61 = vld [vmem:[#allocation33_spill] sm:$0xff] }
 0x713   : > { %v17221_v1 = vsel %vm3019_vm9, nan, %v6351_v59  ;;  %v6144_v47 = vsel %vm6142_vm11, %v19371_v25, %v16746_v38  ;;  %v5828_v38 = vand.u32 3, %v19374_v41  ;;  %v6240_v14 = vand.u32 3, %v19375_v46  ;;  %v19390_v41 = vld [vmem:[#allocation53_spill] sm:$0xff] }
 0x714   : > { %v9574_v8 = vpack.c.bf16 %v17221_v1, %v17208_v17  ;;  %v6145_v56 = vsel %vm6138_vm3, %v6141_v12, %v6144_v47  ;;  %v6553_v29 = vsel %vm6551_vm14, %v16895_v33, %v19372_v42  ;;  %v6556_v11 = vsel %vm6554_vm1, %v19373_v52, %v16900_v53  ;;  %v19377_v53 = vld [vmem:[#allocation8_spill] sm:$0xff]  ;;  %v19385_v47 = vld [vmem:[#allocation51_spill] sm:$0xff]  ;;  %v19392_v46 = vld [vmem:[#allocation73_spill] sm:$0xff] }
 0x715   : > { %v6557_v57 = vsel %vm6550_vm4, %v6553_v29, %v6556_v11  ;;  %vm19376_vm9 = vcmask 523264   ;;  %v17242_v35 = vsel %vm2811_vm12, nan, %v6145_v56  ;;  %v6034_v9 = vand.u32 3, %v19377_v53  ;;  %v19387_v56 = vld [vmem:[#allocation50_spill] sm:$0xff] }
 0x716   : > { %11212 = vmatmul.mubr.msk.bf16.vlgmr.msra.gmra.mxu1 %vm19376_vm9, %v16913_v21  ;;  %9635 = vmatprep.subr.bf16.mxu0 %v9574_v8  ;;  %v17246_v33 = vsel %vm3227_vm13, nan, %v6557_v57  ;;  %v6446_v39 = vand.u32 3, %v19378_v40  ;;  %v19379_v5 = vpack.c.bf16 %v16927_v55, %v16917_v0  ;;  %vm5830_vm8 = vcmp.eq.s32.totalorder %v5828_v38, 0  ;;  %vm19399_vm14 = vmmov %vm19376_vm9  ;;  %v19405_v52 = vld [vmem:[#allocation142_spill] sm:$0xff] }
 0x717   : > { %9533 = vmatprep.mubr.bf16.mxu1 %v19179_v13  ;;  %v9576_v21 = vpack.c.bf16 %v17246_v33, %v17242_v35  ;;  %vm5833_vm12 = vcmp.eq.s32.totalorder %v5828_v38, 2  ;;  %v17257_v50 = vmul.f32 2.0, %v19380_v6  ;;  %vm5829_vm13 = vcmp.lt.s32.totalorder %v5828_v38, 2 }
 0x718   : > { %9703 = vmatpush1.bf16.msra.mxu1 %v19379_v5  ;;  %v19382_v4 = vxor.u32 2147483648, %v19381_v31  ;;  %v19384_v28 = vxor.u32 2147483648, %v19383_v61  ;;  %vm6242_vm10 = vcmp.eq.s32.totalorder %v6240_v14, 0  ;;  %vm6241_vm5 = vcmp.lt.s32.totalorder %v6240_v14, 2 }
 0x719   : > { %9704 = vmatprep.subr.bf16.mxu1 %v9584_v16  ;;  %v19386_v8 = vxor.u32 2147483648, %v19385_v47  ;;  %vm6245_vm7 = vcmp.eq.s32.totalorder %v6240_v14, 2  ;;  %v19388_v16 = vxor.u32 2147483648, %v19387_v56  ;;  %vm6035_vm0 = vcmp.lt.s32.totalorder %v6034_v9, 2 }
 0x71a   : > { %v5832_v59 = vsel %vm5830_vm8, %v19383_v61, %v19382_v4  ;;  %v5835_v12 = vsel %vm5833_vm12, %v19384_v28, %v19381_v31  ;;  %vm6036_vm3 = vcmp.eq.s32.totalorder %v6034_v9, 0  ;;  %vm6039_vm2 = vcmp.eq.s32.totalorder %v6034_v9, 2  ;;  %v19395_v4 = vld [vmem:[#allocation86_spill] sm:$0xff]  ;;  %vm19414_vm8 = vmmov %vm19376_vm9 }
 0x71b   : > { %v5836_v25 = vsel %vm5829_vm13, %v5832_v59, %v5835_v12  ;;  %v6244_v42 = vsel %vm6242_vm10, %v19387_v56, %v19386_v8  ;;  %v6247_v29 = vsel %vm6245_vm7, %v19388_v16, %v19385_v47  ;;  %v19391_v38 = vxor.u32 2147483648, %v19390_v41  ;;  %v19397_v59 = vld [vmem:[#allocation34_spill] sm:$0xff]  ;;  %v19401_v8 = vld [vmem:[#allocation161_spill] sm:$0xff]  ;;  %vm19420_vm12 = vmmov %vm19414_vm8 }
 0x71c   : > { %9705 = vmatpush1.bf16.msra.mxu1 %v9583_v27  ;;  %v17279_v11 = vsel %vm2499_vm15, nan, %v5836_v25  ;;  %v6248_v57 = vsel %vm6241_vm5, %v6244_v42, %v6247_v29  ;;  %v19393_v53 = vxor.u32 2147483648, %v19392_v46  ;;  %vm6448_vm15 = vcmp.eq.s32.totalorder %v6446_v39, 0  ;;  %v17317_v16 = vld [vmem:[%s18048_s7 + $0x40] sm:$0xff]   ;;  %vm19428_vm13 = vmmov %vm19414_vm8 }
 0x71d   : > { %v6038_v14 = vsel %vm6036_vm3, %v19392_v46, %v19391_v38  ;;  %9706 = vmatprep.subr.bf16.mxu1 %v9580_v60  ;;  %v17292_v27 = vsel %vm2915_vm6, nan, %v6248_v57  ;;  %vm6451_vm11 = vcmp.eq.s32.totalorder %v6446_v39, 2  ;;  %vm6447_vm4 = vcmp.lt.s32.totalorder %v6446_v39, 2  ;;  %v19402_v39 = vld [vmem:[#allocation103_spill] sm:$0xff]  ;;  %vm19436_vm10 = vmmov %vm19414_vm8 }
 0x71e   : > { %v6041_v40 = vsel %vm6039_vm2, %v19393_v53, %v19390_v41  ;;  %v9573_v31 = vpack.c.bf16 %v17292_v27, %v17279_v11  ;;  %v19396_v61 = vxor.u32 2147483648, %v19395_v4  ;;  %v19398_v12 = vxor.u32 2147483648, %v19397_v59  ;;  %11213 = vmatmul.mubr.msk.bf16.gmra.mxu1 %vm19399_vm14, %v16994_v20  ;;  %v19406_v41 = vld [vmem:[#allocation160_spill] sm:$0xff]  ;;  %v19408_v53 = vld [vmem:[#allocation14_spill] sm:$0xff]  ;;  %vm19439_vm5 = vmmov %vm19414_vm8 }
 0x71f   : > { %v6042_v5 = vsel %vm6035_vm0, %v6038_v14, %v6041_v40  ;;  %vm19400_vm6 = vweird.f32 %v19061_v36  ;;  %v17309_v56 = vmul.f32 2.0, %v19401_v8  ;;  %v17312_v42 = vmul.f32 2.0, %v19402_v39  ;;  %v19404_v36 = vld [vmem:[#allocation110_spill] sm:$0xff]  ;;  %9543 = vmatprep.mubr.bf16.mxu1 %v19179_v13  ;;  %vm19443_vm7 = vmmov %vm19439_vm5 }
 0x720   : > { %v6450_v28 = vsel %vm6448_vm15, %v19397_v59, %v19396_v61  ;;  %v6453_v25 = vsel %vm6451_vm11, %v19398_v12, %v19395_v4  ;;  %v17306_v60 = vsel %vm19400_vm6, nan, %v6042_v5  ;;  %9707 = vmatpush1.bf16.msra.mxu1 %v9579_v10  ;;  %9636 = vmatpush1.bf16.msra.mxu0 %v9573_v31  ;;  %vm19403_vm1 = vweird.f32 %v19070_v30  ;;  %v19407_v14 = vld [vmem:[#allocation6_spill] sm:$0xff]  ;;  %v19409_v5 = vld [vmem:[#allocation13_spill] sm:$0xff]  ;;  %vm19444_vm0 = vmmov %vm19439_vm5 }
 0x721   : > { %v6454_v47 = vsel %vm6447_vm4, %v6450_v28, %v6453_v25  ;;  %v17324_v29 = vmul.f32 2.0, %v19404_v36  ;;  %v17327_v57 = vmul.f32 2.0, %v19405_v52  ;;  %v17330_v38 = vmul.f32 2.0, %v19406_v41  ;;  %9708 = vmatprep.subr.bf16.mxu1 %v9576_v21  ;;  %v19410_v61 = vld [vmem:[#allocation134_spill] sm:$0xff]  ;;  %vm19448_vm3 = vmmov %vm19444_vm0 }
 0x722   : > { %v17321_v20 = vsel %vm19403_vm1, nan, %v6454_v47  ;;  %v9088_v10 = vmul.f32 %v17257_v50, %v19407_v14  ;;  %v9092_v30 = vmul.f32 %v17309_v56, %v19408_v53  ;;  %v9090_v40 = vmul.f32 %v17312_v42, %v16829_v3  ;;  %v19411_v28 = vld [vmem:[#allocation114_spill] sm:$0xff]  ;;  %v19412_v47 = vld [vmem:[#allocation121_spill] sm:$0xff]  ;;  %vm19453_vm2 = vmmov %vm19444_vm0 }
 0x723   : > { %v9575_v46 = vpack.c.bf16 %v17321_v20, %v17306_v60  ;;  %v9094_v9 = vmul.f32 %v17324_v29, %v16841_v45  ;;  %v9087_v21 = vmul.f32 %v17327_v57, %v16883_v63  ;;  %v9091_v31 = vmul.f32 %v17330_v38, %v19409_v5  ;;  %11228 = vmatmul.mubr.msk.bf16.vlgmr.msra.gmra.mxu0 %vm19376_vm9, %v17317_v16  ;;  %vm19456_vm15 = vmmov %vm19444_vm0 }
 0x724   : > { %v9821_v4 = vpack.c.bf16 %v9092_v30, %v9088_v10  ;;  %v17350_v59 = vmul.f32 2.0, %v19410_v61  ;;  %v17353_v12 = vmul.f32 2.0, %v19411_v28  ;;  %9663 = vmatprep.mubr.bf16.mxu0 %v19179_v13  ;;  %v17361_v14 = vmul.f32 2.0, %v19412_v47  ;;  %v19413_v10 = vld [vmem:[#allocation139_spill] sm:$0xff]  ;;  %vm19459_vm11 = vmmov %vm19444_vm0 }
 0x725   : > { %9709 = vmatpush1.bf16.msra.mxu1 %v9575_v46  ;;  %v9823_v3 = vpack.c.bf16 %v9094_v9, %v9090_v40  ;;  %v9820_v25 = vpack.c.bf16 %v9091_v31, %v9087_v21  ;;  %v17364_v53 = vmul.f32 2.0, %v19413_v10  ;;  %v17371_v30 = vld [vmem:[%s18048_s7 + $0x48] sm:$0xff]   ;;  %v19415_v40 = vld [vmem:[#allocation74_spill] sm:$0xff]  ;;  %v19417_v21 = vld [vmem:[#allocation85_spill] sm:$0xff] }
 0x726   : > { %9864 = vmatprep.subr.bf16.mxu0 %v9821_v4  ;;  %v9080_v45 = vmul.f32 %v17350_v59, %v16931_v26  ;;  %v9084_v63 = vmul.f32 %v17353_v12, %v16957_v62  ;;  %11214 = vmatmul.mubr.msk.bf16.gmra.mxu1 %vm19414_vm8, %v17064_v58  ;;  %v9079_v26 = vmul.f32 %v17361_v14, %v17025_v37  ;;  %v17379_v9 = vmul.f32 2.0, %v19415_v40  ;;  %v19421_v37 = vld [vmem:[#allocation76_spill] sm:$0xff]  ;;  %vm19465_vm4 = vmmov %vm19444_vm0 }
 0x727   : > { %9937 = vmatprep.subr.bf16.mxu1 %v9823_v3  ;;  %9865 = vmatpush1.bf16.msra.mxu0 %v9820_v25  ;;  %v9083_v62 = vmul.f32 %v17364_v53, %v17031_v22  ;;  %v17382_v5 = vmul.f32 2.0, %v19417_v21  ;;  %v19418_v3 = vld [vmem:[#allocation92_spill] sm:$0xff]  ;;  %v17394_v22 = vmul.f32 2.0, %v19421_v37  ;;  %vm19466_vm14 = vmmov %vm19444_vm0 }
 0x728   : > { %v9817_v46 = vpack.c.bf16 %v9084_v63, %v9080_v45  ;;  %9553 = vmatprep.mubr.bf16.mxu1 %v19179_v13  ;;  %19416 = vst [vmem:[#allocation22_spill] sm:$0xff] %v17379_v9  ;;  %v9072_v31 = vmul.f32 %v17379_v9, %v17088_v49  ;;  %v17389_v25 = vmul.f32 2.0, %v19418_v3  ;;  %v19422_v45 = vld [vmem:[#allocation140_spill] sm:$0xff]  ;;  %v19426_v3 = vld [vmem:[#allocation71_spill] sm:$0xff]  ;;  %vm19467_vm6 = vmmov %vm19444_vm0 }
 0x729   : > { %v9816_v58 = vpack.c.bf16 %v9083_v62, %v9079_v26  ;;  %v9076_v4 = vmul.f32 %v17382_v5, %v17104_v51  ;;  %v17397_v63 = vmul.f32 2.0, %v19422_v45  ;;  %v9075_v51 = vmul.f32 %v17394_v22, %v17176_v43  ;;  %v19424_v26 = vld [vmem:[#allocation5_spill] sm:$0xff]  ;;  %v19427_v37 = vld [vmem:[#allocation108_spill] sm:$0xff]  ;;  %v19430_v45 = vld [vmem:[#allocation106_spill] sm:$0xff] }
 0x72a   : > { %9866 = vmatprep.subr.bf16.mxu0 %v9817_v46  ;;  %19419 = vst [vmem:[#allocation17_spill] sm:$0xff] %v17389_v25  ;;  %v9071_v49 = vmul.f32 %v17389_v25, %v17166_v15  ;;  %v17405_v62 = vmul.f32 2.0, %v19424_v26  ;;  %v17408_v9 = vmul.f32 2.0, %v19426_v3  ;;  %v17411_v40 = vmul.f32 2.0, %v19427_v37  ;;  %v19431_v37 = vld [vmem:[#allocation68_spill] sm:$0xff]  ;;  %vm19468_vm1 = vmmov %vm19444_vm0 }
 0x72b   : > { %11229 = vmatmul.mubr.msk.bf16.gmra.mxu0 %vm19420_vm12, %v17371_v30  ;;  %19423 = vst [vmem:[#allocation10_spill] sm:$0xff] %v17397_v63  ;;  %v9813_v46 = vpack.c.bf16 %v9076_v4, %v9072_v31  ;;  %v19429_v31 = vld [vmem:[#allocation47_spill] sm:$0xff]  ;;  %v17424_v26 = vmul.f32 2.0, %v19430_v45  ;;  %v9120_v25 = vmul.f32 %v17257_v50, %v19380_v6  ;;  %vm19469_vm9 = vmmov %vm19444_vm0 }
 0x72c   : > { %9867 = vmatpush1.bf16.msra.mxu0 %v9816_v58  ;;  %9673 = vmatprep.mubr.bf16.mxu0 %v19179_v13  ;;  %19425 = vst [vmem:[#allocation20_spill] sm:$0xff] %v17405_v62  ;;  %v9812_v58 = vpack.c.bf16 %v9075_v51, %v9071_v49  ;;  %v9064_v15 = vmul.f32 %v17405_v62, %v17208_v17  ;;  %v17420_v4 = vmul.f32 2.0, %v19429_v31  ;;  %v19433_v51 = vld [vmem:[#allocation96_spill] sm:$0xff]  ;;  %v19437_v50 = vld [vmem:[#allocation87_spill] sm:$0xff]  ;;  %vm19470_vm8 = vmmov %vm19444_vm0 }
 0x72d   : > { %9868 = vmatprep.subr.bf16.mxu0 %v9813_v46  ;;  %v9068_v43 = vmul.f32 %v17408_v9, %v17221_v1  ;;  %v17427_v46 = vmul.f32 2.0, %v19431_v37  ;;  %v9093_v17 = vmul.f32 %v17397_v63, %v16927_v55  ;;  %v19432_v1 = vld [vmem:[#allocation105_spill] sm:$0xff]  ;;  %v17440_v31 = vmul.f32 2.0, %v19433_v51  ;;  %vm19471_vm12 = vmmov %vm19444_vm0 }
 0x72e   : > { %11215 = vmatmul.mubr.msk.bf16.gmra.mxu1 %vm19428_vm13, %v17131_v24  ;;  %v17432_v24 = vld [vmem:[%s18048_s7 + $0x50] sm:$0xff]   ;;  %v17437_v49 = vmul.f32 2.0, %v19432_v1  ;;  %v9063_v37 = vmul.f32 %v17420_v4, %v17279_v11  ;;  %v9124_v55 = vmul.f32 %v17309_v56, %v19401_v8  ;;  %v9086_v1 = vmul.f32 %v17411_v40, %v17006_v32  ;;  %v19434_v63 = vld [vmem:[#allocation93_spill] sm:$0xff]  ;;  %v19435_v11 = vld [vmem:[#allocation102_spill] sm:$0xff] }
 0x72f   : > { %9726 = vmatprep.mubr.bf16.mxu1 %v19179_v13  ;;  %v9809_v45 = vpack.c.bf16 %v9068_v43, %v9064_v15  ;;  %v9067_v62 = vmul.f32 %v17427_v46, %v17292_v27  ;;  %v17453_v51 = vmul.f32 2.0, %v19434_v63  ;;  %v17458_v15 = vmul.f32 2.0, %v19435_v11  ;;  %vm19472_vm13 = vmmov %vm19444_vm0 }
 0x730   : > { %9869 = vmatpush1.bf16.msra.mxu0 %v9812_v58  ;;  %v9089_v58 = vmul.f32 %v17424_v26, %v16917_v0  ;;  %v9156_v43 = vsub.f32 1.0, %v9124_v55  ;;  %v9082_v6 = vmul.f32 %v17437_v49, %v16974_v23  ;;  %v17465_v32 = vmul.f32 2.0, %v19437_v50 }
 0x731   : > { %9870 = vmatprep.subr.bf16.mxu0 %v9809_v45  ;;  %v9808_v27 = vpack.c.bf16 %v9067_v62, %v9063_v37  ;;  %v9152_v8 = vsub.f32 1.0, %v9120_v25  ;;  %v9085_v0 = vmul.f32 %v17440_v31, %v17068_v48  ;;  %v19438_v45 = vld [vmem:[#allocation97_spill] sm:$0xff]  ;;  %v9078_v23 = vmul.f32 %v17453_v51, %v17139_v34  ;;  %v19440_v62 = vld [vmem:[#allocation18_spill] sm:$0xff] }
 0x732   : > { %v9822_v56 = vpack.c.bf16 %v9093_v17, %v9089_v58  ;;  %v17471_v11 = vmul.f32 2.0, %v19438_v45  ;;  %v9819_v37 = vpack.c.bf16 %v9086_v1, %v9082_v6  ;;  %v17478_v55 = vmul.f32 2.0, %v19440_v62  ;;  %v19441_v48 = vld [vmem:[#allocation77_spill] sm:$0xff]  ;;  %v19442_v1 = vld [vmem:[#allocation12_spill] sm:$0xff] }
 0x733   : > { %11230 = vmatmul.mubr.msk.bf16.gmra.mxu0 %vm19436_vm10, %v17432_v24  ;;  %v10056_v25 = vpack.c.bf16 %v9156_v43, %v9152_v8  ;;  %v9081_v17 = vmul.f32 %v17458_v15, %v17057_v44  ;;  %v17484_v58 = vmul.f32 2.0, %v19441_v48  ;;  %v9074_v34 = vmul.f32 %v17465_v32, %v17135_v18  ;;  %vm19473_vm10 = vmmov %vm19444_vm0 }
 0x734   : > { %9683 = vmatprep.mubr.bf16.mxu0 %v19179_v13  ;;  %9871 = vmatpush1.bf16.msra.mxu0 %v9808_v27  ;;  %v17494_v27 = vmul.f32 2.0, %v19442_v1  ;;  %v9077_v44 = vmul.f32 %v17471_v11, %v17202_v2  ;;  %v17499_v6 = vmul.f32 2.0, %v16766_v54  ;;  %v9123_v18 = vmul.f32 %v17330_v38, %v19406_v41 }
 0x735   : > { %10099 = vmatprep.subr.bf16.mxu0 %v10056_v25  ;;  %v9818_v43 = vpack.c.bf16 %v9085_v0, %v9081_v17  ;;  %v9815_v8 = vpack.c.bf16 %v9078_v23, %v9074_v34  ;;  %v9073_v0 = vmul.f32 %v17484_v58, %v17188_v7  ;;  %v17510_v25 = vmul.f32 2.0, %v16696_v19  ;;  %v19446_v23 = vld [vmem:[#allocation22_spill] sm:$0xff] }
 0x736   : > { %11232 = vmatmul.mubr.msk.bf16.vlgmr.msra.gmra.mxu1 %vm19439_vm5, %v17317_v16  ;;  %v17489_v16 = vld [vmem:[%s18048_s7 + $0x58] sm:$0xff]   ;;  %v9116_v2 = vmul.f32 %v17353_v12, %v19411_v28  ;;  %v9119_v7 = vmul.f32 %v17327_v57, %v19405_v52  ;;  %v9069_v41 = vmul.f32 %v17499_v6, %v17321_v20  ;;  %v9112_v38 = vmul.f32 %v17350_v59, %v19410_v61  ;;  %v17537_v20 = vld [vmem:[%s18048_s7 + $0x60] sm:$0xff]   ;;  %vm19474_vm5 = vmmov %vm19444_vm0 }
 0x737   : > { %9938 = vmatpush1.bf16.msra.mxu1 %v9822_v56  ;;  %9736 = vmatprep.mubr.bf16.mxu1 %v19179_v13  ;;  %v9070_v56 = vmul.f32 %v17478_v55, %v17246_v33  ;;  %v9066_v33 = vmul.f32 %v17494_v27, %v17242_v35  ;;  %v9155_v12 = vsub.f32 1.0, %v9123_v18  ;;  %v9108_v57 = vmul.f32 %v17382_v5, %v19417_v21  ;;  %v19450_v18 = vld [vmem:[#allocation17_spill] sm:$0xff] }
 0x738   : > { %9939 = vmatprep.subr.bf16.mxu1 %v9819_v37  ;;  %v9126_v37 = vmul.f32 %v17324_v29, %v19404_v36  ;;  %v9122_v36 = vmul.f32 %v17312_v42, %v19402_v39  ;;  %v9814_v29 = vpack.c.bf16 %v9077_v44, %v9073_v0  ;;  %v9115_v39 = vmul.f32 %v17364_v53, %v19413_v10 }
 0x739   : > { %v9811_v28 = vpack.c.bf16 %v9070_v56, %v9066_v33  ;;  %v9065_v42 = vmul.f32 %v17510_v25, %v17306_v60  ;;  %v9148_v52 = vsub.f32 1.0, %v9116_v2  ;;  %v9151_v59 = vsub.f32 1.0, %v9119_v7  ;;  %v19445_v60 = vld [vmem:[#allocation74_spill] sm:$0xff]  ;;  %v19452_v33 = vld [vmem:[#allocation20_spill] sm:$0xff] }
 0x73a   : > { %v9158_v35 = vsub.f32 1.0, %v9126_v37  ;;  %v9154_v61 = vsub.f32 1.0, %v9122_v36  ;;  %v9111_v10 = vmul.f32 %v17361_v14, %v19412_v47  ;;  %v9104_v17 = vmul.f32 %v19446_v23, %v19445_v60  ;;  %v19449_v37 = vld [vmem:[#allocation92_spill] sm:$0xff]  ;;  %v19461_v60 = vld [vmem:[#allocation106_spill] sm:$0xff] }
 0x73b   : > { %9940 = vmatpush1.bf16.msra.mxu1 %v9818_v43  ;;  %11231 = vmatmul.mubr.msk.bf16.gmra.mxu0 %vm19443_vm7, %v17489_v16  ;;  %v9810_v53 = vpack.c.bf16 %v9069_v41, %v9065_v42  ;;  %v10055_v43 = vpack.c.bf16 %v9155_v12, %v9151_v59  ;;  %v9147_v44 = vsub.f32 1.0, %v9115_v39  ;;  %v9140_v5 = vsub.f32 1.0, %v9108_v57  ;;  %v19454_v41 = vld [vmem:[#allocation68_spill] sm:$0xff]  ;;  %v19455_v12 = vld [vmem:[#allocation47_spill] sm:$0xff]  ;;  %v19458_v59 = vld [vmem:[#allocation10_spill] sm:$0xff] }
 0x73c   : > { %9941 = vmatprep.subr.bf16.mxu1 %v9815_v8  ;;  %9888 = vmatprep.mubr.bf16.mxu0 %v19179_v13  ;;  %v10058_v34 = vpack.c.bf16 %v9158_v35, %v9154_v61  ;;  %v19447_v8 = vld [vmem:[#allocation76_spill] sm:$0xff]  ;;  %v9100_v47 = vmul.f32 %v17408_v9, %v19426_v3  ;;  %v9143_v14 = vsub.f32 1.0, %v9111_v10  ;;  %v9103_v0 = vmul.f32 %v19450_v18, %v19449_v37  ;;  %vm19475_vm7 = vmmov %vm19444_vm0 }
 0x73d   : > { %v9107_v56 = vmul.f32 %v17394_v22, %v19447_v8  ;;  %v9136_v2 = vsub.f32 1.0, %v9104_v17  ;;  %v19451_v22 = vld [vmem:[#allocation5_spill] sm:$0xff]  ;;  %v9099_v9 = vmul.f32 %v17427_v46, %v19454_v41  ;;  %v9095_v39 = vmul.f32 %v17420_v4, %v19455_v12  ;;  %v19457_v61 = vld [vmem:[#allocation140_spill] sm:$0xff] }
 0x73e   : > { %11233 = vmatmul.mubr.msk.bf16.gmra.mxu1 %vm19444_vm0, %v17371_v30  ;;  %v9144_v30 = vsub.f32 1.0, %v9112_v38  ;;  %v9096_v36 = vmul.f32 %v19452_v33, %v19451_v22  ;;  %v10051_v7 = vpack.c.bf16 %v9147_v44, %v9143_v14  ;;  %v17564_v38 = vld [vmem:[%s18048_s7 + $0x68] sm:$0xff]   ;;  %v9135_v35 = vsub.f32 1.0, %v9103_v0  ;;  %v19460_v4 = vld [vmem:[#allocation108_spill] sm:$0xff] }
 0x73f   : > { %9942 = vmatpush1.bf16.msra.mxu1 %v9814_v29  ;;  %9746 = vmatprep.mubr.bf16.mxu1 %v19179_v13  ;;  %v9139_v29 = vsub.f32 1.0, %v9107_v56  ;;  %v10048_v3 = vpack.c.bf16 %v9140_v5, %v9136_v2  ;;  %v9127_v57 = vsub.f32 1.0, %v9095_v39  ;;  %v9125_v10 = vmul.f32 %v19458_v59, %v19457_v61  ;;  %v11480_v17 = vld [vmem:[%s18048_s7 + $0x70] sm:$0xff]   ;;  %v19464_v5 = vld [vmem:[#allocation102_spill] sm:$0xff] }
 0x740   : > { %9943 = vmatprep.subr.bf16.mxu1 %v9811_v28  ;;  %v10052_v21 = vpack.c.bf16 %v9148_v52, %v9144_v30  ;;  %v9132_v28 = vsub.f32 1.0, %v9100_v47  ;;  %v9131_v52 = vsub.f32 1.0, %v9099_v9  ;;  %v9121_v23 = vmul.f32 %v17424_v26, %v19461_v60  ;;  %v19463_v8 = vld [vmem:[#allocation96_spill] sm:$0xff] }
 0x741   : > { %v10047_v42 = vpack.c.bf16 %v9139_v29, %v9135_v35  ;;  %v9157_v44 = vsub.f32 1.0, %v9125_v10  ;;  %v9113_v26 = vmul.f32 %v17458_v15, %v19464_v5  ;;  %v9106_v14 = vmul.f32 %v17465_v32, %v19437_v50  ;;  %v11481_v32 = vld [vmem:[%s18048_s7 + $0x78] sm:$0xff]  }
 0x742   : > { %v10043_v30 = vpack.c.bf16 %v9131_v52, %v9127_v57  ;;  %v9102_v15 = vmul.f32 %v17478_v55, %v19440_v62  ;;  %v9105_v50 = vmul.f32 %v17484_v58, %v19441_v48  ;;  %v9101_v62 = vmul.f32 %v17499_v6, %v16766_v54 }
 0x743   : > { %9944 = vmatpush1.bf16.msra.mxu1 %v9810_v53  ;;  %11248 = vmatmul.mubr.msk.bf16.vlgmr.msra.gmra.mxu0 %vm19448_vm3, %v17537_v20  ;;  %v9118_v53 = vmul.f32 %v17411_v40, %v19460_v4  ;;  %v9110_v40 = vmul.f32 %v17453_v51, %v19434_v63  ;;  %v9145_v18 = vsub.f32 1.0, %v9113_v26  ;;  %v9097_v48 = vmul.f32 %v17510_v25, %v16696_v19  ;;  %v11482_v19 = vld [vmem:[%s18048_s7 + $0x80] sm:$0xff]   ;;  %v11483_v25 = vld [vmem:[%s18048_s7 + $0x88] sm:$0xff]   ;;  %vm19476_vm3 = vmmov %vm19444_vm0 }
 0x744   : > { %10172 = vmatprep.subr.bf16.mxu1 %v10058_v34  ;;  %10100 = vmatpush1.bf16.msra.mxu0 %v10055_v43  ;;  %v19462_v34 = vld [vmem:[#allocation105_spill] sm:$0xff]  ;;  %v9134_v2 = vsub.f32 1.0, %v9102_v15  ;;  %v9137_v22 = vsub.f32 1.0, %v9105_v50 }
 0x745   : > { %10101 = vmatprep.subr.bf16.mxu0 %v10052_v21  ;;  %9898 = vmatprep.mubr.bf16.mxu0 %v19179_v13  ;;  %v9114_v43 = vmul.f32 %v17437_v49, %v19462_v34  ;;  %v9150_v56 = vsub.f32 1.0, %v9118_v53  ;;  %v9153_v21 = vsub.f32 1.0, %v9121_v23  ;;  %v9142_v51 = vsub.f32 1.0, %v9110_v40 }
 0x746   : > { %11234 = vmatmul.mubr.msk.bf16.gmra.mxu1 %vm19453_vm2, %v17432_v24  ;;  %v9128_v24 = vsub.f32 1.0, %v9096_v36  ;;  %v9129_v54 = vsub.f32 1.0, %v9097_v48  ;;  %v11484_v36 = vld [vmem:[%s18048_s7 + $0x90] sm:$0xff]   ;;  %vm19477_vm2 = vmmov %vm19444_vm0 }
 0x747   : > { %9756 = vmatprep.mubr.bf16.mxu1 %v19179_v13  ;;  %v9146_v47 = vsub.f32 1.0, %v9114_v43  ;;  %v10057_v49 = vpack.c.bf16 %v9157_v44, %v9153_v21 }
 0x748   : > { %10102 = vmatpush1.bf16.msra.mxu0 %v10051_v7  ;;  %v10044_v46 = vpack.c.bf16 %v9132_v28, %v9128_v24  ;;  %v11485_v7 = vld [vmem:[%s18048_s7 + $0x98] sm:$0xff]  }
 0x749   : > { %10103 = vmatprep.subr.bf16.mxu0 %v10048_v3  ;;  %v10054_v63 = vpack.c.bf16 %v9150_v56, %v9146_v47 }
 0x74b   : > { %11249 = vmatmul.mubr.msk.bf16.gmra.mxu0 %vm19456_vm15, %v17564_v38  ;;  %vm19504_vm15 = vmmov %vm19444_vm0 }
 0x74c   : > { %10104 = vmatpush1.bf16.msra.mxu0 %v10047_v42  ;;  %9908 = vmatprep.mubr.bf16.mxu0 %v19179_v13 }
 0x74d   : > { %10105 = vmatprep.subr.bf16.mxu0 %v10044_v46 }
 0x74e   : > { %11235 = vmatmul.mubr.msk.bf16.gmra.mxu1 %vm19459_vm11, %v17489_v16  ;;  %v9117_v16 = vmul.f32 %v17440_v31, %v19463_v8  ;;  %v9109_v31 = vmul.f32 %v17471_v11, %v19438_v45  ;;  %v9138_v11 = vsub.f32 1.0, %v9106_v14  ;;  %v9098_v45 = vmul.f32 %v17494_v27, %v19442_v1  ;;  %vm19506_vm11 = vmmov %vm19444_vm0 }
 0x74f   : > { %9961 = vmatprep.mubr.bf16.mxu1 %v19179_v13  ;;  %v9133_v1 = vsub.f32 1.0, %v9101_v62 }
 0x750   : > { %10106 = vmatpush1.bf16.msra.mxu0 %v10043_v30  ;;  %v9149_v37 = vsub.f32 1.0, %v9117_v16  ;;  %v9141_v0 = vsub.f32 1.0, %v9109_v31  ;;  %v10050_v55 = vpack.c.bf16 %v9142_v51, %v9138_v11  ;;  %v9130_v58 = vsub.f32 1.0, %v9098_v45 }
 0x751   : > { %v10045_v6 = vpack.c.bf16 %v9133_v1, %v9129_v54 }
 0x752   : > { %v10049_v33 = vpack.c.bf16 %v9141_v0, %v9137_v22  ;;  %v10046_v27 = vpack.c.bf16 %v9134_v2, %v9130_v58 }
 0x753   : > { %11250 = vmatmul.mubr.msk.bf16.gmra.mxu0 %vm19465_vm4, %v11480_v17  ;;  %vm19507_vm4 = vmmov %vm19444_vm0 }
 0x754   : > { %9918 = vmatprep.mubr.bf16.mxu0 %v19179_v13 }
 0x756   : > { %11252 = vmatmul.mubr.msk.bf16.vlgmr.msra.gmra.mxu1 %vm19466_vm14, %v17537_v20  ;;  %v10053_v20 = vpack.c.bf16 %v9149_v37, %v9145_v18  ;;  %vm19508_vm14 = vmmov %vm19444_vm0 }
 0x757   : > { %10173 = vmatpush1.bf16.msra.mxu1 %v10057_v49  ;;  %9971 = vmatprep.mubr.bf16.mxu1 %v19179_v13 }
 0x758   : > { %10174 = vmatprep.subr.bf16.mxu1 %v10054_v63 }
 0x75b   : > { %10175 = vmatpush1.bf16.msra.mxu1 %v10053_v20  ;;  %11251 = vmatmul.mubr.msk.bf16.gmra.mxu0 %vm19467_vm6, %v11481_v32  ;;  %vm19509_vm6 = vmmov %vm19444_vm0 }
 0x75c   : > { %10176 = vmatprep.subr.bf16.mxu1 %v10050_v55  ;;  %10123 = vmatprep.mubr.bf16.mxu0 %v19179_v13 }
 0x75e   : > { %11253 = vmatmul.mubr.msk.bf16.gmra.mxu1 %vm19468_vm1, %v17564_v38  ;;  %vm19510_vm1 = vmmov %vm19444_vm0 }
 0x75f   : > { %10177 = vmatpush1.bf16.msra.mxu1 %v10049_v33  ;;  %9981 = vmatprep.mubr.bf16.mxu1 %v19179_v13 }
 0x760   : > { %10178 = vmatprep.subr.bf16.mxu1 %v10046_v27 }
 0x763   : > { %10179 = vmatpush1.bf16.msra.mxu1 %v10045_v6  ;;  %11268 = vmatmul.mubr.msk.bf16.vlgmr.msra.gmra.mxu0 %vm19469_vm9, %v11482_v19  ;;  %vm19511_vm9 = vmmov %vm19444_vm0 }
 0x764   : > { %10133 = vmatprep.mubr.bf16.mxu0 %v19179_v13 }
 0x766   : > { %11254 = vmatmul.mubr.msk.bf16.gmra.mxu1 %vm19470_vm8, %v11480_v17  ;;  %vm19512_vm8 = vmmov %vm19444_vm0 }
 0x767   : > { %9991 = vmatprep.mubr.bf16.mxu1 %v19179_v13 }
 0x76b   : > { %11269 = vmatmul.mubr.msk.bf16.gmra.mxu0 %vm19471_vm12, %v11483_v25  ;;  %vm19513_vm12 = vmmov %vm19444_vm0 }
 0x76c   : > { %10143 = vmatprep.mubr.bf16.mxu0 %v19179_v13 }
 0x76e   : > { %11255 = vmatmul.mubr.msk.bf16.gmra.mxu1 %vm19472_vm13, %v11481_v32  ;;  %vm19514_vm13 = vmmov %vm19444_vm0 }
 0x76f   : > { %10196 = vmatprep.mubr.bf16.mxu1 %v19179_v13 }
 0x773   : > { %11270 = vmatmul.mubr.msk.bf16.gmra.mxu0 %vm19473_vm10, %v11484_v36 }
 0x774   : > { %10153 = vmatprep.mubr.bf16.mxu0 %v19179_v13 }
 0x776   : > { %11272 = vmatmul.mubr.msk.bf16.vlgmr.msra.gmra.mxu1 %vm19474_vm5, %v11482_v19 }
 0x777   : > { %10206 = vmatprep.mubr.bf16.mxu1 %v19179_v13  ;;  %v9274_v29 = vpop.f32.mrf.mxu0 }
 0x779   : > { %v9276_v41 = vpop.f32.mrf.mxu0 }
 0x77b   : > { %11271 = vmatmul.mubr.msk.bf16.gmra.mxu0 %vm19475_vm7, %v11485_v7  ;;  %v9278_v9 = vpop.f32.mrf.mxu0 }
 0x77c   : > { %10517 = vmatprep.mubr.bf16.mxu0 %v19179_v13 }
 0x77d   : > { %v9280_v3 = vpop.f32.mrf.mxu0 }
 0x77e   : > { %11273 = vmatmul.mubr.msk.bf16.gmra.mxu1 %vm19444_vm0, %v11483_v25 }
 0x77f   : > { %10216 = vmatprep.mubr.bf16.mxu1 %v19179_v13  ;;  %v9284_v38 = vpop.f32.mrf.mxu0 }
 0x781   : > { %v9286_v28 = vpop.f32.mrf.mxu0 }
 0x783   : > { %v9288_v35 = vpop.f32.mrf.mxu0 }
 0x785   : > { %v9290_v12 = vpop.f32.mrf.mxu0 }
 0x786   : > { %11274 = vmatmul.mubr.msk.bf16.gmra.mxu1 %vm19476_vm3, %v11484_v36 }
 0x787   : > { %10226 = vmatprep.mubr.bf16.mxu1 %v19179_v13 }
 0x788   : > { %v9294_v39 = vpop.f32.mrf.mxu0 }
 0x78a   : > { %v9296_v24 = vpop.f32.mrf.mxu0 }
 0x78c   : > { %v9298_v42 = vpop.f32.mrf.mxu0 }
 0x78e   : > { %11275 = vmatmul.mubr.msk.bf16.gmra.mxu1 %vm19477_vm2, %v11485_v7  ;;  %v9300_v52 = vpop.f32.mrf.mxu0 }
 0x78f   : > { %10590 = vmatprep.mubr.bf16.mxu1 %v19179_v13 }
 0x793   : > { %v9304_v46 = vpop.f32.mrf.mxu0 }
 0x795   : > { %v9306_v57 = vpop.f32.mrf.mxu0 }
 0x797   : > { %v9308_v61 = vpop.f32.mrf.mxu0 }
 0x799   : > { %v9310_v59 = vpop.f32.mrf.mxu0 }
 0x79f   : > { %v9452_v10 = vpop.f32.mrf.mxu0 }
 0x7a0   : > { %v9453_v4 = vadd.f32 %v9452_v10, %v9274_v29 }
 0x7a1   : > { %v9454_v53 = vpop.f32.mrf.mxu0 }
 0x7a2   : > { %v17650_v30 = vadd.f32 %v9454_v53, %v9276_v41 }
 0x7a3   : > { %v9456_v60 = vpop.f32.mrf.mxu0 }
 0x7a4   : > { %v17652_v23 = vadd.f32 %v9456_v60, %v9278_v9 }
 0x7a5   : > { %v9458_v17 = vpop.f32.mrf.mxu0 }
 0x7a6   : > { %v17654_v43 = vadd.f32 %v9458_v17, %v9280_v3 }
 0x7a7   : > { %v9347_v34 = vpop.f32.mrf.mxu1 }
 0x7a9   : > { %v9349_v44 = vpop.f32.mrf.mxu1  ;;  %v9462_v8 = vpop.f32.mrf.mxu0 }
 0x7aa   : > { %v17656_v16 = vadd.f32 %v9462_v8, %v9284_v38 }
 0x7ab   : > { %v9351_v56 = vpop.f32.mrf.mxu1  ;;  %v9464_v40 = vpop.f32.mrf.mxu0 }
 0x7ac   : > { %v17658_v21 = vadd.f32 %v9464_v40, %v9286_v28 }
 0x7ad   : > { %v9353_v5 = vpop.f32.mrf.mxu1  ;;  %v9466_v26 = vpop.f32.mrf.mxu0 }
 0x7ae   : > { %v17660_v47 = vadd.f32 %v9466_v26, %v9288_v35 }
 0x7af   : > { %v9357_v14 = vpop.f32.mrf.mxu1  ;;  %v9468_v49 = vpop.f32.mrf.mxu0 }
 0x7b0   : > { %v17662_v37 = vadd.f32 %v9468_v49, %v9290_v12 }
 0x7b1   : > { %v9359_v31 = vpop.f32.mrf.mxu1 }
 0x7b3   : > { %v9361_v15 = vpop.f32.mrf.mxu1 }
 0x7b5   : > { %v9363_v32 = vpop.f32.mrf.mxu1 }
 0x7b7   : > { %v9472_v63 = vpop.f32.mrf.mxu0 }
 0x7b8   : > { %v17664_v51 = vadd.f32 %v9472_v63, %v9294_v39 }
 0x7b9   : > { %v9474_v18 = vpop.f32.mrf.mxu0  ;;  %v9367_v20 = vpop.f32.mrf.mxu1 }
 0x7ba   : > { %v17666_v50 = vadd.f32 %v9474_v18, %v9296_v24 }
 0x7bb   : > { %v9476_v11 = vpop.f32.mrf.mxu0  ;;  %v9369_v55 = vpop.f32.mrf.mxu1 }
 0x7bc   : > { %v17668_v45 = vadd.f32 %v9476_v11, %v9298_v42 }
 0x7bd   : > { %v9478_v0 = vpop.f32.mrf.mxu0  ;;  %v9371_v48 = vpop.f32.mrf.mxu1 }
 0x7be   : > { %v17670_v62 = vadd.f32 %v9478_v0, %v9300_v52 }
 0x7bf   : > { %v9373_v1 = vpop.f32.mrf.mxu1 }
 0x7c0   : > { %v9482_v2 = vpop.f32.mrf.mxu0 }
 0x7c1   : > { %v17672_v22 = vadd.f32 %v9482_v2, %v9304_v46 }
 0x7c2   : > { %v9484_v58 = vpop.f32.mrf.mxu0 }
 0x7c3   : > { %v17674_v33 = vadd.f32 %v9484_v58, %v9306_v57 }
 0x7c4   : > { %v9486_v27 = vpop.f32.mrf.mxu0 }
 0x7c5   : > { %v17676_v54 = vadd.f32 %v9486_v27, %v9308_v61 }
 0x7c6   : > { %v9488_v6 = vpop.f32.mrf.mxu0 }
 0x7c7   : > { %v17678_v25 = vadd.f32 %v9488_v6, %v9310_v59 }
 0x7ca   : > { %v9377_v19 = vpop.f32.mrf.mxu1 }
 0x7cc   : > { %v9379_v36 = vpop.f32.mrf.mxu1 }
 0x7ce   : > { %v9381_v7 = vpop.f32.mrf.mxu1 }
 0x7d0   : > { %v9383_v29 = vpop.f32.mrf.mxu1 }
 0x7d6   : > { %v9525_v41 = vpop.f32.mrf.mxu1 }
 0x7d7   : > { %v9526_v9 = vadd.f32 %v9525_v41, %v9347_v34 }
 0x7d8   : > { %v9527_v3 = vpop.f32.mrf.mxu1 }
 0x7d9   : > { %v9528_v38 = vadd.f32 %v9527_v3, %v9349_v44 }
 0x7da   : > { %v9529_v28 = vpop.f32.mrf.mxu1 }
 0x7db   : > { %v9530_v35 = vadd.f32 %v9529_v28, %v9351_v56 }
 0x7dc   : > { %v9531_v12 = vpop.f32.mrf.mxu1 }
 0x7dd   : > { %v9532_v39 = vadd.f32 %v9531_v12, %v9353_v5 }
 0x7de   : > { %v9535_v24 = vpop.f32.mrf.mxu1 }
 0x7df   : > { %v9536_v42 = vadd.f32 %v9535_v24, %v9357_v14 }
 0x7e0   : > { %v9537_v52 = vpop.f32.mrf.mxu1 }
 0x7e1   : > { %v9538_v46 = vadd.f32 %v9537_v52, %v9359_v31 }
 0x7e2   : > { %v9539_v57 = vpop.f32.mrf.mxu1 }
 0x7e3   : > { %v9655_v61 = vpop.f32.mrf.mxu0  ;;  %v9540_v10 = vadd.f32 %v9539_v57, %v9361_v15 }
 0x7e4   : > { %v17680_v59 = vadd.f32 %v9655_v61, %v9453_v4  ;;  %v9541_v53 = vpop.f32.mrf.mxu1 }
 0x7e5   : > { %v9657_v60 = vpop.f32.mrf.mxu0  ;;  %v9542_v17 = vadd.f32 %v9541_v53, %v9363_v32 }
 0x7e6   : > { %v17683_v34 = vadd.f32 %v9657_v60, %v17650_v30  ;;  %v9545_v44 = vpop.f32.mrf.mxu1 }
 0x7e7   : > { %v9659_v8 = vpop.f32.mrf.mxu0  ;;  %v9546_v56 = vadd.f32 %v9545_v44, %v9367_v20 }
 0x7e8   : > { %v17686_v40 = vadd.f32 %v9659_v8, %v17652_v23  ;;  %v9547_v5 = vpop.f32.mrf.mxu1 }
 0x7e9   : > { %v9661_v26 = vpop.f32.mrf.mxu0  ;;  %v9548_v14 = vadd.f32 %v9547_v5, %v9369_v55 }
 0x7ea   : > { %v17689_v49 = vadd.f32 %v9661_v26, %v17654_v43  ;;  %v9549_v4 = vpop.f32.mrf.mxu1 }
 0x7eb   : > { %v9665_v31 = vpop.f32.mrf.mxu0  ;;  %v9550_v63 = vadd.f32 %v9549_v4, %v9371_v48 }
 0x7ec   : > { %v17692_v15 = vadd.f32 %v9665_v31, %v17656_v16  ;;  %v9551_v30 = vpop.f32.mrf.mxu1 }
 0x7ed   : > { %v9667_v18 = vpop.f32.mrf.mxu0  ;;  %v9552_v32 = vadd.f32 %v9551_v30, %v9373_v1 }
 0x7ee   : > { %v17695_v11 = vadd.f32 %v9667_v18, %v17658_v21  ;;  %v9555_v23 = vpop.f32.mrf.mxu1 }
 0x7ef   : > { %v9669_v20 = vpop.f32.mrf.mxu0  ;;  %v9556_v0 = vadd.f32 %v9555_v23, %v9377_v19 }
 0x7f0   : > { %v17698_v55 = vadd.f32 %v9669_v20, %v17660_v47  ;;  %v9557_v43 = vpop.f32.mrf.mxu1 }
 0x7f1   : > { %v9671_v2 = vpop.f32.mrf.mxu0  ;;  %v9558_v58 = vadd.f32 %v9557_v43, %v9379_v36 }
 0x7f2   : > { %v17701_v48 = vadd.f32 %v9671_v2, %v17662_v37  ;;  %v9559_v16 = vpop.f32.mrf.mxu1 }
 0x7f3   : > { %v17703_v27 = vadd.f32 %v9559_v16, %v9381_v7  ;;  %v9675_v6 = vpop.f32.mrf.mxu0 }
 0x7f4   : > { %v9561_v1 = vpop.f32.mrf.mxu1  ;;  %v17706_v21 = vadd.f32 %v9675_v6, %v17664_v51 }
 0x7f5   : > { %19478 = vst [vmem:[#allocation25_spill] sm:$0xff] %v17703_v27  ;;  %v17708_v41 = vadd.f32 %v9561_v1, %v9383_v29  ;;  %v9677_v19 = vpop.f32.mrf.mxu0 }
 0x7f6   : > { %v9728_v3 = vpop.f32.mrf.mxu1  ;;  %v17711_v47 = vadd.f32 %v9677_v19, %v17666_v50 }
 0x7f7   : > { %19479 = vst [vmem:[#allocation24_spill] sm:$0xff] %v17708_v41  ;;  %v9769_v28 = vadd.f32 %v9728_v3, %v9526_v9  ;;  %v9679_v36 = vpop.f32.mrf.mxu0 }
 0x7f8   : > { %v9730_v12 = vpop.f32.mrf.mxu1  ;;  %v17714_v37 = vadd.f32 %v9679_v36, %v17668_v45 }
 0x7f9   : > { %v9770_v7 = vadd.f32 %v9730_v12, %v9528_v38  ;;  %v9681_v24 = vpop.f32.mrf.mxu0 }
 0x7fa   : > { %v9732_v52 = vpop.f32.mrf.mxu1  ;;  %v17717_v57 = vadd.f32 %v9681_v24, %v17670_v62 }
 0x7fb   : > { %v9773_v51 = vadd.f32 %v9732_v52, %v9530_v35  ;;  %v9685_v29 = vpop.f32.mrf.mxu0 }
 0x7fc   : > { %v9734_v61 = vpop.f32.mrf.mxu1  ;;  %v17720_v53 = vadd.f32 %v9685_v29, %v17672_v22  ;;  %v17763_v29 = vpop.permute.xlu1 %10314 }
 0x7fd   : > { %v9774_v50 = vadd.f32 %v9734_v61, %v9532_v39  ;;  %v9687_v60 = vpop.f32.mrf.mxu0 }
 0x7fe   : > { %v9738_v9 = vpop.f32.mrf.mxu1  ;;  %v17723_v44 = vadd.f32 %v9687_v60, %v17674_v33 }
 0x7ff   : > { %v17725_v45 = vadd.f32 %v9738_v9, %v9536_v42  ;;  %v17727_v38 = vpop.f32.mrf.mxu0 }
 0x800   : > { %v9740_v8 = vpop.f32.mrf.mxu1 }
 0x801   : > { %v17729_v5 = vadd.f32 %v9740_v8, %v9538_v46  ;;  %v17731_v62 = vpop.f32.mrf.mxu0 }
 0x802   : > { %v9742_v35 = vpop.f32.mrf.mxu1 }
 0x803   : > { %v17733_v26 = vadd.f32 %v9742_v35, %v9540_v10  ;;  %v9890_v22 = vpop.f32.mrf.mxu0 }
 0x804   : > { %v9744_v4 = vpop.f32.mrf.mxu1  ;;  %v10002_v39 = vadd.f32 %v9890_v22, %v17680_v59 }
 0x805   : > { %v17736_v31 = vadd.f32 %v9744_v4, %v9542_v17  ;;  %v9892_v33 = vpop.f32.mrf.mxu0 }
 0x806   : > { %v9748_v30 = vpop.f32.mrf.mxu1  ;;  %v10003_v42 = vadd.f32 %v9892_v33, %v17683_v34 }
 0x807   : > { %v17739_v18 = vadd.f32 %v9748_v30, %v9546_v56  ;;  %v9894_v23 = vpop.f32.mrf.mxu0  ;;  %v17779_v30 = vpop.permute.xlu1 %10304 }
 0x808   : > { %v9750_v46 = vpop.f32.mrf.mxu1  ;;  %v10006_v20 = vadd.f32 %v9894_v23, %v17686_v40 }
 0x809   : > { %19480 = vst [vmem:[#allocation42_spill] sm:$0xff] %v17739_v18  ;;  %v17742_v43 = vadd.f32 %v9750_v46, %v9548_v14  ;;  %v9896_v10 = vpop.f32.mrf.mxu0 }
 0x80a   : > { %v9752_v2 = vpop.f32.mrf.mxu1  ;;  %v10007_v16 = vadd.f32 %v9896_v10, %v17689_v49 }
 0x80b   : > { %19481 = vst [vmem:[#allocation30_spill] sm:$0xff] %v17742_v43  ;;  %v17745_v6 = vadd.f32 %v9752_v2, %v9550_v63  ;;  %v9900_v59 = vpop.f32.mrf.mxu0  ;;  %v17759_v63 = vpop.permute.xlu0 %10309 }
 0x80c   : > { %v9754_v17 = vpop.f32.mrf.mxu1 }
 0x80d   : > { %19482 = vst [vmem:[#allocation37_spill] sm:$0xff] %v17745_v6  ;;  %v17747_v1 = vadd.f32 %v9754_v17, %v9552_v32  ;;  %v9902_v19 = vpop.f32.mrf.mxu0 }
 0x80e   : > { %v9758_v34 = vpop.f32.mrf.mxu1 }
 0x80f   : > { %19483 = vst [vmem:[#allocation15_spill] sm:$0xff] %v17747_v1  ;;  %v17749_v56 = vadd.f32 %v9758_v34, %v9556_v0  ;;  %v9904_v3 = vpop.f32.mrf.mxu0  ;;  %v17773_v35 = vpop.permute.xlu0 %10299  ;;  %v10010_v1 = vadd.f32 %v9900_v59, %v17692_v15 }
 0x810   : > { %v9760_v36 = vpop.f32.mrf.mxu1  ;;  %v17797_v34 = vpop.permute.xlu1 %10294  ;;  %v10014_v18 = vadd.f32 %v9904_v3, %v17698_v55 }
 0x811   : > { %19484 = vst [vmem:[#allocation31_spill] sm:$0xff] %v17749_v56  ;;  %v17751_v12 = vadd.f32 %v9760_v36, %v9558_v58  ;;  %v9906_v40 = vpop.f32.mrf.mxu0 }
 0x812   : > { %v17753_v14 = vpop.f32.mrf.mxu1 }
 0x813   : > { %19485 = vst [vmem:[#allocation29_spill] sm:$0xff] %v17751_v12  ;;  %19486 = vst [vmem:[#allocation49_spill] sm:$0xff] %v17753_v14  ;;  %v17755_v24 = vpop.f32.mrf.mxu0  ;;  %v17791_v2 = vpop.permute.xlu0 %10289 }
 0x814   : > { %v17757_v49 = vpop.f32.mrf.mxu1  ;;  %v17808_v27 = vpop.permute.xlu1 %10284  ;;  %v10018_v55 = vadd.f32 %v17755_v24, %v17706_v21 }
 0x815   : > { %19487 = vst [vmem:[#allocation46_spill] sm:$0xff] %v17757_v49  ;;  %v17761_v52 = vpop.f32.mrf.mxu0 }
 0x816   : > { %v9963_v32 = vpop.f32.mrf.mxu1 }
 0x817   : > { %v17765_v0 = vadd.f32 %v9963_v32, %v9769_v28  ;;  %v17767_v61 = vpop.f32.mrf.mxu0  ;;  %v17803_v13 = vpop.permute.xlu0 %10279 }
 0x818   : > { %v9965_v58 = vpop.f32.mrf.mxu1  ;;  %v10022_v21 = vadd.f32 %v17767_v61, %v17714_v37 }
 0x819   : > { %v17769_v60 = vadd.f32 %v9965_v58, %v9770_v7  ;;  %v17771_v9 = vpop.f32.mrf.mxu0 }
 0x81a   : > { %v9967_v8 = vpop.f32.mrf.mxu1 }
 0x81b   : > { %v17775_v22 = vadd.f32 %v9967_v8, %v9773_v51  ;;  %v17777_v4 = vpop.f32.mrf.mxu0 }
 0x81c   : > { %v9969_v33 = vpop.f32.mrf.mxu1 }
 0x81d   : > { %v17781_v23 = vadd.f32 %v9969_v33, %v9774_v50  ;;  %v17783_v28 = vpop.f32.mrf.mxu0 }
 0x81e   : > { %v17785_v46 = vpop.f32.mrf.mxu1 }
 0x81f   : > { %v17787_v7 = vpop.f32.mrf.mxu0 }
 0x820   : > { %v17789_v10 = vpop.f32.mrf.mxu1 }
 0x821   : > { %v17793_v17 = vpop.f32.mrf.mxu0 }
 0x822   : > { %v17795_v51 = vpop.f32.mrf.mxu1 }
 0x823   : > { %v10125_v36 = vpop.f32.mrf.mxu0 }
 0x824   : > { %v17799_v32 = vpop.f32.mrf.mxu1  ;;  %v10237_v50 = vadd.f32 %v10125_v36, %v10002_v39 }
 0x825   : > { %v10127_v58 = vpop.f32.mrf.mxu0 }
 0x826   : > { %v17801_v8 = vpop.f32.mrf.mxu1  ;;  %v10238_v33 = vadd.f32 %v10127_v58, %v10003_v42  ;;  %v10317_v12 = vadd.f32 %v17803_v13, %v10237_v50  ;;  %v10011_v58 = vadd.f32 %v9902_v19, %v17695_v11  ;;  %v10015_v11 = vadd.f32 %v9906_v40, %v17701_v48 }
 0x827   : > { %19488 = vst [vmem:[#allocation28_spill] sm:$0xff] %v17801_v8  ;;  %v10129_v49 = vpop.f32.mrf.mxu0  ;;  %v10019_v48 = vadd.f32 %v17761_v52, %v17711_v47  ;;  %v9795_v47 = vadd.f32 %v17727_v38, %v17676_v54  ;;  %v10027_v54 = vadd.f32 %v17783_v28, %v17723_v44 }
 0x828   : > { %v17805_v41 = vpop.f32.mrf.mxu1  ;;  %v10241_v14 = vadd.f32 %v10129_v49, %v10006_v20  ;;  %v10318_v39 = vadd.f32 %v17803_v13, %v10238_v33 }
 0x829   : > { %19489 = vst [vmem:[#allocation38_spill] sm:$0xff] %v17805_v41  ;;  %v10131_v56 = vpop.f32.mrf.mxu0  ;;  %v10349_v41 = vmax.f32 %v10317_v12, 0.0 }
 0x82a   : > { %v17811_v6 = vpop.f32.mrf.mxu1  ;;  %v10321_v36 = vadd.f32 %v17808_v27, %v10241_v14  ;;  %v10242_v42 = vadd.f32 %v10131_v56, %v10007_v16 }
 0x82b   : > { %19490 = vst [vmem:[#allocation41_spill] sm:$0xff] %v17811_v6  ;;  %v10135_v43 = vpop.f32.mrf.mxu0  ;;  %v10350_v6 = vmax.f32 %v10318_v39, 0.0 }
 0x82c   : > { %v17816_v8 = vpop.f32.mrf.mxu1  ;;  %v10353_v50 = vmax.f32 %v10321_v36, 0.0  ;;  %v10322_v20 = vadd.f32 %v17808_v27, %v10242_v42  ;;  %v10245_v49 = vadd.f32 %v10135_v43, %v10010_v1 }
 0x82d   : > { %v10137_v15 = vpop.f32.mrf.mxu0 }
 0x82e   : > { %v17820_v59 = vpop.f32.mrf.mxu1  ;;  %v17822_v33 = vpack.c.bf16 %v10353_v50, %v10349_v41  ;;  %v10354_v14 = vmax.f32 %v10322_v20, 0.0  ;;  %v10246_v16 = vadd.f32 %v10137_v15, %v10011_v58  ;;  %v10325_v12 = vadd.f32 %v17791_v2, %v10245_v49 }
 0x82f   : > { %v10139_v56 = vpop.f32.mrf.mxu0 }
 0x830   : > { %v17825_v19 = vpop.f32.mrf.mxu1  ;;  %v10249_v36 = vadd.f32 %v10139_v56, %v10014_v18  ;;  %v17828_v42 = vpack.c.bf16 %v10354_v14, %v10350_v6  ;;  %v10326_v41 = vadd.f32 %v17791_v2, %v10246_v16  ;;  %v10357_v18 = vmax.f32 %v10325_v12, 0.0 }
 0x831   : > { %v10141_v43 = vpop.f32.mrf.mxu0  ;;  %v10023_v12 = vadd.f32 %v17771_v9, %v17717_v57  ;;  %v10012_v57 = vadd.f32 %v17785_v46, %v17725_v45 }
 0x832   : > { %v17832_v1 = vpop.f32.mrf.mxu1  ;;  %v10329_v3 = vadd.f32 %v17797_v34, %v10249_v36  ;;  %v10250_v39 = vadd.f32 %v10141_v43, %v10015_v11  ;;  %v10358_v15 = vmax.f32 %v10326_v41, 0.0  ;;  %v10026_v41 = vadd.f32 %v17777_v4, %v17720_v53 }
 0x833   : > { %v10145_v40 = vpop.f32.mrf.mxu0  ;;  %v10030_v53 = vadd.f32 %v17787_v7, %v9795_v47 }
 0x834   : > { %v17838_v58 = vpop.f32.mrf.mxu1  ;;  %v10361_v6 = vmax.f32 %v10329_v3, 0.0  ;;  %v10330_v50 = vadd.f32 %v17797_v34, %v10250_v39  ;;  %v10253_v20 = vadd.f32 %v10145_v40, %v10018_v55  ;;  %v9796_v55 = vadd.f32 %v17731_v62, %v17678_v25 }
 0x835   : > { %v10147_v24 = vpop.f32.mrf.mxu0  ;;  %v10013_v25 = vadd.f32 %v17789_v10, %v17729_v5 }
 0x836   : > { %v10198_v49 = vpop.f32.mrf.mxu1  ;;  %v17843_v14 = vpack.c.bf16 %v10361_v6, %v10357_v18  ;;  %v10362_v16 = vmax.f32 %v10330_v50, 0.0  ;;  %v10254_v56 = vadd.f32 %v10147_v24, %v10019_v48  ;;  %v10333_v43 = vadd.f32 %v17773_v35, %v10253_v20 }
 0x837   : > { %v10239_v52 = vadd.f32 %v10198_v49, %v17765_v0  ;;  %v10149_v11 = vpop.f32.mrf.mxu0  ;;  %v10031_v18 = vadd.f32 %v17793_v17, %v9796_v55 }
 0x838   : > { %v10200_v36 = vpop.f32.mrf.mxu1  ;;  %v10257_v37 = vadd.f32 %v10149_v11, %v10022_v21  ;;  %v17851_v61 = vpack.c.bf16 %v10362_v16, %v10358_v15  ;;  %v10334_v3 = vadd.f32 %v17773_v35, %v10254_v56  ;;  %v10365_v28 = vmax.f32 %v10333_v43, 0.0 }
 0x839   : > { %v10240_v38 = vadd.f32 %v10200_v36, %v17769_v60  ;;  %v10151_v0 = vpop.f32.mrf.mxu0  ;;  %v10319_v62 = vadd.f32 %v17803_v13, %v10239_v52 }
 0x83a   : > { %v10202_v9 = vpop.f32.mrf.mxu1  ;;  %v10337_v39 = vadd.f32 %v17779_v30, %v10257_v37  ;;  %v10258_v48 = vadd.f32 %v10151_v0, %v10023_v12  ;;  %v10366_v20 = vmax.f32 %v10334_v3, 0.0 }
 0x83b   : > { %v10243_v44 = vadd.f32 %v10202_v9, %v17775_v22  ;;  %v10155_v60 = vpop.f32.mrf.mxu0  ;;  %v10320_v6 = vadd.f32 %v17803_v13, %v10240_v38  ;;  %v10351_v49 = vmax.f32 %v10319_v62, 0.0  ;;  %v10016_v13 = vadd.f32 %v17795_v51, %v17733_v26 }
 0x83c   : > { %v10204_v4 = vpop.f32.mrf.mxu1  ;;  %v10369_v40 = vmax.f32 %v10337_v39, 0.0  ;;  %v10338_v45 = vadd.f32 %v17779_v30, %v10258_v48  ;;  %v10261_v46 = vadd.f32 %v10155_v60, %v10026_v41  ;;  %v10017_v26 = vadd.f32 %v17799_v32, %v17736_v31  ;;  %v19494_v31 = vld [vmem:[#allocation38_spill] sm:$0xff] }
 0x83d   : > { %v10323_v50 = vadd.f32 %v17808_v27, %v10243_v44  ;;  %v10244_v5 = vadd.f32 %v10204_v4, %v17781_v23  ;;  %v10157_v7 = vpop.f32.mrf.mxu0  ;;  %v10352_v12 = vmax.f32 %v10320_v6, 0.0 }
 0x83e   : > { %v10208_v10 = vpop.f32.mrf.mxu1  ;;  %v17874_v21 = vpack.c.bf16 %v10369_v40, %v10365_v28  ;;  %v10370_v22 = vmax.f32 %v10338_v45, 0.0  ;;  %v10262_v24 = vadd.f32 %v10157_v7, %v10027_v54  ;;  %v10341_v52 = vadd.f32 %v17759_v63, %v10261_v46  ;;  %v19493_v28 = vld [vmem:[#allocation30_spill] sm:$0xff] }
 0x83f   : > { %v10355_v15 = vmax.f32 %v10323_v50, 0.0  ;;  %v10324_v16 = vadd.f32 %v17808_v27, %v10244_v5  ;;  %v10247_v56 = vadd.f32 %v10208_v10, %v10012_v57  ;;  %v10159_v47 = vpop.f32.mrf.mxu0  ;;  %v10021_v32 = vadd.f32 %v19494_v31, %v19493_v28  ;;  %v19495_v10 = vld [vmem:[#allocation37_spill] sm:$0xff] }
 0x840   : > { %v10210_v17 = vpop.f32.mrf.mxu1  ;;  %v10265_v23 = vadd.f32 %v10159_v47, %v10030_v53  ;;  %v10398_v11 = vpack.c.bf16 %v10370_v22, %v10366_v20  ;;  %v10342_v54 = vadd.f32 %v17759_v63, %v10262_v24  ;;  %v10373_v3 = vmax.f32 %v10341_v52, 0.0  ;;  %v19492_v53 = vld [vmem:[#allocation28_spill] sm:$0xff]  ;;  %v19496_v20 = vld [vmem:[#allocation41_spill] sm:$0xff] }
 0x841   : > { %v17880_v36 = vpack.c.bf16 %v10355_v15, %v10351_v49  ;;  %v10356_v43 = vmax.f32 %v10324_v16, 0.0  ;;  %v10248_v37 = vadd.f32 %v10210_v17, %v10013_v25  ;;  %v10161_v55 = vpop.f32.mrf.mxu0  ;;  %v10327_v51 = vadd.f32 %v17791_v2, %v10247_v56  ;;  %v19491_v25 = vld [vmem:[#allocation42_spill] sm:$0xff] }
 0x842   : > { %v10212_v41 = vpop.f32.mrf.mxu1  ;;  %v10345_v27 = vadd.f32 %v17763_v29, %v10265_v23  ;;  %v10266_v38 = vadd.f32 %v10161_v55, %v10031_v18  ;;  %v10020_v62 = vadd.f32 %v19492_v53, %v19491_v25  ;;  %v10374_v45 = vmax.f32 %v10342_v54, 0.0 }
 0x843   : > { %v10251_v0 = vadd.f32 %v10212_v41, %v10016_v13  ;;  %v17887_v57 = vpack.c.bf16 %v10356_v43, %v10352_v12  ;;  %v10328_v44 = vadd.f32 %v17791_v2, %v10248_v37  ;;  %v10359_v6 = vmax.f32 %v10327_v51, 0.0  ;;  %v19497_v13 = vld [vmem:[#allocation15_spill] sm:$0xff]  ;;  %v19501_v51 = vld [vmem:[#allocation29_spill] sm:$0xff] }
 0x844   : > { %v10214_v9 = vpop.f32.mrf.mxu1  ;;  %v10377_v39 = vmax.f32 %v10345_v27, 0.0  ;;  %v10346_v48 = vadd.f32 %v17763_v29, %v10266_v38  ;;  %v10024_v22 = vadd.f32 %v19496_v20, %v19495_v10  ;;  %v10025_v17 = vadd.f32 %v17816_v8, %v19497_v13  ;;  %v19498_v43 = vld [vmem:[#allocation31_spill] sm:$0xff]  ;;  %v19499_v27 = vld [vmem:[#allocation25_spill] sm:$0xff] }
 0x845   : > { %v10331_v60 = vadd.f32 %v17797_v34, %v10251_v0  ;;  %v10252_v4 = vadd.f32 %v10214_v9, %v10017_v26  ;;  %v10360_v49 = vmax.f32 %v10328_v44, 0.0  ;;  %v10028_v37 = vadd.f32 %v17820_v59, %v19498_v43  ;;  %v19500_v38 = vld [vmem:[#allocation49_spill] sm:$0xff]  ;;  %v19502_v59 = vld [vmem:[#allocation24_spill] sm:$0xff] }
 0x846   : > { %v10218_v40 = vpop.f32.mrf.mxu1  ;;  %v10401_v46 = vpack.c.bf16 %v10377_v39, %v10373_v3  ;;  %v10378_v18 = vmax.f32 %v10346_v48, 0.0  ;;  %v9797_v26 = vadd.f32 %v19500_v38, %v19499_v27  ;;  %v10029_v8 = vadd.f32 %v17825_v19, %v19501_v51  ;;  %v19503_v48 = vld [vmem:[#allocation46_spill] sm:$0xff] }
 0x847   : > { %v10363_v50 = vmax.f32 %v10331_v60, 0.0  ;;  %v10332_v5 = vadd.f32 %v17797_v34, %v10252_v4  ;;  %v10255_v7 = vadd.f32 %v10218_v40, %v10020_v62 }
 0x848   : > { %v10220_v24 = vpop.f32.mrf.mxu1  ;;  %v10402_v2 = vpack.c.bf16 %v10378_v18, %v10374_v45  ;;  %v10032_v25 = vadd.f32 %v17832_v1, %v9797_v26  ;;  %v11486_v45 = vld [vmem:[%s18050_s9] sm:$0xff]  }
 0x849   : > { %v10395_v15 = vpack.c.bf16 %v10363_v50, %v10359_v6  ;;  %v10364_v16 = vmax.f32 %v10332_v5, 0.0  ;;  %v10256_v56 = vadd.f32 %v10220_v24, %v10021_v32  ;;  %v10335_v52 = vadd.f32 %v17773_v35, %v10255_v7  ;;  %v11487_v5 = vld [vmem:[%s18050_s9 + $0x8] sm:$0xff]  }
 0x84a   : > { %v10222_v47 = vpop.f32.mrf.mxu1  ;;  %10493 = vmatprep.subr.bf16.mxu0 %v10402_v2 }
 0x84b   : > { %v10259_v23 = vadd.f32 %v10222_v47, %v10024_v22  ;;  %10494 = vmatpush1.bf16.msra.mxu0 %v10401_v46  ;;  %v10396_v34 = vpack.c.bf16 %v10364_v16, %v10360_v49  ;;  %v10336_v55 = vadd.f32 %v17773_v35, %v10256_v56  ;;  %v10367_v9 = vmax.f32 %v10335_v52, 0.0  ;;  %v17962_v47 = vpop.permute.xlu0 %10445 }
 0x84c   : > { %v10224_v12 = vpop.f32.mrf.mxu1  ;;  %10495 = vmatprep.subr.bf16.mxu0 %v10398_v11  ;;  %v9798_v35 = vadd.f32 %v19503_v48, %v19502_v59 }
 0x84d   : > { %v10339_v41 = vadd.f32 %v17779_v30, %v10259_v23  ;;  %v10260_v54 = vadd.f32 %v10224_v12, %v10025_v17  ;;  %v10368_v62 = vmax.f32 %v10336_v55, 0.0 }
 0x84e   : > { %v10228_v0 = vpop.f32.mrf.mxu1  ;;  %v10033_v28 = vadd.f32 %v17838_v58, %v9798_v35 }
 0x84f   : > { %v10371_v3 = vmax.f32 %v10339_v41, 0.0  ;;  %v10340_v39 = vadd.f32 %v17779_v30, %v10260_v54  ;;  %v10263_v11 = vadd.f32 %v10228_v0, %v10028_v37  ;;  %10496 = vmatpush1.bf16.msra.mxu0 %v17874_v21  ;;  %v17972_v37 = vpop.permute.xlu0 %10435 }
 0x850   : > { %v10230_v53 = vpop.f32.mrf.mxu1  ;;  %10497 = vmatprep.subr.bf16.mxu0 %v17851_v61 }
 0x851   : > { %v10399_v44 = vpack.c.bf16 %v10371_v3, %v10367_v9  ;;  %v10372_v60 = vmax.f32 %v10340_v39, 0.0  ;;  %v10264_v19 = vadd.f32 %v10230_v53, %v10029_v8  ;;  %v10343_v30 = vadd.f32 %v17759_v63, %v10263_v11 }
 0x852   : > { %v10232_v4 = vpop.f32.mrf.mxu1 }
 0x853   : > { %v10267_v31 = vadd.f32 %v10232_v4, %v10032_v25  ;;  %v10400_v32 = vpack.c.bf16 %v10372_v60, %v10368_v62  ;;  %10498 = vmatpush1.bf16.msra.mxu0 %v17843_v14  ;;  %v10344_v1 = vadd.f32 %v17759_v63, %v10264_v19  ;;  %v10375_v46 = vmax.f32 %v10343_v30, 0.0  ;;  %v17988_v59 = vpop.permute.xlu0 %10425 }
 0x854   : > { %v10234_v21 = vpop.f32.mrf.mxu1  ;;  %10499 = vmatprep.subr.bf16.mxu0 %v17828_v42  ;;  %v19505_v63 = vmov 0  }
 0x855   : > { %v10347_v61 = vadd.f32 %v17763_v29, %v10267_v31  ;;  %v10268_v40 = vadd.f32 %v10234_v21, %v10033_v28  ;;  %v10376_v6 = vmax.f32 %v10344_v1, 0.0 }
 0x857   : > { %v10379_v58 = vmax.f32 %v10347_v61, 0.0  ;;  %v10348_v18 = vadd.f32 %v17763_v29, %v10268_v40  ;;  %10500 = vmatpush1.bf16.msra.mxu0 %v17822_v33  ;;  %v11488_v29 = vld [vmem:[%s18050_s9 + $0x10] sm:$0xff]   ;;  %v11489_v33 = vld [vmem:[%s18050_s9 + $0x18] sm:$0xff]  }
 0x859   : > { %v10403_v14 = vpack.c.bf16 %v10379_v58, %v10375_v46  ;;  %v10380_v50 = vmax.f32 %v10348_v18, 0.0 }
 0x85a   : > { %11280 = vmatmul.mubr.msk.bf16.vlgmr.msra.gmra.mxu0 %vm19504_vm15, %v11486_v45 }
 0x85b   : > { %v10404_v42 = vpack.c.bf16 %v10380_v50, %v10376_v6  ;;  %10527 = vmatprep.mubr.bf16.mxu0 %v19505_v63  ;;  %v17998_v6 = vpop.permute.xlu0 %10415 }
 0x85d   : > { %10566 = vmatprep.subr.bf16.mxu1 %v10404_v42 }
 0x85e   : > { %10567 = vmatpush1.bf16.msra.mxu1 %v10403_v14 }
 0x85f   : > { %10568 = vmatprep.subr.bf16.mxu1 %v10400_v32 }
 0x862   : > { %10569 = vmatpush1.bf16.msra.mxu1 %v10399_v44  ;;  %11281 = vmatmul.mubr.msk.bf16.gmra.mxu0 %vm19506_vm11, %v11487_v5 }
 0x863   : > { %10570 = vmatprep.subr.bf16.mxu1 %v10396_v34  ;;  %10537 = vmatprep.mubr.bf16.mxu0 %v19505_v63 }
 0x866   : > { %10571 = vmatpush1.bf16.msra.mxu1 %v10395_v15  ;;  %v17958_v15 = vpop.permute.xlu1 %10450 }
 0x867   : > { %10572 = vmatprep.subr.bf16.mxu1 %v17887_v57 }
 0x86a   : > { %10573 = vmatpush1.bf16.msra.mxu1 %v17880_v36  ;;  %11282 = vmatmul.mubr.msk.bf16.gmra.mxu0 %vm19507_vm4, %v11488_v29  ;;  %v17968_v34 = vpop.permute.xlu1 %10440 }
 0x86b   : > { %10547 = vmatprep.mubr.bf16.mxu0 %v19505_v63 }
 0x86d   : > { %11284 = vmatmul.mubr.msk.bf16.vlgmr.msra.gmra.mxu1 %vm19508_vm14, %v11486_v45 }
 0x86e   : > { %10600 = vmatprep.mubr.bf16.mxu1 %v19505_v63  ;;  %v17981_v8 = vpop.permute.xlu1 %10430 }
 0x872   : > { %11283 = vmatmul.mubr.msk.bf16.gmra.mxu0 %vm19509_vm6, %v11489_v33  ;;  %v17994_v21 = vpop.permute.xlu1 %10420 }
 0x873   : > { %10721 = vmatprep.mubr.bf16.mxu0 %v19505_v63 }
 0x875   : > { %11285 = vmatmul.mubr.msk.bf16.gmra.mxu1 %vm19510_vm1, %v11487_v5 }
 0x876   : > { %10610 = vmatprep.mubr.bf16.mxu1 %v19505_v63 }
 0x87d   : > { %11286 = vmatmul.mubr.msk.bf16.gmra.mxu1 %vm19511_vm9, %v11488_v29 }
 0x87e   : > { %10620 = vmatprep.mubr.bf16.mxu1 %v19505_v63 }
 0x885   : > { %11287 = vmatmul.mubr.msk.bf16.gmra.mxu1 %vm19512_vm8, %v11489_v33 }
 0x886   : > { %10762 = vmatprep.mubr.bf16.mxu1 %v19505_v63 }
 0x91a   : > { %v17954_v36 = vpop.f32.mrf.mxu0 }
 0x91c   : > { %v10521_v57 = vpop.f32.mrf.mxu0 }
 0x91d   : > { %v10522_v42 = vadd.f32 %v10521_v57, %v17998_v6 }
 0x91e   : > { %v17956_v7 = vpop.f32.mrf.mxu0 }
 0x91f   : > { %v10524_v29 = vadd.f32 %v17956_v7, %v17994_v21 }
 0x920   : > { %v10525_v10 = vpop.f32.mrf.mxu0 }
 0x921   : > { %v10526_v45 = vadd.f32 %v10525_v10, %v17994_v21  ;;  %v10635_v57 = vmax.f32 %v10524_v29, 0.0 }
 0x922   : > { %v10529_v20 = vpop.f32.mrf.mxu0 }
 0x923   : > { %v10530_v14 = vadd.f32 %v10529_v20, %v17988_v59  ;;  %v10632_v20 = vmax.f32 %v10522_v42, 0.0 }
 0x924   : > { %v10531_v22 = vpop.f32.mrf.mxu0 }
 0x925   : > { %v10532_v28 = vadd.f32 %v10531_v22, %v17988_v59  ;;  %v10636_v22 = vmax.f32 %v10526_v45, 0.0 }
 0x926   : > { %v10533_v24 = vpop.f32.mrf.mxu0 }
 0x927   : > { %v10534_v1 = vadd.f32 %v10533_v24, %v17981_v8  ;;  %v10640_v63 = vmax.f32 %v10532_v28, 0.0 }
 0x928   : > { %v10535_v2 = vpop.f32.mrf.mxu0 }
 0x929   : > { %v10536_v25 = vadd.f32 %v10535_v2, %v17981_v8  ;;  %v10643_v33 = vmax.f32 %v10534_v1, 0.0 }
 0x92a   : > { %v10539_v49 = vpop.f32.mrf.mxu0 }
 0x92b   : > { %v10540_v19 = vadd.f32 %v10539_v49, %v17972_v37  ;;  %v10644_v46 = vmax.f32 %v10536_v25, 0.0  ;;  %v10520_v49 = vadd.f32 %v17954_v36, %v17998_v6 }
 0x92c   : > { %v10541_v16 = vpop.f32.mrf.mxu0 }
 0x92d   : > { %v17960_v56 = vpop.f32.mrf.mxu1  ;;  %v10542_v39 = vadd.f32 %v10541_v16, %v17972_v37  ;;  %v10647_v50 = vmax.f32 %v10540_v19, 0.0  ;;  %v10669_v24 = vpack.c.bf16 %v10644_v46, %v10640_v63  ;;  %v10639_v16 = vmax.f32 %v10530_v14, 0.0 }
 0x92e   : > { %v10543_v13 = vpop.f32.mrf.mxu0 }
 0x92f   : > { %v17964_v17 = vpop.f32.mrf.mxu1  ;;  %v10544_v48 = vadd.f32 %v10543_v13, %v17968_v34  ;;  %v10648_v31 = vmax.f32 %v10542_v39, 0.0 }
 0x930   : > { %v10545_v52 = vpop.f32.mrf.mxu0 }
 0x931   : > { %v17966_v23 = vpop.f32.mrf.mxu1  ;;  %v10546_v38 = vadd.f32 %v10545_v52, %v17968_v34  ;;  %v10651_v61 = vmax.f32 %v10544_v48, 0.0  ;;  %v10668_v52 = vpack.c.bf16 %v10643_v33, %v10639_v16  ;;  %v10663_v48 = vld [vmem:[%s18052_s11] sm:$0x3] }
 0x932   : > { %v10549_v12 = vpop.f32.mrf.mxu0 }
 0x933   : > { %v17970_v43 = vpop.f32.mrf.mxu1  ;;  %v10550_v0 = vadd.f32 %v10549_v12, %v17962_v47  ;;  %v10652_v62 = vmax.f32 %v10546_v38, 0.0  ;;  %v10672_v10 = vpack.c.bf16 %v10651_v61, %v10647_v50  ;;  %v10665_v12 = vpack.c.bf16 %v10636_v22, %v10632_v20 }
 0x934   : > { %v10551_v55 = vpop.f32.mrf.mxu0 }
 0x935   : > { %v17974_v41 = vpop.f32.mrf.mxu1  ;;  %v10552_v26 = vadd.f32 %v10551_v55, %v17962_v47  ;;  %v10655_v4 = vmax.f32 %v10550_v0, 0.0  ;;  %v10673_v18 = vpack.c.bf16 %v10652_v62, %v10648_v31 }
 0x936   : > { %v10553_v54 = vpop.f32.mrf.mxu0 }
 0x937   : > { %v17976_v27 = vpop.f32.mrf.mxu1  ;;  %v10554_v51 = vadd.f32 %v10553_v54, %v17958_v15  ;;  %v10656_v44 = vmax.f32 %v10552_v26, 0.0  ;;  %v10631_v54 = vmax.f32 %v10520_v49, 0.0 }
 0x938   : > { %v10555_v9 = vpop.f32.mrf.mxu0 }
 0x939   : > { %v17984_v3 = vpop.f32.mrf.mxu1  ;;  %v10556_v11 = vadd.f32 %v10555_v9, %v17958_v15  ;;  %v10659_v35 = vmax.f32 %v10554_v51, 0.0  ;;  %v10664_v38 = vpack.c.bf16 %v10635_v57, %v10631_v54 }
 0x93b   : > { %v10608_v53 = vpop.f32.mrf.mxu1  ;;  %v10660_v60 = vmax.f32 %v10556_v11, 0.0  ;;  %v10676_v40 = vpack.c.bf16 %v10659_v35, %v10655_v4 }
 0x93c   : > { %v10609_v62 = vadd.f32 %v10608_v53, %v17981_v8  ;;  %v10599_v53 = vadd.f32 %v17970_v43, %v17994_v21 }
 0x93d   : > { %v10612_v30 = vpop.f32.mrf.mxu1  ;;  %v10677_v32 = vpack.c.bf16 %v10660_v60, %v10656_v44 }
 0x93e   : > { %v10646_v61 = vmax.f32 %v10609_v62, 0.0 }
 0x93f   : > { %v10614_v58 = vpop.f32.mrf.mxu1  ;;  %10697 = vmatprep.subr.bf16.mxu0 %v10677_v32  ;;  %v10607_v32 = vadd.f32 %v17984_v3, %v17981_v8  ;;  %v10597_v8 = vadd.f32 %v17966_v23, %v17994_v21  ;;  %v10684_v21 = vpop.permute.xlu0 %10683 }
 0x940   : > { %10698 = vmatpush1.bf16.msra.mxu0 %v10676_v40  ;;  %v10615_v39 = vadd.f32 %v10614_v58, %v17972_v37  ;;  %v10638_v58 = vmax.f32 %v10599_v53, 0.0 }
 0x941   : > { %v10616_v5 = vpop.f32.mrf.mxu1  ;;  %10699 = vmatprep.subr.bf16.mxu0 %v10673_v18  ;;  %v10645_v3 = vmax.f32 %v10607_v32, 0.0  ;;  %v10593_v18 = vadd.f32 %v17960_v56, %v17998_v6 }
 0x942   : > { %v10617_v35 = vadd.f32 %v10616_v5, %v17968_v34  ;;  %v10650_v28 = vmax.f32 %v10615_v39, 0.0 }
 0x943   : > { %v10618_v2 = vpop.f32.mrf.mxu1  ;;  %v10633_v42 = vmax.f32 %v10593_v18, 0.0 }
 0x944   : > { %10700 = vmatpush1.bf16.msra.mxu0 %v10672_v10  ;;  %v10619_v26 = vadd.f32 %v10618_v2, %v17968_v34  ;;  %v10653_v34 = vmax.f32 %v10617_v35, 0.0 }
 0x945   : > { %v10622_v13 = vpop.f32.mrf.mxu1  ;;  %10701 = vmatprep.subr.bf16.mxu0 %v10669_v24 }
 0x946   : > { %v10623_v0 = vadd.f32 %v10622_v13, %v17962_v47  ;;  %v10654_v44 = vmax.f32 %v10619_v26, 0.0 }
 0x947   : > { %v10624_v55 = vpop.f32.mrf.mxu1 }
 0x948   : > { %10702 = vmatpush1.bf16.msra.mxu0 %v10668_v52  ;;  %v10625_v51 = vadd.f32 %v10624_v55, %v17962_v47  ;;  %v10613_v47 = vadd.f32 %v10612_v30, %v17972_v37  ;;  %v10657_v4 = vmax.f32 %v10623_v0, 0.0  ;;  %v10675_v40 = vpack.c.bf16 %v10654_v44, %v10650_v28 }
 0x949   : > { %v10626_v7 = vpop.f32.mrf.mxu1  ;;  %10703 = vmatprep.subr.bf16.mxu0 %v10665_v12  ;;  %v10603_v37 = vadd.f32 %v17974_v41, %v17988_v59 }
 0x94a   : > { %v10627_v36 = vadd.f32 %v10626_v7, %v17958_v15  ;;  %v10658_v60 = vmax.f32 %v10625_v51, 0.0  ;;  %v10649_v30 = vmax.f32 %v10613_v47, 0.0 }
 0x94b   : > { %v10628_v9 = vpop.f32.mrf.mxu1  ;;  %v10641_v14 = vmax.f32 %v10603_v37, 0.0 }
 0x94c   : > { %v10629_v11 = vadd.f32 %v10628_v9, %v17958_v15  ;;  %10704 = vmatpush1.bf16.msra.mxu0 %v10664_v38  ;;  %v10661_v25 = vmax.f32 %v10627_v36, 0.0  ;;  %v10605_v15 = vadd.f32 %v17976_v27, %v17988_v59  ;;  %v10595_v27 = vadd.f32 %v17964_v17, %v17998_v6 }
 0x94d   : > { %v10674_v46 = vpack.c.bf16 %v10653_v34, %v10649_v30  ;;  %v10637_v59 = vmax.f32 %v10597_v8, 0.0  ;;  %v10670_v50 = vpack.c.bf16 %v10645_v3, %v10641_v14 }
 0x94e   : > { %v10662_v19 = vmax.f32 %v10629_v11, 0.0  ;;  %v10678_v1 = vpack.c.bf16 %v10661_v25, %v10657_v4  ;;  %v10642_v45 = vmax.f32 %v10605_v15, 0.0  ;;  %v10634_v41 = vmax.f32 %v10595_v27, 0.0 }
 0x94f   : > { %11288 = vmatmul.mubr.msk.bf16.vlgmr.msra.gmra.mxu0 %vm19513_vm12, %v10663_v48  ;;  %v10666_v63 = vpack.c.bf16 %v10637_v59, %v10633_v42 }
 0x950   : > { %v10679_v31 = vpack.c.bf16 %v10662_v19, %v10658_v60  ;;  %v10671_v43 = vpack.c.bf16 %v10646_v61, %v10642_v45  ;;  %v10667_v17 = vpack.c.bf16 %v10638_v58, %v10634_v41 }
 0x952   : > { %10738 = vmatprep.subr.bf16.mxu1 %v10679_v31 }
 0x953   : > { %10739 = vmatpush1.bf16.msra.mxu1 %v10678_v1 }
 0x954   : > { %10740 = vmatprep.subr.bf16.mxu1 %v10675_v40 }
 0x957   : > { %10741 = vmatpush1.bf16.msra.mxu1 %v10674_v46 }
 0x958   : > { %10742 = vmatprep.subr.bf16.mxu1 %v10671_v43 }
 0x95b   : > { %10743 = vmatpush1.bf16.msra.mxu1 %v10670_v50 }
 0x95c   : > { %10744 = vmatprep.subr.bf16.mxu1 %v10667_v17 }
 0x95f   : > { %10745 = vmatpush1.bf16.msra.mxu1 %v10666_v63 }
 0x962   : > { %11289 = vmatmul.mubr.msk.bf16.vlgmr.msra.gmra.mxu1 %vm19514_vm13, %v10663_v48 }
 0xa0f   : > { %v10723_v23 = vpop.f32.mrf.mxu0 }
 0xa10   : > { %v10724_v29 = vadd.f32 %v10723_v23, %v10684_v21 }
 0xa11   : > { %v10725_v5 = vpop.f32.mrf.mxu0 }
 0xa12   : > { %v10726_v56 = vadd.f32 %v10725_v5, %v10684_v21 }
 0xa13   : > { %v10727_v6 = vpop.f32.mrf.mxu0 }
 0xa14   : > { %v10775_v33 = vcombine.low %v10724_v29, %v10726_v56 }
 0xa15   : > { %v10728_v10 = vpop.f32.mrf.mxu0 }
 0xa16   : > { %10779 = vst [vmem:[%s442_s24] sm:$0x77] %v10775_v33 }
 0xa22   : > { %v10764_v22 = vpop.f32.mrf.mxu1 }
 0xa23   : > { %v10765_v2 = vadd.f32 %v10764_v22, %v10684_v21 }
 0xa24   : > { %v10766_v24 = vpop.f32.mrf.mxu1 }
 0xa25   : > { %v10767_v49 = vadd.f32 %v10766_v24, %v10684_v21 }
 0xa26   : > { %v10768_v16 = vpop.f32.mrf.mxu1 }
 0xa27   : > { %v10776_v20 = vcombine.low %v10765_v2, %v10767_v49 }
 0xa28   : > { %v10769_v13 = vpop.f32.mrf.mxu1 }
 0xa29   : > { %10780 = vst [vmem:[%s442_s24 + $0x8] sm:$0x77] %v10776_v20 }
 0xa2a PF: > { %s23_s25 = sadd.s32 1, %s11648_s25  }
 0xa2b   : > { %p20_p4 = scmp.ge.s32.totalorder %s23_s25, 4  }
 0xa2d   :  { %22 = sbr.rel (!%p20_p4) target bundleno = 1 (0x1), region = 106 }

</bundles_post_ra>
